<compile_context>
chip_gen: v7x
topology: tpu7x:2x2x1
jax: 0.10.0
libtpu: 0.0.40
codegen_flags: <defaults>
</compile_context>

<pallas_src>
import jax
import jax.numpy as jnp
from jax import lax
from jax.experimental import pallas as pl
from jax.experimental.pallas import tpu as pltpu

# ---------------- model dimensions (fixed by the PyTorch module) ------------
L_IN = 100                    # input length implied by view(-1, 46*120)
C1, C2, C3 = 30, 60, 120
K2 = K3 = 5
L2 = L_IN - K2 + 1            # 96
L3 = L2 - K3 + 1              # 92
L_POOL = L3 // 2              # 46
HID = 1000
N_CLS = 6
BN_EPS = 1e-5

# ---------------- kernel-side padded dimensions -----------------------------
L_A1 = 104                    # per-sample rows in the conv kernel (>= L2+K3-1, mult of 8)
KA = 8                        # taps of the folded first conv, padded 5 -> 8
L3P = 96                      # conv-b rows per sample (>= L3, mult of 8)
L_POOLP = L3P // 2            # 48  (rows 46,47 are junk; FC weight has zeros there)
K_FC = L_POOLP * C3           # 5760 = 45 * 128  (flattened feature dim, lane aligned)
TK = 1920                     # FC reduction tile (15*128)  -> 3 K-steps
HID_PAD = 1024                # 1000 -> 1024 (128 aligned)
H_BLOCKS = 2                  # parallel HID blocks (megacore on v7x)
H_TILE = HID_PAD // H_BLOCKS  # 512


# =====================  kernel 1: fused conv stack + BN + ReLU + maxpool ====
def _conv_kernel(a1_ref, wa_ref, ba_ref, wb_ref, bb_ref, o_ref, hs_ref):
    b = a1_ref.shape[0]                                    # batch tile (static)

    # folded Conv1d(1,60,k=5): im2col rows were built in the wrapper.
    a1 = a1_ref[...].reshape(b * L_A1, KA)                 # (b*104, 8)
    h2 = jnp.dot(a1, wa_ref[...],
                 preferred_element_type=jnp.float32) + ba_ref[...]   # (b*104, 60)
    h2 = h2.reshape(b, L_A1, C2)

    # Conv1d(60,120,k=5) with BatchNorm folded in; accumulate in VMEM scratch.
    # (rows = b*96 per tile; each dot has a large M so the MXU stays busy)
    hs_ref[...] = jnp.dot(h2[:, 0:L3P, :].reshape(b * L3P, C2), wb_ref[0],
                          preferred_element_type=jnp.float32)
    for k in range(1, K3):
        hs_ref[...] += jnp.dot(h2[:, k:k + L3P, :].reshape(b * L3P, C2), wb_ref[k],
                               preferred_element_type=jnp.float32)

    # bias(+BN shift), ReLU; Dropout -> identity (inference)
    hs_ref[...] = jnp.maximum(hs_ref[...] + bb_ref[...], 0.0)

    # MaxPool1d(2,2): pair-max over even/odd rows (sublane-strided reads).
    even = hs_ref[pl.ds(0, b * L_POOLP, stride=2), :]      # rows 0,2,4,...
    odd = hs_ref[pl.ds(1, b * L_POOLP, stride=2), :]       # rows 1,3,5,...
    o_ref[...] = jnp.maximum(even, odd).reshape(b, L_POOLP, C3)


def conv_stage(a1, wa, ba, wb, bb, b_tile):
    n_pad = a1.shape[0]
    return pl.pallas_call(
        _conv_kernel,
        out_shape=jax.ShapeDtypeStruct((n_pad, L_POOLP, C3), jnp.float32),
        grid=(n_pad // b_tile,),
        in_specs=[pl.BlockSpec((b_tile, L_A1, KA), lambda i: (i, 0, 0)),
                  pl.BlockSpec((KA, C2), lambda i: (0, 0)),
                  pl.BlockSpec((1, C2), lambda i: (0, 0)),
                  pl.BlockSpec((K3, C2, C3), lambda i: (0, 0, 0)),
                  pl.BlockSpec((1, C3), lambda i: (0, 0))],
        out_specs=pl.BlockSpec((b_tile, L_POOLP, C3), lambda i: (i, 0, 0)),
        scratch_shapes=[pltpu.VMEM((b_tile * L3P, C3), jnp.float32)],
        compiler_params=pltpu.CompilerParams(
            dimension_semantics=("parallel",),
            vmem_limit_bytes=32 * 1024 * 1024),
    )(a1, wa, ba, wb, bb)


# =====================  kernel 2: FC head (Linear-ReLU-Linear)  =============
def _fc_kernel(x_ref, w1_ref, b1_ref, w2_ref, o_ref, acc_ref):
    k = pl.program_id(1)

    @pl.when(k == 0)
    def _():
        acc_ref[...] = jnp.zeros_like(acc_ref)

    # fw1 is streamed in bf16; accumulate in f32 on the MXU.
    acc_ref[...] += jnp.dot(x_ref[...].astype(jnp.bfloat16), w1_ref[...],
                            preferred_element_type=jnp.float32)

    @pl.when(k == pl.num_programs(1) - 1)
    def _():
        h = jnp.maximum(acc_ref[...] + b1_ref[...], 0.0)   # ReLU; Dropout -> identity
        o_ref[0] = jnp.dot(h, w2_ref[...], preferred_element_type=jnp.float32)


def fc_stage(x_fc, w1t, b1r, w2t):
    n_pad = x_fc.shape[0]
    return pl.pallas_call(
        _fc_kernel,
        out_shape=jax.ShapeDtypeStruct((H_BLOCKS, n_pad, N_CLS), jnp.float32),
        grid=(H_BLOCKS, K_FC // TK),
        in_specs=[pl.BlockSpec((n_pad, TK), lambda h, k: (0, k)),
                  pl.BlockSpec((TK, H_TILE), lambda h, k: (k, h)),
                  pl.BlockSpec((1, H_TILE), lambda h, k: (0, h)),
                  pl.BlockSpec((H_TILE, N_CLS), lambda h, k: (h, 0))],
        out_specs=pl.BlockSpec((1, n_pad, N_CLS), lambda h, k: (h, 0, 0)),
        scratch_shapes=[pltpu.VMEM((n_pad, H_TILE), jnp.float32)],
        compiler_params=pltpu.CompilerParams(
            dimension_semantics=("parallel", "arbitrary"),
            vmem_limit_bytes=32 * 1024 * 1024),
    )(x_fc, w1t, b1r, w2t)


# =====================  one-time parameter preparation  =====================
def prepare_params(p):
    """Fold conv1 into conv2 and BN into conv3; permute/pad/transpose/bf16 the
    FC weights.  Called ONCE -- nothing here runs per forward call."""
    f32 = jnp.float32
    w1, b1 = p['w1'].astype(f32), p['b1'].astype(f32)
    w2, b2 = p['w2'].astype(f32), p['b2'].astype(f32)
    w3, b3 = p['w3'].astype(f32), p['b3'].astype(f32)

    # Conv1d(1,30,k=1) o Conv1d(30,60,k=5)  ==  Conv1d(1,60,k=5)   (exact)
    wA = jnp.einsum('ock,c->ok', w2, w1[:, 0, 0])                 # (60, 5)
    bA = b2 + jnp.einsum('ock,c->o', w2, b1)                      # (60,)
    # BatchNorm1d (eval / running stats) folded into Conv1d(60,120,k=5)  (exact)
    scale = p['gamma'].astype(f32) * lax.rsqrt(p['var'].astype(f32) + BN_EPS)
    wB = w3 * scale[:, None, None]                                # (120, 60, 5)
    bB = (b3 - p['mean'].astype(f32)) * scale + p['beta'].astype(f32)

    wa = jnp.zeros((KA, C2), f32).at[:K2, :].set(wA.T)            # (8, 60)
    wb = jnp.transpose(wB, (2, 1, 0))                             # (5, 60, 120)

    # FC1: permute torch feature order (c*46+p) to kernel order (p*120+c),
    # zero-pad p 46->48 and HID 1000->1024, transpose, store in bf16.
    w1fc = p['fw1'].astype(f32).reshape(HID, C3, L_POOL)          # [h, c, p]
    w1fc = jnp.transpose(w1fc, (0, 2, 1))                         # [h, p, c]
    w1fc = jnp.pad(w1fc, ((0, HID_PAD - HID), (0, L_POOLP - L_POOL), (0, 0)))
    w1t = w1fc.reshape(HID_PAD, K_FC).T.astype(jnp.bfloat16)      # (5760, 1024)
    b1fc = jnp.pad(p['fb1'].astype(f32), (0, HID_PAD - HID))[None, :]   # (1, 1024)
    w2t = jnp.pad(p['fw2'].astype(f32).T, ((0, HID_PAD - HID), (0, 0)))  # (1024, 6)

    return dict(wa=wa, ba=bA[None, :], wb=wb, bb=bB[None, :],
                w1t=w1t, b1=b1fc, w2t=w2t, b2=p['fb2'].astype(f32)[None, :])


# =====================  forward wrapper  ====================================
def _build_a1(x2, n_pad):
    """im2col rows for the folded first conv: a1[b, l, k] = x[b, l+k] (0 padded)."""
    xp = jnp.pad(x2, ((0, n_pad - x2.shape[0]), (0, 0)))            # (n_pad, 100)
    cols = [jnp.pad(xp[:, k:], ((0, 0), (0, L_A1 - (L_IN - k)))) for k in range(K2)]
    cols += [jnp.zeros((n_pad, L_A1), jnp.float32)] * (KA - K2)
    return jnp.stack(cols, axis=-1)                                 # (n_pad, 104, 8)


@jax.jit
def cnn_forward(x, prep):
    n = x.shape[0]
    b_tile = min(16, ((n + 7) // 8) * 8)
    n_pad = ((n + b_tile - 1) // b_tile) * b_tile

    a1 = _build_a1(x[:, 0, :].astype(jnp.float32), n_pad)
    pooled = conv_stage(a1, prep['wa'], prep['ba'], prep['wb'], prep['bb'], b_tile)
    x_fc = pooled.reshape(n_pad, K_FC)                 # contiguous, 128-aligned K
    parts = fc_stage(x_fc, prep['w1t'], prep['b1'], prep['w2t'])   # (2, n_pad, 6)
    logits = parts.sum(axis=0) + prep['b2']
    return logits[:n]


# =====================  parameter init & plain-JAX reference  ===============
def init_params(key):
    ks = jax.random.split(key, 14)

    def rnd(k, shape, scale=0.1):
        return scale * jax.random.normal(k, shape, jnp.float32)

    return dict(
        w1=rnd(ks[0], (C1, 1, 1)),    b1=rnd(ks[1], (C1,)),
        w2=rnd(ks[2], (C2, C1, K2)),  b2=rnd(ks[3], (C2,)),
        w3=rnd(ks[4], (C3, C2, K3)),  b3=rnd(ks[5], (C3,)),
        gamma=1.0 + rnd(ks[6], (C3,)), beta=rnd(ks[7], (C3,)),
        mean=rnd(ks[8], (C3,)),       var=jnp.abs(rnd(ks[9], (C3,))) + 0.5,
        fw1=rnd(ks[10], (HID, C3 * L_POOL), 0.02), fb1=rnd(ks[11], (HID,), 0.02),
        fw2=rnd(ks[12], (N_CLS, HID), 0.02), fb2=rnd(ks[13], (N_CLS,), 0.02),
    )


def _conv1d_ref(x, w, b):
    k_sz = w.shape[2]
    lout = x.shape[2] - k_sz + 1
    acc = jnp.zeros((x.shape[0], w.shape[0], lout), jnp.float32)
    for k in range(k_sz):
        acc = acc + jnp.einsum('ncl,oc->nol', x[:, :, k:k + lout], w[:, :, k])
    return acc + b[None, :, None]


def cnn_forward_ref(x, p):
    n = x.shape[0]
    h = _conv1d_ref(x, p['w1'], p['b1'])
    h = _conv1d_ref(h, p['w2'], p['b2'])
    h = _conv1d_ref(h, p['w3'], p['b3'])
    scale = p['gamma'] / jnp.sqrt(p['var'] + BN_EPS)
    h = (h - p['mean'][None, :, None]) * scale[None, :, None] + p['beta'][None, :, None]
    h = jnp.maximum(h, 0.0)
    h = h.reshape(n, C3, L_POOL, 2).max(axis=-1)
    h = h.reshape(n, C3 * L_POOL)
    h = jnp.maximum(h @ p['fw1'].T + p['fb1'], 0.0)
    return h @ p['fw2'].T + p['fb2']


if __name__ == "__main__":
    key = jax.random.PRNGKey(0)
    k_param, k_x = jax.random.split(key)
    params = init_params(k_param)
    prep = prepare_params(params)          # one-time weight prep (fold/pad/bf16)
    x = jax.random.normal(k_x, (2, 1, L_IN), jnp.float32)   # (batch, channels=1, length=100)

    out = jax.block_until_ready(cnn_forward(x, prep))
    ref = cnn_forward_ref(x, params)

    assert out.shape == (2, N_CLS)
    # bf16 streaming of fw1 introduces ~1e-3 relative error; well inside 1e-2.
    assert jnp.allclose(out, ref, rtol=1e-2, atol=1e-2), "mismatch vs reference"
    print("KERNEL_OK")
</pallas_src>

<mosaic_0001>
module attributes {stable_mosaic.version = 11 : i64} {
  func.func @_conv_kernel(%arg0: i32, %arg1: memref<8x104x8xf32, #tpu.memory_space<vmem>>, %arg2: memref<8x60xf32, #tpu.memory_space<vmem>>, %arg3: memref<1x60xf32, #tpu.memory_space<vmem>>, %arg4: memref<5x60x120xf32, #tpu.memory_space<vmem>>, %arg5: memref<1x120xf32, #tpu.memory_space<vmem>>, %arg6: memref<8x48x120xf32, #tpu.memory_space<vmem>>, %arg7: memref<768x120xf32, #tpu.memory_space<vmem>>) attributes {dimension_semantics = [#tpu.dimension_semantics<parallel>], iteration_bounds = array<i64: 1>, scalar_prefetch = 0 : i64, scratch_operands = 1 : i64, tpu.core_type = #tpu.core_type<tc>, window_params = [{transform_indices = @transform_0, window_bounds = array<i64: 8, 104, 8>}, {pipeline_mode = #tpu.pipeline_mode<synchronous>, transform_indices = @transform_1, window_bounds = array<i64: 8, 60>}, {pipeline_mode = #tpu.pipeline_mode<synchronous>, transform_indices = @transform_2, window_bounds = array<i64: 1, 60>}, {pipeline_mode = #tpu.pipeline_mode<synchronous>, transform_indices = @transform_3, window_bounds = array<i64: 5, 60, 120>}, {pipeline_mode = #tpu.pipeline_mode<synchronous>, transform_indices = @transform_4, window_bounds = array<i64: 1, 120>}, {transform_indices = @transform_5, window_bounds = array<i64: 8, 48, 120>}]} {
    %c0 = arith.constant 0 : index
    %c0_0 = arith.constant 0 : index
    %c0_1 = arith.constant 0 : index
    %0 = vector.load %arg1[%c0, %c0_0, %c0_1] : memref<8x104x8xf32, #tpu.memory_space<vmem>>, vector<8x104x8xf32>
    %1 = vector.shape_cast %0 : vector<8x104x8xf32> to vector<832x8xf32>
    %c0_2 = arith.constant 0 : index
    %c0_3 = arith.constant 0 : index
    %2 = vector.load %arg2[%c0_2, %c0_3] : memref<8x60xf32, #tpu.memory_space<vmem>>, vector<8x60xf32>
    %cst = arith.constant dense<0.000000e+00> : vector<832x60xf32>
    %3 = tpu.matmul %1, %2, %cst {dimension_numbers = #tpu.dot_dimension_numbers<[1], [0], [0], [1], [0, 0, 1, 1], [], []>} : vector<832x8xf32>, vector<8x60xf32>, vector<832x60xf32> -> vector<832x60xf32>
    %c0_4 = arith.constant 0 : index
    %c0_5 = arith.constant 0 : index
    %4 = vector.load %arg3[%c0_4, %c0_5] : memref<1x60xf32, #tpu.memory_space<vmem>>, vector<1x60xf32>
    %5 = vector.broadcast %4 : vector<1x60xf32> to vector<832x60xf32>
    %6 = arith.addf %3, %5 : vector<832x60xf32>
    %7 = vector.shape_cast %6 : vector<832x60xf32> to vector<8x104x60xf32>
    %8 = vector.extract_strided_slice %7 {offsets = [0, 0, 0], sizes = [8, 96, 60], strides = [1, 1, 1]} : vector<8x104x60xf32> to vector<8x96x60xf32>
    %9 = vector.shape_cast %8 : vector<8x96x60xf32> to vector<768x60xf32>
    %c0_6 = arith.constant 0 : index
    %c0_7 = arith.constant 0 : index
    %c0_8 = arith.constant 0 : index
    %10 = vector.load %arg4[%c0_6, %c0_7, %c0_8] : memref<5x60x120xf32, #tpu.memory_space<vmem>>, vector<1x60x120xf32>
    %11 = vector.shape_cast %10 : vector<1x60x120xf32> to vector<60x120xf32>
    %cst_9 = arith.constant dense<0.000000e+00> : vector<768x120xf32>
    %12 = tpu.matmul %9, %11, %cst_9 {dimension_numbers = #tpu.dot_dimension_numbers<[1], [0], [0], [1], [0, 0, 1, 1], [], []>} : vector<768x60xf32>, vector<60x120xf32>, vector<768x120xf32> -> vector<768x120xf32>
    %c0_10 = arith.constant 0 : index
    %c0_11 = arith.constant 0 : index
    %13 = vector.load %arg7[%c0_10, %c0_11] : memref<768x120xf32, #tpu.memory_space<vmem>>, vector<768x120xf32>
    tpu.vector_store %arg7[%c0_10, %c0_11], %12 {strides = array<i32>} : memref<768x120xf32, #tpu.memory_space<vmem>>, vector<768x120xf32>,
    %c0_12 = arith.constant 0 : index
    %c0_13 = arith.constant 0 : index
    %14 = vector.load %arg7[%c0_12, %c0_13] : memref<768x120xf32, #tpu.memory_space<vmem>>, vector<768x120xf32>
    %15 = vector.extract_strided_slice %7 {offsets = [0, 1, 0], sizes = [8, 96, 60], strides = [1, 1, 1]} : vector<8x104x60xf32> to vector<8x96x60xf32>
    %16 = vector.shape_cast %15 : vector<8x96x60xf32> to vector<768x60xf32>
    %c1 = arith.constant 1 : index
    %c0_14 = arith.constant 0 : index
    %c0_15 = arith.constant 0 : index
    %17 = vector.load %arg4[%c1, %c0_14, %c0_15] : memref<5x60x120xf32, #tpu.memory_space<vmem>>, vector<1x60x120xf32>
    %18 = vector.shape_cast %17 : vector<1x60x120xf32> to vector<60x120xf32>
    %cst_16 = arith.constant dense<0.000000e+00> : vector<768x120xf32>
    %19 = tpu.matmul %16, %18, %cst_16 {dimension_numbers = #tpu.dot_dimension_numbers<[1], [0], [0], [1], [0, 0, 1, 1], [], []>} : vector<768x60xf32>, vector<60x120xf32>, vector<768x120xf32> -> vector<768x120xf32>
    %20 = arith.addf %14, %19 : vector<768x120xf32>
    %c0_17 = arith.constant 0 : index
    %c0_18 = arith.constant 0 : index
    %21 = vector.load %arg7[%c0_17, %c0_18] : memref<768x120xf32, #tpu.memory_space<vmem>>, vector<768x120xf32>
    tpu.vector_store %arg7[%c0_17, %c0_18], %20 {strides = array<i32>} : memref<768x120xf32, #tpu.memory_space<vmem>>, vector<768x120xf32>,
    %c0_19 = arith.constant 0 : index
    %c0_20 = arith.constant 0 : index
    %22 = vector.load %arg7[%c0_19, %c0_20] : memref<768x120xf32, #tpu.memory_space<vmem>>, vector<768x120xf32>
    %23 = vector.extract_strided_slice %7 {offsets = [0, 2, 0], sizes = [8, 96, 60], strides = [1, 1, 1]} : vector<8x104x60xf32> to vector<8x96x60xf32>
    %24 = vector.shape_cast %23 : vector<8x96x60xf32> to vector<768x60xf32>
    %c2 = arith.constant 2 : index
    %c0_21 = arith.constant 0 : index
    %c0_22 = arith.constant 0 : index
    %25 = vector.load %arg4[%c2, %c0_21, %c0_22] : memref<5x60x120xf32, #tpu.memory_space<vmem>>, vector<1x60x120xf32>
    %26 = vector.shape_cast %25 : vector<1x60x120xf32> to vector<60x120xf32>
    %cst_23 = arith.constant dense<0.000000e+00> : vector<768x120xf32>
    %27 = tpu.matmul %24, %26, %cst_23 {dimension_numbers = #tpu.dot_dimension_numbers<[1], [0], [0], [1], [0, 0, 1, 1], [], []>} : vector<768x60xf32>, vector<60x120xf32>, vector<768x120xf32> -> vector<768x120xf32>
    %28 = arith.addf %22, %27 : vector<768x120xf32>
    %c0_24 = arith.constant 0 : index
    %c0_25 = arith.constant 0 : index
    %29 = vector.load %arg7[%c0_24, %c0_25] : memref<768x120xf32, #tpu.memory_space<vmem>>, vector<768x120xf32>
    tpu.vector_store %arg7[%c0_24, %c0_25], %28 {strides = array<i32>} : memref<768x120xf32, #tpu.memory_space<vmem>>, vector<768x120xf32>,
    %c0_26 = arith.constant 0 : index
    %c0_27 = arith.constant 0 : index
    %30 = vector.load %arg7[%c0_26, %c0_27] : memref<768x120xf32, #tpu.memory_space<vmem>>, vector<768x120xf32>
    %31 = vector.extract_strided_slice %7 {offsets = [0, 3, 0], sizes = [8, 96, 60], strides = [1, 1, 1]} : vector<8x104x60xf32> to vector<8x96x60xf32>
    %32 = vector.shape_cast %31 : vector<8x96x60xf32> to vector<768x60xf32>
    %c3 = arith.constant 3 : index
    %c0_28 = arith.constant 0 : index
    %c0_29 = arith.constant 0 : index
    %33 = vector.load %arg4[%c3, %c0_28, %c0_29] : memref<5x60x120xf32, #tpu.memory_space<vmem>>, vector<1x60x120xf32>
    %34 = vector.shape_cast %33 : vector<1x60x120xf32> to vector<60x120xf32>
    %cst_30 = arith.constant dense<0.000000e+00> : vector<768x120xf32>
    %35 = tpu.matmul %32, %34, %cst_30 {dimension_numbers = #tpu.dot_dimension_numbers<[1], [0], [0], [1], [0, 0, 1, 1], [], []>} : vector<768x60xf32>, vector<60x120xf32>, vector<768x120xf32> -> vector<768x120xf32>
    %36 = arith.addf %30, %35 : vector<768x120xf32>
    %c0_31 = arith.constant 0 : index
    %c0_32 = arith.constant 0 : index
    %37 = vector.load %arg7[%c0_31, %c0_32] : memref<768x120xf32, #tpu.memory_space<vmem>>, vector<768x120xf32>
    tpu.vector_store %arg7[%c0_31, %c0_32], %36 {strides = array<i32>} : memref<768x120xf32, #tpu.memory_space<vmem>>, vector<768x120xf32>,
    %c0_33 = arith.constant 0 : index
    %c0_34 = arith.constant 0 : index
    %38 = vector.load %arg7[%c0_33, %c0_34] : memref<768x120xf32, #tpu.memory_space<vmem>>, vector<768x120xf32>
    %39 = vector.extract_strided_slice %7 {offsets = [0, 4, 0], sizes = [8, 96, 60], strides = [1, 1, 1]} : vector<8x104x60xf32> to vector<8x96x60xf32>
    %40 = vector.shape_cast %39 : vector<8x96x60xf32> to vector<768x60xf32>
    %c4 = arith.constant 4 : index
    %c0_35 = arith.constant 0 : index
    %c0_36 = arith.constant 0 : index
    %41 = vector.load %arg4[%c4, %c0_35, %c0_36] : memref<5x60x120xf32, #tpu.memory_space<vmem>>, vector<1x60x120xf32>
    %42 = vector.shape_cast %41 : vector<1x60x120xf32> to vector<60x120xf32>
    %cst_37 = arith.constant dense<0.000000e+00> : vector<768x120xf32>
    %43 = tpu.matmul %40, %42, %cst_37 {dimension_numbers = #tpu.dot_dimension_numbers<[1], [0], [0], [1], [0, 0, 1, 1], [], []>} : vector<768x60xf32>, vector<60x120xf32>, vector<768x120xf32> -> vector<768x120xf32>
    %44 = arith.addf %38, %43 : vector<768x120xf32>
    %c0_38 = arith.constant 0 : index
    %c0_39 = arith.constant 0 : index
    %45 = vector.load %arg7[%c0_38, %c0_39] : memref<768x120xf32, #tpu.memory_space<vmem>>, vector<768x120xf32>
    tpu.vector_store %arg7[%c0_38, %c0_39], %44 {strides = array<i32>} : memref<768x120xf32, #tpu.memory_space<vmem>>, vector<768x120xf32>,
    %c0_40 = arith.constant 0 : index
    %c0_41 = arith.constant 0 : index
    %46 = vector.load %arg7[%c0_40, %c0_41] : memref<768x120xf32, #tpu.memory_space<vmem>>, vector<768x120xf32>
    %c0_42 = arith.constant 0 : index
    %c0_43 = arith.constant 0 : index
    %47 = vector.load %arg5[%c0_42, %c0_43] : memref<1x120xf32, #tpu.memory_space<vmem>>, vector<1x120xf32>
    %48 = vector.broadcast %47 : vector<1x120xf32> to vector<768x120xf32>
    %49 = arith.addf %46, %48 : vector<768x120xf32>
    %cst_44 = arith.constant 0.000000e+00 : f32
    %50 = vector.broadcast %cst_44 : f32 to vector<768x120xf32>
    %51 = arith.maximumf %49, %50 : vector<768x120xf32>
    %c0_45 = arith.constant 0 : index
    %c0_46 = arith.constant 0 : index
    %52 = vector.load %arg7[%c0_45, %c0_46] : memref<768x120xf32, #tpu.memory_space<vmem>>, vector<768x120xf32>
    tpu.vector_store %arg7[%c0_45, %c0_46], %51 {strides = array<i32>} : memref<768x120xf32, #tpu.memory_space<vmem>>, vector<768x120xf32>,
    %c0_47 = arith.constant 0 : index
    %c0_48 = arith.constant 0 : index
    %53 = tpu.strided_load %arg7[%c0_47, %c0_48] {strides = array<i32: 2, 1>} : memref<768x120xf32, #tpu.memory_space<vmem>>, vector<384x120xf32>
    %c1_49 = arith.constant 1 : index
    %c0_50 = arith.constant 0 : index
    %54 = tpu.strided_load %arg7[%c1_49, %c0_50] {strides = array<i32: 2, 1>} : memref<768x120xf32, #tpu.memory_space<vmem>>, vector<384x120xf32>
    %55 = arith.maximumf %53, %54 : vector<384x120xf32>
    %56 = vector.shape_cast %55 : vector<384x120xf32> to vector<8x48x120xf32>
    %c0_51 = arith.constant 0 : index
    %c0_52 = arith.constant 0 : index
    %c0_53 = arith.constant 0 : index
    %57 = vector.load %arg6[%c0_51, %c0_52, %c0_53] : memref<8x48x120xf32, #tpu.memory_space<vmem>>, vector<8x48x120xf32>
    tpu.vector_store %arg6[%c0_51, %c0_52, %c0_53], %56 {strides = array<i32>} : memref<8x48x120xf32, #tpu.memory_space<vmem>>, vector<8x48x120xf32>,
    return
  }
  func.func @transform_0(%arg0: i32) -> (i32, i32, i32) {
    %c0_i32 = arith.constant 0 : i32
    %c0_i32_0 = arith.constant 0 : i32
    %c0_i32_1 = arith.constant 0 : i32
    return %arg0, %c0_i32, %c0_i32_0 : i32, i32, i32
  }
  func.func @transform_1(%arg0: i32) -> (i32, i32) {
    %c0_i32 = arith.constant 0 : i32
    %c0_i32_0 = arith.constant 0 : i32
    %c0_i32_1 = arith.constant 0 : i32
    return %c0_i32, %c0_i32_0 : i32, i32
  }
  func.func @transform_2(%arg0: i32) -> (i32, i32) {
    %c0_i32 = arith.constant 0 : i32
    %c0_i32_0 = arith.constant 0 : i32
    %c0_i32_1 = arith.constant 0 : i32
    return %c0_i32, %c0_i32_0 : i32, i32
  }
  func.func @transform_3(%arg0: i32) -> (i32, i32, i32) {
    %c0_i32 = arith.constant 0 : i32
    %c0_i32_0 = arith.constant 0 : i32
    %c0_i32_1 = arith.constant 0 : i32
    %c0_i32_2 = arith.constant 0 : i32
    return %c0_i32, %c0_i32_0, %c0_i32_1 : i32, i32, i32
  }
  func.func @transform_4(%arg0: i32) -> (i32, i32) {
    %c0_i32 = arith.constant 0 : i32
    %c0_i32_0 = arith.constant 0 : i32
    %c0_i32_1 = arith.constant 0 : i32
    return %c0_i32, %c0_i32_0 : i32, i32
  }
  func.func @transform_5(%arg0: i32) -> (i32, i32, i32) {
    %c0_i32 = arith.constant 0 : i32
    %c0_i32_0 = arith.constant 0 : i32
    %c0_i32_1 = arith.constant 0 : i32
    return %arg0, %c0_i32, %c0_i32_0 : i32, i32, i32
  }
}

module attributes {stable_mosaic.version = 11 : i64} {
  func.func @_fc_kernel(%arg0: i32, %arg1: i32, %arg2: memref<8x1920xf32, #tpu.memory_space<vmem>>, %arg3: memref<1920x512xbf16, #tpu.memory_space<vmem>>, %arg4: memref<1x512xf32, #tpu.memory_space<vmem>>, %arg5: memref<512x6xf32, #tpu.memory_space<vmem>>, %arg6: memref<1x8x6xf32, #tpu.memory_space<vmem>>, %arg7: memref<8x512xf32, #tpu.memory_space<vmem>>) attributes {dimension_semantics = [#tpu.dimension_semantics<parallel>, #tpu.dimension_semantics<arbitrary>], iteration_bounds = array<i64: 2, 3>, scalar_prefetch = 0 : i64, scratch_operands = 1 : i64, tpu.core_type = #tpu.core_type<tc>, window_params = [{transform_indices = @transform_0, window_bounds = array<i64: 8, 1920>}, {transform_indices = @transform_1, window_bounds = array<i64: 1920, 512>}, {transform_indices = @transform_2, window_bounds = array<i64: 1, 512>}, {transform_indices = @transform_3, window_bounds = array<i64: 512, 6>}, {transform_indices = @transform_4, window_bounds = array<i64: 1, 8, 6>}]} {
    %c0_i32 = arith.constant 0 : i32
    %0 = arith.cmpi eq, %arg1, %c0_i32 : i32
    %1 = arith.extui %0 : i1 to i32
    %c0_i32_0 = arith.constant 0 : i32
    %2 = arith.cmpi ne, %1, %c0_i32_0 : i32
    scf.if %2 {
      %cst_9 = arith.constant 0.000000e+00 : f32
      %13 = vector.broadcast %cst_9 : f32 to vector<8x512xf32>
      %c0_10 = arith.constant 0 : index
      %c0_11 = arith.constant 0 : index
      %14 = vector.load %arg7[%c0_10, %c0_11] : memref<8x512xf32, #tpu.memory_space<vmem>>, vector<8x512xf32>
      tpu.vector_store %arg7[%c0_10, %c0_11], %13 {strides = array<i32>} : memref<8x512xf32, #tpu.memory_space<vmem>>, vector<8x512xf32>,
    } else {
    }
    %c0 = arith.constant 0 : index
    %c0_1 = arith.constant 0 : index
    %3 = vector.load %arg7[%c0, %c0_1] : memref<8x512xf32, #tpu.memory_space<vmem>>, vector<8x512xf32>
    %c0_2 = arith.constant 0 : index
    %c0_3 = arith.constant 0 : index
    %4 = vector.load %arg2[%c0_2, %c0_3] : memref<8x1920xf32, #tpu.memory_space<vmem>>, vector<8x1920xf32>
    %5 = arith.truncf %4 : vector<8x1920xf32> to vector<8x1920xbf16>
    %c0_4 = arith.constant 0 : index
    %c0_5 = arith.constant 0 : index
    %6 = vector.load %arg3[%c0_4, %c0_5] : memref<1920x512xbf16, #tpu.memory_space<vmem>>, vector<1920x512xbf16>
    %cst = arith.constant dense<0.000000e+00> : vector<8x512xf32>
    %7 = tpu.matmul %5, %6, %cst {dimension_numbers = #tpu.dot_dimension_numbers<[1], [0], [0], [1], [0, 0, 1, 1], [], []>} : vector<8x1920xbf16>, vector<1920x512xbf16>, vector<8x512xf32> -> vector<8x512xf32>
    %8 = arith.addf %3, %7 : vector<8x512xf32>
    %c0_6 = arith.constant 0 : index
    %c0_7 = arith.constant 0 : index
    %9 = vector.load %arg7[%c0_6, %c0_7] : memref<8x512xf32, #tpu.memory_space<vmem>>, vector<8x512xf32>
    tpu.vector_store %arg7[%c0_6, %c0_7], %8 {strides = array<i32>} : memref<8x512xf32, #tpu.memory_space<vmem>>, vector<8x512xf32>,
    %c2_i32 = arith.constant 2 : i32
    %10 = arith.cmpi eq, %arg1, %c2_i32 : i32
    %11 = arith.extui %10 : i1 to i32
    %c0_i32_8 = arith.constant 0 : i32
    %12 = arith.cmpi ne, %11, %c0_i32_8 : i32
    scf.if %12 {
      %c0_9 = arith.constant 0 : index
      %c0_10 = arith.constant 0 : index
      %13 = vector.load %arg7[%c0_9, %c0_10] : memref<8x512xf32, #tpu.memory_space<vmem>>, vector<8x512xf32>
      %c0_11 = arith.constant 0 : index
      %c0_12 = arith.constant 0 : index
      %14 = vector.load %arg4[%c0_11, %c0_12] : memref<1x512xf32, #tpu.memory_space<vmem>>, vector<1x512xf32>
      %15 = vector.broadcast %14 : vector<1x512xf32> to vector<8x512xf32>
      %16 = arith.addf %13, %15 : vector<8x512xf32>
      %cst_13 = arith.constant 0.000000e+00 : f32
      %17 = vector.broadcast %cst_13 : f32 to vector<8x512xf32>
      %18 = arith.maximumf %16, %17 : vector<8x512xf32>
      %c0_14 = arith.constant 0 : index
      %c0_15 = arith.constant 0 : index
      %19 = vector.load %arg5[%c0_14, %c0_15] : memref<512x6xf32, #tpu.memory_space<vmem>>, vector<512x6xf32>
      %cst_16 = arith.constant dense<0.000000e+00> : vector<8x6xf32>
      %20 = tpu.matmul %18, %19, %cst_16 {dimension_numbers = #tpu.dot_dimension_numbers<[1], [0], [0], [1], [0, 0, 1, 1], [], []>} : vector<8x512xf32>, vector<512x6xf32>, vector<8x6xf32> -> vector<8x6xf32>
      %c0_17 = arith.constant 0 : index
      %c0_18 = arith.constant 0 : index
      %c0_19 = arith.constant 0 : index
      %21 = vector.load %arg6[%c0_17, %c0_18, %c0_19] : memref<1x8x6xf32, #tpu.memory_space<vmem>>, vector<1x8x6xf32>
      %22 = vector.shape_cast %21 : vector<1x8x6xf32> to vector<8x6xf32>
      %23 = vector.shape_cast %20 : vector<8x6xf32> to vector<1x8x6xf32>
      tpu.vector_store %arg6[%c0_17, %c0_18, %c0_19], %23 {strides = array<i32>} : memref<1x8x6xf32, #tpu.memory_space<vmem>>, vector<1x8x6xf32>,
    } else {
    }
    return
  }
  func.func @transform_0(%arg0: i32, %arg1: i32) -> (i32, i32) {
    %c0_i32 = arith.constant 0 : i32
    %c0_i32_0 = arith.constant 0 : i32
    return %c0_i32, %arg1 : i32, i32
  }
  func.func @transform_1(%arg0: i32, %arg1: i32) -> (i32, i32) {
    %c0_i32 = arith.constant 0 : i32
    return %arg1, %arg0 : i32, i32
  }
  func.func @transform_2(%arg0: i32, %arg1: i32) -> (i32, i32) {
    %c0_i32 = arith.constant 0 : i32
    %c0_i32_0 = arith.constant 0 : i32
    return %c0_i32, %arg0 : i32, i32
  }
  func.func @transform_3(%arg0: i32, %arg1: i32) -> (i32, i32) {
    %c0_i32 = arith.constant 0 : i32
    %c0_i32_0 = arith.constant 0 : i32
    return %arg0, %c0_i32 : i32, i32
  }
  func.func @transform_4(%arg0: i32, %arg1: i32) -> (i32, i32, i32) {
    %c0_i32 = arith.constant 0 : i32
    %c0_i32_0 = arith.constant 0 : i32
    %c0_i32_1 = arith.constant 0 : i32
    return %arg0, %c0_i32, %c0_i32_0 : i32, i32, i32
  }
}

</mosaic_0001>

<bundles_post_ra>
// kernel: cnn_forward.3
= control target key start
LH: loop header
LB: loop body
LE: loop exit
PB: predicated region body
PF: predicated region fallthrough
CT: control target
= control target key end

     0   :  { %s6861_s0 = inlined_call_operand.vmem [shape: f32[8,5760], index: 0, kind: input, shape index: {}]   ;;  %s6862_s1 = inlined_call_operand.hbm [shape: bf16[5760,1024], index: 1, kind: input, shape index: {}]   ;;  %s6863_s2 = inlined_call_operand.hbm [shape: f32[1,1024], index: 2, kind: input, shape index: {}]   ;;  %s6864_s3 = inlined_call_operand.vmem [shape: f32[1024,6], index: 3, kind: input, shape index: {}]   ;;  %s6865_s4 = inlined_call_operand.vmem [shape: f32[2,8,6], index: 4, kind: output, shape index: {}]  }
   0x1   :  { %6871 = sst [smem:[#allocation10_spill]] %s6862_s1 }
   0x2   :  { %6872 = sst [smem:[#allocation11_spill]] %s6863_s2 }
   0x3   :  { %6873 = sst [smem:[#allocation12_spill]] %s6865_s4 }
   0x4   :  { %9 = vsyncpa [#allocation4], 0 }
   0x5   :  { %11 = vsyncpa [#allocation4 + $0x1], 0 }
   0x6   :  { %12 = vsyncpa [#allocation6], 0 }
   0x7   :  { %14 = vsyncpa [#allocation6 + $0x1], 0  ;;  %s5926_s15 = smov 0   ;;  %s5928_s16 = smov 0  }
   0x8   :  { %s5930_s17 = smov 0   ;;  %s5932_s18 = smov 0  }
   0x9   :  { %s5934_s19 = smov 0   ;;  %s5936_s20 = smov 0  }
   0xa   :  { %s5938_s21 = smov 0   ;;  %s5940_s22 = smov 0  }
   0xb   :  { %s5942_s23 = smov 0   ;;  %s5944_s24 = smov 0  }
   0xc   :  { %s5946_s25 = smov 0  }
   0xd LB: > { %s29_s26 = sadd.s32 1, %s5884_s23  ;;  %p74_p1 = scmp.ne.s32.totalorder %s5872_s20, %s5868_s19  ;;  %s5892_s25 = sphi %s5946_s25, %s20_s25   ;;  %s5888_s24 = sphi %s5944_s24, %s6904_s24   ;;  %s5884_s23 = sphi %s5942_s23, %s6903_s23   ;;  %s5880_s22 = sphi %s5940_s22, %s6902_s22   ;;  %s5876_s21 = sphi %s5938_s21, %s6901_s21   ;;  %s5872_s20 = sphi %s5936_s20, %s6900_s20   ;;  %s5868_s19 = sphi %s5934_s19, %s6899_s19   ;;  %s5864_s18 = sphi %s5932_s18, %s6898_s18   ;;  %s5860_s17 = sphi %s5930_s17, %s6897_s17   ;;  %s5856_s16 = sphi %s5928_s16, %s6896_s16   ;;  %s5852_s15 = sphi %s5926_s15, %s6895_s15  }
   0xe   : > { %p5983_p0 = scmp.ge.s32.totalorder %s29_s26, 3  ;;  %p6867_p2 = scmp.eq.s32.totalorder %s5892_s25, 0 }
   0xf   : > { %p6866_p4 = scmp.lt.s32.totalorder %s5892_s25, 6  ;;  %s191_s30 = sand.u32 1, %s5872_s20  }
  0x10   : > { %s6906_s26 = smov (%p5983_p0, %s29_s26), 0  ;;  %p76_p3 = por %p6867_p2, %p74_p1 }
  0x11   : > { %s4911_s5 = smul.u32 3840, %s191_s30  ;;  %s4279_s6 = sshll.u32 %s5888_s24, 2 }
  0x12   : > { %s4775_s7 = smul.u32 1920, %s5884_s23  ;;  %p6004_p5 = pnand %p6866_p4, %p76_p3 }
  0x13   : > { %s195_s10 = scalar_lea.vmem [#allocation3], %s4911_s5  ;;  %s6876_s1 = sld [smem:[#allocation10_spill]] }
  0x14   : > { %s202_s9 = sadd.s32 %s4775_s7, %s4279_s6  ;;  %s205_s11 = sshll.u32 %s195_s10, 4  ;;  %s6008_s11 = int_to_ptr.vmem [resolvable:$true] %s205_s11 }
  0x15   : > { %s4281_s12 = sshll.u32 %s202_s9, 6  ;;  %s6016_s29 = scalar_lea.sflag [#allocation4], %s191_s30 }
  0x16   : > { %p5740_p8 = pneg %p6004_p5 }
  0x19   : > { %s6013_s27 = scalar_lea.hbm %s6876_s1, %s4281_s12  ;;  %s5743_s7 = scalar_lea.hbm %s6876_s1, 368640 }
  0x1a   : > { %s5738_s4 = scalar_lea.hbm %s6013_s27, 61440  ;;  %p5744_p11 = scmp.lt.u32.totalorder %s6013_s27, %s6876_s1 }
  0x1b   : > { %p5739_p7 = scmp.ne.s32.totalorder %s6013_s27, %s5738_s4  ;;  %p5745_p12 = scmp.lt.u32.totalorder %s5743_s7, %s5738_s4 }
  0x1c   : > { %p5747_p1 = scmp.lt.u32.totalorder %s5738_s4, %s6013_s27 }
  0x1d   : > { %p5741_p9 = pnand %p5740_p8, %p5739_p7  ;;  %p5746_p13 = por %p5745_p12, %p5744_p11 }
  0x1f   : > { %p5742_p10 = pneg %p5741_p9  ;;  %p5748_p3 = por %p5747_p1, %p5746_p13 }
  0x21   : > { %p5749_p4 = pnand %p5748_p3, %p5742_p10 }
  0x23   : > { %5752 = shalt.err (!%p5749_p4)
}
  0x24   : > { %s5753_s30 = scalar_lea.vmem %s6008_s11, 61440  ;;  %s5894_s12 = smov [#allocation3]  }
  0x25   : > { %p5754_p7 = scmp.ne.s32.totalorder %s6008_s11, %s5753_s30  ;;  %s5758_s13 = sshll.u32 %s5894_s12, 4  ;;  %s5759_s13 = int_to_ptr.vmem [resolvable:$false] %s5758_s13 }
  0x26   : > { %s5760_s14 = scalar_lea.vmem %s5759_s13, 122880  ;;  %p5761_p6 = scmp.lt.s32.totalorder %s6008_s11, %s5759_s13 }
  0x27   : > { %p5756_p9 = pnand %p5754_p7, %p5740_p8  ;;  %p5762_p11 = scmp.lt.s32.totalorder %s5760_s14, %s5753_s30 }
  0x29   : > { %p5757_p2 = pneg %p5756_p9  ;;  %p5763_p12 = por %p5762_p11, %p5761_p6 }
  0x2b   : > { %p5764_p13 = pnand %p5763_p12, %p5757_p2 }
  0x2d   : > { %5767 = shalt.err (!%p5764_p13)
}
  0x2e   : > { %s5895_s4 = smov 512   ;;  %s5896_s5 = smov 256  }
  0x2f   : > { %s5897_s6 = smov 16   ;;  %p241_p2 = scmp.lt.s32.totalorder %s5892_s25, 7 }
  0x30   : > { %4920 = dma.hbm_to_vmem [thread:$0]  (!%p6004_p5), %s6013_s27, 61440, %s6008_s11, %s6016_s29, %s5895_s4, %s5896_s5, %s5897_s6  }
  0x31   : > { %p6877_p4 = scmp.ge.s32.totalorder %s5892_s25, 1  ;;  %s4275_s9 = sadd.s32 4294967295, %s5892_s25  }
  0x32   : > { %s32_s10 = sadd.s32 1, %s5888_s24  ;;  %p80_p8 = scmp.ne.s32.totalorder %s5868_s19, %s5864_s18 }
  0x33   : > { %p6047_p6 = pnand %p6877_p4, %p241_p2  ;;  %s6908_s10 = smov (!%p5983_p0, %s32_s10), %s5888_s24 }
  0x34   : > { %p6058_p10 = scmp.eq.s32.totalorder %s4275_s9, 0  ;;  %p34_p5 = scmp.ge.s32.totalorder %s6908_s10, 2 }
  0x35   : > { %s93_s27 = sadd.s32 1, %s5860_s17  ;;  %p100_p3 = scmp.ne.s32.totalorder %s5860_s17, %s5856_s16 }
  0x36   : > { %p6065_p1 = por %p6058_p10, %p80_p8  ;;  %s6910_s10 = smov (%p34_p5, %s6908_s10), 0 }
  0x37   : > { %6881 = sst [smem:[#allocation9_spill]] %s6910_s10  ;;  %p6882_p0 = scmp.eq.s32.totalorder %s5892_s25, 0 }
  0x38   : > { %s6880_s29 = scalar_select %p6065_p1, 1, 0 }
  0x39   : > { %p6075_p7 = por %p100_p3, %p6882_p0  ;;  %p106_p9 = scmp.ne.s32.totalorder %s5856_s16, %s5852_s15 }
  0x3a   : > { %s63_s28 = ssub.s32 %s5888_s24, %s6910_s10  ;;  %s215_s11 = sand.u32 1, %s5860_s17  }
  0x3b   : > { %s6884_s30 = ssub.s32 %s5884_s23, %s6906_s26  ;;  %p91_p11 = scmp.eq.s32.totalorder %s63_s28, 0 }
  0x3c   : > { %s64_s12 = sor.u32 %s63_s28, %s6884_s30  ;;  %p6089_p13 = por %p106_p9, %p6058_p10 }
  0x3d   : > { %p65_p12 = scmp.eq.s32.totalorder %s64_s12, 0  ;;  %s6886_s4 = sadd.s32 1, %s5872_s20 }
  0x3e   : > { %s6885_s13 = scalar_select %p6089_p13, 1, 0 }
  0x3f   : > { %s6094_s14 = scalar_select %p91_p11, %s5860_s17, %s93_s27  }
  0x40   : > { %s6099_s5 = scalar_select %p65_p12, %s5872_s20, %s6886_s4  }
  0x41   : > { %s4282_s6 = sshll.u32 %s215_s11, 2  ;;  %s4776_s9 = sshll.u32 %s5888_s24, 6 }
  0x42   : > { %s6887_s2 = sld [smem:[#allocation11_spill]]  ;;  %s219_s8 = scalar_lea.vmem [#allocation5], %s4282_s6 }
  0x43   : > { %s227_s28 = sshll.u32 %s219_s8, 4  ;;  %p6888_p2 = scmp.lt.s32.totalorder %s5892_s25, 6  ;;  %s6107_s28 = int_to_ptr.vmem [resolvable:$true] %s227_s28 }
  0x44   : > { %s216_s30 = scalar_lea.sflag [#allocation6], %s215_s11 }
  0x45   : > { %p6113_p4 = pnand %p6888_p2, %p6075_p7 }
  0x47   : > { %p5770_p10 = pneg %p6113_p4 }
  0x48   : > { %s6105_s10 = scalar_lea.hbm %s6887_s2, %s4776_s9  ;;  %s5773_s18 = scalar_lea.hbm %s6887_s2, 128 }
  0x49   : > { %s5768_s1 = scalar_lea.hbm %s6105_s10, 64  ;;  %p5774_p0 = scmp.lt.u32.totalorder %s6105_s10, %s6887_s2 }
  0x4a   : > { %p5769_p8 = scmp.ne.s32.totalorder %s6105_s10, %s5768_s1  ;;  %p5775_p7 = scmp.lt.u32.totalorder %s5773_s18, %s5768_s1 }
  0x4b   : > { %p5777_p11 = scmp.lt.u32.totalorder %s5768_s1, %s6105_s10 }
  0x4c   : > { %p5771_p5 = pnand %p5770_p10, %p5769_p8  ;;  %p5776_p9 = por %p5775_p7, %p5774_p0 }
  0x4e   : > { %p5772_p3 = pneg %p5771_p5  ;;  %p5778_p12 = por %p5777_p11, %p5776_p9 }
  0x50   : > { %p5779_p2 = pnand %p5778_p12, %p5772_p3 }
  0x52   : > { %5782 = shalt.err (!%p5779_p2)
}
  0x53   : > { %s5783_s11 = scalar_lea.vmem %s6107_s28, 64  ;;  %s5898_s15 = smov [#allocation5]  }
  0x54   : > { %p5784_p8 = scmp.ne.s32.totalorder %s6107_s28, %s5783_s11  ;;  %s5788_s8 = sshll.u32 %s5898_s15, 4  ;;  %s5789_s8 = int_to_ptr.vmem [resolvable:$false] %s5788_s8 }
  0x55   : > { %s5790_s12 = scalar_lea.vmem %s5789_s8, 128  ;;  %p5791_p1 = scmp.lt.s32.totalorder %s6107_s28, %s5789_s8 }
  0x56   : > { %p5786_p5 = pnand %p5784_p8, %p5770_p10  ;;  %p5792_p0 = scmp.lt.s32.totalorder %s5790_s12, %s5783_s11 }
  0x58   : > { %p5787_p13 = pneg %p5786_p5  ;;  %p5793_p7 = por %p5792_p0, %p5791_p1 }
  0x5a   : > { %p5794_p9 = pnand %p5793_p7, %p5787_p13 }
  0x5c   : > { %5797 = shalt.err (!%p5794_p9)
}
  0x5d   : > { %4923 = dma.hbm_to_vmem [thread:$0]  (!%p6113_p4), %s6105_s10, 64, %s6107_s28, %s216_s30  }
  0x5e   : > { %245 = sbr.rel (%p6047_p6) target bundleno = 1057 (0x421), region = 36  ;;  %s247_s1 = sand.u32 (!%p6047_p6), 1, %s5868_s19  }
  0x5f   : > { %s4912_s4 = smul.u32 (!%p6047_p6), 3840, %s247_s1  ;;  %s248_s18 = scalar_lea.sflag (!%p6047_p6), [#allocation4], %s247_s1 }
  0x60   : > { %p6890_p10 = scmp.ne.s32.totalorder (!%p6047_p6), %s6880_s29, 0 }
  0x61   : > { %s6145_s6 = scalar_lea.vmem (!%p6047_p6), [#allocation3], %s4912_s4 }
  0x65   : > { %5843 = dma.done.wait (%p6890_p10), %s248_s18, 61440  }
  0x66   : > { %5845 = vsyncadd (%p6890_p10), %s248_s18, 4294905856  ;;  %s256_s27 = sand.u32 1, %s5856_s16   ;;  %p6891_p6 = scmp.ne.s32.totalorder %s6885_s13, 0 }
  0x67   : > { %s6152_s9 = sshll.u32 %s256_s27, 2  ;;  %s257_s7 = scalar_lea.sflag [#allocation6], %s256_s27 }
  0x68   : > { %5847 = dma.done.wait (%p6891_p6), %s257_s7, 64  }
  0x69   : > { %5849 = vsyncadd (%p6891_p6), %s257_s7, 4294967232  ;;  %s299_s28 = smul.u32 15, %s5876_s21  ;;  %s4288_s29 = sshll.u32 %s5880_s22, 6 }
  0x6a   : > { %p309_p1 = scmp.lt.s32.totalorder %s4288_s29, 127  ;;  %p314_p4 = scmp.lt.s32.totalorder %s5880_s22, 1 }
  0x6b   : > { %p300_p13 = scmp.lt.s32.totalorder %s299_s28, 44  ;;  %s6892_s10 = sld [smem:[#allocation12_spill]] }
  0x6c   : > { %s6912_s29 = smov (!%p309_p1, %s4288_s29), 127  ;;  %s6916_s22 = smov (!%p314_p4, %s5880_s22), 1 }
  0x6d   : > { %s6914_s28 = smov (!%p300_p13, %s299_s28), 44  ;;  %s4289_s30 = sshll.u32 %s6912_s29, 3 }
  0x6e   : > { %s4287_s11 = sshll.u32 %s6914_s28, 3  ;;  %s6165_s12 = scalar_lea.vmem %s6864_s3, %s4289_s30 }
  0x6f   : > { %s6170_s4 = scalar_lea.vmem %s6861_s0, %s4287_s11  ;;  %s4290_s18 = sshll.u32 %s6916_s22, 3 }
  0x70   : > { %p4291_p3 = scmp.ne.s32.totalorder %s5876_s21, 0 }
  0x71   : > { %s6176_s2 = scalar_lea.vmem %s6892_s10, %s4290_s18  ;;  %v5899_v0 = vmov (!%p4291_p3), 0.0  }
  0x72   : > { %322 = sbr.rel (%p4291_p3) target bundleno = 121 (0x79), region = 48  ;;  %323 = vst [vmem:[#allocation2] sm:$0xff] (!%p4291_p3), %v5899_v0  ;;  %324 = vst [vmem:[#allocation2 + $0x8] sm:$0xff] (!%p4291_p3), %v5899_v0 }
  0x73   : > { %325 = vst [vmem:[#allocation2 + $0x10] sm:$0xff] (!%p4291_p3), %v5899_v0  ;;  %326 = vst [vmem:[#allocation2 + $0x18] sm:$0xff] (!%p4291_p3), %v5899_v0 }
  0x79 PF: > { %v5018_v1 = vld [vmem:[%s6145_s6 + $0x4] ss:$16 sps:$4 sm:$0xff]   ;;  %v5022_v3 = vld [vmem:[%s6145_s6] ss:$16 sps:$4 sm:$0xff]   ;;  %v332_v47 = vld [vmem:[%s6170_s4 + $0x8] sm:$0xff]  ;;  %p4772_p11 = scmp.ne.s32.totalorder %s5876_s21, 2 }
  0x7a   : > { %v5020_v2 = vld [vmem:[%s6145_s6 + $0x204] ss:$16 sps:$4 sm:$0xff]   ;;  %3241 = vmatprep.subr.bf16.mxu0 %v5018_v1  ;;  %v5023_v4 = vld [vmem:[%s6145_s6 + $0x200] ss:$16 sps:$4 sm:$0xff]   ;;  %v6228_v50 = vpack.c.bf16 %v332_v47, %v332_v47  ;;  %v334_v51 = vld [vmem:[%s6170_s4 + $0x18] sm:$0xff]  ;;  %s6893_s21 = scalar_lea.vmem (!%p4772_p11), [#allocation5], %s6152_s9 }
  0x7b   : > { %3282 = vmatprep.subr.bf16.mxu1 %v5020_v2  ;;  %v5024_v5 = vld [vmem:[%s6145_s6 + $0x24] ss:$16 sps:$4 sm:$0xff]   ;;  %3242 = vmatpush1.bf16.msra.mxu0 %v5022_v3  ;;  %v5028_v7 = vld [vmem:[%s6145_s6 + $0x20] ss:$16 sps:$4 sm:$0xff]   ;;  %v6232_v53 = vpack.c.bf16 %v334_v51, %v334_v51  ;;  %vm4147_vm0 = vcmask (!%p4772_p11), 48128  }
  0x7c   : > { %3283 = vmatpush1.bf16.msra.mxu1 %v5023_v4  ;;  %v5026_v6 = vld [vmem:[%s6145_s6 + $0x224] ss:$16 sps:$4 sm:$0xff]   ;;  %3243 = vmatprep.subr.bf16.mxu0 %v5024_v5  ;;  %v5029_v8 = vld [vmem:[%s6145_s6 + $0x220] ss:$16 sps:$4 sm:$0xff]  }
  0x7d   : > { %3284 = vmatprep.subr.bf16.mxu1 %v5026_v6  ;;  %v5030_v9 = vld [vmem:[%s6145_s6 + $0x44] ss:$16 sps:$4 sm:$0xff]   ;;  %v5034_v11 = vld [vmem:[%s6145_s6 + $0x40] ss:$16 sps:$4 sm:$0xff]   ;;  %3273 = vmatprep.mubr.bf16.mxu0 %v6228_v50 }
  0x7e   : > { %v5032_v10 = vld [vmem:[%s6145_s6 + $0x244] ss:$16 sps:$4 sm:$0xff]   ;;  %v5035_v12 = vld [vmem:[%s6145_s6 + $0x240] ss:$16 sps:$4 sm:$0xff]   ;;  %3314 = vmatprep.mubr.bf16.mxu1 %v6232_v53 }
  0x7f   : > { %3244 = vmatpush1.bf16.msra.mxu0 %v5028_v7  ;;  %v5036_v13 = vld [vmem:[%s6145_s6 + $0x64] ss:$16 sps:$4 sm:$0xff]   ;;  %v5040_v15 = vld [vmem:[%s6145_s6 + $0x60] ss:$16 sps:$4 sm:$0xff]  }
  0x80   : > { %3285 = vmatpush1.bf16.msra.mxu1 %v5029_v8  ;;  %3245 = vmatprep.subr.bf16.mxu0 %v5030_v9  ;;  %v5038_v14 = vld [vmem:[%s6145_s6 + $0x264] ss:$16 sps:$4 sm:$0xff]   ;;  %v5041_v16 = vld [vmem:[%s6145_s6 + $0x260] ss:$16 sps:$4 sm:$0xff]  }
  0x81   : > { %3286 = vmatprep.subr.bf16.mxu1 %v5032_v10  ;;  %v5042_v17 = vld [vmem:[%s6145_s6 + $0x84] ss:$16 sps:$4 sm:$0xff]   ;;  %v5046_v19 = vld [vmem:[%s6145_s6 + $0x80] ss:$16 sps:$4 sm:$0xff]  }
  0x82   : > { %v5044_v18 = vld [vmem:[%s6145_s6 + $0x284] ss:$16 sps:$4 sm:$0xff]   ;;  %v5047_v20 = vld [vmem:[%s6145_s6 + $0x280] ss:$16 sps:$4 sm:$0xff]  }
  0x83   : > { %3246 = vmatpush1.bf16.msra.mxu0 %v5034_v11  ;;  %v5048_v21 = vld [vmem:[%s6145_s6 + $0xa4] ss:$16 sps:$4 sm:$0xff]   ;;  %v5052_v23 = vld [vmem:[%s6145_s6 + $0xa0] ss:$16 sps:$4 sm:$0xff]  }
  0x84   : > { %3287 = vmatpush1.bf16.msra.mxu1 %v5035_v12  ;;  %3247 = vmatprep.subr.bf16.mxu0 %v5036_v13  ;;  %v5050_v22 = vld [vmem:[%s6145_s6 + $0x2a4] ss:$16 sps:$4 sm:$0xff]   ;;  %v5053_v24 = vld [vmem:[%s6145_s6 + $0x2a0] ss:$16 sps:$4 sm:$0xff]  }
  0x85   : > { %3288 = vmatprep.subr.bf16.mxu1 %v5038_v14  ;;  %v5054_v25 = vld [vmem:[%s6145_s6 + $0xc4] ss:$16 sps:$4 sm:$0xff]   ;;  %v5058_v27 = vld [vmem:[%s6145_s6 + $0xc0] ss:$16 sps:$4 sm:$0xff]  }
  0x86   : > { %v5056_v26 = vld [vmem:[%s6145_s6 + $0x2c4] ss:$16 sps:$4 sm:$0xff]   ;;  %v5059_v28 = vld [vmem:[%s6145_s6 + $0x2c0] ss:$16 sps:$4 sm:$0xff]  }
  0x87   : > { %3248 = vmatpush1.bf16.msra.mxu0 %v5040_v15  ;;  %v5060_v29 = vld [vmem:[%s6145_s6 + $0xe4] ss:$16 sps:$4 sm:$0xff]   ;;  %v5064_v31 = vld [vmem:[%s6145_s6 + $0xe0] ss:$16 sps:$4 sm:$0xff]  }
  0x88   : > { %3289 = vmatpush1.bf16.msra.mxu1 %v5041_v16  ;;  %3249 = vmatprep.subr.bf16.mxu0 %v5042_v17  ;;  %v5062_v30 = vld [vmem:[%s6145_s6 + $0x2e4] ss:$16 sps:$4 sm:$0xff]   ;;  %v5065_v32 = vld [vmem:[%s6145_s6 + $0x2e0] ss:$16 sps:$4 sm:$0xff]  }
  0x89   : > { %3290 = vmatprep.subr.bf16.mxu1 %v5044_v18  ;;  %v5066_v33 = vld [vmem:[%s6145_s6 + $0x104] ss:$16 sps:$4 sm:$0xff]   ;;  %v5070_v35 = vld [vmem:[%s6145_s6 + $0x100] ss:$16 sps:$4 sm:$0xff]  }
  0x8a   : > { %v5068_v34 = vld [vmem:[%s6145_s6 + $0x304] ss:$16 sps:$4 sm:$0xff]   ;;  %v5071_v36 = vld [vmem:[%s6145_s6 + $0x300] ss:$16 sps:$4 sm:$0xff]  }
  0x8b   : > { %3250 = vmatpush1.bf16.msra.mxu0 %v5046_v19  ;;  %v5072_v37 = vld [vmem:[%s6145_s6 + $0x124] ss:$16 sps:$4 sm:$0xff]   ;;  %v5076_v39 = vld [vmem:[%s6145_s6 + $0x120] ss:$16 sps:$4 sm:$0xff]  }
  0x8c   : > { %3291 = vmatpush1.bf16.msra.mxu1 %v5047_v20  ;;  %3251 = vmatprep.subr.bf16.mxu0 %v5048_v21  ;;  %v5074_v38 = vld [vmem:[%s6145_s6 + $0x324] ss:$16 sps:$4 sm:$0xff]   ;;  %v5077_v40 = vld [vmem:[%s6145_s6 + $0x320] ss:$16 sps:$4 sm:$0xff]  }
  0x8d   : > { %3292 = vmatprep.subr.bf16.mxu1 %v5050_v22  ;;  %v5078_v41 = vld [vmem:[%s6145_s6 + $0x144] ss:$16 sps:$4 sm:$0xff]   ;;  %v5082_v43 = vld [vmem:[%s6145_s6 + $0x140] ss:$16 sps:$4 sm:$0xff]  }
  0x8e   : > { %v5080_v42 = vld [vmem:[%s6145_s6 + $0x344] ss:$16 sps:$4 sm:$0xff]   ;;  %v5083_v44 = vld [vmem:[%s6145_s6 + $0x340] ss:$16 sps:$4 sm:$0xff]  }
  0x8f   : > { %3252 = vmatpush1.bf16.msra.mxu0 %v5052_v23  ;;  %v5084_v45 = vld [vmem:[%s6145_s6 + $0x164] ss:$16 sps:$4 sm:$0xff]   ;;  %v5088_v48 = vld [vmem:[%s6145_s6 + $0x160] ss:$16 sps:$4 sm:$0xff]  }
  0x90   : > { %3293 = vmatpush1.bf16.msra.mxu1 %v5053_v24  ;;  %3253 = vmatprep.subr.bf16.mxu0 %v5054_v25  ;;  %v5086_v46 = vld [vmem:[%s6145_s6 + $0x364] ss:$16 sps:$4 sm:$0xff]   ;;  %v5089_v49 = vld [vmem:[%s6145_s6 + $0x360] ss:$16 sps:$4 sm:$0xff]  }
  0x91   : > { %3294 = vmatprep.subr.bf16.mxu1 %v5056_v26  ;;  %v5090_v52 = vld [vmem:[%s6145_s6 + $0x184] ss:$16 sps:$4 sm:$0xff]   ;;  %v5094_v55 = vld [vmem:[%s6145_s6 + $0x180] ss:$16 sps:$4 sm:$0xff]  }
  0x92   : > { %v5092_v54 = vld [vmem:[%s6145_s6 + $0x384] ss:$16 sps:$4 sm:$0xff]   ;;  %v5095_v56 = vld [vmem:[%s6145_s6 + $0x380] ss:$16 sps:$4 sm:$0xff]  }
  0x93   : > { %3254 = vmatpush1.bf16.msra.mxu0 %v5058_v27  ;;  %v5096_v57 = vld [vmem:[%s6145_s6 + $0x1a4] ss:$16 sps:$4 sm:$0xff]   ;;  %v5100_v59 = vld [vmem:[%s6145_s6 + $0x1a0] ss:$16 sps:$4 sm:$0xff]  }
  0x94   : > { %3295 = vmatpush1.bf16.msra.mxu1 %v5059_v28  ;;  %3255 = vmatprep.subr.bf16.mxu0 %v5060_v29  ;;  %v5098_v58 = vld [vmem:[%s6145_s6 + $0x3a4] ss:$16 sps:$4 sm:$0xff]   ;;  %v5101_v60 = vld [vmem:[%s6145_s6 + $0x3a0] ss:$16 sps:$4 sm:$0xff]  }
  0x95   : > { %3296 = vmatprep.subr.bf16.mxu1 %v5062_v30  ;;  %v5102_v61 = vld [vmem:[%s6145_s6 + $0x1c4] ss:$16 sps:$4 sm:$0xff]   ;;  %v5106_v63 = vld [vmem:[%s6145_s6 + $0x1c0] ss:$16 sps:$4 sm:$0xff]  }
  0x96   : > { %v5104_v62 = vld [vmem:[%s6145_s6 + $0x3c4] ss:$16 sps:$4 sm:$0xff]   ;;  %v5107_v0 = vld [vmem:[%s6145_s6 + $0x3c0] ss:$16 sps:$4 sm:$0xff]  }
  0x97   : > { %3256 = vmatpush1.bf16.msra.mxu0 %v5064_v31  ;;  %v5108_v1 = vld [vmem:[%s6145_s6 + $0x1e4] ss:$16 sps:$4 sm:$0xff]   ;;  %v5112_v3 = vld [vmem:[%s6145_s6 + $0x1e0] ss:$16 sps:$4 sm:$0xff]  }
  0x98   : > { %3297 = vmatpush1.bf16.msra.mxu1 %v5065_v32  ;;  %3257 = vmatprep.subr.bf16.mxu0 %v5066_v33  ;;  %v5110_v2 = vld [vmem:[%s6145_s6 + $0x3e4] ss:$16 sps:$4 sm:$0xff]   ;;  %v5113_v4 = vld [vmem:[%s6145_s6 + $0x3e0] ss:$16 sps:$4 sm:$0xff]  }
  0x99   : > { %3298 = vmatprep.subr.bf16.mxu1 %v5068_v34  ;;  %v331_v5 = vld [vmem:[%s6170_s4] sm:$0xff]  ;;  %v333_v6 = vld [vmem:[%s6170_s4 + $0x10] sm:$0xff] }
  0x9a   : > { %v5116_v7 = vld [vmem:[%s6145_s6 + $0x404] ss:$16 sps:$4 sm:$0xff]   ;;  %v6255_v9 = vpack.c.bf16 %v331_v5, %v331_v5  ;;  %v6257_v10 = vpack.c.bf16 %v333_v6, %v333_v6  ;;  %v5114_v11 = vld [vmem:[%s6145_s6 + $0x400] ss:$16 sps:$4 sm:$0xff]  }
  0x9b   : > { %3258 = vmatpush1.bf16.msra.mxu0 %v5070_v35  ;;  %v5119_v8 = vld [vmem:[%s6145_s6 + $0x604] ss:$16 sps:$4 sm:$0xff]   ;;  %v5117_v12 = vld [vmem:[%s6145_s6 + $0x600] ss:$16 sps:$4 sm:$0xff]   ;;  %v336_v35 = vld [vmem:[%s6170_s4 + $0x28] sm:$0xff] }
  0x9c   : > { %3299 = vmatpush1.bf16.msra.mxu1 %v5071_v36  ;;  %3259 = vmatprep.subr.bf16.mxu0 %v5072_v37  ;;  %v5122_v13 = vld [vmem:[%s6145_s6 + $0x424] ss:$16 sps:$4 sm:$0xff]   ;;  %v5120_v15 = vld [vmem:[%s6145_s6 + $0x420] ss:$16 sps:$4 sm:$0xff]  }
  0x9d   : > { %3300 = vmatprep.subr.bf16.mxu1 %v5074_v38  ;;  %v5125_v14 = vld [vmem:[%s6145_s6 + $0x624] ss:$16 sps:$4 sm:$0xff]   ;;  %v5123_v16 = vld [vmem:[%s6145_s6 + $0x620] ss:$16 sps:$4 sm:$0xff]   ;;  %v6288_v38 = vpack.c.bf16 %v336_v35, %v336_v35 }
  0x9e   : > { %v5128_v17 = vld [vmem:[%s6145_s6 + $0x444] ss:$16 sps:$4 sm:$0xff]   ;;  %v5126_v19 = vld [vmem:[%s6145_s6 + $0x440] ss:$16 sps:$4 sm:$0xff]  }
  0x9f   : > { %3260 = vmatpush1.bf16.msra.mxu0 %v5076_v39  ;;  %v5131_v18 = vld [vmem:[%s6145_s6 + $0x644] ss:$16 sps:$4 sm:$0xff]   ;;  %v5129_v20 = vld [vmem:[%s6145_s6 + $0x640] ss:$16 sps:$4 sm:$0xff]   ;;  %v338_v39 = vld [vmem:[%s6170_s4 + $0x38] sm:$0xff] }
  0xa0   : > { %3301 = vmatpush1.bf16.msra.mxu1 %v5077_v40  ;;  %3261 = vmatprep.subr.bf16.mxu0 %v5078_v41  ;;  %v5134_v21 = vld [vmem:[%s6145_s6 + $0x464] ss:$16 sps:$4 sm:$0xff]   ;;  %v5132_v23 = vld [vmem:[%s6145_s6 + $0x460] ss:$16 sps:$4 sm:$0xff]   ;;  %v6292_v41 = vpack.c.bf16 %v338_v39, %v338_v39 }
  0xa1   : > { %3302 = vmatprep.subr.bf16.mxu1 %v5080_v42  ;;  %v5137_v22 = vld [vmem:[%s6145_s6 + $0x664] ss:$16 sps:$4 sm:$0xff]   ;;  %v5135_v24 = vld [vmem:[%s6145_s6 + $0x660] ss:$16 sps:$4 sm:$0xff]  }
  0xa2   : > { %v5140_v25 = vld [vmem:[%s6145_s6 + $0x484] ss:$16 sps:$4 sm:$0xff]   ;;  %v5138_v27 = vld [vmem:[%s6145_s6 + $0x480] ss:$16 sps:$4 sm:$0xff]  }
  0xa3   : > { %3262 = vmatpush1.bf16.msra.mxu0 %v5082_v43  ;;  %v5143_v26 = vld [vmem:[%s6145_s6 + $0x684] ss:$16 sps:$4 sm:$0xff]   ;;  %v5141_v28 = vld [vmem:[%s6145_s6 + $0x680] ss:$16 sps:$4 sm:$0xff]  }
  0xa4   : > { %3303 = vmatpush1.bf16.msra.mxu1 %v5083_v44  ;;  %3263 = vmatprep.subr.bf16.mxu0 %v5084_v45  ;;  %v5146_v29 = vld [vmem:[%s6145_s6 + $0x4a4] ss:$16 sps:$4 sm:$0xff]   ;;  %v5144_v31 = vld [vmem:[%s6145_s6 + $0x4a0] ss:$16 sps:$4 sm:$0xff]  }
  0xa5   : > { %3304 = vmatprep.subr.bf16.mxu1 %v5086_v46  ;;  %v5149_v30 = vld [vmem:[%s6145_s6 + $0x6a4] ss:$16 sps:$4 sm:$0xff]   ;;  %v5147_v32 = vld [vmem:[%s6145_s6 + $0x6a0] ss:$16 sps:$4 sm:$0xff]  }
  0xa6   : > { %v5152_v33 = vld [vmem:[%s6145_s6 + $0x4c4] ss:$16 sps:$4 sm:$0xff]   ;;  %v5150_v36 = vld [vmem:[%s6145_s6 + $0x4c0] ss:$16 sps:$4 sm:$0xff]  }
  0xa7   : > { %3264 = vmatpush1.bf16.msra.mxu0 %v5088_v48  ;;  %v5155_v34 = vld [vmem:[%s6145_s6 + $0x6c4] ss:$16 sps:$4 sm:$0xff]   ;;  %v5153_v37 = vld [vmem:[%s6145_s6 + $0x6c0] ss:$16 sps:$4 sm:$0xff]  }
  0xa8   : > { %3305 = vmatpush1.bf16.msra.mxu1 %v5089_v49  ;;  %3265 = vmatprep.subr.bf16.mxu0 %v5090_v52  ;;  %v5158_v40 = vld [vmem:[%s6145_s6 + $0x4e4] ss:$16 sps:$4 sm:$0xff]   ;;  %v5156_v43 = vld [vmem:[%s6145_s6 + $0x4e0] ss:$16 sps:$4 sm:$0xff]  }
  0xa9   : > { %3306 = vmatprep.subr.bf16.mxu1 %v5092_v54  ;;  %v5161_v42 = vld [vmem:[%s6145_s6 + $0x6e4] ss:$16 sps:$4 sm:$0xff]   ;;  %v5159_v44 = vld [vmem:[%s6145_s6 + $0x6e0] ss:$16 sps:$4 sm:$0xff]  }
  0xaa   : > { %v5164_v45 = vld [vmem:[%s6145_s6 + $0x504] ss:$16 sps:$4 sm:$0xff]   ;;  %v5162_v47 = vld [vmem:[%s6145_s6 + $0x500] ss:$16 sps:$4 sm:$0xff]  }
  0xab   : > { %3266 = vmatpush1.bf16.msra.mxu0 %v5094_v55  ;;  %v5167_v46 = vld [vmem:[%s6145_s6 + $0x704] ss:$16 sps:$4 sm:$0xff]   ;;  %v5165_v48 = vld [vmem:[%s6145_s6 + $0x700] ss:$16 sps:$4 sm:$0xff]  }
  0xac   : > { %3307 = vmatpush1.bf16.msra.mxu1 %v5095_v56  ;;  %3267 = vmatprep.subr.bf16.mxu0 %v5096_v57  ;;  %v5170_v49 = vld [vmem:[%s6145_s6 + $0x524] ss:$16 sps:$4 sm:$0xff]   ;;  %v5168_v52 = vld [vmem:[%s6145_s6 + $0x520] ss:$16 sps:$4 sm:$0xff]  }
  0xad   : > { %3308 = vmatprep.subr.bf16.mxu1 %v5098_v58  ;;  %v5173_v51 = vld [vmem:[%s6145_s6 + $0x724] ss:$16 sps:$4 sm:$0xff]   ;;  %v5171_v54 = vld [vmem:[%s6145_s6 + $0x720] ss:$16 sps:$4 sm:$0xff]  }
  0xae   : > { %v5176_v55 = vld [vmem:[%s6145_s6 + $0x544] ss:$16 sps:$4 sm:$0xff]   ;;  %v5174_v57 = vld [vmem:[%s6145_s6 + $0x540] ss:$16 sps:$4 sm:$0xff]  }
  0xaf   : > { %3268 = vmatpush1.bf16.msra.mxu0 %v5100_v59  ;;  %v5179_v56 = vld [vmem:[%s6145_s6 + $0x744] ss:$16 sps:$4 sm:$0xff]   ;;  %v5177_v58 = vld [vmem:[%s6145_s6 + $0x740] ss:$16 sps:$4 sm:$0xff]  }
  0xb0   : > { %3309 = vmatpush1.bf16.msra.mxu1 %v5101_v60  ;;  %3269 = vmatprep.subr.bf16.mxu0 %v5102_v61  ;;  %v5182_v59 = vld [vmem:[%s6145_s6 + $0x564] ss:$16 sps:$4 sm:$0xff]   ;;  %v5180_v61 = vld [vmem:[%s6145_s6 + $0x560] ss:$16 sps:$4 sm:$0xff]  }
  0xb1   : > { %3310 = vmatprep.subr.bf16.mxu1 %v5104_v62  ;;  %v5185_v60 = vld [vmem:[%s6145_s6 + $0x764] ss:$16 sps:$4 sm:$0xff]   ;;  %v5183_v62 = vld [vmem:[%s6145_s6 + $0x760] ss:$16 sps:$4 sm:$0xff]  }
  0xb2   : > { %v5192_v5 = vld [vmem:[%s6145_s6 + $0x5a0] ss:$16 sps:$4 sm:$0xff]   ;;  %v5233_v39 = vld [vmem:[%s6145_s6 + $0xa64] ss:$16 sps:$4 sm:$0xff]  }
  0xb3   : > { %3270 = vmatpush1.bf16.msra.mxu0 %v5106_v63  ;;  %v5188_v63 = vld [vmem:[%s6145_s6 + $0x584] ss:$16 sps:$4 sm:$0xff]   ;;  %v5195_v6 = vld [vmem:[%s6145_s6 + $0x7a0] ss:$16 sps:$4 sm:$0xff]  }
  0xb4   : > { %3311 = vmatpush1.bf16.msra.mxu1 %v5107_v0  ;;  %3271 = vmatprep.subr.bf16.mxu0 %v5108_v1  ;;  %v5191_v0 = vld [vmem:[%s6145_s6 + $0x784] ss:$16 sps:$4 sm:$0xff]   ;;  %v5186_v1 = vld [vmem:[%s6145_s6 + $0x580] ss:$16 sps:$4 sm:$0xff]  }
  0xb5   : > { %3312 = vmatprep.subr.bf16.mxu1 %v5110_v2  ;;  %v5189_v2 = vld [vmem:[%s6145_s6 + $0x780] ss:$16 sps:$4 sm:$0xff]  }
  0xb6   : > { %v5222_v35 = vld [vmem:[%s6145_s6 + $0x840] ss:$16 sps:$4 sm:$0xff]  }
  0xb7   : > { %3272 = vmatpush1.bf16.msra.mxu0 %v5112_v3  ;;  %v5194_v3 = vld [vmem:[%s6145_s6 + $0x5a4] ss:$16 sps:$4 sm:$0xff]  }
  0xb8   : > { %3313 = vmatpush1.bf16.msra.mxu1 %v5113_v4  ;;  %3323 = vmatprep.subr.bf16.mxu0 %v5116_v7  ;;  %v5197_v4 = vld [vmem:[%s6145_s6 + $0x7a4] ss:$16 sps:$4 sm:$0xff]  }
  0xb9   : > { %3364 = vmatprep.subr.bf16.mxu1 %v5119_v8  ;;  %v5200_v7 = vld [vmem:[%s6145_s6 + $0x5c4] ss:$16 sps:$4 sm:$0xff]  }
  0xba   : > { %3274 = vmatmul.mubr.bf16.vlgmr.msra.gmra.mrb[0].mxu0 %v6255_v9  ;;  %v5203_v8 = vld [vmem:[%s6145_s6 + $0x7c4] ss:$16 sps:$4 sm:$0xff]  }
  0xbb   : > { %3315 = vmatmul.mubr.bf16.vlgmr.msra.gmra.mrb[0].mxu1 %v6257_v10  ;;  %3324 = vmatpush1.bf16.msra.mxu0 %v5114_v11  ;;  %v5198_v11 = vld [vmem:[%s6145_s6 + $0x5c0] ss:$16 sps:$4 sm:$0xff]  }
  0xbc   : > { %3365 = vmatpush1.bf16.msra.mxu1 %v5117_v12  ;;  %3325 = vmatprep.subr.bf16.mxu0 %v5122_v13  ;;  %v5201_v12 = vld [vmem:[%s6145_s6 + $0x7c0] ss:$16 sps:$4 sm:$0xff]   ;;  %v5206_v13 = vld [vmem:[%s6145_s6 + $0x5e4] ss:$16 sps:$4 sm:$0xff]  }
  0xbd   : > { %3366 = vmatprep.subr.bf16.mxu1 %v5125_v14  ;;  %3355 = vmatprep.mubr.bf16.mxu0 %v6288_v38  ;;  %v5209_v14 = vld [vmem:[%s6145_s6 + $0x7e4] ss:$16 sps:$4 sm:$0xff]  }
  0xbe   : > { %3396 = vmatprep.mubr.bf16.mxu1 %v6292_v41 }
  0xbf   : > { %3326 = vmatpush1.bf16.msra.mxu0 %v5120_v15  ;;  %v5204_v15 = vld [vmem:[%s6145_s6 + $0x5e0] ss:$16 sps:$4 sm:$0xff]  }
  0xc0   : > { %3367 = vmatpush1.bf16.msra.mxu1 %v5123_v16  ;;  %3327 = vmatprep.subr.bf16.mxu0 %v5128_v17  ;;  %v5207_v16 = vld [vmem:[%s6145_s6 + $0x7e0] ss:$16 sps:$4 sm:$0xff]  }
  0xc1   : > { %3368 = vmatprep.subr.bf16.mxu1 %v5131_v18  ;;  %v335_v17 = vld [vmem:[%s6170_s4 + $0x20] sm:$0xff]  ;;  %v337_v18 = vld [vmem:[%s6170_s4 + $0x30] sm:$0xff] }
  0xc3   : > { %3328 = vmatpush1.bf16.msra.mxu0 %v5126_v19  ;;  %v5212_v19 = vld [vmem:[%s6145_s6 + $0x804] ss:$16 sps:$4 sm:$0xff]  }
  0xc4   : > { %3369 = vmatpush1.bf16.msra.mxu1 %v5129_v20  ;;  %3329 = vmatprep.subr.bf16.mxu0 %v5134_v21  ;;  %v5215_v20 = vld [vmem:[%s6145_s6 + $0xa04] ss:$16 sps:$4 sm:$0xff]   ;;  %v6335_v21 = vpack.c.bf16 %v335_v17, %v335_v17  ;;  %v5282_v17 = vld [vmem:[%s6145_s6 + $0x980] ss:$16 sps:$4 sm:$0xff]  }
  0xc5   : > { %3370 = vmatprep.subr.bf16.mxu1 %v5137_v22  ;;  %v6337_v22 = vpack.c.bf16 %v337_v18, %v337_v18  ;;  %v5285_v18 = vld [vmem:[%s6145_s6 + $0xb80] ss:$16 sps:$4 sm:$0xff]  }
  0xc7   : > { %3330 = vmatpush1.bf16.msra.mxu0 %v5132_v23  ;;  %v5210_v23 = vld [vmem:[%s6145_s6 + $0x800] ss:$16 sps:$4 sm:$0xff]  }
  0xc8   : > { %3371 = vmatpush1.bf16.msra.mxu1 %v5135_v24  ;;  %3331 = vmatprep.subr.bf16.mxu0 %v5140_v25  ;;  %v5213_v24 = vld [vmem:[%s6145_s6 + $0xa00] ss:$16 sps:$4 sm:$0xff]   ;;  %v5218_v25 = vld [vmem:[%s6145_s6 + $0x824] ss:$16 sps:$4 sm:$0xff]  }
  0xc9   : > { %3372 = vmatprep.subr.bf16.mxu1 %v5143_v26  ;;  %v5221_v26 = vld [vmem:[%s6145_s6 + $0xa24] ss:$16 sps:$4 sm:$0xff]  }
  0xcb   : > { %3332 = vmatpush1.bf16.msra.mxu0 %v5138_v27  ;;  %v340_v27 = vld [vmem:[%s6170_s4 + $0x48] sm:$0xff] }
  0xcc   : > { %3373 = vmatpush1.bf16.msra.mxu1 %v5141_v28  ;;  %3333 = vmatprep.subr.bf16.mxu0 %v5146_v29  ;;  %v5216_v28 = vld [vmem:[%s6145_s6 + $0x820] ss:$16 sps:$4 sm:$0xff]  }
  0xcd   : > { %3374 = vmatprep.subr.bf16.mxu1 %v5149_v30  ;;  %v5219_v29 = vld [vmem:[%s6145_s6 + $0xa20] ss:$16 sps:$4 sm:$0xff]   ;;  %v6348_v30 = vpack.c.bf16 %v340_v27, %v340_v27 }
  0xce   : > { %v5294_v27 = vld [vmem:[%s6145_s6 + $0x9c0] ss:$16 sps:$4 sm:$0xff]  }
  0xcf   : > { %3334 = vmatpush1.bf16.msra.mxu0 %v5144_v31  ;;  %v342_v31 = vld [vmem:[%s6170_s4 + $0x58] sm:$0xff] }
  0xd0   : > { %3375 = vmatpush1.bf16.msra.mxu1 %v5147_v32  ;;  %3335 = vmatprep.subr.bf16.mxu0 %v5152_v33  ;;  %v5224_v32 = vld [vmem:[%s6145_s6 + $0x844] ss:$16 sps:$4 sm:$0xff]   ;;  %v6352_v33 = vpack.c.bf16 %v342_v31, %v342_v31 }
  0xd1   : > { %3376 = vmatprep.subr.bf16.mxu1 %v5155_v34  ;;  %v5227_v34 = vld [vmem:[%s6145_s6 + $0xa44] ss:$16 sps:$4 sm:$0xff]  }
  0xd2   : > { %v5305_v31 = vld [vmem:[%s6145_s6 + $0xbe4] ss:$16 sps:$4 sm:$0xff]  }
  0xd3   : > { %3336 = vmatpush1.bf16.msra.mxu0 %v5150_v36  ;;  %v5225_v36 = vld [vmem:[%s6145_s6 + $0xa40] ss:$16 sps:$4 sm:$0xff]  }
  0xd4   : > { %3377 = vmatpush1.bf16.msra.mxu1 %v5153_v37  ;;  %3337 = vmatprep.subr.bf16.mxu0 %v5158_v40  ;;  %v5230_v37 = vld [vmem:[%s6145_s6 + $0x864] ss:$16 sps:$4 sm:$0xff]   ;;  %v5228_v40 = vld [vmem:[%s6145_s6 + $0x860] ss:$16 sps:$4 sm:$0xff]  }
  0xd5   : > { %3378 = vmatprep.subr.bf16.mxu1 %v5161_v42  ;;  %v5231_v42 = vld [vmem:[%s6145_s6 + $0xa60] ss:$16 sps:$4 sm:$0xff]  }
  0xd7   : > { %3338 = vmatpush1.bf16.msra.mxu0 %v5156_v43  ;;  %v5236_v43 = vld [vmem:[%s6145_s6 + $0x884] ss:$16 sps:$4 sm:$0xff]  }
  0xd8   : > { %3379 = vmatpush1.bf16.msra.mxu1 %v5159_v44  ;;  %3339 = vmatprep.subr.bf16.mxu0 %v5164_v45  ;;  %v5239_v44 = vld [vmem:[%s6145_s6 + $0xa84] ss:$16 sps:$4 sm:$0xff]   ;;  %v5234_v45 = vld [vmem:[%s6145_s6 + $0x880] ss:$16 sps:$4 sm:$0xff]  }
  0xd9   : > { %3380 = vmatprep.subr.bf16.mxu1 %v5167_v46  ;;  %v5237_v46 = vld [vmem:[%s6145_s6 + $0xa80] ss:$16 sps:$4 sm:$0xff]  }
  0xdb   : > { %3340 = vmatpush1.bf16.msra.mxu0 %v5162_v47  ;;  %v5242_v47 = vld [vmem:[%s6145_s6 + $0x8a4] ss:$16 sps:$4 sm:$0xff]  }
  0xdc   : > { %3381 = vmatpush1.bf16.msra.mxu1 %v5165_v48  ;;  %3341 = vmatprep.subr.bf16.mxu0 %v5170_v49  ;;  %v5245_v48 = vld [vmem:[%s6145_s6 + $0xaa4] ss:$16 sps:$4 sm:$0xff]   ;;  %v5240_v49 = vld [vmem:[%s6145_s6 + $0x8a0] ss:$16 sps:$4 sm:$0xff]  }
  0xdd   : > { %3382 = vmatprep.subr.bf16.mxu1 %v5173_v51  ;;  %v5243_v51 = vld [vmem:[%s6145_s6 + $0xaa0] ss:$16 sps:$4 sm:$0xff]  }
  0xdf   : > { %3342 = vmatpush1.bf16.msra.mxu0 %v5168_v52  ;;  %v5248_v52 = vld [vmem:[%s6145_s6 + $0x8c4] ss:$16 sps:$4 sm:$0xff]  }
  0xe0   : > { %3383 = vmatpush1.bf16.msra.mxu1 %v5171_v54  ;;  %3343 = vmatprep.subr.bf16.mxu0 %v5176_v55  ;;  %v5251_v54 = vld [vmem:[%s6145_s6 + $0xac4] ss:$16 sps:$4 sm:$0xff]   ;;  %v5246_v55 = vld [vmem:[%s6145_s6 + $0x8c0] ss:$16 sps:$4 sm:$0xff]  }
  0xe1   : > { %3384 = vmatprep.subr.bf16.mxu1 %v5179_v56  ;;  %v5249_v56 = vld [vmem:[%s6145_s6 + $0xac0] ss:$16 sps:$4 sm:$0xff]  }
  0xe3   : > { %3344 = vmatpush1.bf16.msra.mxu0 %v5174_v57  ;;  %v5254_v57 = vld [vmem:[%s6145_s6 + $0x8e4] ss:$16 sps:$4 sm:$0xff]  }
  0xe4   : > { %3385 = vmatpush1.bf16.msra.mxu1 %v5177_v58  ;;  %3345 = vmatprep.subr.bf16.mxu0 %v5182_v59  ;;  %v5257_v58 = vld [vmem:[%s6145_s6 + $0xae4] ss:$16 sps:$4 sm:$0xff]   ;;  %v5252_v59 = vld [vmem:[%s6145_s6 + $0x8e0] ss:$16 sps:$4 sm:$0xff]  }
  0xe5   : > { %3386 = vmatprep.subr.bf16.mxu1 %v5185_v60  ;;  %v5255_v60 = vld [vmem:[%s6145_s6 + $0xae0] ss:$16 sps:$4 sm:$0xff]  }
  0xe7   : > { %3346 = vmatpush1.bf16.msra.mxu0 %v5180_v61  ;;  %v5260_v61 = vld [vmem:[%s6145_s6 + $0x904] ss:$16 sps:$4 sm:$0xff]  }
  0xe8   : > { %3387 = vmatpush1.bf16.msra.mxu1 %v5183_v62  ;;  %3347 = vmatprep.subr.bf16.mxu0 %v5188_v63  ;;  %v5263_v62 = vld [vmem:[%s6145_s6 + $0xb04] ss:$16 sps:$4 sm:$0xff]   ;;  %v5258_v63 = vld [vmem:[%s6145_s6 + $0x900] ss:$16 sps:$4 sm:$0xff]  }
  0xe9   : > { %3388 = vmatprep.subr.bf16.mxu1 %v5191_v0  ;;  %v5261_v0 = vld [vmem:[%s6145_s6 + $0xb00] ss:$16 sps:$4 sm:$0xff]  }
  0xeb   : > { %3348 = vmatpush1.bf16.msra.mxu0 %v5186_v1  ;;  %v5266_v1 = vld [vmem:[%s6145_s6 + $0x924] ss:$16 sps:$4 sm:$0xff]  }
  0xec   : > { %3389 = vmatpush1.bf16.msra.mxu1 %v5189_v2  ;;  %3349 = vmatprep.subr.bf16.mxu0 %v5194_v3  ;;  %v5269_v2 = vld [vmem:[%s6145_s6 + $0xb24] ss:$16 sps:$4 sm:$0xff]   ;;  %v5264_v3 = vld [vmem:[%s6145_s6 + $0x920] ss:$16 sps:$4 sm:$0xff]  }
  0xed   : > { %3390 = vmatprep.subr.bf16.mxu1 %v5197_v4  ;;  %v5267_v4 = vld [vmem:[%s6145_s6 + $0xb20] ss:$16 sps:$4 sm:$0xff]  }
  0xef   : > { %3350 = vmatpush1.bf16.msra.mxu0 %v5192_v5  ;;  %v5272_v5 = vld [vmem:[%s6145_s6 + $0x944] ss:$16 sps:$4 sm:$0xff]  }
  0xf0   : > { %3391 = vmatpush1.bf16.msra.mxu1 %v5195_v6  ;;  %3351 = vmatprep.subr.bf16.mxu0 %v5200_v7  ;;  %v5275_v6 = vld [vmem:[%s6145_s6 + $0xb44] ss:$16 sps:$4 sm:$0xff]   ;;  %v5270_v7 = vld [vmem:[%s6145_s6 + $0x940] ss:$16 sps:$4 sm:$0xff]  }
  0xf1   : > { %3392 = vmatprep.subr.bf16.mxu1 %v5203_v8  ;;  %v5273_v8 = vld [vmem:[%s6145_s6 + $0xb40] ss:$16 sps:$4 sm:$0xff]  }
  0xf3   : > { %3352 = vmatpush1.bf16.msra.mxu0 %v5198_v11  ;;  %v5278_v11 = vld [vmem:[%s6145_s6 + $0x964] ss:$16 sps:$4 sm:$0xff]  }
  0xf4   : > { %3393 = vmatpush1.bf16.msra.mxu1 %v5201_v12  ;;  %3353 = vmatprep.subr.bf16.mxu0 %v5206_v13  ;;  %v5281_v12 = vld [vmem:[%s6145_s6 + $0xb64] ss:$16 sps:$4 sm:$0xff]   ;;  %v5276_v13 = vld [vmem:[%s6145_s6 + $0x960] ss:$16 sps:$4 sm:$0xff]  }
  0xf5   : > { %3394 = vmatprep.subr.bf16.mxu1 %v5209_v14  ;;  %v5279_v14 = vld [vmem:[%s6145_s6 + $0xb60] ss:$16 sps:$4 sm:$0xff]  }
  0xf7   : > { %3354 = vmatpush1.bf16.msra.mxu0 %v5204_v15  ;;  %v5284_v15 = vld [vmem:[%s6145_s6 + $0x984] ss:$16 sps:$4 sm:$0xff]  }
  0xf8   : > { %3395 = vmatpush1.bf16.msra.mxu1 %v5207_v16  ;;  %3405 = vmatprep.subr.bf16.mxu0 %v5212_v19  ;;  %v5287_v16 = vld [vmem:[%s6145_s6 + $0xb84] ss:$16 sps:$4 sm:$0xff]  }
  0xf9   : > { %3446 = vmatprep.subr.bf16.mxu1 %v5215_v20  ;;  %v5290_v19 = vld [vmem:[%s6145_s6 + $0x9a4] ss:$16 sps:$4 sm:$0xff]  }
  0xfa   : > { %3356 = vmatmul.mubr.bf16.vlgmr.msra.gmra.mrb[4].mxu0 %v6335_v21  ;;  %v5293_v20 = vld [vmem:[%s6145_s6 + $0xba4] ss:$16 sps:$4 sm:$0xff]  }
  0xfb   : > { %3397 = vmatmul.mubr.bf16.vlgmr.msra.gmra.mrb[4].mxu1 %v6337_v22  ;;  %3406 = vmatpush1.bf16.msra.mxu0 %v5210_v23  ;;  %v5288_v23 = vld [vmem:[%s6145_s6 + $0x9a0] ss:$16 sps:$4 sm:$0xff]  }
  0xfc   : > { %3447 = vmatpush1.bf16.msra.mxu1 %v5213_v24  ;;  %3407 = vmatprep.subr.bf16.mxu0 %v5218_v25  ;;  %v5291_v24 = vld [vmem:[%s6145_s6 + $0xba0] ss:$16 sps:$4 sm:$0xff]   ;;  %v5296_v25 = vld [vmem:[%s6145_s6 + $0x9c4] ss:$16 sps:$4 sm:$0xff]  }
  0xfd   : > { %3448 = vmatprep.subr.bf16.mxu1 %v5221_v26  ;;  %3437 = vmatprep.mubr.bf16.mxu0 %v6348_v30  ;;  %v5299_v26 = vld [vmem:[%s6145_s6 + $0xbc4] ss:$16 sps:$4 sm:$0xff]  }
  0xfe   : > { %3478 = vmatprep.mubr.bf16.mxu1 %v6352_v33 }
  0xff   : > { %3408 = vmatpush1.bf16.msra.mxu0 %v5216_v28  ;;  %v5297_v28 = vld [vmem:[%s6145_s6 + $0xbc0] ss:$16 sps:$4 sm:$0xff]  }
 0x100   : > { %3449 = vmatpush1.bf16.msra.mxu1 %v5219_v29  ;;  %3409 = vmatprep.subr.bf16.mxu0 %v5224_v32  ;;  %v5302_v29 = vld [vmem:[%s6145_s6 + $0x9e4] ss:$16 sps:$4 sm:$0xff]   ;;  %v5300_v32 = vld [vmem:[%s6145_s6 + $0x9e0] ss:$16 sps:$4 sm:$0xff]  }
 0x101   : > { %3450 = vmatprep.subr.bf16.mxu1 %v5227_v34  ;;  %v5303_v34 = vld [vmem:[%s6145_s6 + $0xbe0] ss:$16 sps:$4 sm:$0xff]  }
 0x103   : > { %3410 = vmatpush1.bf16.msra.mxu0 %v5222_v35  ;;  %v339_v35 = vld [vmem:[%s6170_s4 + $0x40] sm:$0xff] }
 0x104   : > { %3451 = vmatpush1.bf16.msra.mxu1 %v5225_v36  ;;  %3411 = vmatprep.subr.bf16.mxu0 %v5230_v37  ;;  %v341_v36 = vld [vmem:[%s6170_s4 + $0x50] sm:$0xff] }
 0x105   : > { %3452 = vmatprep.subr.bf16.mxu1 %v5233_v39  ;;  %v5308_v37 = vld [vmem:[%s6145_s6 + $0xc04] ss:$16 sps:$4 sm:$0xff]  }
 0x106   : > { %v5311_v39 = vld [vmem:[%s6145_s6 + $0xe04] ss:$16 sps:$4 sm:$0xff]  }
 0x107   : > { %3412 = vmatpush1.bf16.msra.mxu0 %v5228_v40  ;;  %v6415_v40 = vpack.c.bf16 %v339_v35, %v339_v35  ;;  %v5377_v35 = vld [vmem:[%s6145_s6 + $0x6c] ss:$16 sps:$4 sm:$0xff]  }
 0x108   : > { %3453 = vmatpush1.bf16.msra.mxu1 %v5231_v42  ;;  %3413 = vmatprep.subr.bf16.mxu0 %v5236_v43  ;;  %v6417_v42 = vpack.c.bf16 %v341_v36, %v341_v36  ;;  %v5306_v43 = vld [vmem:[%s6145_s6 + $0xc00] ss:$16 sps:$4 sm:$0xff]  }
 0x109   : > { %3454 = vmatprep.subr.bf16.mxu1 %v5239_v44  ;;  %v344_v44 = vld [vmem:[%s6170_s4 + $0x68] sm:$0xff]  ;;  %v5372_v36 = vld [vmem:[%s6145_s6 + $0xd60] ss:$16 sps:$4 sm:$0xff]  }
 0x10b   : > { %3414 = vmatpush1.bf16.msra.mxu0 %v5234_v45  ;;  %v5309_v45 = vld [vmem:[%s6145_s6 + $0xe00] ss:$16 sps:$4 sm:$0xff]  }
 0x10c   : > { %3455 = vmatpush1.bf16.msra.mxu1 %v5237_v46  ;;  %3415 = vmatprep.subr.bf16.mxu0 %v5242_v47  ;;  %v5314_v46 = vld [vmem:[%s6145_s6 + $0xc24] ss:$16 sps:$4 sm:$0xff]  }
 0x10d   : > { %3456 = vmatprep.subr.bf16.mxu1 %v5245_v48  ;;  %v5317_v47 = vld [vmem:[%s6145_s6 + $0xe24] ss:$16 sps:$4 sm:$0xff]   ;;  %v6424_v48 = vpack.c.bf16 %v344_v44, %v344_v44  ;;  %v5381_v44 = vld [vmem:[%s6145_s6 + $0x88] ss:$16 sps:$4 sm:$0xff]  }
 0x10f   : > { %3416 = vmatpush1.bf16.msra.mxu0 %v5240_v49  ;;  %v5312_v49 = vld [vmem:[%s6145_s6 + $0xc20] ss:$16 sps:$4 sm:$0xff]  }
 0x110   : > { %3457 = vmatpush1.bf16.msra.mxu1 %v5243_v51  ;;  %3417 = vmatprep.subr.bf16.mxu0 %v5248_v52  ;;  %v5315_v51 = vld [vmem:[%s6145_s6 + $0xe20] ss:$16 sps:$4 sm:$0xff]   ;;  %v5320_v52 = vld [vmem:[%s6145_s6 + $0xc44] ss:$16 sps:$4 sm:$0xff]  }
 0x111   : > { %3458 = vmatprep.subr.bf16.mxu1 %v5251_v54  ;;  %v5323_v54 = vld [vmem:[%s6145_s6 + $0xe44] ss:$16 sps:$4 sm:$0xff]  }
 0x113   : > { %3418 = vmatpush1.bf16.msra.mxu0 %v5246_v55  ;;  %v5900_v55 = vmov 0  }
 0x114   : > { %3459 = vmatpush1.bf16.msra.mxu1 %v5249_v56  ;;  %3419 = vmatprep.subr.bf16.mxu0 %v5254_v57  ;;  %v5318_v56 = vld [vmem:[%s6145_s6 + $0xc40] ss:$16 sps:$4 sm:$0xff]  }
 0x115   : > { %3460 = vmatprep.subr.bf16.mxu1 %v5257_v58  ;;  %v5321_v57 = vld [vmem:[%s6145_s6 + $0xe40] ss:$16 sps:$4 sm:$0xff]   ;;  %v5326_v58 = vld [vmem:[%s6145_s6 + $0xc64] ss:$16 sps:$4 sm:$0xff]  }
 0x117   : > { %3420 = vmatpush1.bf16.msra.mxu0 %v5252_v59  ;;  %v5329_v59 = vld [vmem:[%s6145_s6 + $0xe64] ss:$16 sps:$4 sm:$0xff]  }
 0x118   : > { %3461 = vmatpush1.bf16.msra.mxu1 %v5255_v60  ;;  %3421 = vmatprep.subr.bf16.mxu0 %v5260_v61  ;;  %v5324_v60 = vld [vmem:[%s6145_s6 + $0xc60] ss:$16 sps:$4 sm:$0xff]  }
 0x119   : > { %3462 = vmatprep.subr.bf16.mxu1 %v5263_v62  ;;  %v5327_v61 = vld [vmem:[%s6145_s6 + $0xe60] ss:$16 sps:$4 sm:$0xff]   ;;  %v5332_v62 = vld [vmem:[%s6145_s6 + $0xc84] ss:$16 sps:$4 sm:$0xff]  }
 0x11b   : > { %3422 = vmatpush1.bf16.msra.mxu0 %v5258_v63  ;;  %v5335_v63 = vld [vmem:[%s6145_s6 + $0xe84] ss:$16 sps:$4 sm:$0xff]  }
 0x11c   : > { %3463 = vmatpush1.bf16.msra.mxu1 %v5261_v0  ;;  %3423 = vmatprep.subr.bf16.mxu0 %v5266_v1  ;;  %v5330_v0 = vld [vmem:[%s6145_s6 + $0xc80] ss:$16 sps:$4 sm:$0xff]  }
 0x11d   : > { %3464 = vmatprep.subr.bf16.mxu1 %v5269_v2  ;;  %v5333_v1 = vld [vmem:[%s6145_s6 + $0xe80] ss:$16 sps:$4 sm:$0xff]   ;;  %v5338_v2 = vld [vmem:[%s6145_s6 + $0xca4] ss:$16 sps:$4 sm:$0xff]  }
 0x11f   : > { %3424 = vmatpush1.bf16.msra.mxu0 %v5264_v3  ;;  %v5341_v3 = vld [vmem:[%s6145_s6 + $0xea4] ss:$16 sps:$4 sm:$0xff]  }
 0x120   : > { %3465 = vmatpush1.bf16.msra.mxu1 %v5267_v4  ;;  %3425 = vmatprep.subr.bf16.mxu0 %v5272_v5  ;;  %v5336_v4 = vld [vmem:[%s6145_s6 + $0xca0] ss:$16 sps:$4 sm:$0xff]  }
 0x121   : > { %3466 = vmatprep.subr.bf16.mxu1 %v5275_v6  ;;  %v5339_v5 = vld [vmem:[%s6145_s6 + $0xea0] ss:$16 sps:$4 sm:$0xff]   ;;  %v5344_v6 = vld [vmem:[%s6145_s6 + $0xcc4] ss:$16 sps:$4 sm:$0xff]  }
 0x123   : > { %3426 = vmatpush1.bf16.msra.mxu0 %v5270_v7  ;;  %v5347_v7 = vld [vmem:[%s6145_s6 + $0xec4] ss:$16 sps:$4 sm:$0xff]  }
 0x124   : > { %3467 = vmatpush1.bf16.msra.mxu1 %v5273_v8  ;;  %3427 = vmatprep.subr.bf16.mxu0 %v5278_v11  ;;  %v5342_v8 = vld [vmem:[%s6145_s6 + $0xcc0] ss:$16 sps:$4 sm:$0xff]  }
 0x125   : > { %3468 = vmatprep.subr.bf16.mxu1 %v5281_v12  ;;  %v5345_v11 = vld [vmem:[%s6145_s6 + $0xec0] ss:$16 sps:$4 sm:$0xff]   ;;  %v5350_v12 = vld [vmem:[%s6145_s6 + $0xce4] ss:$16 sps:$4 sm:$0xff]  }
 0x127   : > { %3428 = vmatpush1.bf16.msra.mxu0 %v5276_v13  ;;  %v5353_v13 = vld [vmem:[%s6145_s6 + $0xee4] ss:$16 sps:$4 sm:$0xff]  }
 0x128   : > { %3469 = vmatpush1.bf16.msra.mxu1 %v5279_v14  ;;  %3429 = vmatprep.subr.bf16.mxu0 %v5284_v15  ;;  %v5348_v14 = vld [vmem:[%s6145_s6 + $0xce0] ss:$16 sps:$4 sm:$0xff]  }
 0x129   : > { %3470 = vmatprep.subr.bf16.mxu1 %v5287_v16  ;;  %v5351_v15 = vld [vmem:[%s6145_s6 + $0xee0] ss:$16 sps:$4 sm:$0xff]   ;;  %v5356_v16 = vld [vmem:[%s6145_s6 + $0xd04] ss:$16 sps:$4 sm:$0xff]  }
 0x12b   : > { %3430 = vmatpush1.bf16.msra.mxu0 %v5282_v17  ;;  %v345_v17 = vld [vmem:[%s6170_s4 + $0x70] sm:$0xff] }
 0x12c   : > { %3471 = vmatpush1.bf16.msra.mxu1 %v5285_v18  ;;  %3431 = vmatprep.subr.bf16.mxu0 %v5290_v19  ;;  %v5359_v18 = vld [vmem:[%s6145_s6 + $0xc] ss:$16 sps:$4 sm:$0xff]   ;;  %v5354_v19 = vld [vmem:[%s6145_s6 + $0xd00] ss:$16 sps:$4 sm:$0xff]  }
 0x12d   : > { %3472 = vmatprep.subr.bf16.mxu1 %v5293_v20  ;;  %v6460_v20 = vpack.c.bf16 %v345_v17, %v345_v17  ;;  %v5431_v17 = vld [vmem:[%s6145_s6 + $0x28c] ss:$16 sps:$4 sm:$0xff]  }
 0x12f   : > { %3432 = vmatpush1.bf16.msra.mxu0 %v5288_v23  ;;  %v5357_v23 = vld [vmem:[%s6145_s6 + $0x8] ss:$16 sps:$4 sm:$0xff]  }
 0x130   : > { %3473 = vmatpush1.bf16.msra.mxu1 %v5291_v24  ;;  %3433 = vmatprep.subr.bf16.mxu0 %v5296_v25  ;;  %v5362_v24 = vld [vmem:[%s6145_s6 + $0xd24] ss:$16 sps:$4 sm:$0xff]   ;;  %v5365_v25 = vld [vmem:[%s6145_s6 + $0x2c] ss:$16 sps:$4 sm:$0xff]  }
 0x131   : > { %3474 = vmatprep.subr.bf16.mxu1 %v5299_v26  ;;  %v5360_v26 = vld [vmem:[%s6145_s6 + $0xd20] ss:$16 sps:$4 sm:$0xff]  }
 0x133   : > { %3434 = vmatpush1.bf16.msra.mxu0 %v5294_v27  ;;  %v5363_v27 = vld [vmem:[%s6145_s6 + $0x28] ss:$16 sps:$4 sm:$0xff]  }
 0x134   : > { %3475 = vmatpush1.bf16.msra.mxu1 %v5297_v28  ;;  %3435 = vmatprep.subr.bf16.mxu0 %v5302_v29  ;;  %v5368_v28 = vld [vmem:[%s6145_s6 + $0xd44] ss:$16 sps:$4 sm:$0xff]   ;;  %v5371_v29 = vld [vmem:[%s6145_s6 + $0x4c] ss:$16 sps:$4 sm:$0xff]  }
 0x135   : > { %3476 = vmatprep.subr.bf16.mxu1 %v5305_v31  ;;  %v5366_v31 = vld [vmem:[%s6145_s6 + $0xd40] ss:$16 sps:$4 sm:$0xff]  }
 0x137   : > { %3436 = vmatpush1.bf16.msra.mxu0 %v5300_v32  ;;  %v5369_v32 = vld [vmem:[%s6145_s6 + $0x48] ss:$16 sps:$4 sm:$0xff]  }
 0x138   : > { %3477 = vmatpush1.bf16.msra.mxu1 %v5303_v34  ;;  %3487 = vmatprep.subr.bf16.mxu0 %v5308_v37  ;;  %v5374_v34 = vld [vmem:[%s6145_s6 + $0xd64] ss:$16 sps:$4 sm:$0xff]   ;;  %v5375_v37 = vld [vmem:[%s6145_s6 + $0x68] ss:$16 sps:$4 sm:$0xff]  }
 0x139   : > { %3528 = vmatprep.subr.bf16.mxu1 %v5311_v39  ;;  %v5383_v39 = vld [vmem:[%s6145_s6 + $0x8c] ss:$16 sps:$4 sm:$0xff]  }
 0x13a   : > { %3438 = vmatmul.mubr.bf16.vlgmr.msra.gmra.mrb[8].mxu0 %v6415_v40 }
 0x13b   : > { %3479 = vmatmul.mubr.bf16.vlgmr.msra.gmra.mrb[8].mxu1 %v6417_v42  ;;  %3488 = vmatpush1.bf16.msra.mxu0 %v5306_v43  ;;  %v5378_v43 = vld [vmem:[%s6145_s6 + $0xd80] ss:$16 sps:$4 sm:$0xff]  }
 0x13c   : > { %3529 = vmatpush1.bf16.msra.mxu1 %v5309_v45  ;;  %3489 = vmatprep.subr.bf16.mxu0 %v5314_v46  ;;  %v5386_v45 = vld [vmem:[%s6145_s6 + $0xda4] ss:$16 sps:$4 sm:$0xff]   ;;  %v5389_v46 = vld [vmem:[%s6145_s6 + $0xac] ss:$16 sps:$4 sm:$0xff]  }
 0x13d   : > { %3530 = vmatprep.subr.bf16.mxu1 %v5317_v47  ;;  %3560 = vmatprep.mubr.bf16.mxu1 %v5900_v55  ;;  %v5384_v47 = vld [vmem:[%s6145_s6 + $0xda0] ss:$16 sps:$4 sm:$0xff]  }
 0x13e   : > { %3519 = vmatprep.mubr.bf16.mxu0 %v6424_v48 }
 0x13f   : > { %3490 = vmatpush1.bf16.msra.mxu0 %v5312_v49  ;;  %v5387_v49 = vld [vmem:[%s6145_s6 + $0xa8] ss:$16 sps:$4 sm:$0xff]  }
 0x140   : > { %3531 = vmatpush1.bf16.msra.mxu1 %v5315_v51  ;;  %3491 = vmatprep.subr.bf16.mxu0 %v5320_v52  ;;  %v5392_v51 = vld [vmem:[%s6145_s6 + $0xdc4] ss:$16 sps:$4 sm:$0xff]   ;;  %v5395_v52 = vld [vmem:[%s6145_s6 + $0xcc] ss:$16 sps:$4 sm:$0xff]  }
 0x141   : > { %3532 = vmatprep.subr.bf16.mxu1 %v5323_v54  ;;  %v5390_v54 = vld [vmem:[%s6145_s6 + $0xdc0] ss:$16 sps:$4 sm:$0xff]  }
 0x143   : > { %3492 = vmatpush1.bf16.msra.mxu0 %v5318_v56  ;;  %v5393_v56 = vld [vmem:[%s6145_s6 + $0xc8] ss:$16 sps:$4 sm:$0xff]  }
 0x144   : > { %3533 = vmatpush1.bf16.msra.mxu1 %v5321_v57  ;;  %3493 = vmatprep.subr.bf16.mxu0 %v5326_v58  ;;  %v5398_v57 = vld [vmem:[%s6145_s6 + $0xde4] ss:$16 sps:$4 sm:$0xff]   ;;  %v5401_v58 = vld [vmem:[%s6145_s6 + $0xec] ss:$16 sps:$4 sm:$0xff]  }
 0x145   : > { %3534 = vmatprep.subr.bf16.mxu1 %v5329_v59  ;;  %v5396_v59 = vld [vmem:[%s6145_s6 + $0xde0] ss:$16 sps:$4 sm:$0xff]  }
 0x147   : > { %3494 = vmatpush1.bf16.msra.mxu0 %v5324_v60  ;;  %v5399_v60 = vld [vmem:[%s6145_s6 + $0xe8] ss:$16 sps:$4 sm:$0xff]  }
 0x148   : > { %3535 = vmatpush1.bf16.msra.mxu1 %v5327_v61  ;;  %3495 = vmatprep.subr.bf16.mxu0 %v5332_v62  ;;  %v343_v61 = vld [vmem:[%s6170_s4 + $0x60] sm:$0xff]  ;;  %v5404_v62 = vld [vmem:[%s6145_s6 + $0x10c] ss:$16 sps:$4 sm:$0xff]  }
 0x149   : > { %3536 = vmatprep.subr.bf16.mxu1 %v5335_v63  ;;  %v5407_v63 = vld [vmem:[%s6145_s6 + $0x20c] ss:$16 sps:$4 sm:$0xff]  }
 0x14b   : > { %3496 = vmatpush1.bf16.msra.mxu0 %v5330_v0  ;;  %v6496_v0 = vpack.c.bf16 %v343_v61, %v343_v61  ;;  %v5459_v61 = vld [vmem:[%s6145_s6 + $0x428] ss:$16 sps:$4 sm:$0xff]  }
 0x14c   : > { %3537 = vmatpush1.bf16.msra.mxu1 %v5333_v1  ;;  %3497 = vmatprep.subr.bf16.mxu0 %v5338_v2  ;;  %v5402_v1 = vld [vmem:[%s6145_s6 + $0x108] ss:$16 sps:$4 sm:$0xff]  }
 0x14d   : > { %3538 = vmatprep.subr.bf16.mxu1 %v5341_v3  ;;  %v5405_v2 = vld [vmem:[%s6145_s6 + $0x208] ss:$16 sps:$4 sm:$0xff]   ;;  %v5410_v3 = vld [vmem:[%s6145_s6 + $0x12c] ss:$16 sps:$4 sm:$0xff]  }
 0x14f   : > { %3498 = vmatpush1.bf16.msra.mxu0 %v5336_v4  ;;  %v5413_v4 = vld [vmem:[%s6145_s6 + $0x22c] ss:$16 sps:$4 sm:$0xff]  }
 0x150   : > { %3539 = vmatpush1.bf16.msra.mxu1 %v5339_v5  ;;  %3499 = vmatprep.subr.bf16.mxu0 %v5344_v6  ;;  %v5408_v5 = vld [vmem:[%s6145_s6 + $0x128] ss:$16 sps:$4 sm:$0xff]  }
 0x151   : > { %3540 = vmatprep.subr.bf16.mxu1 %v5347_v7  ;;  %v5411_v6 = vld [vmem:[%s6145_s6 + $0x228] ss:$16 sps:$4 sm:$0xff]   ;;  %v5416_v7 = vld [vmem:[%s6145_s6 + $0x14c] ss:$16 sps:$4 sm:$0xff]  }
 0x153   : > { %3500 = vmatpush1.bf16.msra.mxu0 %v5342_v8  ;;  %v5419_v8 = vld [vmem:[%s6145_s6 + $0x24c] ss:$16 sps:$4 sm:$0xff]  }
 0x154   : > { %3541 = vmatpush1.bf16.msra.mxu1 %v5345_v11  ;;  %3501 = vmatprep.subr.bf16.mxu0 %v5350_v12  ;;  %v5414_v11 = vld [vmem:[%s6145_s6 + $0x148] ss:$16 sps:$4 sm:$0xff]  }
 0x155   : > { %3542 = vmatprep.subr.bf16.mxu1 %v5353_v13  ;;  %v5417_v12 = vld [vmem:[%s6145_s6 + $0x248] ss:$16 sps:$4 sm:$0xff]   ;;  %v5422_v13 = vld [vmem:[%s6145_s6 + $0x16c] ss:$16 sps:$4 sm:$0xff]  }
 0x157   : > { %3502 = vmatpush1.bf16.msra.mxu0 %v5348_v14  ;;  %v5425_v14 = vld [vmem:[%s6145_s6 + $0x26c] ss:$16 sps:$4 sm:$0xff]  }
 0x158   : > { %3543 = vmatpush1.bf16.msra.mxu1 %v5351_v15  ;;  %3503 = vmatprep.subr.bf16.mxu0 %v5356_v16  ;;  %v5420_v15 = vld [vmem:[%s6145_s6 + $0x168] ss:$16 sps:$4 sm:$0xff]  }
 0x159   : > { %3569 = vmatprep.subr.bf16.mxu1 %v5359_v18  ;;  %v5423_v16 = vld [vmem:[%s6145_s6 + $0x268] ss:$16 sps:$4 sm:$0xff]  }
 0x15a   : > { %v5426_v18 = vld [vmem:[%s6145_s6 + $0x188] ss:$16 sps:$4 sm:$0xff]  }
 0x15b   : > { %3561 = vmatmul.mubr.bf16.vlgmr.msra.gmra.mrb[12].mxu1 %v6460_v20  ;;  %3504 = vmatpush1.bf16.msra.mxu0 %v5354_v19  ;;  %v5429_v19 = vld [vmem:[%s6145_s6 + $0x288] ss:$16 sps:$4 sm:$0xff]  }
 0x15c   : > { %3570 = vmatpush1.bf16.msra.mxu1 %v5357_v23  ;;  %3505 = vmatprep.subr.bf16.mxu0 %v5362_v24  ;;  %v5434_v23 = vld [vmem:[%s6145_s6 + $0x1ac] ss:$16 sps:$4 sm:$0xff]  }
 0x15d   : > { %3571 = vmatprep.subr.bf16.mxu1 %v5365_v25  ;;  %3601 = vmatprep.mubr.bf16.mxu1 %v6228_v50  ;;  %v5380_v50 = vld [vmem:[%s6145_s6 + $0xd84] ss:$16 sps:$4 sm:$0xff]   ;;  %v5437_v24 = vld [vmem:[%s6145_s6 + $0x2ac] ss:$16 sps:$4 sm:$0xff]   ;;  %v5432_v25 = vld [vmem:[%s6145_s6 + $0x1a8] ss:$16 sps:$4 sm:$0xff]  }
 0x15f   : > { %3506 = vmatpush1.bf16.msra.mxu0 %v5360_v26  ;;  %v5435_v26 = vld [vmem:[%s6145_s6 + $0x2a8] ss:$16 sps:$4 sm:$0xff]  }
 0x160   : > { %3572 = vmatpush1.bf16.msra.mxu1 %v5363_v27  ;;  %3507 = vmatprep.subr.bf16.mxu0 %v5368_v28  ;;  %v5440_v27 = vld [vmem:[%s6145_s6 + $0x1cc] ss:$16 sps:$4 sm:$0xff]  }
 0x161   : > { %3573 = vmatprep.subr.bf16.mxu1 %v5371_v29  ;;  %v5443_v28 = vld [vmem:[%s6145_s6 + $0x2cc] ss:$16 sps:$4 sm:$0xff]  }
 0x163   : > { %3508 = vmatpush1.bf16.msra.mxu0 %v5366_v31 }
 0x164   : > { %3574 = vmatpush1.bf16.msra.mxu1 %v5369_v32  ;;  %3509 = vmatprep.subr.bf16.mxu0 %v5374_v34  ;;  %v5438_v32 = vld [vmem:[%s6145_s6 + $0x1c8] ss:$16 sps:$4 sm:$0xff]  }
 0x165   : > { %3575 = vmatprep.subr.bf16.mxu1 %v5377_v35  ;;  %v5441_v34 = vld [vmem:[%s6145_s6 + $0x2c8] ss:$16 sps:$4 sm:$0xff]  }
 0x167   : > { %3510 = vmatpush1.bf16.msra.mxu0 %v5372_v36 }
 0x168   : > { %3576 = vmatpush1.bf16.msra.mxu1 %v5375_v37  ;;  %3511 = vmatprep.subr.bf16.mxu0 %v5380_v50 }
 0x169   : > { %3577 = vmatprep.subr.bf16.mxu1 %v5383_v39 }
 0x16b   : > { %3512 = vmatpush1.bf16.msra.mxu0 %v5378_v43 }
 0x16c   : > { %3578 = vmatpush1.bf16.msra.mxu1 %v5381_v44  ;;  %3513 = vmatprep.subr.bf16.mxu0 %v5386_v45 }
 0x16d   : > { %3579 = vmatprep.subr.bf16.mxu1 %v5389_v46  ;;  %v5446_v46 = vld [vmem:[%s6145_s6 + $0x1ec] ss:$16 sps:$4 sm:$0xff]  }
 0x16f   : > { %3514 = vmatpush1.bf16.msra.mxu0 %v5384_v47  ;;  %v5449_v47 = vld [vmem:[%s6145_s6 + $0x2ec] ss:$16 sps:$4 sm:$0xff]  }
 0x170   : > { %3580 = vmatpush1.bf16.msra.mxu1 %v5387_v49  ;;  %3515 = vmatprep.subr.bf16.mxu0 %v5392_v51  ;;  %v5444_v49 = vld [vmem:[%s6145_s6 + $0x1e8] ss:$16 sps:$4 sm:$0xff]  }
 0x171   : > { %3581 = vmatprep.subr.bf16.mxu1 %v5395_v52  ;;  %v5447_v51 = vld [vmem:[%s6145_s6 + $0x2e8] ss:$16 sps:$4 sm:$0xff]   ;;  %v5452_v52 = vld [vmem:[%s6145_s6 + $0x30c] ss:$16 sps:$4 sm:$0xff]  }
 0x173   : > { %3516 = vmatpush1.bf16.msra.mxu0 %v5390_v54  ;;  %v5455_v54 = vld [vmem:[%s6145_s6 + $0x40c] ss:$16 sps:$4 sm:$0xff]  }
 0x174   : > { %3582 = vmatpush1.bf16.msra.mxu1 %v5393_v56  ;;  %3517 = vmatprep.subr.bf16.mxu0 %v5398_v57  ;;  %v5450_v56 = vld [vmem:[%s6145_s6 + $0x308] ss:$16 sps:$4 sm:$0xff]  }
 0x175   : > { %3583 = vmatprep.subr.bf16.mxu1 %v5401_v58  ;;  %v5453_v57 = vld [vmem:[%s6145_s6 + $0x408] ss:$16 sps:$4 sm:$0xff]   ;;  %v5458_v58 = vld [vmem:[%s6145_s6 + $0x32c] ss:$16 sps:$4 sm:$0xff]  }
 0x177   : > { %3518 = vmatpush1.bf16.msra.mxu0 %v5396_v59  ;;  %v5461_v59 = vld [vmem:[%s6145_s6 + $0x42c] ss:$16 sps:$4 sm:$0xff]  }
 0x178   : > { %3584 = vmatpush1.bf16.msra.mxu1 %v5399_v60  ;;  %3610 = vmatprep.subr.bf16.mxu0 %v5407_v63  ;;  %v5456_v60 = vld [vmem:[%s6145_s6 + $0x328] ss:$16 sps:$4 sm:$0xff]   ;;  %v5467_v63 = vld [vmem:[%s6145_s6 + $0x44c] ss:$16 sps:$4 sm:$0xff]  }
 0x179   : > { %3585 = vmatprep.subr.bf16.mxu1 %v5404_v62  ;;  %v5464_v62 = vld [vmem:[%s6145_s6 + $0x34c] ss:$16 sps:$4 sm:$0xff]  }
 0x17a   : > { %3520 = vmatmul.mubr.bf16.vlgmr.msra.gmra.mrb[12].mxu0 %v6496_v0 }
 0x17b   : > { %3611 = vmatpush1.bf16.msra.mxu0 %v5405_v2  ;;  %3642 = vmatprep.mubr.bf16.mxu0 %v6232_v53  ;;  %v5428_v53 = vld [vmem:[%s6145_s6 + $0x18c] ss:$16 sps:$4 sm:$0xff]  }
 0x17c   : > { %3586 = vmatpush1.bf16.msra.mxu1 %v5402_v1  ;;  %3612 = vmatprep.subr.bf16.mxu0 %v5413_v4  ;;  %v5462_v1 = vld [vmem:[%s6145_s6 + $0x348] ss:$16 sps:$4 sm:$0xff]   ;;  %v5470_v2 = vld [vmem:[%s6145_s6 + $0x36c] ss:$16 sps:$4 sm:$0xff]  }
 0x17d   : > { %3587 = vmatprep.subr.bf16.mxu1 %v5410_v3  ;;  %v5473_v3 = vld [vmem:[%s6145_s6 + $0x46c] ss:$16 sps:$4 sm:$0xff]   ;;  %v5468_v4 = vld [vmem:[%s6145_s6 + $0x368] ss:$16 sps:$4 sm:$0xff]  }
 0x17f   : > { %3613 = vmatpush1.bf16.msra.mxu0 %v5411_v6  ;;  %v5479_v6 = vld [vmem:[%s6145_s6 + $0x48c] ss:$16 sps:$4 sm:$0xff]  }
 0x180   : > { %3588 = vmatpush1.bf16.msra.mxu1 %v5408_v5  ;;  %3614 = vmatprep.subr.bf16.mxu0 %v5419_v8  ;;  %v5471_v5 = vld [vmem:[%s6145_s6 + $0x468] ss:$16 sps:$4 sm:$0xff]  }
 0x181   : > { %3589 = vmatprep.subr.bf16.mxu1 %v5416_v7  ;;  %v5474_v7 = vld [vmem:[%s6145_s6 + $0x388] ss:$16 sps:$4 sm:$0xff]  }
 0x182   : > { %v5477_v8 = vld [vmem:[%s6145_s6 + $0x488] ss:$16 sps:$4 sm:$0xff]  }
 0x183   : > { %3615 = vmatpush1.bf16.msra.mxu0 %v5417_v12  ;;  %v5485_v12 = vld [vmem:[%s6145_s6 + $0x4ac] ss:$16 sps:$4 sm:$0xff]  }
 0x184   : > { %3590 = vmatpush1.bf16.msra.mxu1 %v5414_v11  ;;  %3616 = vmatprep.subr.bf16.mxu0 %v5425_v14  ;;  %v5482_v11 = vld [vmem:[%s6145_s6 + $0x3ac] ss:$16 sps:$4 sm:$0xff]   ;;  %v5483_v14 = vld [vmem:[%s6145_s6 + $0x4a8] ss:$16 sps:$4 sm:$0xff]  }
 0x185   : > { %3591 = vmatprep.subr.bf16.mxu1 %v5422_v13  ;;  %v5480_v13 = vld [vmem:[%s6145_s6 + $0x3a8] ss:$16 sps:$4 sm:$0xff]  }
 0x187   : > { %3617 = vmatpush1.bf16.msra.mxu0 %v5423_v16  ;;  %v5491_v16 = vld [vmem:[%s6145_s6 + $0x4cc] ss:$16 sps:$4 sm:$0xff]  }
 0x188   : > { %3592 = vmatpush1.bf16.msra.mxu1 %v5420_v15  ;;  %3618 = vmatprep.subr.bf16.mxu0 %v5431_v17  ;;  %v5488_v15 = vld [vmem:[%s6145_s6 + $0x3cc] ss:$16 sps:$4 sm:$0xff]   ;;  %v5489_v17 = vld [vmem:[%s6145_s6 + $0x4c8] ss:$16 sps:$4 sm:$0xff]  }
 0x189   : > { %3593 = vmatprep.subr.bf16.mxu1 %v5428_v53  ;;  %v5486_v53 = vld [vmem:[%s6145_s6 + $0x3c8] ss:$16 sps:$4 sm:$0xff]  }
 0x18b   : > { %3619 = vmatpush1.bf16.msra.mxu0 %v5429_v19  ;;  %v5497_v19 = vld [vmem:[%s6145_s6 + $0x4ec] ss:$16 sps:$4 sm:$0xff]  }
 0x18c   : > { %3594 = vmatpush1.bf16.msra.mxu1 %v5426_v18  ;;  %3620 = vmatprep.subr.bf16.mxu0 %v5437_v24  ;;  %v5494_v18 = vld [vmem:[%s6145_s6 + $0x3ec] ss:$16 sps:$4 sm:$0xff]   ;;  %v5495_v24 = vld [vmem:[%s6145_s6 + $0x4e8] ss:$16 sps:$4 sm:$0xff]  }
 0x18d   : > { %3595 = vmatprep.subr.bf16.mxu1 %v5434_v23  ;;  %v3275_v29 = vpop.f32.mrb[0].mxu0  ;;  %v5492_v23 = vld [vmem:[%s6145_s6 + $0x3e8] ss:$16 sps:$4 sm:$0xff]  }
 0x18e   : > { %v3316_v31 = vpop.f32.mrb[0].mxu1  ;;  %v3277_v36 = vpop.f32.mrb[1].mxu0 }
 0x18f   : > { %v6526_v35 = vadd.f32 %v3316_v31, %v3275_v29  ;;  %v3318_v37 = vpop.f32.mrb[1].mxu1  ;;  %v3279_v39 = vpop.f32.mrb[2].mxu0  ;;  %3621 = vmatpush1.bf16.msra.mxu0 %v5435_v26  ;;  %v5503_v26 = vld [vmem:[%s6145_s6 + $0x60c] ss:$16 sps:$4 sm:$0xff]  }
 0x190   : > { %v6528_v50 = vadd.f32 %v3318_v37, %v3277_v36  ;;  %v3320_v43 = vpop.f32.mrb[2].mxu1  ;;  %3596 = vmatpush1.bf16.msra.mxu1 %v5432_v25  ;;  %v3280_v44 = vpop.f32.mrb[3].mxu0  ;;  %3622 = vmatprep.subr.bf16.mxu0 %v5443_v28  ;;  %v5500_v25 = vld [vmem:[%s6145_s6 + $0x50c] ss:$16 sps:$4 sm:$0xff]   ;;  %v5501_v28 = vld [vmem:[%s6145_s6 + $0x608] ss:$16 sps:$4 sm:$0xff]  }
 0x191   : > { %v3321_v45 = vpop.f32.mrb[3].mxu1  ;;  %3597 = vmatprep.subr.bf16.mxu1 %v5440_v27  ;;  %v5498_v27 = vld [vmem:[%s6145_s6 + $0x508] ss:$16 sps:$4 sm:$0xff]   ;;  %v5506_v29 = vld [vmem:[%s6145_s6 + $0x52c] ss:$16 sps:$4 sm:$0xff]  }
 0x192   : > { %v5509_v31 = vld [vmem:[%s6145_s6 + $0x62c] ss:$16 sps:$4 sm:$0xff]   ;;  %v5510_v39 = vld [vmem:[%s6145_s6 + $0x548] ss:$16 sps:$4 sm:$0xff]  }
 0x193   : > { %3623 = vmatpush1.bf16.msra.mxu0 %v5441_v34  ;;  %v5507_v34 = vld [vmem:[%s6145_s6 + $0x628] ss:$16 sps:$4 sm:$0xff]   ;;  %v5512_v36 = vld [vmem:[%s6145_s6 + $0x54c] ss:$16 sps:$4 sm:$0xff]  }
 0x194   : > { %3598 = vmatpush1.bf16.msra.mxu1 %v5438_v32  ;;  %3624 = vmatprep.subr.bf16.mxu0 %v5449_v47  ;;  %v5504_v32 = vld [vmem:[%s6145_s6 + $0x528] ss:$16 sps:$4 sm:$0xff]   ;;  %v5515_v37 = vld [vmem:[%s6145_s6 + $0x64c] ss:$16 sps:$4 sm:$0xff]  }
 0x195   : > { %3599 = vmatprep.subr.bf16.mxu1 %v5446_v46  ;;  %v5518_v43 = vld [vmem:[%s6145_s6 + $0x56c] ss:$16 sps:$4 sm:$0xff]   ;;  %v5516_v45 = vld [vmem:[%s6145_s6 + $0x568] ss:$16 sps:$4 sm:$0xff]  }
 0x196   : > { %v5521_v44 = vld [vmem:[%s6145_s6 + $0x66c] ss:$16 sps:$4 sm:$0xff]   ;;  %v5519_v46 = vld [vmem:[%s6145_s6 + $0x668] ss:$16 sps:$4 sm:$0xff]  }
 0x197   : > { %3625 = vmatpush1.bf16.msra.mxu0 %v5447_v51  ;;  %v5527_v47 = vld [vmem:[%s6145_s6 + $0x68c] ss:$16 sps:$4 sm:$0xff]   ;;  %v5525_v51 = vld [vmem:[%s6145_s6 + $0x688] ss:$16 sps:$4 sm:$0xff]  }
 0x198   : > { %3600 = vmatpush1.bf16.msra.mxu1 %v5444_v49  ;;  %3626 = vmatprep.subr.bf16.mxu0 %v5452_v52  ;;  %v5522_v49 = vld [vmem:[%s6145_s6 + $0x588] ss:$16 sps:$4 sm:$0xff]   ;;  %v5530_v52 = vld [vmem:[%s6145_s6 + $0x5ac] ss:$16 sps:$4 sm:$0xff]  }
 0x199   : > { %3651 = vmatprep.subr.bf16.mxu1 %v5455_v54  ;;  %v5533_v54 = vld [vmem:[%s6145_s6 + $0x6ac] ss:$16 sps:$4 sm:$0xff]  }
 0x19b   : > { %3602 = vmatmul.mubr.bf16.vlgmr.msra.gmra.mrb[16].mxu1 %v6255_v9  ;;  %3627 = vmatpush1.bf16.msra.mxu0 %v5450_v56  ;;  %v5465_v9 = vld [vmem:[%s6145_s6 + $0x448] ss:$16 sps:$4 sm:$0xff]  }
 0x19c   : > { %3652 = vmatpush1.bf16.msra.mxu1 %v5453_v57  ;;  %3628 = vmatprep.subr.bf16.mxu0 %v5458_v58  ;;  %v5528_v56 = vld [vmem:[%s6145_s6 + $0x5a8] ss:$16 sps:$4 sm:$0xff]   ;;  %v5536_v58 = vld [vmem:[%s6145_s6 + $0x5cc] ss:$16 sps:$4 sm:$0xff]  }
 0x19d   : > { %3653 = vmatprep.subr.bf16.mxu1 %v5461_v59  ;;  %3683 = vmatprep.mubr.bf16.mxu1 %v6288_v38  ;;  %v5476_v38 = vld [vmem:[%s6145_s6 + $0x38c] ss:$16 sps:$4 sm:$0xff]   ;;  %v5531_v57 = vld [vmem:[%s6145_s6 + $0x6a8] ss:$16 sps:$4 sm:$0xff]  }
 0x19e   : > { %v5539_v59 = vld [vmem:[%s6145_s6 + $0x6cc] ss:$16 sps:$4 sm:$0xff]  }
 0x19f   : > { %3629 = vmatpush1.bf16.msra.mxu0 %v5456_v60 }
 0x1a0   : > { %3654 = vmatpush1.bf16.msra.mxu1 %v5459_v61  ;;  %3630 = vmatprep.subr.bf16.mxu0 %v5464_v62 }
 0x1a1   : > { %3655 = vmatprep.subr.bf16.mxu1 %v5467_v63 }
 0x1a3   : > { %3631 = vmatpush1.bf16.msra.mxu0 %v5462_v1 }
 0x1a4   : > { %3656 = vmatpush1.bf16.msra.mxu1 %v5465_v9  ;;  %3632 = vmatprep.subr.bf16.mxu0 %v5470_v2 }
 0x1a5   : > { %3657 = vmatprep.subr.bf16.mxu1 %v5473_v3 }
 0x1a7   : > { %3633 = vmatpush1.bf16.msra.mxu0 %v5468_v4  ;;  %v5534_v4 = vld [vmem:[%s6145_s6 + $0x5c8] ss:$16 sps:$4 sm:$0xff]  }
 0x1a8   : > { %3658 = vmatpush1.bf16.msra.mxu1 %v5471_v5  ;;  %3634 = vmatprep.subr.bf16.mxu0 %v5476_v38  ;;  %v5537_v5 = vld [vmem:[%s6145_s6 + $0x6c8] ss:$16 sps:$4 sm:$0xff]  }
 0x1a9   : > { %3659 = vmatprep.subr.bf16.mxu1 %v5479_v6 }
 0x1ab   : > { %3635 = vmatpush1.bf16.msra.mxu0 %v5474_v7 }
 0x1ac   : > { %3660 = vmatpush1.bf16.msra.mxu1 %v5477_v8  ;;  %3636 = vmatprep.subr.bf16.mxu0 %v5482_v11  ;;  %v5540_v11 = vld [vmem:[%s6145_s6 + $0x5e8] ss:$16 sps:$4 sm:$0xff]  }
 0x1ad   : > { %3661 = vmatprep.subr.bf16.mxu1 %v5485_v12  ;;  %v5543_v12 = vld [vmem:[%s6145_s6 + $0x6e8] ss:$16 sps:$4 sm:$0xff]  }
 0x1af   : > { %3637 = vmatpush1.bf16.msra.mxu0 %v5480_v13  ;;  %v5548_v13 = vld [vmem:[%s6145_s6 + $0x70c] ss:$16 sps:$4 sm:$0xff]  }
 0x1b0   : > { %3662 = vmatpush1.bf16.msra.mxu1 %v5483_v14  ;;  %3638 = vmatprep.subr.bf16.mxu0 %v5488_v15  ;;  %v5551_v14 = vld [vmem:[%s6145_s6 + $0x80c] ss:$16 sps:$4 sm:$0xff]   ;;  %v5546_v15 = vld [vmem:[%s6145_s6 + $0x708] ss:$16 sps:$4 sm:$0xff]  }
 0x1b1   : > { %3663 = vmatprep.subr.bf16.mxu1 %v5491_v16  ;;  %v5549_v16 = vld [vmem:[%s6145_s6 + $0x808] ss:$16 sps:$4 sm:$0xff]  }
 0x1b3   : > { %3639 = vmatpush1.bf16.msra.mxu0 %v5486_v53  ;;  %v5554_v53 = vld [vmem:[%s6145_s6 + $0x72c] ss:$16 sps:$4 sm:$0xff]  }
 0x1b4   : > { %3664 = vmatpush1.bf16.msra.mxu1 %v5489_v17  ;;  %3640 = vmatprep.subr.bf16.mxu0 %v5494_v18  ;;  %v5557_v17 = vld [vmem:[%s6145_s6 + $0x82c] ss:$16 sps:$4 sm:$0xff]   ;;  %v5552_v18 = vld [vmem:[%s6145_s6 + $0x728] ss:$16 sps:$4 sm:$0xff]  }
 0x1b5   : > { %3665 = vmatprep.subr.bf16.mxu1 %v5497_v19  ;;  %v5555_v19 = vld [vmem:[%s6145_s6 + $0x828] ss:$16 sps:$4 sm:$0xff]  }
 0x1b7   : > { %3641 = vmatpush1.bf16.msra.mxu0 %v5492_v23  ;;  %v5560_v23 = vld [vmem:[%s6145_s6 + $0x74c] ss:$16 sps:$4 sm:$0xff]  }
 0x1b8   : > { %3666 = vmatpush1.bf16.msra.mxu1 %v5495_v24  ;;  %3692 = vmatprep.subr.bf16.mxu0 %v5503_v26  ;;  %v5563_v24 = vld [vmem:[%s6145_s6 + $0x84c] ss:$16 sps:$4 sm:$0xff]  }
 0x1b9   : > { %3667 = vmatprep.subr.bf16.mxu1 %v5500_v25  ;;  %v5558_v25 = vld [vmem:[%s6145_s6 + $0x748] ss:$16 sps:$4 sm:$0xff]   ;;  %v5566_v26 = vld [vmem:[%s6145_s6 + $0x76c] ss:$16 sps:$4 sm:$0xff]  }
 0x1ba   : > { %3643 = vmatmul.mubr.bf16.vlgmr.msra.gmra.mrb[16].mxu0 %v6257_v10  ;;  %v5513_v10 = vld [vmem:[%s6145_s6 + $0x648] ss:$16 sps:$4 sm:$0xff]  }
 0x1bb   : > { %3693 = vmatpush1.bf16.msra.mxu0 %v5501_v28  ;;  %3724 = vmatprep.mubr.bf16.mxu0 %v6292_v41  ;;  %v5524_v41 = vld [vmem:[%s6145_s6 + $0x58c] ss:$16 sps:$4 sm:$0xff]   ;;  %v5564_v28 = vld [vmem:[%s6145_s6 + $0x768] ss:$16 sps:$4 sm:$0xff]  }
 0x1bc   : > { %3668 = vmatpush1.bf16.msra.mxu1 %v5498_v27  ;;  %3694 = vmatprep.subr.bf16.mxu0 %v5509_v31  ;;  %v5569_v27 = vld [vmem:[%s6145_s6 + $0x86c] ss:$16 sps:$4 sm:$0xff]  }
 0x1bd   : > { %3669 = vmatprep.subr.bf16.mxu1 %v5506_v29  ;;  %v5567_v29 = vld [vmem:[%s6145_s6 + $0x868] ss:$16 sps:$4 sm:$0xff]   ;;  %v5575_v31 = vld [vmem:[%s6145_s6 + $0x88c] ss:$16 sps:$4 sm:$0xff]  }
 0x1bf   : > { %3695 = vmatpush1.bf16.msra.mxu0 %v5507_v34  ;;  %v5573_v34 = vld [vmem:[%s6145_s6 + $0x888] ss:$16 sps:$4 sm:$0xff]  }
 0x1c0   : > { %3670 = vmatpush1.bf16.msra.mxu1 %v5504_v32  ;;  %3696 = vmatprep.subr.bf16.mxu0 %v5515_v37  ;;  %v5570_v32 = vld [vmem:[%s6145_s6 + $0x788] ss:$16 sps:$4 sm:$0xff]   ;;  %v5581_v37 = vld [vmem:[%s6145_s6 + $0x8ac] ss:$16 sps:$4 sm:$0xff]  }
 0x1c1   : > { %3671 = vmatprep.subr.bf16.mxu1 %v5512_v36  ;;  %v5578_v36 = vld [vmem:[%s6145_s6 + $0x7ac] ss:$16 sps:$4 sm:$0xff]  }
 0x1c3   : > { %3697 = vmatpush1.bf16.msra.mxu0 %v5513_v10  ;;  %v5579_v10 = vld [vmem:[%s6145_s6 + $0x8a8] ss:$16 sps:$4 sm:$0xff]  }
 0x1c4   : > { %3672 = vmatpush1.bf16.msra.mxu1 %v5510_v39  ;;  %3698 = vmatprep.subr.bf16.mxu0 %v5521_v44  ;;  %v5576_v39 = vld [vmem:[%s6145_s6 + $0x7a8] ss:$16 sps:$4 sm:$0xff]   ;;  %v5587_v44 = vld [vmem:[%s6145_s6 + $0x8cc] ss:$16 sps:$4 sm:$0xff]  }
 0x1c5   : > { %3673 = vmatprep.subr.bf16.mxu1 %v5518_v43  ;;  %v5584_v43 = vld [vmem:[%s6145_s6 + $0x7cc] ss:$16 sps:$4 sm:$0xff]  }
 0x1c7   : > { %3699 = vmatpush1.bf16.msra.mxu0 %v5519_v46  ;;  %v5585_v46 = vld [vmem:[%s6145_s6 + $0x8c8] ss:$16 sps:$4 sm:$0xff]  }
 0x1c8   : > { %3674 = vmatpush1.bf16.msra.mxu1 %v5516_v45  ;;  %3700 = vmatprep.subr.bf16.mxu0 %v5527_v47  ;;  %v5582_v45 = vld [vmem:[%s6145_s6 + $0x7c8] ss:$16 sps:$4 sm:$0xff]   ;;  %v5593_v47 = vld [vmem:[%s6145_s6 + $0x8ec] ss:$16 sps:$4 sm:$0xff]  }
 0x1c9   : > { %3675 = vmatprep.subr.bf16.mxu1 %v5524_v41  ;;  %v5590_v41 = vld [vmem:[%s6145_s6 + $0x7ec] ss:$16 sps:$4 sm:$0xff]  }
 0x1cb   : > { %3701 = vmatpush1.bf16.msra.mxu0 %v5525_v51  ;;  %v5591_v51 = vld [vmem:[%s6145_s6 + $0x8e8] ss:$16 sps:$4 sm:$0xff]  }
 0x1cc   : > { %3676 = vmatpush1.bf16.msra.mxu1 %v5522_v49  ;;  %3702 = vmatprep.subr.bf16.mxu0 %v5533_v54  ;;  %v5588_v49 = vld [vmem:[%s6145_s6 + $0x7e8] ss:$16 sps:$4 sm:$0xff]   ;;  %v5599_v54 = vld [vmem:[%s6145_s6 + $0xa0c] ss:$16 sps:$4 sm:$0xff]  }
 0x1cd   : > { %3677 = vmatprep.subr.bf16.mxu1 %v5530_v52  ;;  %v3357_v60 = vpop.f32.mrb[4].mxu0  ;;  %v5596_v52 = vld [vmem:[%s6145_s6 + $0x90c] ss:$16 sps:$4 sm:$0xff]  }
 0x1ce   : > { %v3398_v61 = vpop.f32.mrb[4].mxu1  ;;  %v3358_v62 = vadd.f32 %v3357_v60, %v6526_v35  ;;  %v3359_v63 = vpop.f32.mrb[5].mxu0  ;;  %v5542_v35 = vld [vmem:[%s6145_s6 + $0x5ec] ss:$16 sps:$4 sm:$0xff]   ;;  %v5600_v60 = vld [vmem:[%s6145_s6 + $0x928] ss:$16 sps:$4 sm:$0xff]  }
 0x1cf   : > { %v3400_v1 = vpop.f32.mrb[5].mxu1  ;;  %v3360_v9 = vadd.f32 %v3359_v63, %v6528_v50  ;;  %v3361_v2 = vpop.f32.mrb[6].mxu0  ;;  %3703 = vmatpush1.bf16.msra.mxu0 %v5531_v57  ;;  %v5545_v50 = vld [vmem:[%s6145_s6 + $0x6ec] ss:$16 sps:$4 sm:$0xff]   ;;  %v5597_v57 = vld [vmem:[%s6145_s6 + $0xa08] ss:$16 sps:$4 sm:$0xff]  }
 0x1d0   : > { %v3402_v3 = vpop.f32.mrb[6].mxu1  ;;  %3678 = vmatpush1.bf16.msra.mxu1 %v5528_v56  ;;  %v6600_v38 = vadd.f32 %v3398_v61, %v3358_v62  ;;  %v3362_v6 = vpop.f32.mrb[7].mxu0  ;;  %3704 = vmatprep.subr.bf16.mxu0 %v5539_v59  ;;  %v5594_v56 = vld [vmem:[%s6145_s6 + $0x908] ss:$16 sps:$4 sm:$0xff]   ;;  %v5605_v59 = vld [vmem:[%s6145_s6 + $0xa2c] ss:$16 sps:$4 sm:$0xff]  }
 0x1d1   : > { %v3403_v7 = vpop.f32.mrb[7].mxu1  ;;  %3679 = vmatprep.subr.bf16.mxu1 %v5536_v58  ;;  %v6604_v8 = vadd.f32 %v3400_v1, %v3360_v9  ;;  %v5602_v58 = vld [vmem:[%s6145_s6 + $0x92c] ss:$16 sps:$4 sm:$0xff]   ;;  %v5603_v61 = vld [vmem:[%s6145_s6 + $0xa28] ss:$16 sps:$4 sm:$0xff]  }
 0x1d2   : > { %v5608_v62 = vld [vmem:[%s6145_s6 + $0x94c] ss:$16 sps:$4 sm:$0xff]   ;;  %v5606_v1 = vld [vmem:[%s6145_s6 + $0x948] ss:$16 sps:$4 sm:$0xff]  }
 0x1d3   : > { %3705 = vmatpush1.bf16.msra.mxu0 %v5537_v5  ;;  %v5611_v63 = vld [vmem:[%s6145_s6 + $0xa4c] ss:$16 sps:$4 sm:$0xff]   ;;  %v5612_v3 = vld [vmem:[%s6145_s6 + $0x968] ss:$16 sps:$4 sm:$0xff]  }
 0x1d4   : > { %3680 = vmatpush1.bf16.msra.mxu1 %v5534_v4  ;;  %3706 = vmatprep.subr.bf16.mxu0 %v5545_v50  ;;  %v5614_v9 = vld [vmem:[%s6145_s6 + $0x96c] ss:$16 sps:$4 sm:$0xff]   ;;  %v5615_v4 = vld [vmem:[%s6145_s6 + $0xa68] ss:$16 sps:$4 sm:$0xff]  }
 0x1d5   : > { %3681 = vmatprep.subr.bf16.mxu1 %v5542_v35  ;;  %v5617_v2 = vld [vmem:[%s6145_s6 + $0xa6c] ss:$16 sps:$4 sm:$0xff]   ;;  %v5618_v6 = vld [vmem:[%s6145_s6 + $0x988] ss:$16 sps:$4 sm:$0xff]  }
 0x1d6   : > { %v5623_v5 = vld [vmem:[%s6145_s6 + $0xa8c] ss:$16 sps:$4 sm:$0xff]   ;;  %v5621_v7 = vld [vmem:[%s6145_s6 + $0xa88] ss:$16 sps:$4 sm:$0xff]  }
 0x1d7   : > { %3707 = vmatpush1.bf16.msra.mxu0 %v5543_v12  ;;  %v5626_v35 = vld [vmem:[%s6145_s6 + $0x9ac] ss:$16 sps:$4 sm:$0xff]   ;;  %v5627_v12 = vld [vmem:[%s6145_s6 + $0xaa8] ss:$16 sps:$4 sm:$0xff]  }
 0x1d8   : > { %3682 = vmatpush1.bf16.msra.mxu1 %v5540_v11  ;;  %3708 = vmatprep.subr.bf16.mxu0 %v5548_v13  ;;  %v5629_v50 = vld [vmem:[%s6145_s6 + $0xaac] ss:$16 sps:$4 sm:$0xff]   ;;  %v5624_v11 = vld [vmem:[%s6145_s6 + $0x9a8] ss:$16 sps:$4 sm:$0xff]  }
 0x1d9   : > { %3733 = vmatprep.subr.bf16.mxu1 %v5551_v14  ;;  %v5632_v13 = vld [vmem:[%s6145_s6 + $0x9cc] ss:$16 sps:$4 sm:$0xff]  }
 0x1da   : > { %v5635_v14 = vld [vmem:[%s6145_s6 + $0xacc] ss:$16 sps:$4 sm:$0xff]  }
 0x1db   : > { %3684 = vmatmul.mubr.bf16.vlgmr.msra.gmra.mrb[20].mxu1 %v6335_v21  ;;  %3709 = vmatpush1.bf16.msra.mxu0 %v5546_v15  ;;  %v5561_v21 = vld [vmem:[%s6145_s6 + $0x848] ss:$16 sps:$4 sm:$0xff]  }
 0x1dc   : > { %3734 = vmatpush1.bf16.msra.mxu1 %v5549_v16  ;;  %3710 = vmatprep.subr.bf16.mxu0 %v5554_v53 }
 0x1dd   : > { %3735 = vmatprep.subr.bf16.mxu1 %v5557_v17  ;;  %3765 = vmatprep.mubr.bf16.mxu1 %v6348_v30  ;;  %v5572_v30 = vld [vmem:[%s6145_s6 + $0x78c] ss:$16 sps:$4 sm:$0xff]  }
 0x1df   : > { %3711 = vmatpush1.bf16.msra.mxu0 %v5552_v18 }
 0x1e0   : > { %3736 = vmatpush1.bf16.msra.mxu1 %v5555_v19  ;;  %3712 = vmatprep.subr.bf16.mxu0 %v5560_v23 }
 0x1e1   : > { %3737 = vmatprep.subr.bf16.mxu1 %v5563_v24 }
 0x1e3   : > { %3713 = vmatpush1.bf16.msra.mxu0 %v5558_v25  ;;  %v5630_v25 = vld [vmem:[%s6145_s6 + $0x9c8] ss:$16 sps:$4 sm:$0xff]  }
 0x1e4   : > { %3738 = vmatpush1.bf16.msra.mxu1 %v5561_v21  ;;  %3714 = vmatprep.subr.bf16.mxu0 %v5566_v26  ;;  %v5633_v21 = vld [vmem:[%s6145_s6 + $0xac8] ss:$16 sps:$4 sm:$0xff]  }
 0x1e5   : > { %3739 = vmatprep.subr.bf16.mxu1 %v5569_v27 }
 0x1e7   : > { %3715 = vmatpush1.bf16.msra.mxu0 %v5564_v28 }
 0x1e8   : > { %3740 = vmatpush1.bf16.msra.mxu1 %v5567_v29  ;;  %3716 = vmatprep.subr.bf16.mxu0 %v5572_v30  ;;  %v5636_v30 = vld [vmem:[%s6145_s6 + $0x9e8] ss:$16 sps:$4 sm:$0xff]  }
 0x1e9   : > { %3741 = vmatprep.subr.bf16.mxu1 %v5575_v31  ;;  %v5639_v31 = vld [vmem:[%s6145_s6 + $0xae8] ss:$16 sps:$4 sm:$0xff]  }
 0x1eb   : > { %3717 = vmatpush1.bf16.msra.mxu0 %v5570_v32  ;;  %v5644_v32 = vld [vmem:[%s6145_s6 + $0xb0c] ss:$16 sps:$4 sm:$0xff]  }
 0x1ec   : > { %3742 = vmatpush1.bf16.msra.mxu1 %v5573_v34  ;;  %3718 = vmatprep.subr.bf16.mxu0 %v5578_v36  ;;  %v5647_v34 = vld [vmem:[%s6145_s6 + $0xc0c] ss:$16 sps:$4 sm:$0xff]   ;;  %v5642_v36 = vld [vmem:[%s6145_s6 + $0xb08] ss:$16 sps:$4 sm:$0xff]  }
 0x1ed   : > { %3743 = vmatprep.subr.bf16.mxu1 %v5581_v37  ;;  %v5645_v37 = vld [vmem:[%s6145_s6 + $0xc08] ss:$16 sps:$4 sm:$0xff]  }
 0x1ef   : > { %3719 = vmatpush1.bf16.msra.mxu0 %v5576_v39  ;;  %v5650_v39 = vld [vmem:[%s6145_s6 + $0xb2c] ss:$16 sps:$4 sm:$0xff]  }
 0x1f0   : > { %3744 = vmatpush1.bf16.msra.mxu1 %v5579_v10  ;;  %3720 = vmatprep.subr.bf16.mxu0 %v5584_v43  ;;  %v5653_v10 = vld [vmem:[%s6145_s6 + $0xc2c] ss:$16 sps:$4 sm:$0xff]   ;;  %v5648_v43 = vld [vmem:[%s6145_s6 + $0xb28] ss:$16 sps:$4 sm:$0xff]  }
 0x1f1   : > { %3745 = vmatprep.subr.bf16.mxu1 %v5587_v44  ;;  %v5651_v44 = vld [vmem:[%s6145_s6 + $0xc28] ss:$16 sps:$4 sm:$0xff]  }
 0x1f3   : > { %3721 = vmatpush1.bf16.msra.mxu0 %v5582_v45  ;;  %v5656_v45 = vld [vmem:[%s6145_s6 + $0xb4c] ss:$16 sps:$4 sm:$0xff]  }
 0x1f4   : > { %3746 = vmatpush1.bf16.msra.mxu1 %v5585_v46  ;;  %3722 = vmatprep.subr.bf16.mxu0 %v5590_v41  ;;  %v5659_v46 = vld [vmem:[%s6145_s6 + $0xc4c] ss:$16 sps:$4 sm:$0xff]   ;;  %v5654_v41 = vld [vmem:[%s6145_s6 + $0xb48] ss:$16 sps:$4 sm:$0xff]  }
 0x1f5   : > { %3747 = vmatprep.subr.bf16.mxu1 %v5593_v47  ;;  %v5662_v47 = vld [vmem:[%s6145_s6 + $0xb6c] ss:$16 sps:$4 sm:$0xff]  }
 0x1f7   : > { %3723 = vmatpush1.bf16.msra.mxu0 %v5588_v49  ;;  %v5665_v49 = vld [vmem:[%s6145_s6 + $0xc6c] ss:$16 sps:$4 sm:$0xff]  }
 0x1f8   : > { %3748 = vmatpush1.bf16.msra.mxu1 %v5591_v51  ;;  %3774 = vmatprep.subr.bf16.mxu0 %v5599_v54  ;;  %v5660_v51 = vld [vmem:[%s6145_s6 + $0xb68] ss:$16 sps:$4 sm:$0xff]   ;;  %v5671_v54 = vld [vmem:[%s6145_s6 + $0xc8c] ss:$16 sps:$4 sm:$0xff]  }
 0x1f9   : > { %3749 = vmatprep.subr.bf16.mxu1 %v5596_v52  ;;  %v5663_v52 = vld [vmem:[%s6145_s6 + $0xc68] ss:$16 sps:$4 sm:$0xff]  }
 0x1fa   : > { %3725 = vmatmul.mubr.bf16.vlgmr.msra.gmra.mrb[20].mxu0 %v6337_v22  ;;  %v5609_v22 = vld [vmem:[%s6145_s6 + $0xa48] ss:$16 sps:$4 sm:$0xff]  }
 0x1fb   : > { %3775 = vmatpush1.bf16.msra.mxu0 %v5597_v57  ;;  %3806 = vmatprep.mubr.bf16.mxu0 %v6352_v33  ;;  %v5620_v33 = vld [vmem:[%s6145_s6 + $0x98c] ss:$16 sps:$4 sm:$0xff]   ;;  %v5669_v57 = vld [vmem:[%s6145_s6 + $0xc88] ss:$16 sps:$4 sm:$0xff]  }
 0x1fc   : > { %3750 = vmatpush1.bf16.msra.mxu1 %v5594_v56  ;;  %3776 = vmatprep.subr.bf16.mxu0 %v5605_v59  ;;  %v5666_v56 = vld [vmem:[%s6145_s6 + $0xb88] ss:$16 sps:$4 sm:$0xff]   ;;  %v5677_v59 = vld [vmem:[%s6145_s6 + $0xcac] ss:$16 sps:$4 sm:$0xff]  }
 0x1fd   : > { %3751 = vmatprep.subr.bf16.mxu1 %v5602_v58  ;;  %v5674_v58 = vld [vmem:[%s6145_s6 + $0xbac] ss:$16 sps:$4 sm:$0xff]  }
 0x1ff   : > { %3777 = vmatpush1.bf16.msra.mxu0 %v5603_v61  ;;  %v5675_v61 = vld [vmem:[%s6145_s6 + $0xca8] ss:$16 sps:$4 sm:$0xff]  }
 0x200   : > { %3752 = vmatpush1.bf16.msra.mxu1 %v5600_v60  ;;  %3778 = vmatprep.subr.bf16.mxu0 %v5611_v63  ;;  %v5672_v60 = vld [vmem:[%s6145_s6 + $0xba8] ss:$16 sps:$4 sm:$0xff]   ;;  %v5683_v63 = vld [vmem:[%s6145_s6 + $0xccc] ss:$16 sps:$4 sm:$0xff]  }
 0x201   : > { %3753 = vmatprep.subr.bf16.mxu1 %v5608_v62  ;;  %v5680_v62 = vld [vmem:[%s6145_s6 + $0xbcc] ss:$16 sps:$4 sm:$0xff]  }
 0x203   : > { %3779 = vmatpush1.bf16.msra.mxu0 %v5609_v22 }
 0x204   : > { %3754 = vmatpush1.bf16.msra.mxu1 %v5606_v1  ;;  %3780 = vmatprep.subr.bf16.mxu0 %v5617_v2  ;;  %v5678_v2 = vld [vmem:[%s6145_s6 + $0xbc8] ss:$16 sps:$4 sm:$0xff]  }
 0x205   : > { %3755 = vmatprep.subr.bf16.mxu1 %v5614_v9 }
 0x207   : > { %3781 = vmatpush1.bf16.msra.mxu0 %v5615_v4 }
 0x208   : > { %3756 = vmatpush1.bf16.msra.mxu1 %v5612_v3  ;;  %3782 = vmatprep.subr.bf16.mxu0 %v5623_v5  ;;  %v5681_v3 = vld [vmem:[%s6145_s6 + $0xcc8] ss:$16 sps:$4 sm:$0xff]   ;;  %v5689_v5 = vld [vmem:[%s6145_s6 + $0xcec] ss:$16 sps:$4 sm:$0xff]  }
 0x209   : > { %3757 = vmatprep.subr.bf16.mxu1 %v5620_v33  ;;  %v5686_v33 = vld [vmem:[%s6145_s6 + $0xbec] ss:$16 sps:$4 sm:$0xff]  }
 0x20b   : > { %3783 = vmatpush1.bf16.msra.mxu0 %v5621_v7  ;;  %v5687_v7 = vld [vmem:[%s6145_s6 + $0xce8] ss:$16 sps:$4 sm:$0xff]  }
 0x20c   : > { %3758 = vmatpush1.bf16.msra.mxu1 %v5618_v6  ;;  %3784 = vmatprep.subr.bf16.mxu0 %v5629_v50  ;;  %v5684_v6 = vld [vmem:[%s6145_s6 + $0xbe8] ss:$16 sps:$4 sm:$0xff]   ;;  %v5695_v50 = vld [vmem:[%s6145_s6 + $0xe0c] ss:$16 sps:$4 sm:$0xff]  }
 0x20d   : > { %3759 = vmatprep.subr.bf16.mxu1 %v5626_v35  ;;  %v3439_v15 = vpop.f32.mrb[8].mxu0  ;;  %v5692_v35 = vld [vmem:[%s6145_s6 + $0xd0c] ss:$16 sps:$4 sm:$0xff]  }
 0x20e   : > { %v3480_v16 = vpop.f32.mrb[8].mxu1  ;;  %v3440_v53 = vadd.f32 %v3439_v15, %v6600_v38  ;;  %v3441_v17 = vpop.f32.mrb[9].mxu0  ;;  %v5638_v38 = vld [vmem:[%s6145_s6 + $0x9ec] ss:$16 sps:$4 sm:$0xff]   ;;  %v5696_v15 = vld [vmem:[%s6145_s6 + $0xd28] ss:$16 sps:$4 sm:$0xff]  }
 0x20f   : > { %v3482_v18 = vpop.f32.mrb[9].mxu1  ;;  %v3442_v19 = vadd.f32 %v3441_v17, %v6604_v8  ;;  %v3443_v23 = vpop.f32.mrb[10].mxu0  ;;  %3785 = vmatpush1.bf16.msra.mxu0 %v5627_v12  ;;  %v5641_v8 = vld [vmem:[%s6145_s6 + $0xaec] ss:$16 sps:$4 sm:$0xff]   ;;  %v5693_v12 = vld [vmem:[%s6145_s6 + $0xe08] ss:$16 sps:$4 sm:$0xff]  }
 0x210   : > { %v3484_v24 = vpop.f32.mrb[10].mxu1  ;;  %3760 = vmatpush1.bf16.msra.mxu1 %v5624_v11  ;;  %v6674_v26 = vadd.f32 %v3480_v16, %v3440_v53  ;;  %v3444_v27 = vpop.f32.mrb[11].mxu0  ;;  %3786 = vmatprep.subr.bf16.mxu0 %v5635_v14  ;;  %v5690_v11 = vld [vmem:[%s6145_s6 + $0xd08] ss:$16 sps:$4 sm:$0xff]   ;;  %v5701_v14 = vld [vmem:[%s6145_s6 + $0xe2c] ss:$16 sps:$4 sm:$0xff]  }
 0x211   : > { %v3485_v28 = vpop.f32.mrb[11].mxu1  ;;  %3761 = vmatprep.subr.bf16.mxu1 %v5632_v13  ;;  %v6678_v29 = vadd.f32 %v3482_v18, %v3442_v19  ;;  %v5698_v13 = vld [vmem:[%s6145_s6 + $0xd2c] ss:$16 sps:$4 sm:$0xff]   ;;  %v5699_v16 = vld [vmem:[%s6145_s6 + $0xe28] ss:$16 sps:$4 sm:$0xff]  }
 0x212   : > { %v5704_v53 = vld [vmem:[%s6145_s6 + $0xd4c] ss:$16 sps:$4 sm:$0xff]   ;;  %v5702_v18 = vld [vmem:[%s6145_s6 + $0xd48] ss:$16 sps:$4 sm:$0xff]  }
 0x213   : > { %3787 = vmatpush1.bf16.msra.mxu0 %v5633_v21  ;;  %v5707_v17 = vld [vmem:[%s6145_s6 + $0xe4c] ss:$16 sps:$4 sm:$0xff]   ;;  %v5708_v24 = vld [vmem:[%s6145_s6 + $0xd68] ss:$16 sps:$4 sm:$0xff]  }
 0x214   : > { %3762 = vmatpush1.bf16.msra.mxu1 %v5630_v25  ;;  %3788 = vmatprep.subr.bf16.mxu0 %v5641_v8  ;;  %v5710_v19 = vld [vmem:[%s6145_s6 + $0xd6c] ss:$16 sps:$4 sm:$0xff]   ;;  %v5711_v25 = vld [vmem:[%s6145_s6 + $0xe68] ss:$16 sps:$4 sm:$0xff]  }
 0x215   : > { %3763 = vmatprep.subr.bf16.mxu1 %v5638_v38  ;;  %v5713_v23 = vld [vmem:[%s6145_s6 + $0xe6c] ss:$16 sps:$4 sm:$0xff]   ;;  %v5714_v27 = vld [vmem:[%s6145_s6 + $0xd88] ss:$16 sps:$4 sm:$0xff]  }
 0x216   : > { %v5719_v21 = vld [vmem:[%s6145_s6 + $0xe8c] ss:$16 sps:$4 sm:$0xff]   ;;  %v5717_v28 = vld [vmem:[%s6145_s6 + $0xe88] ss:$16 sps:$4 sm:$0xff]  }
 0x217   : > { %3789 = vmatpush1.bf16.msra.mxu0 %v5639_v31  ;;  %v5722_v38 = vld [vmem:[%s6145_s6 + $0xdac] ss:$16 sps:$4 sm:$0xff]   ;;  %v5723_v31 = vld [vmem:[%s6145_s6 + $0xea8] ss:$16 sps:$4 sm:$0xff]  }
 0x218   : > { %3764 = vmatpush1.bf16.msra.mxu1 %v5636_v30  ;;  %3790 = vmatprep.subr.bf16.mxu0 %v5644_v32  ;;  %v5725_v8 = vld [vmem:[%s6145_s6 + $0xeac] ss:$16 sps:$4 sm:$0xff]   ;;  %v5720_v30 = vld [vmem:[%s6145_s6 + $0xda8] ss:$16 sps:$4 sm:$0xff]  }
 0x219   : > { %3815 = vmatprep.subr.bf16.mxu1 %v5647_v34  ;;  %v5728_v32 = vld [vmem:[%s6145_s6 + $0xdcc] ss:$16 sps:$4 sm:$0xff]  }
 0x21a   : > { %v5731_v34 = vld [vmem:[%s6145_s6 + $0xecc] ss:$16 sps:$4 sm:$0xff]  }
 0x21b   : > { %3766 = vmatmul.mubr.bf16.vlgmr.msra.gmra.mrb[24].mxu1 %v6415_v40  ;;  %3791 = vmatpush1.bf16.msra.mxu0 %v5642_v36  ;;  %v5657_v40 = vld [vmem:[%s6145_s6 + $0xc48] ss:$16 sps:$4 sm:$0xff]  }
 0x21c   : > { %3816 = vmatpush1.bf16.msra.mxu1 %v5645_v37  ;;  %3792 = vmatprep.subr.bf16.mxu0 %v5650_v39 }
 0x21d   : > { %3817 = vmatprep.subr.bf16.mxu1 %v5653_v10  ;;  %3847 = vmatprep.mubr.bf16.mxu1 %v6424_v48  ;;  %v5668_v48 = vld [vmem:[%s6145_s6 + $0xb8c] ss:$16 sps:$4 sm:$0xff]   ;;  %v327_v10 = vld [vmem:[#allocation2] sm:$0xff] }
 0x21f   : > { %3793 = vmatpush1.bf16.msra.mxu0 %v5648_v43 }
 0x220   : > { %3818 = vmatpush1.bf16.msra.mxu1 %v5651_v44  ;;  %3794 = vmatprep.subr.bf16.mxu0 %v5656_v45  ;;  %v5726_v45 = vld [vmem:[%s6145_s6 + $0xdc8] ss:$16 sps:$4 sm:$0xff]  }
 0x221   : > { %3819 = vmatprep.subr.bf16.mxu1 %v5659_v46  ;;  %v5729_v46 = vld [vmem:[%s6145_s6 + $0xec8] ss:$16 sps:$4 sm:$0xff]  }
 0x223   : > { %3795 = vmatpush1.bf16.msra.mxu0 %v5654_v41 }
 0x224   : > { %3820 = vmatpush1.bf16.msra.mxu1 %v5657_v40  ;;  %3796 = vmatprep.subr.bf16.mxu0 %v5662_v47  ;;  %v328_v40 = vld [vmem:[#allocation2 + $0x8] sm:$0xff] }
 0x225   : > { %3821 = vmatprep.subr.bf16.mxu1 %v5665_v49  ;;  %v5734_v49 = vld [vmem:[%s6145_s6 + $0xdec] ss:$16 sps:$4 sm:$0xff]  }
 0x227   : > { %3797 = vmatpush1.bf16.msra.mxu0 %v5660_v51  ;;  %v5737_v51 = vld [vmem:[%s6145_s6 + $0xeec] ss:$16 sps:$4 sm:$0xff]  }
 0x228   : > { %3822 = vmatpush1.bf16.msra.mxu1 %v5663_v52  ;;  %3798 = vmatprep.subr.bf16.mxu0 %v5668_v48 }
 0x229   : > { %3823 = vmatprep.subr.bf16.mxu1 %v5671_v54  ;;  %v5735_v54 = vld [vmem:[%s6145_s6 + $0xee8] ss:$16 sps:$4 sm:$0xff]  }
 0x22b   : > { %3799 = vmatpush1.bf16.msra.mxu0 %v5666_v56 }
 0x22c   : > { %3824 = vmatpush1.bf16.msra.mxu1 %v5669_v57  ;;  %3800 = vmatprep.subr.bf16.mxu0 %v5674_v58 }
 0x22d   : > { %3825 = vmatprep.subr.bf16.mxu1 %v5677_v59 }
 0x22e   : > { %v6710_v1 = vpop.f32.mrb[12].mxu1 }
 0x22f   : > { %v6712_v22 = vpop.f32.mrb[13].mxu1  ;;  %3801 = vmatpush1.bf16.msra.mxu0 %v5672_v60 }
 0x230   : > { %v3566_v9 = vpop.f32.mrb[14].mxu1  ;;  %3826 = vmatpush1.bf16.msra.mxu1 %v5675_v61  ;;  %3802 = vmatprep.subr.bf16.mxu0 %v5680_v62 }
 0x231   : > { %v3567_v4 = vpop.f32.mrb[15].mxu1  ;;  %3827 = vmatprep.subr.bf16.mxu1 %v5683_v63 }
 0x233   : > { %3803 = vmatpush1.bf16.msra.mxu0 %v5678_v2 }
 0x234   : > { %3828 = vmatpush1.bf16.msra.mxu1 %v5681_v3  ;;  %3804 = vmatprep.subr.bf16.mxu0 %v5686_v33 }
 0x235   : > { %3829 = vmatprep.subr.bf16.mxu1 %v5689_v5 }
 0x237   : > { %3805 = vmatpush1.bf16.msra.mxu0 %v5684_v6 }
 0x238   : > { %3830 = vmatpush1.bf16.msra.mxu1 %v5687_v7  ;;  %3856 = vmatprep.subr.bf16.mxu0 %v5695_v50 }
 0x239   : > { %3831 = vmatprep.subr.bf16.mxu1 %v5692_v35 }
 0x23a   : > { %3807 = vmatmul.mubr.bf16.vlgmr.msra.gmra.mrb[24].mxu0 %v6417_v42  ;;  %v5705_v42 = vld [vmem:[%s6145_s6 + $0xe48] ss:$16 sps:$4 sm:$0xff]  }
 0x23b   : > { %3857 = vmatpush1.bf16.msra.mxu0 %v5693_v12  ;;  %3888 = vmatprep.mubr.bf16.mxu0 %v5900_v55  ;;  %v5716_v55 = vld [vmem:[%s6145_s6 + $0xd8c] ss:$16 sps:$4 sm:$0xff]  }
 0x23c   : > { %3832 = vmatpush1.bf16.msra.mxu1 %v5690_v11  ;;  %3858 = vmatprep.subr.bf16.mxu0 %v5701_v14 }
 0x23d   : > { %3833 = vmatprep.subr.bf16.mxu1 %v5698_v13 }
 0x23f   : > { %3859 = vmatpush1.bf16.msra.mxu0 %v5699_v16 }
 0x240   : > { %3834 = vmatpush1.bf16.msra.mxu1 %v5696_v15  ;;  %3860 = vmatprep.subr.bf16.mxu0 %v5707_v17 }
 0x241   : > { %3835 = vmatprep.subr.bf16.mxu1 %v5704_v53 }
 0x243   : > { %3861 = vmatpush1.bf16.msra.mxu0 %v5705_v42 }
 0x244   : > { %3836 = vmatpush1.bf16.msra.mxu1 %v5702_v18  ;;  %3862 = vmatprep.subr.bf16.mxu0 %v5713_v23 }
 0x245   : > { %3837 = vmatprep.subr.bf16.mxu1 %v5710_v19 }
 0x247   : > { %3863 = vmatpush1.bf16.msra.mxu0 %v5711_v25 }
 0x248   : > { %3838 = vmatpush1.bf16.msra.mxu1 %v5708_v24  ;;  %3864 = vmatprep.subr.bf16.mxu0 %v5719_v21 }
 0x249   : > { %3839 = vmatprep.subr.bf16.mxu1 %v5716_v55 }
 0x24b   : > { %3865 = vmatpush1.bf16.msra.mxu0 %v5717_v28  ;;  %v329_v28 = vld [vmem:[#allocation2 + $0x10] sm:$0xff] }
 0x24c   : > { %3840 = vmatpush1.bf16.msra.mxu1 %v5714_v27  ;;  %3866 = vmatprep.subr.bf16.mxu0 %v5725_v8 }
 0x24d   : > { %3841 = vmatprep.subr.bf16.mxu1 %v5722_v38  ;;  %v3521_v36 = vpop.f32.mrb[12].mxu0 }
 0x24e   : > { %v3522_v37 = vadd.f32 %v3521_v36, %v6674_v26  ;;  %v3523_v39 = vpop.f32.mrb[13].mxu0 }
 0x24f   : > { %v3524_v43 = vadd.f32 %v3523_v39, %v6678_v29  ;;  %v3525_v44 = vpop.f32.mrb[14].mxu0  ;;  %3867 = vmatpush1.bf16.msra.mxu0 %v5723_v31  ;;  %v5732_v29 = vld [vmem:[%s6145_s6 + $0xde8] ss:$16 sps:$4 sm:$0xff]  }
 0x250   : > { %3842 = vmatpush1.bf16.msra.mxu1 %v5720_v30  ;;  %v3563_v41 = vadd.f32 %v6710_v1, %v3522_v37  ;;  %v3526_v47 = vpop.f32.mrb[15].mxu0  ;;  %3868 = vmatprep.subr.bf16.mxu0 %v5731_v34  ;;  %v3960_v44 = vld [vmem:[%s6165_s12 + $0x88] sm:$0xff] (!%p4772_p11) }
 0x251   : > { %3843 = vmatprep.subr.bf16.mxu1 %v5728_v32  ;;  %v3565_v26 = vadd.f32 %v6712_v22, %v3524_v43  ;;  %v330_v32 = vld [vmem:[#allocation2 + $0x18] sm:$0xff]  ;;  %v3959_v43 = vld [vmem:[%s6165_s12 + $0x80] sm:$0xff] (!%p4772_p11)  ;;  %v3944_v47 = vld [vmem:[%s6165_s12 + $0x8] sm:$0xff] (!%p4772_p11) }
 0x252   : > { %v3897_v52 = vadd.f32 %v3563_v41, %v327_v10  ;;  %v3992_v41 = vld [vmem:[%s6165_s12 + $0x188] sm:$0xff] (!%p4772_p11) }
 0x253   : > { %v3898_v48 = vadd.f32 %v3565_v26, %v328_v40  ;;  %3869 = vmatpush1.bf16.msra.mxu0 %v5729_v46  ;;  %v4847_v46 = vpack.c.bf16 (!%p4772_p11), %v3960_v44, %v3959_v43  ;;  %v3943_v40 = vld [vmem:[%s6165_s12] sm:$0xff] (!%p4772_p11) }
 0x254   : > { %3844 = vmatpush1.bf16.msra.mxu1 %v5726_v45  ;;  %3901 = vst [vmem:[#allocation2] sm:$0xff] %v3897_v52  ;;  %3870 = vmatprep.subr.bf16.mxu0 %v5737_v51  ;;  %v3991_v45 = vld [vmem:[%s6165_s12 + $0x180] sm:$0xff] (!%p4772_p11)  ;;  %v4849_v51 = vpack.c.bf16 (!%p4772_p11), %v3944_v47, %v3943_v40  ;;  %v3976_v52 = vld [vmem:[%s6165_s12 + $0x108] sm:$0xff] (!%p4772_p11)  ;;  %v3985_v40 = vld [vmem:[%s6165_s12 + $0x150] sm:$0xff] (!%p4772_p11) }
 0x255   : > { %3845 = vmatprep.subr.bf16.mxu1 %v5734_v49  ;;  %3902 = vst [vmem:[#allocation2 + $0x8] sm:$0xff] %v3898_v48  ;;  %v4879_v49 = vpack.c.bf16 (!%p4772_p11), %v3992_v41, %v3991_v45  ;;  %v3975_v26 = vld [vmem:[%s6165_s12 + $0x100] sm:$0xff] (!%p4772_p11)  ;;  %v3961_v48 = vld [vmem:[%s6165_s12 + $0x90] sm:$0xff] (!%p4772_p11)  ;;  %v3954_v41 = vld [vmem:[%s6165_s12 + $0x58] sm:$0xff] (!%p4772_p11) }
 0x257   : > { %3871 = vmatpush1.bf16.msra.mxu0 %v5735_v54  ;;  %v3962_v54 = vld [vmem:[%s6165_s12 + $0x98] sm:$0xff] (!%p4772_p11) }
 0x258   : > { %3846 = vmatpush1.bf16.msra.mxu1 %v5732_v29  ;;  %4848 = vmatprep.subr.bf16.mxu0 (!%p4772_p11), %v4847_v46  ;;  %v4881_v29 = vpack.c.bf16 (!%p4772_p11), %v3976_v52, %v3975_v26  ;;  %v3953_v46 = vld [vmem:[%s6165_s12 + $0x50] sm:$0xff] (!%p4772_p11)  ;;  %v3972_v26 = vld [vmem:[%s6165_s12 + $0xe8] sm:$0xff] (!%p4772_p11) }
 0x259   : > { %4880 = vmatprep.subr.bf16.mxu1 (!%p4772_p11), %v4879_v49  ;;  %v3986_v49 = vld [vmem:[%s6165_s12 + $0x158] sm:$0xff] (!%p4772_p11) }
 0x25a   : > { %3889 = vmatmul.mubr.bf16.vlgmr.msra.gmra.mrb[28].mxu0 %v6460_v20 }
 0x25b   : > { %3848 = vmatmul.mubr.bf16.vlgmr.msra.gmra.mrb[28].mxu1 %v6496_v0  ;;  %4850 = vmatpush3.bf16.msra.mxu0 (!%p4772_p11), %v4849_v51  ;;  %v3971_v51 = vld [vmem:[%s6165_s12 + $0xe0] sm:$0xff] (!%p4772_p11) }
 0x25c   : > { %4882 = vmatpush3.bf16.msra.mxu1 (!%p4772_p11), %v4881_v29  ;;  %v4003_v29 = vld [vmem:[%s6165_s12 + $0x1e0] sm:$0xff] (!%p4772_p11) }
 0x26e   : > { %v3603_v56 = vpop.f32.mrb[16].mxu1 }
 0x26f   : > { %v3605_v57 = vpop.f32.mrb[17].mxu1 }
 0x270   : > { %v3607_v58 = vpop.f32.mrb[18].mxu1 }
 0x271   : > { %v3608_v59 = vpop.f32.mrb[19].mxu1  ;;  %v4851_v58 = vpack.c.bf16 (!%p4772_p11), %v3962_v54, %v3961_v48  ;;  %v4004_v54 = vld [vmem:[%s6165_s12 + $0x1e8] sm:$0xff] (!%p4772_p11) }
 0x273   : > { %4852 = vmatprep.subr.bf16.mxu0 (!%p4772_p11), %v4851_v58  ;;  %v3955_v58 = vld [vmem:[%s6165_s12 + $0x60] sm:$0xff] (!%p4772_p11) }
 0x28d   : > { %v3644_v60 = vpop.f32.mrb[16].mxu0 }
 0x28e   : > { %v3645_v61 = vadd.f32 %v3644_v60, %v3603_v56  ;;  %v3646_v62 = vpop.f32.mrb[17].mxu0  ;;  %v3993_v56 = vld [vmem:[%s6165_s12 + $0x190] sm:$0xff] (!%p4772_p11) }
 0x28f   : > { %v3647_v63 = vadd.f32 %v3646_v62, %v3605_v57  ;;  %v3648_v1 = vpop.f32.mrb[18].mxu0  ;;  %v3994_v57 = vld [vmem:[%s6165_s12 + $0x198] sm:$0xff] (!%p4772_p11)  ;;  %v3945_v60 = vld [vmem:[%s6165_s12 + $0x10] sm:$0xff] (!%p4772_p11) }
 0x290   : > { %v3649_v22 = vpop.f32.mrb[19].mxu0  ;;  %v4883_v59 = vpack.c.bf16 (!%p4772_p11), %v3994_v57, %v3993_v56  ;;  %v3977_v62 = vld [vmem:[%s6165_s12 + $0x110] sm:$0xff] (!%p4772_p11)  ;;  %v3978_v1 = vld [vmem:[%s6165_s12 + $0x118] sm:$0xff] (!%p4772_p11)  ;;  %v4869_v57 = vpack.c.bf16 (!%p4772_p11), %v3954_v41, %v3953_v46 }
 0x291   : > { %v3963_v22 = vld [vmem:[%s6165_s12 + $0xa0] sm:$0xff] (!%p4772_p11) }
 0x292   : > { %4884 = vmatprep.subr.bf16.mxu1 (!%p4772_p11), %v4883_v59  ;;  %v3956_v59 = vld [vmem:[%s6165_s12 + $0x68] sm:$0xff] (!%p4772_p11) }
 0x2ae   : > { %v3685_v9 = vpop.f32.mrb[20].mxu1 }
 0x2af   : > { %v3686_v2 = vadd.f32 %v3685_v9, %v3645_v61  ;;  %v3687_v3 = vpop.f32.mrb[21].mxu1  ;;  %v3946_v61 = vld [vmem:[%s6165_s12 + $0x18] sm:$0xff] (!%p4772_p11)  ;;  %v3964_v9 = vld [vmem:[%s6165_s12 + $0xa8] sm:$0xff] (!%p4772_p11) }
 0x2b0   : > { %v3688_v4 = vadd.f32 %v3687_v3, %v3647_v63  ;;  %v3689_v33 = vpop.f32.mrb[22].mxu1  ;;  %v4853_v63 = vpack.c.bf16 (!%p4772_p11), %v3946_v61, %v3945_v60  ;;  %v4855_v3 = vpack.c.bf16 (!%p4772_p11), %v3964_v9, %v3963_v22  ;;  %v3987_v60 = vld [vmem:[%s6165_s12 + $0x160] sm:$0xff] (!%p4772_p11)  ;;  %v3910_v22 = vld [vmem:[#allocation2 + $0x8] sm:$0xff] (!%p4772_p11) }
 0x2b1   : > { %v3690_v5 = vpop.f32.mrb[23].mxu1  ;;  %v3996_v33 = vld [vmem:[%s6165_s12 + $0x1a8] sm:$0xff] (!%p4772_p11)  ;;  %v3913_v9 = vld [vmem:[%s6893_s21] sm:$0xf] (!%p4772_p11) }
 0x2b2   : > { %v3947_v5 = vld [vmem:[%s6165_s12 + $0x20] sm:$0xff] (!%p4772_p11)  ;;  %4854 = vmatpush3.bf16.msra.mxu0 (!%p4772_p11), %v4853_v63  ;;  %v4871_v63 = vpack.c.bf16 (!%p4772_p11), %v3972_v26, %v3971_v51 }
 0x2b3   : > { %4856 = vmatprep.subr.bf16.mxu0 (!%p4772_p11), %v4855_v3  ;;  %v3973_v3 = vld [vmem:[%s6165_s12 + $0xf0] sm:$0xff] (!%p4772_p11) }
 0x2cd   : > { %v3726_v6 = vpop.f32.mrb[20].mxu0 }
 0x2ce   : > { %v3727_v0 = vadd.f32 %v3726_v6, %v3686_v2  ;;  %v3728_v7 = vpop.f32.mrb[21].mxu0  ;;  %v4885_v2 = vpack.c.bf16 (!%p4772_p11), %v3978_v1, %v3977_v62  ;;  %v4901_v62 = vpack.c.bf16 (!%p4772_p11), %v3986_v49, %v3985_v40  ;;  %v3988_v1 = vld [vmem:[%s6165_s12 + $0x168] sm:$0xff] (!%p4772_p11) }
 0x2cf   : > { %v3729_v20 = vadd.f32 %v3728_v7, %v3688_v4  ;;  %v3730_v35 = vpop.f32.mrb[22].mxu0  ;;  %v3995_v4 = vld [vmem:[%s6165_s12 + $0x1a0] sm:$0xff] (!%p4772_p11) }
 0x2d0   : > { %v3731_v50 = vpop.f32.mrb[23].mxu0  ;;  %v4887_v6 = vpack.c.bf16 (!%p4772_p11), %v3996_v33, %v3995_v4  ;;  %v3979_v7 = vld [vmem:[%s6165_s12 + $0x120] sm:$0xff] (!%p4772_p11)  ;;  %4886 = vmatpush3.bf16.msra.mxu1 (!%p4772_p11), %v4885_v2  ;;  %v4903_v2 = vpack.c.bf16 (!%p4772_p11), %v4004_v54, %v4003_v29  ;;  %v3974_v4 = vld [vmem:[%s6165_s12 + $0xf8] sm:$0xff] (!%p4772_p11) }
 0x2d1   : > { %v3965_v50 = vld [vmem:[%s6165_s12 + $0xb0] sm:$0xff] (!%p4772_p11) }
 0x2d2   : > { %4888 = vmatprep.subr.bf16.mxu1 (!%p4772_p11), %v4887_v6 }
 0x2ee   : > { %v3767_v11 = vpop.f32.mrb[24].mxu1 }
 0x2ef   : > { %v3768_v12 = vadd.f32 %v3767_v11, %v3727_v0  ;;  %v3769_v13 = vpop.f32.mrb[25].mxu1  ;;  %v3948_v0 = vld [vmem:[%s6165_s12 + $0x28] sm:$0xff] (!%p4772_p11)  ;;  %v3966_v11 = vld [vmem:[%s6165_s12 + $0xb8] sm:$0xff] (!%p4772_p11) }
 0x2f0   : > { %v3770_v14 = vadd.f32 %v3769_v13, %v3729_v20  ;;  %v3771_v15 = vpop.f32.mrb[26].mxu1  ;;  %v3980_v20 = vld [vmem:[%s6165_s12 + $0x128] sm:$0xff] (!%p4772_p11)  ;;  %v4857_v35 = vpack.c.bf16 (!%p4772_p11), %v3948_v0, %v3947_v5  ;;  %v4005_v0 = vld [vmem:[%s6165_s12 + $0x1f0] sm:$0xff] (!%p4772_p11) }
 0x2f1   : > { %v3772_v16 = vpop.f32.mrb[27].mxu1  ;;  %v4889_v13 = vpack.c.bf16 (!%p4772_p11), %v3980_v20, %v3979_v7  ;;  %v3998_v15 = vld [vmem:[%s6165_s12 + $0x1b8] sm:$0xff] (!%p4772_p11) }
 0x2f2   : > { %v3949_v16 = vld [vmem:[%s6165_s12 + $0x30] sm:$0xff] (!%p4772_p11)  ;;  %4858 = vmatpush3.bf16.msra.mxu0 (!%p4772_p11), %v4857_v35  ;;  %v4006_v7 = vld [vmem:[%s6165_s12 + $0x1f8] sm:$0xff] (!%p4772_p11)  ;;  %v4873_v35 = vpack.c.bf16 (!%p4772_p11), %v3956_v59, %v3955_v58 }
 0x2f3   : > { %4890 = vmatpush3.bf16.msra.mxu1 (!%p4772_p11), %v4889_v13 }
 0x30d   : > { %v3808_v53 = vpop.f32.mrb[24].mxu0 }
 0x30e   : > { %v3809_v17 = vadd.f32 %v3808_v53, %v3768_v12  ;;  %v3810_v18 = vpop.f32.mrb[25].mxu0  ;;  %v3997_v12 = vld [vmem:[%s6165_s12 + $0x1b0] sm:$0xff] (!%p4772_p11)  ;;  %v3950_v53 = vld [vmem:[%s6165_s12 + $0x38] sm:$0xff] (!%p4772_p11) }
 0x30f   : > { %v3811_v42 = vadd.f32 %v3810_v18, %v3770_v14  ;;  %v3812_v19 = vpop.f32.mrb[26].mxu0  ;;  %v4859_v14 = vpack.c.bf16 (!%p4772_p11), %v3966_v11, %v3965_v50  ;;  %v3981_v18 = vld [vmem:[%s6165_s12 + $0x130] sm:$0xff] (!%p4772_p11) }
 0x310   : > { %v3813_v23 = vpop.f32.mrb[27].mxu0  ;;  %v3967_v19 = vld [vmem:[%s6165_s12 + $0xc0] sm:$0xff] (!%p4772_p11) }
 0x311   : > { %v3915_v23 = vlaneseq (!%p4772_p11)  ;;  %4860 = vmatprep.subr.bf16.mxu0 (!%p4772_p11), %v4859_v14  ;;  %v4905_v14 = vpack.c.bf16 (!%p4772_p11), %v3988_v1, %v3987_v60 }
 0x32d   : > { %v3890_v25 = vpop.f32.mrb[28].mxu0 }
 0x32e   : > { %v3849_v24 = vpop.f32.mrb[28].mxu1  ;;  %v3892_v27 = vpop.f32.mrb[29].mxu0 }
 0x32f   : > { %v3850_v55 = vadd.f32 %v3849_v24, %v3809_v17  ;;  %v3851_v21 = vpop.f32.mrb[29].mxu1  ;;  %v3894_v30 = vpop.f32.mrb[30].mxu0  ;;  %v4891_v17 = vpack.c.bf16 (!%p4772_p11), %v3998_v15, %v3997_v12  ;;  %v3968_v24 = vld [vmem:[%s6165_s12 + $0xc8] sm:$0xff] (!%p4772_p11)  ;;  %v3909_v12 = vld [vmem:[#allocation2] sm:$0xff] (!%p4772_p11)  ;;  %v4875_v15 = vpack.c.bf16 (!%p4772_p11), %v3974_v4, %v3973_v3 }
 0x330   : > { %v3852_v38 = vadd.f32 %v3851_v21, %v3811_v42  ;;  %v3853_v8 = vpop.f32.mrb[30].mxu1  ;;  %v3895_v36 = vpop.f32.mrb[31].mxu0  ;;  %3908 = sbr.rel (%p4772_p11) target bundleno = 1057 (0x421), region = 52  ;;  %v3982_v42 = vld [vmem:[%s6165_s12 + $0x138] sm:$0xff] (!%p4772_p11)  ;;  %v4861_v21 = vpack.c.bf16 (!%p4772_p11), %v3950_v53, %v3949_v16  ;;  %v3983_v30 = vld [vmem:[%s6165_s12 + $0x140] sm:$0xff] (!%p4772_p11)  ;;  %v3957_v16 = vld [vmem:[%s6165_s12 + $0x70] sm:$0xff] (!%p4772_p11) }
 0x331   : > { %v3891_v31 = vadd.f32 %v3890_v25, %v3850_v55  ;;  %v3854_v34 = vpop.f32.mrb[31].mxu1  ;;  %v3999_v25 = vld [vmem:[%s6165_s12 + $0x1c0] sm:$0xff] (!%p4772_p11)  ;;  %v4000_v55 = vld [vmem:[%s6165_s12 + $0x1c8] sm:$0xff] (!%p4772_p11)  ;;  %4892 = vmatprep.subr.bf16.mxu1 (!%p4772_p11), %v4891_v17  ;;  %v3970_v36 = vld [vmem:[%s6165_s12 + $0xd8] sm:$0xff] (!%p4772_p11) }
 0x332   : > { %v3893_v37 = vadd.f32 %v3892_v27, %v3852_v38  ;;  %v4893_v27 = vpack.c.bf16 (!%p4772_p11), %v3982_v42, %v3981_v18  ;;  %v3951_v38 = vld [vmem:[%s6165_s12 + $0x40] sm:$0xff] (!%p4772_p11)  ;;  %v3952_v8 = vld [vmem:[%s6165_s12 + $0x48] sm:$0xff] (!%p4772_p11)  ;;  %v3969_v34 = vld [vmem:[%s6165_s12 + $0xd0] sm:$0xff] (!%p4772_p11)  ;;  %4862 = vmatpush3.bf16.msra.mxu0 (!%p4772_p11), %v4861_v21  ;;  %v4907_v18 = vpack.c.bf16 (!%p4772_p11), %v4006_v7, %v4005_v0 }
 0x333   : > { %v3899_v39 = vadd.f32 %v3891_v31, %v329_v28  ;;  %v4863_v28 = vpack.c.bf16 (!%p4772_p11), %v3968_v24, %v3967_v19  ;;  %v4895_v31 = vpack.c.bf16 (!%p4772_p11), %v4000_v55, %v3999_v25  ;;  %v4865_v43 = vpack.c.bf16 (!%p4772_p11), %v3952_v8, %v3951_v38  ;;  %v3958_v53 = vld [vmem:[%s6165_s12 + $0x78] sm:$0xff] (!%p4772_p11)  ;;  %v3989_v42 = vld [vmem:[%s6165_s12 + $0x170] sm:$0xff] (!%p4772_p11) }
 0x334   : > { %v3900_v10 = vadd.f32 %v3893_v37, %v330_v32  ;;  %v3984_v32 = vld [vmem:[%s6165_s12 + $0x148] sm:$0xff] (!%p4772_p11)  ;;  %v3916_v37 = vshrl.u32 (!%p4772_p11), %v3915_v23, 7  ;;  %4894 = vmatpush3.bf16.msra.mxu1 (!%p4772_p11), %v4893_v27  ;;  %v4867_v45 = vpack.c.bf16 (!%p4772_p11), %v3970_v36, %v3969_v34  ;;  %v3990_v19 = vld [vmem:[%s6165_s12 + $0x178] sm:$0xff] (!%p4772_p11)  ;;  %v4877_v55 = vpack.c.bf16 (!%p4772_p11), %v3958_v53, %v3957_v16 }
 0x335   : > { %3903 = vst [vmem:[#allocation2 + $0x10] sm:$0xff] %v3899_v39  ;;  %v4001_v39 = vld [vmem:[%s6165_s12 + $0x1d0] sm:$0xff] (!%p4772_p11)  ;;  %4864 = vmatprep.subr.bf16.mxu0 (!%p4772_p11), %v4863_v28  ;;  %v4897_v44 = vpack.c.bf16 (!%p4772_p11), %v3984_v32, %v3983_v30  ;;  %4896 = vmatprep.subr.bf16.mxu1 (!%p4772_p11), %v4895_v31  ;;  %v4909_v27 = vpack.c.bf16 (!%p4772_p11), %v3990_v19, %v3989_v42 }
 0x336   : > { %3904 = vst [vmem:[#allocation2 + $0x18] sm:$0xff] %v3900_v10  ;;  %v4002_v10 = vld [vmem:[%s6165_s12 + $0x1d8] sm:$0xff] (!%p4772_p11)  ;;  %v3921_v52 = vsub.s32 (!%p4772_p11), 1, %v3916_v37  ;;  %v3929_v48 = vsub.s32 (!%p4772_p11), 3, %v3916_v37  ;;  %v3917_v56 = vsub.s32 (!%p4772_p11), 0, %v3916_v37  ;;  %4866 = vmatpush3.bf16.msra.mxu0 (!%p4772_p11), %v4865_v43  ;;  %v3925_v61 = vsub.s32 (!%p4772_p11), 2, %v3916_v37 }
 0x337   : > { %v4899_v47 = vpack.c.bf16 %v4002_v10, %v4001_v39  ;;  %4868 = vmatprep.subr.bf16.mxu0 %v4867_v45 }
 0x338   : > { %4898 = vmatpush3.bf16.msra.mxu1 %v4897_v44  ;;  %v3922_v33 = vrot.slane %v3913_v9, %v3921_v52  ;;  %v3930_v6 = vrot.slane %v3913_v9, %v3929_v48  ;;  %v3918_v20 = vrot.slane %v3913_v9, %v3917_v56  ;;  %v3926_v13 = vrot.slane %v3913_v9, %v3925_v61 }
 0x339   : > { %4900 = vmatprep.subr.bf16.mxu1 %v4899_v47 }
 0x33a   : > { %4870 = vmatpush3.bf16.msra.mxu0 %v4869_v57  ;;  %v3936_v50 = vadd.f32 %v3922_v33, %v3910_v22  ;;  %v3935_v25 = vadd.f32 %v3918_v20, %v3909_v12 }
 0x33b   : > { %4872 = vmatprep.subr.bf16.mxu0 %v4871_v63 }
 0x33c   : > { %4902 = vmatpush3.bf16.msra.mxu1 %v4901_v62  ;;  %v3911_v17 = vld [vmem:[#allocation2 + $0x10] sm:$0xff]  ;;  %v3940_v23 = vmax.f32 %v3936_v50, 0.0  ;;  %v3939_v28 = vmax.f32 %v3935_v25, 0.0 }
 0x33d   : > { %v3912_v5 = vld [vmem:[#allocation2 + $0x18] sm:$0xff]  ;;  %4904 = vmatprep.subr.bf16.mxu1 %v4903_v2  ;;  %v3937_v21 = vadd.f32 %v3926_v13, %v3911_v17 }
 0x33e   : > { %v3938_v11 = vadd.f32 %v3930_v6, %v3912_v5  ;;  %4874 = vmatpush3.bf16.msra.mxu0 %v4873_v35  ;;  %4071 = vmatprep.mubr.f32.mxu0 %v3940_v23 }
 0x33f   : > { %4876 = vmatprep.subr.bf16.mxu0 %v4875_v15  ;;  %v3941_v38 = vmax.f32 %v3937_v21, 0.0 }
 0x340   : > { %v3942_v24 = vmax.f32 %v3938_v11, 0.0  ;;  %4906 = vmatpush3.bf16.msra.mxu1 %v4905_v14 }
 0x341   : > { %4908 = vmatprep.subr.bf16.mxu1 %v4907_v18 }
 0x342   : > { %4141 = vmatprep.mubr.f32.mxu1 %v3942_v24  ;;  %4878 = vmatpush3.bf16.msra.mxu0 %v4877_v55 }
 0x344   : > { %4910 = vmatpush3.bf16.msra.mxu1 %v4909_v27 }
 0x345   : > { %4072 = vmatmul.mubr.f32.vlgmr.msra.gmra.mrb[0].mxu0 %v3939_v28 }
 0x347   : > { %4142 = vmatmul.mubr.f32.vlgmr.msra.gmra.mrb[0].mxu1 %v3941_v38 }
 0x418   : > { %v4809_v8 = vpop.f32.mrb[0].mxu0 }
 0x419   : > { %v4810_v31 = vpop.f32.mrb[1].mxu0 }
 0x41a   : > { %v4844_v30 = vpop.f32.mrb[0].mxu1  ;;  %v4811_v32 = vadd.f32 %v4810_v31, %v4809_v8 }
 0x41b   : > { %v4845_v34 = vpop.f32.mrb[1].mxu1 }
 0x41c   : > { %v4846_v36 = vadd.f32 %v4845_v34, %v4844_v30 }
 0x41e   : > { %v4144_v37 = vadd.f32 %v4846_v36, %v4811_v32 }
 0x420   : > { %4148 = vst.msk [vmem:[%s6176_s2] sm:$0xff] %vm4147_vm0, %v4144_v37 }
 0x421 PF: > { %s20_s25 = sadd.s32 1, %s5892_s25   ;;  %s6894_s6 = sld [smem:[#allocation9_spill]] }
 0x422   : > { %p17_p12 = scmp.ge.s32.totalorder %s20_s25, 8   ;;  %s6895_s15 = smov %s5856_s16 }
 0x423   : > { %s6896_s16 = smov %s5860_s17  ;;  %s6897_s17 = smov %s6094_s14 }
 0x424   : > { %s6898_s18 = smov %s5868_s19  ;;  %s6899_s19 = smov %s5872_s20 }
 0x425   : > { %s6900_s20 = smov %s6099_s5  ;;  %s6901_s21 = smov %s5884_s23 }
 0x426   : > { %s6902_s22 = smov %s5888_s24  ;;  %s6903_s23 = smov %s6906_s26 }
 0x427   : > { %s6904_s24 = smov %s6894_s6  ;;  %19 = sbr.rel (!%p17_p12) target bundleno = 13 (0xd), region = 103 }
 0x42e   :  { %4168 = vsyncpa [#allocation4], 1 }
 0x42f   :  { %4170 = vsyncpa [#allocation4 + $0x1], 1 }
 0x430   :  { %4171 = vsyncpa [#allocation6], 1 }
 0x431   :  { %4173 = vsyncpa [#allocation6 + $0x1], 1 }

// kernel: cnn_forward.2
= control target key start
LH: loop header
LB: loop body
LE: loop exit
PB: predicated region body
PF: predicated region fallthrough
CT: control target
= control target key end

     0   :  { %10 = vsyncpa [#allocation4], 0  ;;  %s14312_s0 = inlined_call_operand.vmem [shape: f32[8,104,8], index: 0, kind: input, shape index: {}]   ;;  %s14313_s1 = inlined_call_operand.hbm [shape: f32[8,60], index: 1, kind: input, shape index: {}]   ;;  %s14314_s2 = inlined_call_operand.hbm [shape: f32[1,60], index: 2, kind: input, shape index: {}]   ;;  %s14315_s3 = inlined_call_operand.hbm [shape: f32[5,60,120], index: 3, kind: input, shape index: {}]   ;;  %s14316_s4 = inlined_call_operand.hbm [shape: f32[1,120], index: 4, kind: input, shape index: {}]   ;;  %s14317_s5 = inlined_call_operand.vmem [shape: f32[8,48,120], index: 5, kind: output, shape index: {}]  }
   0x1   :  { %11 = vsyncpa [#allocation6], 0 }
   0x2   :  { %12 = vsyncpa [#allocation9], 0  ;;  %s10034_s18 = smov [#allocation5]   ;;  %s10035_s20 = smov [#allocation3]  }
   0x3   :  { %s31_s19 = sshll.u32 %s10034_s18, 4  ;;  %s21_s21 = sshll.u32 %s10035_s20, 4  ;;  %s32_s19 = int_to_ptr.vmem [resolvable:$true] %s31_s19  ;;  %s22_s21 = int_to_ptr.vmem [resolvable:$true] %s21_s21 }
   0x4   :  { %s9940_s24 = scalar_lea.hbm %s14314_s2, 16 }
   0x5   :  { %p9941_p0 = scmp.ne.s32.totalorder %s14314_s2, %s9940_s24  ;;  %p9944_p1 = scmp.lt.u32.totalorder %s9940_s24, %s14314_s2 }
   0x7   :  { %p9946_p2 = pnand %p9944_p1, %p9941_p0 }
   0x9   :  { %9949 = shalt.err (!%p9946_p2)
}
   0xa   :  { %s9950_s29 = scalar_lea.vmem %s32_s19, 16  ;;  %s9954_s30 = scalar_lea.vmem %s32_s19, 32 }
   0xb   :  { %p9951_p3 = scmp.ne.s32.totalorder %s32_s19, %s9950_s29  ;;  %p9955_p4 = scmp.lt.s32.totalorder %s32_s19, %s32_s19 }
   0xc   :  { %p9956_p5 = scmp.lt.s32.totalorder %s9954_s30, %s9950_s29 }
   0xe   :  { %p9957_p6 = por %p9956_p5, %p9955_p4 }
  0x10   :  { %p9958_p7 = pnand %p9957_p6, %p9951_p3 }
  0x12   :  { %9961 = shalt.err (!%p9958_p7)
}
  0x13   :  { %34 = dma.hbm_to_vmem [thread:$0]  %s14314_s2, 16, %s32_s19, [#allocation6]  }
  0x14   :  { %s9962_s10 = scalar_lea.hbm %s14313_s1, 128 }
  0x15   :  { %p9963_p8 = scmp.ne.s32.totalorder %s14313_s1, %s9962_s10  ;;  %p9966_p9 = scmp.lt.u32.totalorder %s9962_s10, %s14313_s1 }
  0x17   :  { %p9968_p10 = pnand %p9966_p9, %p9963_p8 }
  0x19   :  { %9971 = shalt.err (!%p9968_p10)
}
  0x1a   :  { %s9972_s15 = scalar_lea.vmem %s22_s21, 128  ;;  %p9977_p12 = scmp.lt.s32.totalorder %s22_s21, %s22_s21 }
  0x1b   :  { %p9973_p11 = scmp.ne.s32.totalorder %s22_s21, %s9972_s15  ;;  %p9978_p13 = scmp.lt.s32.totalorder %s9972_s15, %s9972_s15 }
  0x1d   :  { %p9979_p0 = por %p9978_p13, %p9977_p12 }
  0x1f   :  { %p9980_p1 = pnand %p9979_p0, %p9973_p11 }
  0x21   :  { %9983 = shalt.err (!%p9980_p1)
}
  0x22   :  { %24 = dma.hbm_to_vmem [thread:$0]  %s14313_s1, 128, %s22_s21, [#allocation4]  }
  0x23   :  { %s10036_s17 = smov [#allocation7]   ;;  %s9984_s22 = scalar_lea.hbm %s14315_s3, 5120 }
  0x24   :  { %s40_s18 = sshll.u32 %s10036_s17, 4  ;;  %p9985_p2 = scmp.ne.s32.totalorder %s14315_s3, %s9984_s22  ;;  %s41_s18 = int_to_ptr.vmem [resolvable:$true] %s40_s18 }
  0x25   :  { %p9988_p3 = scmp.lt.u32.totalorder %s9984_s22, %s14315_s3 }
  0x27   :  { %p9990_p4 = pnand %p9988_p3, %p9985_p2 }
  0x29   :  { %9993 = shalt.err (!%p9990_p4)
}
  0x2a   :  { %s9994_s27 = scalar_lea.vmem %s41_s18, 5120  ;;  %p9999_p6 = scmp.lt.s32.totalorder %s41_s18, %s41_s18 }
  0x2b   :  { %p9995_p5 = scmp.ne.s32.totalorder %s41_s18, %s9994_s27  ;;  %p10000_p7 = scmp.lt.s32.totalorder %s9994_s27, %s9994_s27 }
  0x2d   :  { %p10001_p8 = por %p10000_p7, %p9999_p6 }
  0x2f   :  { %p10002_p9 = pnand %p10001_p8, %p9995_p5 }
  0x31   :  { %10005 = shalt.err (!%p10002_p9)
}
  0x32   :  { %s10037_s1 = smov 128   ;;  %s10038_s21 = smov 8  }
  0x33   :  { %46 = dma.hbm_to_vmem [thread:$0]  %s14315_s3, 5120, %s41_s18, [#allocation6], %s10037_s1, %s10037_s1, %s10038_s21  }
  0x34   :  { %s10039_s30 = smov [#allocation8]   ;;  %s10006_s9 = scalar_lea.hbm %s14316_s4, 16 }
  0x35   :  { %s53_s6 = sshll.u32 %s10039_s30, 4  ;;  %p10007_p10 = scmp.ne.s32.totalorder %s14316_s4, %s10006_s9  ;;  %s54_s6 = int_to_ptr.vmem [resolvable:$true] %s53_s6 }
  0x36   :  { %p10010_p11 = scmp.lt.u32.totalorder %s10006_s9, %s14316_s4 }
  0x38   :  { %p10012_p12 = pnand %p10010_p11, %p10007_p10 }
  0x3a   :  { %10015 = shalt.err (!%p10012_p12)
}
  0x3b   :  { %s10016_s14 = scalar_lea.vmem %s54_s6, 16  ;;  %s10020_s3 = scalar_lea.vmem %s54_s6, 32 }
  0x3c   :  { %p10017_p13 = scmp.ne.s32.totalorder %s54_s6, %s10016_s14  ;;  %p10021_p0 = scmp.lt.s32.totalorder %s54_s6, %s54_s6 }
  0x3d   :  { %p10022_p1 = scmp.lt.s32.totalorder %s10020_s3, %s10016_s14 }
  0x3f   :  { %p10023_p2 = por %p10022_p1, %p10021_p0 }
  0x41   :  { %p10024_p3 = pnand %p10023_p2, %p10017_p13 }
  0x43   :  { %10027 = shalt.err (!%p10024_p3)
}
  0x44   :  { %56 = dma.hbm_to_vmem [thread:$0]  %s14316_s4, 16, %s54_s6, [#allocation9]  }
  0x45   :  { %10028 = dma.done.wait [#allocation4], 128  }
  0x46   :  { %10029 = vsyncadd [#allocation4], 4294967168 }
  0x47   :  { %10030 = dma.done.wait [#allocation6], 5136  }
  0x48   :  { %10031 = vsyncadd [#allocation6], 4294962160 }
  0x49   :  { %10032 = dma.done.wait [#allocation9], 16  }
  0x4a   :  { %10033 = vsyncadd [#allocation9], 4294967280  ;;  %vm181_vm0 = vcmask 64512   ;;  %v173_v0 = vld [vmem:[#allocation3] sm:$0xff]  ;;  %v70_v2 = vld [vmem:[%s14312_s0 + $0x8] sm:$0xff]  ;;  %vm1376_vm1 = vcmask 1043456  }
  0x4b   :  { %v69_v1 = vld [vmem:[%s14312_s0] sm:$0xff]  ;;  %8882 = vmatprep.subr.mxu0 %v173_v0  ;;  %v71_v3 = vld [vmem:[%s14312_s0 + $0x10] sm:$0xff]  ;;  %v72_v4 = vld [vmem:[%s14312_s0 + $0x18] sm:$0xff]  ;;  %vm10040_vm2 = vmmov 1   ;;  %vm1087_vm4 = vcmask 490496   ;;  %vm3364_vm5 = vcmask 1045504  }
  0x4c   :  { %8884 = vmatprep.mubr.msk.f32.mxu0 %vm181_vm0, %v69_v1  ;;  %8883 = vmatpush3.msra.mxu0 %v173_v0  ;;  %v73_v5 = vld [vmem:[%s14312_s0 + $0x20] sm:$0xff]  ;;  %v74_v6 = vld [vmem:[%s14312_s0 + $0x28] sm:$0xff]  ;;  %v75_v7 = vld [vmem:[%s14312_s0 + $0x30] sm:$0xff]  ;;  %v14417_v0 = vmov 0  ;;  %vm2126_vm6 = vcmask 1046528   ;;  %vm4602_vm7 = vcmask 1044480  }
  0x4d   :  { %8885 = vmatmul.mubr.msk.f32.vlgmr.msra.gmra.mrb[0].mxu0 %vm181_vm0, %v70_v2  ;;  %v76_v8 = vld [vmem:[%s14312_s0 + $0x38] sm:$0xff]  ;;  %v77_v9 = vld [vmem:[%s14312_s0 + $0x40] sm:$0xff]  ;;  %v78_v10 = vld [vmem:[%s14312_s0 + $0x48] sm:$0xff]  ;;  %vm1925_vm8 = vcmask 982016  }
  0x4e   :  { %8887 = vmatprep.mubr.msk.f32.mxu0 %vm181_vm0, %v71_v3  ;;  %v79_v11 = vld [vmem:[%s14312_s0 + $0x50] sm:$0xff]  ;;  %v80_v12 = vld [vmem:[%s14312_s0 + $0x58] sm:$0xff]  ;;  %v81_v13 = vld [vmem:[%s14312_s0 + $0x60] sm:$0xff] }
  0x4f   :  { %v82_v14 = vld [vmem:[%s14312_s0 + $0x68] sm:$0xff]  ;;  %v83_v15 = vld [vmem:[%s14312_s0 + $0x70] sm:$0xff]  ;;  %v84_v16 = vld [vmem:[%s14312_s0 + $0x78] sm:$0xff] }
  0x50   :  { %v85_v17 = vld [vmem:[%s14312_s0 + $0x80] sm:$0xff]  ;;  %v86_v18 = vld [vmem:[%s14312_s0 + $0x88] sm:$0xff]  ;;  %v87_v19 = vld [vmem:[%s14312_s0 + $0x90] sm:$0xff] }
  0x51   :  { %8888 = vmatmul.mubr.msk.f32.gmra.mrb[2].mxu0 %vm181_vm0, %v72_v4  ;;  %v88_v20 = vld [vmem:[%s14312_s0 + $0x98] sm:$0xff]  ;;  %v89_v21 = vld [vmem:[%s14312_s0 + $0xa0] sm:$0xff]  ;;  %v90_v22 = vld [vmem:[%s14312_s0 + $0xa8] sm:$0xff] }
  0x52   :  { %8890 = vmatprep.mubr.msk.f32.mxu0 %vm181_vm0, %v73_v5  ;;  %v91_v23 = vld [vmem:[%s14312_s0 + $0xb0] sm:$0xff]  ;;  %v92_v24 = vld [vmem:[%s14312_s0 + $0xb8] sm:$0xff]  ;;  %v93_v25 = vld [vmem:[%s14312_s0 + $0xc0] sm:$0xff] }
  0x53   :  { %v94_v26 = vld [vmem:[%s14312_s0 + $0xc8] sm:$0xff]  ;;  %v95_v27 = vld [vmem:[%s14312_s0 + $0xd0] sm:$0xff]  ;;  %v96_v28 = vld [vmem:[%s14312_s0 + $0xd8] sm:$0xff] }
  0x54   :  { %v97_v29 = vld [vmem:[%s14312_s0 + $0xe0] sm:$0xff]  ;;  %v98_v30 = vld [vmem:[%s14312_s0 + $0xe8] sm:$0xff]  ;;  %v99_v31 = vld [vmem:[%s14312_s0 + $0xf0] sm:$0xff] }
  0x55   :  { %8891 = vmatmul.mubr.msk.f32.gmra.mrb[4].mxu0 %vm181_vm0, %v74_v6  ;;  %v100_v32 = vld [vmem:[%s14312_s0 + $0xf8] sm:$0xff]  ;;  %v101_v33 = vld [vmem:[%s14312_s0 + $0x100] sm:$0xff]  ;;  %v102_v34 = vld [vmem:[%s14312_s0 + $0x108] sm:$0xff] }
  0x56   :  { %8893 = vmatprep.mubr.msk.f32.mxu0 %vm181_vm0, %v75_v7  ;;  %v103_v35 = vld [vmem:[%s14312_s0 + $0x110] sm:$0xff]  ;;  %v104_v36 = vld [vmem:[%s14312_s0 + $0x118] sm:$0xff]  ;;  %v105_v37 = vld [vmem:[%s14312_s0 + $0x120] sm:$0xff] }
  0x57   :  { %v106_v38 = vld [vmem:[%s14312_s0 + $0x128] sm:$0xff]  ;;  %v1080_v40 = vld [vmem:[#allocation7 + $0x8] sm:$0xff]  ;;  %v1081_v44 = vld [vmem:[#allocation7 + $0x10] sm:$0xff] }
  0x58   :  { %v1079_v39 = vld [vmem:[#allocation7] sm:$0xff]  ;;  %v108_v43 = vld [vmem:[%s14312_s0 + $0x138] sm:$0xff]  ;;  %v1082_v45 = vld [vmem:[#allocation7 + $0x18] sm:$0xff] }
  0x59   :  { %8894 = vmatmul.mubr.msk.f32.gmra.mrb[6].mxu0 %vm181_vm0, %v76_v8  ;;  %v107_v41 = vld [vmem:[%s14312_s0 + $0x130] sm:$0xff]  ;;  %v9840_v42 = vpack.c.bf16 %v1080_v40, %v1079_v39  ;;  %v109_v46 = vld [vmem:[%s14312_s0 + $0x140] sm:$0xff]  ;;  %v9844_v47 = vpack.c.bf16 %v1082_v45, %v1081_v44  ;;  %v110_v54 = vld [vmem:[%s14312_s0 + $0x148] sm:$0xff] }
  0x5a   :  { %8896 = vmatprep.mubr.msk.f32.mxu0 %vm181_vm0, %v77_v9  ;;  %v3566_v48 = vld [vmem:[#allocation7 + $0x80] sm:$0xff]  ;;  %v3567_v49 = vld [vmem:[#allocation7 + $0x88] sm:$0xff]  ;;  %v3568_v53 = vld [vmem:[#allocation7 + $0x90] sm:$0xff] }
  0x5b   :  { %9841 = vmatprep.subr.bf16.mxu1 %v9840_v42  ;;  %v9876_v50 = vpack.c.bf16 %v3567_v49, %v3566_v48  ;;  %v1083_v51 = vld [vmem:[#allocation7 + $0x20] sm:$0xff]  ;;  %v1084_v52 = vld [vmem:[#allocation7 + $0x28] sm:$0xff]  ;;  %v3569_v56 = vld [vmem:[#allocation7 + $0x98] sm:$0xff] }
  0x5c   :  { %9843 = vmatpush3.bf16.msra.mxu1 %v9840_v42  ;;  %v9848_v55 = vpack.c.bf16 %v1084_v52, %v1083_v51  ;;  %v111_v57 = vld [vmem:[%s14312_s0 + $0x150] sm:$0xff]  ;;  %v9880_v58 = vpack.c.bf16 %v3569_v56, %v3568_v53  ;;  %v112_v59 = vld [vmem:[%s14312_s0 + $0x158] sm:$0xff]  ;;  %v1086_v61 = vld [vmem:[#allocation7 + $0x38] sm:$0xf] }
  0x5d   :  { %8897 = vmatmul.mubr.msk.f32.gmra.mrb[8].mxu0 %vm181_vm0, %v78_v10  ;;  %9845 = vmatprep.subr.bf16.mxu1 %v9844_v47  ;;  %v1085_v60 = vld [vmem:[#allocation7 + $0x30] sm:$0xff]  ;;  %vm10298_vm3 = vmpackc.low %vm1376_vm1, %vm10040_vm2  ;;  %v3570_v1 = vld [vmem:[#allocation7 + $0xa0] sm:$0xff] }
  0x5e   :  { %8899 = vmatprep.mubr.msk.f32.mxu0 %vm181_vm0, %v79_v11  ;;  %9877 = vmatprep.subr.bf16.mxu0 %v9876_v50  ;;  %v113_v62 = vld [vmem:[%s14312_s0 + $0x160] sm:$0xff]  ;;  %v9852_v63 = vpack.c.bf16 %v1086_v61, %v1085_v60  ;;  %v14418_v0 = vsel %vm10298_vm3, 4294967295, %v14417_v0  ;;  %v3571_v2 = vld [vmem:[#allocation7 + $0xa8] sm:$0xff]  ;;  %v114_v3 = vld [vmem:[%s14312_s0 + $0x168] sm:$0xff] }
  0x5f   :  { %9879 = vmatpush3.bf16.msra.mxu0 %v9876_v50  ;;  %14419 = vst [vmem:[#allocation13_spill] sm:$0xff] %v14418_v0  ;;  %v9884_v4 = vpack.c.bf16 %v3571_v2, %v3570_v1  ;;  %v115_v5 = vld [vmem:[%s14312_s0 + $0x170] sm:$0xff]  ;;  %v3572_v6 = vld [vmem:[#allocation7 + $0xb0] sm:$0xff]  ;;  %v3573_v7 = vld [vmem:[#allocation7 + $0xb8] sm:$0xf] }
  0x60   :  { %9847 = vmatpush3.bf16.msra.mxu1 %v9844_v47  ;;  %9881 = vmatprep.subr.bf16.mxu0 %v9880_v58  ;;  %v9888_v8 = vpack.c.bf16 %v3573_v7, %v3572_v6  ;;  %v116_v9 = vld [vmem:[%s14312_s0 + $0x178] sm:$0xff]  ;;  %v117_v10 = vld [vmem:[%s14312_s0 + $0x180] sm:$0xff]  ;;  %v118_v11 = vld [vmem:[%s14312_s0 + $0x188] sm:$0xff] }
  0x61   :  { %8900 = vmatmul.mubr.msk.f32.gmra.mrb[10].mxu0 %vm181_vm0, %v80_v12  ;;  %9849 = vmatprep.subr.bf16.mxu1 %v9848_v55  ;;  %v119_v12 = vld [vmem:[%s14312_s0 + $0x190] sm:$0xff]  ;;  %v144_v40 = vld [vmem:[%s14312_s0 + $0x258] sm:$0xff]  ;;  %v146_v42 = vld [vmem:[%s14312_s0 + $0x268] sm:$0xff] }
  0x62   :  { %8902 = vmatprep.mubr.msk.f32.mxu0 %vm181_vm0, %v81_v13  ;;  %v120_v13 = vld [vmem:[%s14312_s0 + $0x198] sm:$0xff]  ;;  %v143_v39 = vld [vmem:[%s14312_s0 + $0x250] sm:$0xff]  ;;  %v149_v45 = vld [vmem:[%s14312_s0 + $0x280] sm:$0xff] }
  0x63   :  { %9883 = vmatpush3.bf16.msra.mxu0 %v9880_v58  ;;  %v148_v44 = vld [vmem:[%s14312_s0 + $0x278] sm:$0xff]  ;;  %v151_v47 = vld [vmem:[%s14312_s0 + $0x290] sm:$0xff]  ;;  %v153_v49 = vld [vmem:[%s14312_s0 + $0x2a0] sm:$0xff] }
  0x64   :  { %9851 = vmatpush3.bf16.msra.mxu1 %v9848_v55  ;;  %9885 = vmatprep.subr.bf16.mxu0 %v9884_v4  ;;  %v152_v48 = vld [vmem:[%s14312_s0 + $0x298] sm:$0xff]  ;;  %v154_v50 = vld [vmem:[%s14312_s0 + $0x2a8] sm:$0xff]  ;;  %v155_v51 = vld [vmem:[%s14312_s0 + $0x2b0] sm:$0xff] }
  0x65   :  { %8903 = vmatmul.mubr.msk.f32.gmra.mrb[12].mxu0 %vm181_vm0, %v82_v14  ;;  %9854 = vmatprep.subr.msk.bf16.mxu1 %vm10298_vm3, %v9852_v63  ;;  %v121_v14 = vld [vmem:[%s14312_s0 + $0x1a0] sm:$0xff]  ;;  %v156_v52 = vld [vmem:[%s14312_s0 + $0x2b8] sm:$0xff]  ;;  %v159_v55 = vld [vmem:[%s14312_s0 + $0x2d0] sm:$0xff] }
  0x66   :  { %8905 = vmatprep.mubr.msk.f32.mxu0 %vm181_vm0, %v83_v15  ;;  %v122_v15 = vld [vmem:[%s14312_s0 + $0x1a8] sm:$0xff]  ;;  %v157_v53 = vld [vmem:[%s14312_s0 + $0x2c0] sm:$0xff]  ;;  %v160_v56 = vld [vmem:[%s14312_s0 + $0x2d8] sm:$0xff] }
  0x67   :  { %9887 = vmatpush3.bf16.msra.mxu0 %v9884_v4  ;;  %v162_v58 = vld [vmem:[%s14312_s0 + $0x2e8] sm:$0xff]  ;;  %v164_v60 = vld [vmem:[%s14312_s0 + $0x2f8] sm:$0xff]  ;;  %v165_v61 = vld [vmem:[%s14312_s0 + $0x300] sm:$0xff] }
  0x68   :  { %9857 = vmatpush3.bf16.msk.msra.mxu1 %vm10298_vm3, %v9852_v63  ;;  %9890 = vmatprep.subr.msk.bf16.mxu0 %vm10298_vm3, %v9888_v8  ;;  %v167_v63 = vld [vmem:[%s14312_s0 + $0x310] sm:$0xff]  ;;  %v168_v1 = vld [vmem:[%s14312_s0 + $0x318] sm:$0xff]  ;;  %v169_v2 = vld [vmem:[%s14312_s0 + $0x320] sm:$0xff] }
  0x69   :  { %8906 = vmatmul.mubr.msk.f32.gmra.mrb[14].mxu0 %vm181_vm0, %v84_v16  ;;  %v2328_v16 = vld [vmem:[#allocation7 + $0x40] sm:$0xff]  ;;  %v10551_v6 = vld [vmem:[#allocation5] ss:$0 sm:$0xff]  ;;  %v2330_v7 = vld [vmem:[#allocation7 + $0x50] sm:$0xff] }
  0x6a   :  { %8908 = vmatprep.mubr.msk.f32.mxu0 %vm181_vm0, %v85_v17  ;;  %v2329_v17 = vld [vmem:[#allocation7 + $0x48] sm:$0xff] }
  0x6b   :  { %9893 = vmatpush3.bf16.msk.msra.mxu0 %vm10298_vm3, %v9888_v8  ;;  %v171_v4 = vld [vmem:[%s14312_s0 + $0x330] sm:$0xff]  ;;  %v2331_v8 = vld [vmem:[#allocation7 + $0x58] sm:$0xff] }
  0x6d   :  { %8909 = vmatmul.mubr.msk.f32.gmra.mrb[16].mxu0 %vm181_vm0, %v86_v18  ;;  %v123_v18 = vld [vmem:[%s14312_s0 + $0x1b0] sm:$0xff] }
  0x6e   :  { %8911 = vmatprep.mubr.msk.f32.mxu0 %vm181_vm0, %v87_v19  ;;  %v10350_v19 = vpack.c.bf16 %v2329_v17, %v2328_v16 }
  0x70   :  { %9859 = vmatprep.subr.bf16.mxu1 %v10350_v19 }
  0x71   :  { %8912 = vmatmul.mubr.msk.f32.gmra.mrb[18].mxu0 %vm181_vm0, %v88_v20  ;;  %v124_v20 = vld [vmem:[%s14312_s0 + $0x1b8] sm:$0xff] }
  0x72   :  { %8914 = vmatprep.mubr.msk.f32.mxu0 %vm181_vm0, %v89_v21  ;;  %v125_v21 = vld [vmem:[%s14312_s0 + $0x1c0] sm:$0xff] }
  0x75   :  { %8915 = vmatmul.mubr.msk.f32.gmra.mrb[20].mxu0 %vm181_vm0, %v90_v22  ;;  %v126_v22 = vld [vmem:[%s14312_s0 + $0x1c8] sm:$0xff] }
  0x76   :  { %8917 = vmatprep.mubr.msk.f32.mxu0 %vm181_vm0, %v91_v23  ;;  %v127_v23 = vld [vmem:[%s14312_s0 + $0x1d0] sm:$0xff] }
  0x79   :  { %8918 = vmatmul.mubr.msk.f32.gmra.mrb[22].mxu0 %vm181_vm0, %v92_v24  ;;  %v128_v24 = vld [vmem:[%s14312_s0 + $0x1d8] sm:$0xff] }
  0x7a   :  { %8920 = vmatprep.mubr.msk.f32.mxu0 %vm181_vm0, %v93_v25  ;;  %v129_v25 = vld [vmem:[%s14312_s0 + $0x1e0] sm:$0xff] }
  0x7d   :  { %8921 = vmatmul.mubr.msk.f32.gmra.mrb[24].mxu0 %vm181_vm0, %v94_v26  ;;  %v130_v26 = vld [vmem:[%s14312_s0 + $0x1e8] sm:$0xff] }
  0x7e   :  { %8923 = vmatprep.mubr.msk.f32.mxu0 %vm181_vm0, %v95_v27  ;;  %v131_v27 = vld [vmem:[%s14312_s0 + $0x1f0] sm:$0xff] }
  0x81   :  { %8924 = vmatmul.mubr.msk.f32.gmra.mrb[26].mxu0 %vm181_vm0, %v96_v28  ;;  %v132_v28 = vld [vmem:[%s14312_s0 + $0x1f8] sm:$0xff] }
  0x82   :  { %8926 = vmatprep.mubr.msk.f32.mxu0 %vm181_vm0, %v97_v29  ;;  %v133_v29 = vld [vmem:[%s14312_s0 + $0x200] sm:$0xff] }
  0x85   :  { %8927 = vmatmul.mubr.msk.f32.gmra.mrb[28].mxu0 %vm181_vm0, %v98_v30  ;;  %v134_v30 = vld [vmem:[%s14312_s0 + $0x208] sm:$0xff] }
  0x86   :  { %8929 = vmatprep.mubr.msk.f32.mxu0 %vm181_vm0, %v99_v31  ;;  %v135_v31 = vld [vmem:[%s14312_s0 + $0x210] sm:$0xff] }
  0x89   :  { %8930 = vmatmul.mubr.msk.f32.gmra.mrb[30].mxu0 %vm181_vm0, %v100_v32  ;;  %v136_v32 = vld [vmem:[%s14312_s0 + $0x218] sm:$0xff] }
  0x8a   :  { %8932 = vmatprep.mubr.msk.f32.mxu0 %vm181_vm0, %v101_v33  ;;  %v137_v33 = vld [vmem:[%s14312_s0 + $0x220] sm:$0xff] }
  0x8d   :  { %8933 = vmatmul.mubr.msk.f32.gmra.mrb[32].mxu0 %vm181_vm0, %v102_v34  ;;  %v138_v34 = vld [vmem:[%s14312_s0 + $0x228] sm:$0xff] }
  0x8e   :  { %8935 = vmatprep.mubr.msk.f32.mxu0 %vm181_vm0, %v103_v35  ;;  %v139_v35 = vld [vmem:[%s14312_s0 + $0x230] sm:$0xff] }
  0x91   :  { %8936 = vmatmul.mubr.msk.f32.gmra.mrb[34].mxu0 %vm181_vm0, %v104_v36  ;;  %v140_v36 = vld [vmem:[%s14312_s0 + $0x238] sm:$0xff] }
  0x92   :  { %8938 = vmatprep.mubr.msk.f32.mxu0 %vm181_vm0, %v105_v37  ;;  %v141_v37 = vld [vmem:[%s14312_s0 + $0x240] sm:$0xff] }
  0x95   :  { %8939 = vmatmul.mubr.msk.f32.gmra.mrb[36].mxu0 %vm181_vm0, %v106_v38  ;;  %v142_v38 = vld [vmem:[%s14312_s0 + $0x248] sm:$0xff] }
  0x96   :  { %8941 = vmatprep.mubr.msk.f32.mxu0 %vm181_vm0, %v107_v41  ;;  %v145_v41 = vld [vmem:[%s14312_s0 + $0x260] sm:$0xff] }
  0x99   :  { %8942 = vmatmul.mubr.msk.f32.gmra.mrb[38].mxu0 %vm181_vm0, %v108_v43  ;;  %v147_v43 = vld [vmem:[%s14312_s0 + $0x270] sm:$0xff] }
  0x9a   :  { %8944 = vmatprep.mubr.msk.f32.mxu0 %vm181_vm0, %v109_v46  ;;  %v150_v46 = vld [vmem:[%s14312_s0 + $0x288] sm:$0xff] }
  0x9d   :  { %8945 = vmatmul.mubr.msk.f32.gmra.mrb[40].mxu0 %vm181_vm0, %v110_v54  ;;  %v158_v54 = vld [vmem:[%s14312_s0 + $0x2c8] sm:$0xff] }
  0x9e   :  { %8947 = vmatprep.mubr.msk.f32.mxu0 %vm181_vm0, %v111_v57  ;;  %v161_v57 = vld [vmem:[%s14312_s0 + $0x2e0] sm:$0xff] }
  0xa1   :  { %8948 = vmatmul.mubr.msk.f32.gmra.mrb[42].mxu0 %vm181_vm0, %v112_v59  ;;  %v163_v59 = vld [vmem:[%s14312_s0 + $0x2f0] sm:$0xff] }
  0xa2   :  { %8950 = vmatprep.mubr.msk.f32.mxu0 %vm181_vm0, %v113_v62  ;;  %v166_v62 = vld [vmem:[%s14312_s0 + $0x308] sm:$0xff] }
  0xa5   :  { %8951 = vmatmul.mubr.msk.f32.gmra.mrb[44].mxu0 %vm181_vm0, %v114_v3  ;;  %v170_v3 = vld [vmem:[%s14312_s0 + $0x328] sm:$0xff] }
  0xa6   :  { %8953 = vmatprep.mubr.msk.f32.mxu0 %vm181_vm0, %v115_v5  ;;  %v172_v5 = vld [vmem:[%s14312_s0 + $0x338] sm:$0xff] }
  0xa9   :  { %8954 = vmatmul.mubr.msk.f32.gmra.mrb[46].mxu0 %vm181_vm0, %v116_v9 }
  0xaa   :  { %8956 = vmatprep.mubr.msk.f32.mxu0 %vm181_vm0, %v117_v10 }
  0xad   :  { %8957 = vmatmul.mubr.msk.f32.gmra.mrb[48].mxu0 %vm181_vm0, %v118_v11 }
  0xae   :  { %8959 = vmatprep.mubr.msk.f32.mxu0 %vm181_vm0, %v119_v12 }
  0xb1   :  { %8960 = vmatmul.mubr.msk.f32.gmra.mrb[50].mxu0 %vm181_vm0, %v120_v13  ;;  %v9862_v13 = vpack.c.bf16 %v2331_v8, %v2330_v7 }
  0xb2   :  { %8962 = vmatprep.mubr.msk.f32.mxu0 %vm181_vm0, %v121_v14 }
  0xb5   :  { %8963 = vmatmul.mubr.msk.f32.gmra.mrb[52].mxu0 %vm181_vm0, %v122_v15  ;;  %v2332_v15 = vld [vmem:[#allocation7 + $0x60] sm:$0xff] }
  0xb6   :  { %8965 = vmatprep.mubr.msk.f32.mxu0 %vm181_vm0, %v123_v18 }
  0xb9   :  { %8966 = vmatmul.mubr.msk.f32.gmra.mrb[54].mxu0 %vm181_vm0, %v124_v20 }
  0xba   :  { %8968 = vmatprep.mubr.msk.f32.mxu0 %vm181_vm0, %v125_v21 }
  0xbd   :  { %8969 = vmatmul.mubr.msk.f32.gmra.mrb[56].mxu0 %vm181_vm0, %v126_v22  ;;  %v2333_v22 = vld [vmem:[#allocation7 + $0x68] sm:$0xff] }
  0xbe   :  { %8971 = vmatprep.mubr.msk.f32.mxu0 %vm181_vm0, %v127_v23 }
  0xc1   :  { %8972 = vmatmul.mubr.msk.f32.gmra.mrb[58].mxu0 %vm181_vm0, %v128_v24 }
  0xc2   :  { %8974 = vmatprep.mubr.msk.f32.mxu0 %vm181_vm0, %v129_v25 }
  0xc5   :  { %8975 = vmatmul.mubr.msk.f32.gmra.mrb[60].mxu0 %vm181_vm0, %v130_v26 }
  0xc6   :  { %8977 = vmatprep.mubr.msk.f32.mxu0 %vm181_vm0, %v131_v27 }
  0xc9   :  { %8978 = vmatmul.mubr.msk.f32.gmra.mrb[62].mxu0 %vm181_vm0, %v132_v28 }
  0xca   :  { %8980 = vmatprep.mubr.msk.f32.mxu0 %vm181_vm0, %v133_v29 }
  0xcd   :  { %8981 = vmatmul.mubr.msk.f32.gmra.mrb[64].mxu0 %vm181_vm0, %v134_v30 }
  0xce   :  { %8983 = vmatprep.mubr.msk.f32.mxu0 %vm181_vm0, %v135_v31 }
  0xd1   :  { %8984 = vmatmul.mubr.msk.f32.gmra.mrb[66].mxu0 %vm181_vm0, %v136_v32 }
  0xd2   :  { %8986 = vmatprep.mubr.msk.f32.mxu0 %vm181_vm0, %v137_v33  ;;  %v9866_v33 = vpack.c.bf16 %v2333_v22, %v2332_v15 }
  0xd5   :  { %8987 = vmatmul.mubr.msk.f32.gmra.mrb[68].mxu0 %vm181_vm0, %v138_v34 }
  0xd6   :  { %8989 = vmatprep.mubr.msk.f32.mxu0 %vm181_vm0, %v139_v35 }
  0xd9   :  { %8990 = vmatmul.mubr.msk.f32.gmra.mrb[70].mxu0 %vm181_vm0, %v140_v36 }
  0xda   :  { %8992 = vmatprep.mubr.msk.f32.mxu0 %vm181_vm0, %v141_v37 }
  0xdd   :  { %8993 = vmatmul.mubr.msk.f32.gmra.mrb[72].mxu0 %vm181_vm0, %v142_v38 }
  0xde   :  { %8995 = vmatprep.mubr.msk.f32.mxu0 %vm181_vm0, %v143_v39 }
  0xe1   :  { %8996 = vmatmul.mubr.msk.f32.gmra.mrb[74].mxu0 %vm181_vm0, %v144_v40 }
  0xe2   :  { %8998 = vmatprep.mubr.msk.f32.mxu0 %vm181_vm0, %v145_v41 }
  0xe5   :  { %8999 = vmatmul.mubr.msk.f32.gmra.mrb[76].mxu0 %vm181_vm0, %v146_v42 }
  0xe6   :  { %9001 = vmatprep.mubr.msk.f32.mxu0 %vm181_vm0, %v147_v43 }
  0xe9   :  { %9002 = vmatmul.mubr.msk.f32.gmra.mrb[78].mxu0 %vm181_vm0, %v148_v44 }
  0xea   :  { %9004 = vmatprep.mubr.msk.f32.mxu0 %vm181_vm0, %v149_v45 }
  0xed   :  { %9005 = vmatmul.mubr.msk.f32.gmra.mrb[80].mxu0 %vm181_vm0, %v150_v46 }
  0xee   :  { %9007 = vmatprep.mubr.msk.f32.mxu0 %vm181_vm0, %v151_v47 }
  0xf1   :  { %9008 = vmatmul.mubr.msk.f32.gmra.mrb[82].mxu0 %vm181_vm0, %v152_v48 }
  0xf2   :  { %9010 = vmatprep.mubr.msk.f32.mxu0 %vm181_vm0, %v153_v49 }
  0xf5   :  { %9011 = vmatmul.mubr.msk.f32.gmra.mrb[84].mxu0 %vm181_vm0, %v154_v50 }
  0xf6   :  { %9013 = vmatprep.mubr.msk.f32.mxu0 %vm181_vm0, %v155_v51 }
  0xf9   :  { %9014 = vmatmul.mubr.msk.f32.gmra.mrb[86].mxu0 %vm181_vm0, %v156_v52 }
  0xfa   :  { %9016 = vmatprep.mubr.msk.f32.mxu0 %vm181_vm0, %v157_v53 }
  0xfd   :  { %9017 = vmatmul.mubr.msk.f32.gmra.mrb[88].mxu0 %vm181_vm0, %v158_v54 }
  0xfe   :  { %9019 = vmatprep.mubr.msk.f32.mxu0 %vm181_vm0, %v159_v55 }
 0x101   :  { %9020 = vmatmul.mubr.msk.f32.gmra.mrb[90].mxu0 %vm181_vm0, %v160_v56 }
 0x102   :  { %9022 = vmatprep.mubr.msk.f32.mxu0 %vm181_vm0, %v161_v57 }
 0x105   :  { %9023 = vmatmul.mubr.msk.f32.gmra.mrb[92].mxu0 %vm181_vm0, %v162_v58 }
 0x106   :  { %9025 = vmatprep.mubr.msk.f32.mxu0 %vm181_vm0, %v163_v59 }
 0x109   :  { %9026 = vmatmul.mubr.msk.f32.gmra.mrb[94].mxu0 %vm181_vm0, %v164_v60 }
 0x10a   :  { %9028 = vmatprep.mubr.msk.f32.mxu0 %vm181_vm0, %v165_v61 }
 0x10d   :  { %9029 = vmatmul.mubr.msk.f32.gmra.mrb[96].mxu0 %vm181_vm0, %v166_v62 }
 0x10e   :  { %9031 = vmatprep.mubr.msk.f32.mxu0 %vm181_vm0, %v167_v63 }
 0x111   :  { %9032 = vmatmul.mubr.msk.f32.gmra.mrb[98].mxu0 %vm181_vm0, %v168_v1 }
 0x112   :  { %9034 = vmatprep.mubr.msk.f32.mxu0 %vm181_vm0, %v169_v2 }
 0x115   :  { %9035 = vmatmul.mubr.msk.f32.gmra.mrb[100].mxu0 %vm181_vm0, %v170_v3 }
 0x116   :  { %9037 = vmatprep.mubr.msk.f32.mxu0 %vm181_vm0, %v171_v4 }
 0x119   :  { %9038 = vmatmul.mubr.msk.f32.gmra.mrb[102].mxu0 %vm181_vm0, %v172_v5 }
 0x120   :  { %v8886_v9 = vpop.f32.mrb[0].mxu0 }
 0x121   :  { %v10554_v10 = vadd.f32 %v8886_v9, %v10551_v6  ;;  %v560_v11 = vpop.f32.mrb[1].mxu0 }
 0x122   :  { %v561_v12 = vadd.f32 %v10551_v6, %v560_v11 }
 0x123   :  { %v3366_v14 = vrot.slane %v10554_v10, 2  ;;  %v2128_v16 = vrot.slane %v10554_v10, 1  ;;  %v5841_v17 = vrot.slane %v10554_v10, 4  ;;  %v4604_v18 = vrot.slane %v10554_v10, 3 }
 0x124   :  { %v8889_v20 = vpop.f32.mrb[2].mxu0  ;;  %9056 = vmatprep.mubr.msk.f32.mxu1 %vm1087_vm4, %v561_v12  ;;  %v3365_v21 = vrot.slane %v561_v12, 2  ;;  %v2127_v23 = vrot.slane %v561_v12, 1  ;;  %v5840_v24 = vrot.slane %v561_v12, 4  ;;  %v4603_v25 = vrot.slane %v561_v12, 3 }
 0x125   :  { %v10563_v26 = vadd.f32 %v8889_v20, %v10551_v6  ;;  %v570_v27 = vpop.f32.mrb[3].mxu0  ;;  %9057 = vmatmul.mubr.msk.f32.vlgmr.msra.gmra.mrb[0].mxu1 %vm1087_vm4, %v10554_v10 }
 0x126   :  { %v571_v28 = vadd.f32 %v10551_v6, %v570_v27  ;;  %v3367_v29 = vsel %vm3364_vm5, %v3365_v21, %v3366_v14  ;;  %9861 = vmatpush3.bf16.msra.mxu1 %v10350_v19  ;;  %v10571_v30 = vsel %vm2126_vm6, %v2127_v23, %v2128_v16  ;;  %v10574_v31 = vsel %vm1376_vm1, %v5840_v24, %v5841_v17 }
 0x127   :  { %9376 = vmatprep.mubr.msk.f32.mxu0 %vm1087_vm4, %v3367_v29  ;;  %v3370_v32 = vrot.slane %v10563_v26, 2  ;;  %9863 = vmatprep.subr.bf16.mxu1 %v9862_v13  ;;  %v2132_v34 = vrot.slane %v10563_v26, 1  ;;  %v10580_v35 = vsel %vm4602_vm7, %v4603_v25, %v4604_v18  ;;  %v5845_v39 = vrot.slane %v10563_v26, 4 }
 0x128   :  { %14420 = vst [vmem:[#allocation14_spill] sm:$0xff] %v10580_v35  ;;  %v8892_v36 = vpop.f32.mrb[4].mxu0  ;;  %9059 = vmatprep.mubr.msk.f32.mxu1 %vm1087_vm4, %v571_v28  ;;  %v3368_v19 = vrot.slane %v571_v28, 2  ;;  %v2130_v37 = vrot.slane %v571_v28, 1  ;;  %v5843_v38 = vrot.slane %v571_v28, 4  ;;  %v4606_v42 = vrot.slane %v571_v28, 3 }
 0x129   :  { %v10585_v40 = vadd.f32 %v8892_v36, %v10551_v6  ;;  %v580_v41 = vpop.f32.mrb[5].mxu0  ;;  %9060 = vmatmul.mubr.msk.f32.gmra.mrb[2].mxu1 %vm1087_vm4, %v10563_v26  ;;  %v4608_v43 = vrot.slane %v10563_v26, 3 }
 0x12a   :  { %v10591_v44 = vadd.f32 %v10551_v6, %v580_v41  ;;  %v3369_v45 = vsel %vm3364_vm5, %v3366_v14, %v3368_v19  ;;  %v3371_v46 = vsel %vm3364_vm5, %v3368_v19, %v3370_v32  ;;  %9865 = vmatpush3.bf16.msra.mxu1 %v9862_v13  ;;  %v10596_v47 = vsel %vm2126_vm6, %v2128_v16, %v2130_v37 }
 0x12b   :  { %9377 = vmatmul.mubr.msk.f32.vlgmr.msra.gmra.mrb[104].mxu0 %vm1087_vm4, %v3369_v45  ;;  %v3374_v48 = vrot.slane %v10585_v40, 2  ;;  %9867 = vmatprep.subr.bf16.mxu1 %v9866_v33  ;;  %v10601_v49 = vsel %vm2126_vm6, %v2130_v37, %v2132_v34  ;;  %v10604_v50 = vsel %vm1376_vm1, %v5841_v17, %v5843_v38  ;;  %v2136_v51 = vrot.slane %v10585_v40, 1 }
 0x12c   :  { %v8895_v52 = vpop.f32.mrb[6].mxu0  ;;  %9062 = vmatprep.mubr.msk.f32.mxu1 %vm1087_vm4, %v10591_v44  ;;  %9379 = vmatprep.mubr.msk.f32.mxu0 %vm1087_vm4, %v3371_v46  ;;  %v3372_v53 = vrot.slane %v10591_v44, 2  ;;  %v2134_v54 = vrot.slane %v10591_v44, 1  ;;  %v10613_v55 = vsel %vm1376_vm1, %v5843_v38, %v5845_v39  ;;  %v5847_v56 = vrot.slane %v10591_v44, 4 }
 0x12d   :  { %v10617_v57 = vadd.f32 %v8895_v52, %v10551_v6  ;;  %v590_v58 = vpop.f32.mrb[7].mxu0  ;;  %9063 = vmatmul.mubr.msk.f32.gmra.mrb[4].mxu1 %vm1087_vm4, %v10585_v40  ;;  %v5849_v59 = vrot.slane %v10585_v40, 4  ;;  %v10623_v60 = vsel %vm4602_vm7, %v4604_v18, %v4606_v42  ;;  %v10628_v61 = vsel %vm4602_vm7, %v4606_v42, %v4608_v43 }
 0x12e   :  { %14421 = vst [vmem:[#allocation15_spill] sm:$0xff] %v10623_v60  ;;  %14422 = vst [vmem:[#allocation16_spill] sm:$0xff] %v10628_v61  ;;  %v10631_v62 = vadd.f32 %v10551_v6, %v590_v58  ;;  %v3373_v63 = vsel %vm3364_vm5, %v3370_v32, %v3372_v53  ;;  %v3375_v1 = vsel %vm3364_vm5, %v3372_v53, %v3374_v48  ;;  %9869 = vmatpush3.bf16.msra.mxu1 %v9866_v33 }
 0x12f   :  { %v10636_v2 = vsel %vm2126_vm6, %v2132_v34, %v2134_v54  ;;  %9380 = vmatmul.mubr.msk.f32.gmra.mrb[106].mxu0 %vm1087_vm4, %v3373_v63  ;;  %v3378_v3 = vrot.slane %v10617_v57, 2  ;;  %v10641_v4 = vsel %vm2126_vm6, %v2134_v54, %v2136_v51  ;;  %v10644_v5 = vsel %vm1376_vm1, %v5845_v39, %v5847_v56 }
 0x130   :  { %v2140_v7 = vrot.slane %v10617_v57, 1  ;;  %v8898_v8 = vpop.f32.mrb[8].mxu0  ;;  %9065 = vmatprep.mubr.msk.f32.mxu1 %vm1087_vm4, %v10631_v62  ;;  %9382 = vmatprep.mubr.msk.f32.mxu0 %vm1087_vm4, %v3375_v1  ;;  %v3376_v9 = vrot.slane %v10631_v62, 2  ;;  %v2138_v10 = vrot.slane %v10631_v62, 1  ;;  %v10653_v11 = vsel %vm1376_vm1, %v5847_v56, %v5849_v59 }
 0x131   :  { %v5851_v12 = vrot.slane %v10631_v62, 4  ;;  %v10657_v13 = vadd.f32 %v8898_v8, %v10551_v6  ;;  %v600_v14 = vpop.f32.mrb[9].mxu0  ;;  %9066 = vmatmul.mubr.msk.f32.gmra.mrb[6].mxu1 %vm1087_vm4, %v10617_v57  ;;  %v5853_v15 = vrot.slane %v10617_v57, 4  ;;  %v4610_v16 = vrot.slane %v10591_v44, 3 }
 0x132   :  { %v4612_v17 = vrot.slane %v10585_v40, 3  ;;  %v10665_v18 = vadd.f32 %v10551_v6, %v600_v14  ;;  %v3377_v20 = vsel %vm3364_vm5, %v3374_v48, %v3376_v9  ;;  %v3379_v21 = vsel %vm3364_vm5, %v3376_v9, %v3378_v3 }
 0x133   :  { %v10670_v22 = vsel %vm2126_vm6, %v2136_v51, %v2138_v10  ;;  %9383 = vmatmul.mubr.msk.f32.gmra.mrb[108].mxu0 %vm1087_vm4, %v3377_v20  ;;  %v3382_v23 = vrot.slane %v10657_v13, 2  ;;  %v10675_v24 = vsel %vm2126_vm6, %v2138_v10, %v2140_v7  ;;  %v10678_v25 = vsel %vm1376_vm1, %v5849_v59, %v5851_v12 }
 0x134   :  { %v2144_v27 = vrot.slane %v10657_v13, 1  ;;  %v8901_v28 = vpop.f32.mrb[10].mxu0  ;;  %9068 = vmatprep.mubr.msk.f32.mxu1 %vm1087_vm4, %v10665_v18  ;;  %9385 = vmatprep.mubr.msk.f32.mxu0 %vm1087_vm4, %v3379_v21  ;;  %v3380_v29 = vrot.slane %v10665_v18, 2  ;;  %v2142_v32 = vrot.slane %v10665_v18, 1  ;;  %v10687_v33 = vsel %vm1376_vm1, %v5851_v12, %v5853_v15 }
 0x135   :  { %v5855_v34 = vrot.slane %v10665_v18, 4  ;;  %v10691_v36 = vadd.f32 %v8901_v28, %v10551_v6  ;;  %v610_v19 = vpop.f32.mrb[11].mxu0  ;;  %9069 = vmatmul.mubr.msk.f32.gmra.mrb[8].mxu1 %vm1087_vm4, %v10657_v13  ;;  %v5857_v37 = vrot.slane %v10657_v13, 4  ;;  %v10699_v38 = vsel %vm4602_vm7, %v4608_v43, %v4610_v16 }
 0x136   :  { %14423 = vst [vmem:[#allocation17_spill] sm:$0xff] %v10699_v38  ;;  %v10704_v39 = vsel %vm4602_vm7, %v4610_v16, %v4612_v17  ;;  %v10707_v41 = vadd.f32 %v10551_v6, %v610_v19  ;;  %v3381_v42 = vsel %vm3364_vm5, %v3378_v3, %v3380_v29  ;;  %v3383_v44 = vsel %vm3364_vm5, %v3380_v29, %v3382_v23 }
 0x137   :  { %14424 = vst [vmem:[#allocation18_spill] sm:$0xff] %v10704_v39  ;;  %v10712_v45 = vsel %vm2126_vm6, %v2140_v7, %v2142_v32  ;;  %9386 = vmatmul.mubr.msk.f32.gmra.mrb[110].mxu0 %vm1087_vm4, %v3381_v42  ;;  %v3386_v26 = vrot.slane %v10691_v36, 2  ;;  %v10717_v43 = vsel %vm2126_vm6, %v2142_v32, %v2144_v27  ;;  %v10720_v46 = vsel %vm1376_vm1, %v5853_v15, %v5855_v34 }
 0x138   :  { %v2148_v48 = vrot.slane %v10691_v36, 1  ;;  %v8904_v51 = vpop.f32.mrb[12].mxu0  ;;  %9071 = vmatprep.mubr.msk.f32.mxu1 %vm1087_vm4, %v10707_v41  ;;  %9388 = vmatprep.mubr.msk.f32.mxu0 %vm1087_vm4, %v3383_v44  ;;  %v3384_v52 = vrot.slane %v10707_v41, 2  ;;  %v2146_v53 = vrot.slane %v10707_v41, 1  ;;  %v10729_v54 = vsel %vm1376_vm1, %v5855_v34, %v5857_v37 }
 0x139   :  { %v5859_v56 = vrot.slane %v10707_v41, 4  ;;  %v10733_v58 = vadd.f32 %v8904_v51, %v10551_v6  ;;  %v620_v59 = vpop.f32.mrb[13].mxu0  ;;  %9072 = vmatmul.mubr.msk.f32.gmra.mrb[10].mxu1 %vm1087_vm4, %v10691_v36  ;;  %v5861_v63 = vrot.slane %v10691_v36, 4  ;;  %v4614_v1 = vrot.slane %v10631_v62, 3 }
 0x13a   :  { %v4616_v3 = vrot.slane %v10617_v57, 3  ;;  %v10741_v7 = vadd.f32 %v10551_v6, %v620_v59  ;;  %v3385_v8 = vsel %vm3364_vm5, %v3382_v23, %v3384_v52  ;;  %v3387_v9 = vsel %vm3364_vm5, %v3384_v52, %v3386_v26 }
 0x13b   :  { %v10746_v10 = vsel %vm2126_vm6, %v2144_v27, %v2146_v53  ;;  %9074 = vmatprep.mubr.msk.f32.mxu1 %vm1087_vm4, %v10733_v58  ;;  %9389 = vmatmul.mubr.msk.f32.gmra.mrb[112].mxu0 %vm1087_vm4, %v3385_v8  ;;  %v3390_v12 = vrot.slane %v10733_v58, 2  ;;  %v10753_v62 = vsel %vm2126_vm6, %v2146_v53, %v2148_v48  ;;  %v10756_v57 = vsel %vm1376_vm1, %v5857_v37, %v5859_v56 }
 0x13c   :  { %14425 = vst [vmem:[#allocation19_spill] sm:$0xff] %v10756_v57  ;;  %v2152_v14 = vrot.slane %v10733_v58, 1  ;;  %v8907_v15 = vpop.f32.mrb[14].mxu0  ;;  %9391 = vmatprep.mubr.msk.f32.mxu0 %vm1087_vm4, %v3387_v9  ;;  %v3388_v16 = vrot.slane %v10741_v7, 2  ;;  %v2150_v20 = vrot.slane %v10741_v7, 1  ;;  %v10763_v21 = vsel %vm1376_vm1, %v5859_v56, %v5861_v63 }
 0x13d   :  { %14426 = vst [vmem:[#allocation20_spill] sm:$0xff] %v10763_v21  ;;  %v5863_v23 = vrot.slane %v10741_v7, 4  ;;  %v10767_v27 = vadd.f32 %v8907_v15, %v10551_v6  ;;  %v630_v28 = vpop.f32.mrb[15].mxu0  ;;  %v5865_v29 = vrot.slane %v10733_v58, 4  ;;  %v10773_v32 = vsel %vm4602_vm7, %v4612_v17, %v4614_v1 }
 0x13e   :  { %14427 = vst [vmem:[#allocation21_spill] sm:$0xff] %v10773_v32  ;;  %v10776_v34 = vsel %vm4602_vm7, %v4614_v1, %v4616_v3  ;;  %v10779_v19 = vadd.f32 %v10551_v6, %v630_v28  ;;  %v3389_v37 = vsel %vm3364_vm5, %v3386_v26, %v3388_v16  ;;  %v10783_v42 = vsel %vm2126_vm6, %v2148_v48, %v2150_v20  ;;  %v2334_v20 = vld [vmem:[#allocation7 + $0x70] sm:$0xff] }
 0x13f   :  { %14428 = vst [vmem:[#allocation22_spill] sm:$0xff] %v10776_v34  ;;  %14429 = vst [vmem:[#allocation23_spill] sm:$0xff] %v10783_v42  ;;  %v10786_v44 = vsel %vm1376_vm1, %v5861_v63, %v5863_v23  ;;  %9392 = vmatmul.mubr.msk.f32.gmra.mrb[114].mxu0 %vm1087_vm4, %v3389_v37  ;;  %v3393_v40 = vrot.slane %v10767_v27, 2  ;;  %v2155_v17 = vrot.slane %v10767_v27, 1  ;;  %v5868_v51 = vrot.slane %v10767_v27, 4 }
 0x140   :  { %14430 = vst [vmem:[#allocation24_spill] sm:$0xff] %v10786_v44  ;;  %v4618_v52 = vrot.slane %v10665_v18, 3  ;;  %v8910_v53 = vpop.f32.mrb[16].mxu0  ;;  %9075 = vmatmul.mubr.msk.f32.gmra.mrb[12].mxu1 %vm1087_vm4, %v10779_v19  ;;  %v3391_v26 = vrot.slane %v10779_v19, 2  ;;  %v2153_v48 = vrot.slane %v10779_v19, 1  ;;  %v5866_v56 = vrot.slane %v10779_v19, 4 }
 0x141   :  { %v4620_v59 = vrot.slane %v10657_v13, 3  ;;  %v10800_v63 = vadd.f32 %v8910_v53, %v10551_v6  ;;  %v640_v1 = vpop.f32.mrb[17].mxu0  ;;  %9077 = vmatprep.mubr.msk.f32.mxu1 %vm1087_vm4, %v10767_v27  ;;  %v4622_v8 = vrot.slane %v10707_v41, 3  ;;  %v2335_v23 = vld [vmem:[#allocation7 + $0x78] sm:$0xf]  ;;  %v14442_v39 = vrot.slane %v10691_v36, 3 }
 0x142   :  { %v10805_v18 = vsel %vm4602_vm7, %v4616_v3, %v4618_v52  ;;  %v10810_v15 = vadd.f32 %v10551_v6, %v640_v1  ;;  %v3392_v16 = vsel %vm3364_vm5, %v3390_v12, %v3391_v26  ;;  %v3394_v13 = vsel %vm3364_vm5, %v3391_v26, %v3393_v40 }
 0x143   :  { %14431 = vst [vmem:[#allocation25_spill] sm:$0xff] %v10805_v18  ;;  %v10815_v28 = vsel %vm2126_vm6, %v2152_v14, %v2153_v48  ;;  %9394 = vmatprep.mubr.msk.f32.mxu0 %vm1087_vm4, %v3392_v16  ;;  %v3397_v3 = vrot.slane %v10800_v63, 2  ;;  %v9870_v37 = vpack.c.bf16 %v2335_v23, %v2334_v20  ;;  %v10820_v41 = vsel %vm2126_vm6, %v2153_v48, %v2155_v17 }
 0x144   :  { %14432 = vst [vmem:[#allocation26_spill] sm:$0xff] %v10815_v28  ;;  %14433 = vst [vmem:[#allocation27_spill] sm:$0xff] %v10820_v41  ;;  %v10823_v53 = vsel %vm1376_vm1, %v5865_v29, %v5866_v56  ;;  %v8913_v1 = vpop.f32.mrb[18].mxu0  ;;  %9078 = vmatmul.mubr.msk.f32.gmra.mrb[14].mxu1 %vm1087_vm4, %v10810_v15  ;;  %9395 = vmatmul.mubr.msk.f32.gmra.mrb[116].mxu0 %vm1087_vm4, %v3394_v13  ;;  %v3395_v12 = vrot.slane %v10810_v15, 2  ;;  %v2157_v14 = vrot.slane %v10810_v15, 1  ;;  %v2159_v26 = vrot.slane %v10800_v63, 1 }
 0x145   :  { %14434 = vst [vmem:[#allocation28_spill] sm:$0xff] %v10823_v53  ;;  %v10832_v16 = vsel %vm1376_vm1, %v5866_v56, %v5868_v51  ;;  %v10835_v48 = vadd.f32 %v8913_v1, %v10551_v6  ;;  %v650_v29 = vpop.f32.mrb[19].mxu0  ;;  %9080 = vmatprep.mubr.msk.f32.mxu1 %vm1087_vm4, %v10800_v63  ;;  %9872 = vmatprep.subr.msk.bf16.mxu1 %vm10298_vm3, %v9870_v37  ;;  %v5870_v13 = vrot.slane %v10810_v15, 4  ;;  %v5872_v20 = vrot.slane %v10800_v63, 4 }
 0x146   :  { %14435 = vst [vmem:[#allocation29_spill] sm:$0xff] %v10832_v16  ;;  %v10844_v23 = vsel %vm4602_vm7, %v4618_v52, %v4620_v59  ;;  %v10847_v56 = vadd.f32 %v10551_v6, %v650_v29  ;;  %v3396_v1 = vsel %vm3364_vm5, %v3393_v40, %v3395_v12  ;;  %v3398_v9 = vsel %vm3364_vm5, %v3395_v12, %v3397_v3 }
 0x147   :  { %14436 = vst [vmem:[#allocation30_spill] sm:$0xff] %v10844_v23  ;;  %9875 = vmatpush3.bf16.msk.msra.mxu1 %vm10298_vm3, %v9870_v37  ;;  %v10854_v18 = vsel %vm2126_vm6, %v2155_v17, %v2157_v14  ;;  %9397 = vmatprep.mubr.msk.f32.mxu0 %vm1087_vm4, %v3396_v1  ;;  %v3401_v34 = vrot.slane %v10835_v48, 2  ;;  %v10859_v52 = vsel %vm2126_vm6, %v2157_v14, %v2159_v26  ;;  %v2163_v40 = vrot.slane %v10835_v48, 1 }
 0x148   :  { %14437 = vst [vmem:[#allocation31_spill] sm:$0xff] %v10854_v18  ;;  %14438 = vst [vmem:[#allocation32_spill] sm:$0xff] %v10859_v52  ;;  %v10862_v29 = vsel %vm1376_vm1, %v5868_v51, %v5870_v13  ;;  %v8916_v23 = vpop.f32.mrb[20].mxu0  ;;  %9081 = vmatmul.mubr.msk.f32.gmra.mrb[16].mxu1 %vm1087_vm4, %v10847_v56  ;;  %9398 = vmatmul.mubr.msk.f32.gmra.mrb[118].mxu0 %vm1087_vm4, %v3398_v9  ;;  %v3399_v17 = vrot.slane %v10847_v56, 2  ;;  %v2161_v37 = vrot.slane %v10847_v56, 1  ;;  %v5874_v14 = vrot.slane %v10847_v56, 4 }
 0x149   :  { %14439 = vst [vmem:[#allocation33_spill] sm:$0xff] %v10862_v29  ;;  %v10871_v12 = vsel %vm1376_vm1, %v5870_v13, %v5872_v20  ;;  %v10875_v51 = vadd.f32 %v8916_v23, %v10551_v6  ;;  %v660_v1 = vpop.f32.mrb[21].mxu0  ;;  %9083 = vmatprep.mubr.msk.f32.mxu1 %vm1087_vm4, %v10835_v48  ;;  %v5876_v32 = vrot.slane %v10835_v48, 4  ;;  %v10881_v9 = vsel %vm4602_vm7, %v4620_v59, %v4622_v8 }
 0x14a   :  { %14440 = vst [vmem:[#allocation34_spill] sm:$0xff] %v10871_v12  ;;  %14441 = vst [vmem:[#allocation35_spill] sm:$0xff] %v10881_v9  ;;  %v10886_v38 = vsel %vm4602_vm7, %v4622_v8, %v14442_v39  ;;  %v10889_v13 = vadd.f32 %v10551_v6, %v660_v1  ;;  %v3400_v23 = vsel %vm3364_vm5, %v3397_v3, %v3399_v17  ;;  %v4628_v35 = vrot.slane %v10733_v58, 3 }
 0x14b   :  { %14443 = vst [vmem:[#allocation36_spill] sm:$0xff] %v10886_v38  ;;  %v3402_v61 = vsel %vm3364_vm5, %v3399_v17, %v3401_v34  ;;  %v10894_v60 = vsel %vm2126_vm6, %v2159_v26, %v2161_v37  ;;  %9400 = vmatprep.mubr.msk.f32.mxu0 %vm1087_vm4, %v3400_v23  ;;  %v3405_v59 = vrot.slane %v10875_v51, 2  ;;  %v10899_v9 = vsel %vm2126_vm6, %v2161_v37, %v2163_v40 }
 0x14c   :  { %14444 = vst [vmem:[#allocation37_spill] sm:$0xff] %v10894_v60  ;;  %14445 = vst [vmem:[#allocation38_spill] sm:$0xff] %v10899_v9  ;;  %v10902_v39 = vsel %vm1376_vm1, %v5872_v20, %v5874_v14  ;;  %v2167_v8 = vrot.slane %v10875_v51, 1  ;;  %v8919_v1 = vpop.f32.mrb[22].mxu0  ;;  %9084 = vmatmul.mubr.msk.f32.gmra.mrb[18].mxu1 %vm1087_vm4, %v10889_v13  ;;  %9401 = vmatmul.mubr.msk.f32.gmra.mrb[120].mxu0 %vm1087_vm4, %v3402_v61  ;;  %v3403_v3 = vrot.slane %v10889_v13, 2  ;;  %v2165_v26 = vrot.slane %v10889_v13, 1 }
 0x14d   :  { %14446 = vst [vmem:[#allocation39_spill] sm:$0xff] %v10902_v39  ;;  %v10911_v17 = vsel %vm1376_vm1, %v5874_v14, %v5876_v32  ;;  %v5878_v37 = vrot.slane %v10889_v13, 4  ;;  %v10915_v20 = vadd.f32 %v8919_v1, %v10551_v6  ;;  %v670_v23 = vpop.f32.mrb[23].mxu0  ;;  %9086 = vmatprep.mubr.msk.f32.mxu1 %vm1087_vm4, %v10875_v51  ;;  %v5880_v38 = vrot.slane %v10875_v51, 4 }
 0x14e   :  { %14447 = vst [vmem:[#allocation40_spill] sm:$0xff] %v10911_v17  ;;  %v4626_v61 = vrot.slane %v10741_v7, 3  ;;  %v10923_v39 = vadd.f32 %v10551_v6, %v670_v23  ;;  %v3404_v14 = vsel %vm3364_vm5, %v3401_v34, %v3403_v3  ;;  %v3406_v17 = vsel %vm3364_vm5, %v3403_v3, %v3405_v59 }
 0x14f   :  { %v10928_v1 = vsel %vm2126_vm6, %v2163_v40, %v2165_v26  ;;  %9403 = vmatprep.mubr.msk.f32.mxu0 %vm1087_vm4, %v3404_v14  ;;  %v3409_v12 = vrot.slane %v10915_v20, 2  ;;  %v10933_v9 = vsel %vm2126_vm6, %v2165_v26, %v2167_v8  ;;  %v10936_v7 = vsel %vm1376_vm1, %v5876_v32, %v5878_v37 }
 0x150   :  { %14448 = vst [vmem:[#allocation41_spill] sm:$0xff] %v10928_v1  ;;  %14449 = vst [vmem:[#allocation42_spill] sm:$0xff] %v10933_v9  ;;  %v2171_v58 = vrot.slane %v10915_v20, 1  ;;  %v8922_v23 = vpop.f32.mrb[24].mxu0  ;;  %9087 = vmatmul.mubr.msk.f32.gmra.mrb[20].mxu1 %vm1087_vm4, %v10923_v39  ;;  %9404 = vmatmul.mubr.msk.f32.gmra.mrb[122].mxu0 %vm1087_vm4, %v3406_v17  ;;  %v3407_v34 = vrot.slane %v10923_v39, 2  ;;  %v2169_v40 = vrot.slane %v10923_v39, 1  ;;  %v10945_v3 = vsel %vm1376_vm1, %v5878_v37, %v5880_v38 }
 0x151   :  { %14450 = vst [vmem:[#allocation43_spill] sm:$0xff] %v10936_v7  ;;  %14451 = vst [vmem:[#allocation44_spill] sm:$0xff] %v10945_v3  ;;  %v5882_v26 = vrot.slane %v10923_v39, 4  ;;  %v10949_v32 = vadd.f32 %v8922_v23, %v10551_v6  ;;  %v680_v14 = vpop.f32.mrb[25].mxu0  ;;  %9089 = vmatprep.mubr.msk.f32.mxu1 %vm1087_vm4, %v10915_v20  ;;  %v5884_v7 = vrot.slane %v10915_v20, 4  ;;  %v14452_v17 = vrot.slane %v10691_v36, 3 }
 0x152   :  { %v4629_v1 = vrot.slane %v10779_v19, 3  ;;  %v10961_v37 = vadd.f32 %v10551_v6, %v680_v14  ;;  %v3408_v3 = vsel %vm3364_vm5, %v3405_v59, %v3407_v34  ;;  %v3410_v23 = vsel %vm3364_vm5, %v3407_v34, %v3409_v12 }
 0x153   :  { %v10957_v9 = vsel %vm4602_vm7, %v14452_v17, %v4626_v61  ;;  %v10966_v29 = vsel %vm2126_vm6, %v2167_v8, %v2169_v40  ;;  %9406 = vmatprep.mubr.msk.f32.mxu0 %vm1087_vm4, %v3408_v3  ;;  %v3413_v60 = vrot.slane %v10949_v32, 2  ;;  %v10971_v36 = vsel %vm2126_vm6, %v2169_v40, %v2171_v58 }
 0x154   :  { %14453 = vst [vmem:[#allocation45_spill] sm:$0xff] %v10957_v9  ;;  %14454 = vst [vmem:[#allocation46_spill] sm:$0xff] %v10966_v29  ;;  %v10974_v61 = vsel %vm1376_vm1, %v5880_v38, %v5882_v26  ;;  %v2175_v19 = vrot.slane %v10949_v32, 1  ;;  %v8925_v14 = vpop.f32.mrb[26].mxu0  ;;  %9090 = vmatmul.mubr.msk.f32.gmra.mrb[22].mxu1 %vm1087_vm4, %v10961_v37  ;;  %9407 = vmatmul.mubr.msk.f32.gmra.mrb[124].mxu0 %vm1087_vm4, %v3410_v23  ;;  %v3411_v59 = vrot.slane %v10961_v37, 2  ;;  %v2173_v8 = vrot.slane %v10961_v37, 1 }
 0x155   :  { %14455 = vst [vmem:[#allocation47_spill] sm:$0xff] %v10971_v36  ;;  %14456 = vst [vmem:[#allocation48_spill] sm:$0xff] %v10974_v61  ;;  %v10983_v34 = vsel %vm1376_vm1, %v5882_v26, %v5884_v7  ;;  %v5886_v40 = vrot.slane %v10961_v37, 4  ;;  %v10987_v38 = vadd.f32 %v8925_v14, %v10551_v6  ;;  %v690_v3 = vpop.f32.mrb[27].mxu0  ;;  %v5888_v17 = vrot.slane %v10949_v32, 4 }
 0x156   :  { %14457 = vst [vmem:[#allocation49_spill] sm:$0xff] %v10983_v34  ;;  %v10991_v9 = vsel %vm4602_vm7, %v4628_v35, %v4629_v1  ;;  %v4631_v23 = vrot.slane %v10767_v27, 3  ;;  %v10995_v61 = vadd.f32 %v10551_v6, %v690_v3  ;;  %v3412_v36 = vsel %vm3364_vm5, %v3409_v12, %v3411_v59 }
 0x157   :  { %14458 = vst [vmem:[#allocation50_spill] sm:$0xff] %v10991_v9  ;;  %v3414_v26 = vsel %vm3364_vm5, %v3411_v59, %v3413_v60  ;;  %v11000_v34 = vsel %vm2126_vm6, %v2171_v58, %v2173_v8  ;;  %9409 = vmatprep.mubr.msk.f32.mxu0 %vm1087_vm4, %v3412_v36  ;;  %v3416_v14 = vrot.slane %v10987_v38, 2  ;;  %v11005_v29 = vsel %vm2126_vm6, %v2173_v8, %v2175_v19 }
 0x158   :  { %14459 = vst [vmem:[#allocation51_spill] sm:$0xff] %v11000_v34  ;;  %14460 = vst [vmem:[#allocation52_spill] sm:$0xff] %v11005_v29  ;;  %v2178_v35 = vrot.slane %v10987_v38, 1  ;;  %v11009_v27 = vsel %vm1376_vm1, %v5884_v7, %v5886_v40  ;;  %v8928_v3 = vpop.f32.mrb[28].mxu0  ;;  %9092 = vmatprep.mubr.msk.f32.mxu1 %vm1087_vm4, %v10995_v61  ;;  %9410 = vmatmul.mubr.msk.f32.gmra.mrb[126].mxu0 %vm1087_vm4, %v3414_v26  ;;  %v3415_v60 = vrot.slane %v10995_v61, 2  ;;  %v2177_v12 = vrot.slane %v10995_v61, 1 }
 0x159   :  { %14461 = vst [vmem:[#allocation53_spill] sm:$0xff] %v11009_v27  ;;  %v11017_v58 = vsel %vm1376_vm1, %v5886_v40, %v5888_v17  ;;  %v5890_v36 = vrot.slane %v10995_v61, 4  ;;  %v11021_v19 = vadd.f32 %v8928_v3, %v10551_v6  ;;  %v700_v7 = vpop.f32.mrb[29].mxu0  ;;  %9093 = vmatmul.mubr.msk.f32.gmra.mrb[24].mxu1 %vm1087_vm4, %v10987_v38  ;;  %v5891_v59 = vrot.slane %v10987_v38, 4 }
 0x15a   :  { %14462 = vst [vmem:[#allocation54_spill] sm:$0xff] %v11017_v58  ;;  %v11027_v8 = vsel %vm4602_vm7, %v4629_v1, %v4631_v23  ;;  %v4633_v26 = vrot.slane %v10810_v15, 3  ;;  %v11031_v9 = vadd.f32 %v10551_v6, %v700_v7  ;;  %v3417_v40 = vsel %vm3364_vm5, %v3415_v60, %v3416_v14 }
 0x15b   :  { %14463 = vst [vmem:[#allocation55_spill] sm:$0xff] %v11027_v8  ;;  %v11035_v17 = vsel %vm2126_vm6, %v2177_v12, %v2178_v35  ;;  %v4635_v3 = vrot.slane %v10800_v63, 3  ;;  %9412 = vmatprep.mubr.msk.f32.mxu0 %vm1087_vm4, %v3417_v40  ;;  %v3420_v58 = vrot.slane %v11021_v19, 2  ;;  %v2182_v27 = vrot.slane %v11021_v19, 1 }
 0x15c   :  { %14464 = vst [vmem:[#allocation56_spill] sm:$0xff] %v11035_v17  ;;  %v11042_v1 = vsel %vm1376_vm1, %v5890_v36, %v5891_v59  ;;  %v5895_v15 = vrot.slane %v11021_v19, 4  ;;  %v8931_v7 = vpop.f32.mrb[30].mxu0  ;;  %9095 = vmatprep.mubr.msk.f32.mxu1 %vm1087_vm4, %v11031_v9  ;;  %v3418_v60 = vrot.slane %v11031_v9, 2  ;;  %v2180_v12 = vrot.slane %v11031_v9, 1 }
 0x15d   :  { %14465 = vst [vmem:[#allocation57_spill] sm:$0xff] %v11042_v1  ;;  %v5893_v63 = vrot.slane %v11031_v9, 4  ;;  %v11051_v40 = vsel %vm4602_vm7, %v4631_v23, %v4633_v26  ;;  %v11054_v8 = vadd.f32 %v8931_v7, %v10551_v6  ;;  %v710_v36 = vpop.f32.mrb[31].mxu0  ;;  %9096 = vmatmul.mubr.msk.f32.gmra.mrb[26].mxu1 %vm1087_vm4, %v11021_v19  ;;  %v11059_v1 = vsel %vm4602_vm7, %v4633_v26, %v4635_v3 }
 0x15e   :  { %14466 = vst [vmem:[#allocation58_spill] sm:$0xff] %v11051_v40  ;;  %14467 = vst [vmem:[#allocation59_spill] sm:$0xff] %v11059_v1  ;;  %v4637_v17 = vrot.slane %v10847_v56, 3  ;;  %v11064_v34 = vadd.f32 %v10551_v6, %v710_v36  ;;  %v3419_v23 = vsel %vm3364_vm5, %v3416_v14, %v3418_v60  ;;  %v3421_v40 = vsel %vm3364_vm5, %v3418_v60, %v3420_v58 }
 0x15f   :  { %v11069_v7 = vsel %vm2126_vm6, %v2178_v35, %v2180_v12  ;;  %9413 = vmatmul.mubr.msk.f32.gmra.mrb[128].mxu0 %vm1087_vm4, %v3419_v23  ;;  %v3424_v16 = vrot.slane %v11054_v8, 2  ;;  %v11074_v26 = vsel %vm2126_vm6, %v2180_v12, %v2182_v27  ;;  %v11077_v56 = vsel %vm1376_vm1, %v5891_v59, %v5893_v63 }
 0x160   :  { %14468 = vst [vmem:[#allocation60_spill] sm:$0xff] %v11069_v7  ;;  %14469 = vst [vmem:[#allocation61_spill] sm:$0xff] %v11074_v26  ;;  %v2186_v36 = vrot.slane %v11054_v8, 1  ;;  %v8934_v29 = vpop.f32.mrb[32].mxu0  ;;  %9098 = vmatprep.mubr.msk.f32.mxu1 %vm1087_vm4, %v11064_v34  ;;  %9415 = vmatprep.mubr.msk.f32.mxu0 %vm1087_vm4, %v3421_v40  ;;  %v3422_v14 = vrot.slane %v11064_v34, 2  ;;  %v2184_v35 = vrot.slane %v11064_v34, 1  ;;  %v11086_v60 = vsel %vm1376_vm1, %v5893_v63, %v5895_v15 }
 0x161   :  { %14470 = vst [vmem:[#allocation62_spill] sm:$0xff] %v11077_v56  ;;  %14471 = vst [vmem:[#allocation63_spill] sm:$0xff] %v11086_v60  ;;  %v5897_v12 = vrot.slane %v11064_v34, 4  ;;  %v11090_v59 = vadd.f32 %v8934_v29, %v10551_v6  ;;  %v720_v23 = vpop.f32.mrb[33].mxu0  ;;  %9099 = vmatmul.mubr.msk.f32.gmra.mrb[28].mxu1 %vm1087_vm4, %v11054_v8  ;;  %v5899_v1 = vrot.slane %v11054_v8, 4  ;;  %v11096_v40 = vsel %vm4602_vm7, %v4635_v3, %v4637_v17 }
 0x162   :  { %14472 = vst [vmem:[#allocation64_spill] sm:$0xff] %v11096_v40  ;;  %v14473_v56 = vrot.slane %v10835_v48, 3  ;;  %v11104_v63 = vadd.f32 %v10551_v6, %v720_v23  ;;  %v3423_v29 = vsel %vm3364_vm5, %v3420_v58, %v3422_v14  ;;  %v3425_v60 = vsel %vm3364_vm5, %v3422_v14, %v3424_v16 }
 0x163   :  { %v11109_v7 = vsel %vm2126_vm6, %v2182_v27, %v2184_v35  ;;  %9416 = vmatmul.mubr.msk.f32.gmra.mrb[130].mxu0 %vm1087_vm4, %v3423_v29  ;;  %v3428_v3 = vrot.slane %v11090_v59, 2  ;;  %v11114_v40 = vsel %vm2126_vm6, %v2184_v35, %v2186_v36  ;;  %v11126_v14 = vsel %vm1376_vm1, %v5897_v12, %v5899_v1 }
 0x164   :  { %v11101_v26 = vsel %vm4602_vm7, %v4637_v17, %v14473_v56  ;;  %14475 = vst [vmem:[#allocation66_spill] sm:$0xff] %v11109_v7  ;;  %14476 = vst [vmem:[#allocation67_spill] sm:$0xff] %v11114_v40  ;;  %v11117_v17 = vsel %vm1376_vm1, %v5895_v15, %v5897_v12  ;;  %v2190_v56 = vrot.slane %v11090_v59, 1  ;;  %v8937_v23 = vpop.f32.mrb[34].mxu0  ;;  %9101 = vmatprep.mubr.msk.f32.mxu1 %vm1087_vm4, %v11104_v63  ;;  %9418 = vmatprep.mubr.msk.f32.mxu0 %vm1087_vm4, %v3425_v60 }
 0x165   :  { %14474 = vst [vmem:[#allocation65_spill] sm:$0xff] %v11101_v26  ;;  %14477 = vst [vmem:[#allocation68_spill] sm:$0xff] %v11117_v17  ;;  %v3426_v27 = vrot.slane %v11104_v63, 2  ;;  %v2188_v58 = vrot.slane %v11104_v63, 1  ;;  %v5901_v35 = vrot.slane %v11104_v63, 4  ;;  %v11130_v15 = vadd.f32 %v8937_v23, %v10551_v6  ;;  %v730_v29 = vpop.f32.mrb[35].mxu0  ;;  %9102 = vmatmul.mubr.msk.f32.gmra.mrb[30].mxu1 %vm1087_vm4, %v11090_v59 }
 0x166   :  { %14478 = vst [vmem:[#allocation69_spill] sm:$0xff] %v11126_v14  ;;  %v6041_v26 = vld [vmem:[#allocation7 + $0x100] sm:$0xff]  ;;  %v6042_v17 = vld [vmem:[#allocation7 + $0x108] sm:$0xff]  ;;  %v5903_v60 = vrot.slane %v11090_v59, 4  ;;  %v4641_v40 = vrot.slane %v10889_v13, 3  ;;  %v11138_v12 = vadd.f32 %v10551_v6, %v730_v29 }
 0x167   :  { %v3427_v14 = vsel %vm3364_vm5, %v3424_v16, %v3426_v27  ;;  %v3429_v23 = vsel %vm3364_vm5, %v3426_v27, %v3428_v3  ;;  %v9912_v52 = vpack.c.bf16 %v6042_v17, %v6041_v26  ;;  %v3432_v53 = vrot.slane %v11130_v15, 2 }
 0x168   :  { %9419 = vmatmul.mubr.msk.f32.gmra.mrb[132].mxu0 %vm1087_vm4, %v3427_v14  ;;  %v11145_v18 = vsel %vm2126_vm6, %v2186_v36, %v2188_v58  ;;  %v11148_v44 = vsel %vm2126_vm6, %v2188_v58, %v2190_v56  ;;  %v11151_v13 = vsel %vm1376_vm1, %v5899_v1, %v5901_v35  ;;  %v8940_v29 = vpop.f32.mrb[36].mxu0  ;;  %9104 = vmatprep.mubr.msk.f32.mxu1 %vm1087_vm4, %v11138_v12  ;;  %v3430_v16 = vrot.slane %v11138_v12, 2  ;;  %v6043_v58 = vld [vmem:[#allocation7 + $0x110] sm:$0xff]  ;;  %v6044_v14 = vld [vmem:[#allocation7 + $0x118] sm:$0xff] }
 0x169   :  { %14479 = vst [vmem:[#allocation70_spill] sm:$0xff] %v11145_v18  ;;  %14480 = vst [vmem:[#allocation71_spill] sm:$0xff] %v11148_v44  ;;  %9421 = vmatprep.mubr.msk.f32.mxu0 %vm1087_vm4, %v3429_v23  ;;  %v2192_v26 = vrot.slane %v11138_v12, 1  ;;  %v2194_v17 = vrot.slane %v11130_v15, 1  ;;  %v11160_v36 = vsel %vm1376_vm1, %v5901_v35, %v5903_v60  ;;  %v11163_v27 = vadd.f32 %v8940_v29, %v10551_v6  ;;  %v740_v1 = vpop.f32.mrb[37].mxu0 }
 0x16a   :  { %14481 = vst [vmem:[#allocation72_spill] sm:$0xff] %v11151_v13  ;;  %14482 = vst [vmem:[#allocation73_spill] sm:$0xff] %v11160_v36  ;;  %9105 = vmatmul.mubr.msk.f32.gmra.mrb[32].mxu1 %vm1087_vm4, %v11130_v15  ;;  %9913 = vmatprep.subr.bf16.mxu0 %v9912_v52  ;;  %v5905_v23 = vrot.slane %v11138_v12, 4  ;;  %v5907_v7 = vrot.slane %v11130_v15, 4  ;;  %v14483_v13 = vrot.slane %v10835_v48, 3  ;;  %v11175_v35 = vadd.f32 %v10551_v6, %v740_v1 }
 0x16b   :  { %v3431_v29 = vsel %vm3364_vm5, %v3428_v3, %v3430_v16  ;;  %v3433_v36 = vsel %vm3364_vm5, %v3430_v16, %v3432_v53  ;;  %9915 = vmatpush3.bf16.msra.mxu0 %v9912_v52  ;;  %v9916_v18 = vpack.c.bf16 %v6044_v14, %v6043_v58  ;;  %v3436_v41 = vrot.slane %v11163_v27, 2  ;;  %v6045_v58 = vld [vmem:[#allocation7 + $0x120] sm:$0xff]  ;;  %v6046_v14 = vld [vmem:[#allocation7 + $0x128] sm:$0xff] }
 0x16c   :  { %v11172_v44 = vsel %vm4602_vm7, %v14483_v13, %v4641_v40  ;;  %9422 = vmatmul.mubr.msk.f32.gmra.mrb[134].mxu0 %vm1087_vm4, %v3431_v29  ;;  %v11182_v21 = vsel %vm2126_vm6, %v2190_v56, %v2192_v26  ;;  %v11185_v48 = vsel %vm2126_vm6, %v2192_v26, %v2194_v17  ;;  %v11188_v13 = vsel %vm1376_vm1, %v5903_v60, %v5905_v23  ;;  %v8943_v1 = vpop.f32.mrb[38].mxu0 }
 0x16d   :  { %14484 = vst [vmem:[#allocation74_spill] sm:$0xff] %v11172_v44  ;;  %14485 = vst [vmem:[#allocation75_spill] sm:$0xff] %v11182_v21  ;;  %9107 = vmatprep.mubr.msk.f32.mxu1 %vm1087_vm4, %v11175_v35  ;;  %9424 = vmatprep.mubr.msk.f32.mxu0 %vm1087_vm4, %v3433_v36  ;;  %v3434_v52 = vrot.slane %v11175_v35, 2  ;;  %v2196_v3 = vrot.slane %v11175_v35, 1  ;;  %v2198_v16 = vrot.slane %v11163_v27, 1  ;;  %v11197_v56 = vsel %vm1376_vm1, %v5905_v23, %v5907_v7  ;;  %v750_v60 = vpop.f32.mrb[39].mxu0 }
 0x16e   :  { %14486 = vst [vmem:[#allocation76_spill] sm:$0xff] %v11185_v48  ;;  %14487 = vst [vmem:[#allocation77_spill] sm:$0xff] %v11188_v13  ;;  %v11200_v26 = vadd.f32 %v8943_v1, %v10551_v6  ;;  %9108 = vmatmul.mubr.msk.f32.gmra.mrb[34].mxu1 %vm1087_vm4, %v11163_v27  ;;  %9917 = vmatprep.subr.bf16.mxu0 %v9916_v18  ;;  %v5909_v36 = vrot.slane %v11175_v35, 4  ;;  %v5911_v29 = vrot.slane %v11163_v27, 4  ;;  %v14489_v44 = vrot.slane %v10875_v51, 3 }
 0x16f   :  { %14488 = vst [vmem:[#allocation78_spill] sm:$0xff] %v11197_v56  ;;  %v11212_v23 = vadd.f32 %v10551_v6, %v750_v60  ;;  %v3435_v1 = vsel %vm3364_vm5, %v3432_v53, %v3434_v52  ;;  %v3437_v56 = vsel %vm3364_vm5, %v3434_v52, %v3436_v41  ;;  %9919 = vmatpush3.bf16.msra.mxu0 %v9916_v18 }
 0x170   :  { %v11209_v13 = vsel %vm4602_vm7, %v4641_v40, %v14489_v44  ;;  %v9920_v48 = vpack.c.bf16 %v6046_v14, %v6045_v58  ;;  %9110 = vmatprep.mubr.msk.f32.mxu1 %vm1087_vm4, %v11200_v26  ;;  %9425 = vmatmul.mubr.msk.f32.gmra.mrb[136].mxu0 %vm1087_vm4, %v3435_v1  ;;  %v11220_v21 = vsel %vm2126_vm6, %v2194_v17, %v2196_v3  ;;  %v8946_v60 = vpop.f32.mrb[40].mxu0  ;;  %v6048_v14 = vld [vmem:[#allocation7 + $0x138] sm:$0xf] }
 0x171   :  { %14490 = vst [vmem:[#allocation79_spill] sm:$0xff] %v11209_v13  ;;  %14491 = vst [vmem:[#allocation80_spill] sm:$0xff] %v11220_v21  ;;  %v11223_v44 = vsel %vm2126_vm6, %v2196_v3, %v2198_v16  ;;  %v11226_v40 = vsel %vm1376_vm1, %v5907_v7, %v5909_v36  ;;  %9427 = vmatprep.mubr.msk.f32.mxu0 %vm1087_vm4, %v3437_v56  ;;  %v3438_v18 = vrot.slane %v11212_v23, 2  ;;  %v2200_v53 = vrot.slane %v11212_v23, 1  ;;  %v760_v58 = vpop.f32.mrb[41].mxu0  ;;  %v6047_v3 = vld [vmem:[#allocation7 + $0x130] sm:$0xff] }
 0x172   :  { %14492 = vst [vmem:[#allocation81_spill] sm:$0xff] %v11223_v44  ;;  %14493 = vst [vmem:[#allocation82_spill] sm:$0xff] %v11226_v40  ;;  %9921 = vmatprep.subr.bf16.mxu0 %v9920_v48  ;;  %v11232_v52 = vsel %vm1376_vm1, %v5909_v36, %v5911_v29  ;;  %v11235_v17 = vadd.f32 %v8946_v60, %v10551_v6  ;;  %v5913_v7 = vrot.slane %v11212_v23, 4  ;;  %v3440_v36 = vrot.slane %v11200_v26, 2  ;;  %v4805_v44 = vld [vmem:[#allocation7 + $0xc8] sm:$0xff] }
 0x173   :  { %14494 = vst [vmem:[#allocation83_spill] sm:$0xff] %v11232_v52  ;;  %v11239_v1 = vadd.f32 %v10551_v6, %v760_v58  ;;  %v3439_v56 = vsel %vm3364_vm5, %v3436_v41, %v3438_v18  ;;  %9923 = vmatpush3.bf16.msra.mxu0 %v9920_v48  ;;  %v9924_v13 = vpack.c.bf16 %v6048_v14, %v6047_v3  ;;  %v4804_v52 = vld [vmem:[#allocation7 + $0xc0] sm:$0xff]  ;;  %v2202_v3 = vrot.slane %v11200_v26, 1 }
 0x174   :  { %v11243_v40 = vsel %vm2126_vm6, %v2198_v16, %v2200_v53  ;;  %9428 = vmatmul.mubr.msk.f32.gmra.mrb[138].mxu0 %vm1087_vm4, %v3439_v56  ;;  %v3443_v60 = vrot.slane %v11235_v17, 2  ;;  %v2205_v21 = vrot.slane %v11235_v17, 1  ;;  %v11250_v58 = vsel %vm1376_vm1, %v5911_v29, %v5913_v7  ;;  %v8949_v28 = vpop.f32.mrb[42].mxu0 }
 0x175   :  { %14495 = vst [vmem:[#allocation84_spill] sm:$0xff] %v11243_v40  ;;  %14496 = vst [vmem:[#allocation85_spill] sm:$0xff] %v11250_v58  ;;  %9111 = vmatmul.mubr.msk.f32.gmra.mrb[36].mxu1 %vm1087_vm4, %v11239_v1  ;;  %v3441_v41 = vrot.slane %v11239_v1, 2  ;;  %v11255_v48 = vpack.c.bf16 %v4805_v44, %v4804_v52  ;;  %9926 = vmatprep.subr.msk.bf16.mxu0 %vm10298_vm3, %v9924_v13  ;;  %v2203_v16 = vrot.slane %v11239_v1, 1  ;;  %v5916_v18 = vrot.slane %v11239_v1, 4  ;;  %v770_v29 = vpop.f32.mrb[43].mxu0 }
 0x176   :  { %v11262_v53 = vadd.f32 %v8949_v28, %v10551_v6  ;;  %9113 = vmatprep.mubr.msk.f32.mxu1 %vm1087_vm4, %v11235_v17  ;;  %v5915_v14 = vrot.slane %v11200_v26, 4  ;;  %v5918_v44 = vrot.slane %v11235_v17, 4  ;;  %v11270_v52 = vadd.f32 %v10551_v6, %v770_v29 }
 0x177   :  { %v3442_v7 = vsel %vm3364_vm5, %v3440_v36, %v3441_v41  ;;  %v3444_v56 = vsel %vm3364_vm5, %v3441_v41, %v3443_v60  ;;  %9895 = vmatprep.subr.bf16.mxu1 %v11255_v48  ;;  %9929 = vmatpush3.bf16.msk.msra.mxu0 %vm10298_vm3, %v9924_v13  ;;  %v11280_v58 = vsel %vm2126_vm6, %v2202_v3, %v2203_v16 }
 0x178   :  { %14497 = vst [vmem:[#allocation86_spill] sm:$0xff] %v11262_v53  ;;  %14498 = vst [vmem:[#allocation87_spill] sm:$0xff] %v11270_v52  ;;  %9430 = vmatprep.mubr.msk.f32.mxu0 %vm1087_vm4, %v3442_v7  ;;  %v3447_v28 = vrot.slane %v11262_v53, 2  ;;  %v11283_v40 = vsel %vm2126_vm6, %v2203_v16, %v2205_v21  ;;  %v11286_v29 = vsel %vm1376_vm1, %v5915_v14, %v5916_v18  ;;  %v8952_v36 = vpop.f32.mrb[44].mxu0  ;;  %v3445_v13 = vrot.slane %v11270_v52, 2 }
 0x179   :  { %14499 = vst [vmem:[#allocation88_spill] sm:$0xff] %v11280_v58  ;;  %14500 = vst [vmem:[#allocation89_spill] sm:$0xff] %v11283_v40  ;;  %9114 = vmatmul.mubr.msk.f32.gmra.mrb[38].mxu1 %vm1087_vm4, %v11270_v52  ;;  %9431 = vmatmul.mubr.msk.f32.gmra.mrb[140].mxu0 %vm1087_vm4, %v3444_v56  ;;  %v4645_v7 = vrot.slane %v10923_v39, 3  ;;  %v11295_v3 = vadd.f32 %v8952_v36, %v10551_v6  ;;  %v780_v16 = vpop.f32.mrb[45].mxu0  ;;  %v11300_v14 = vsel %vm1376_vm1, %v5916_v18, %v5918_v44 }
 0x17a   :  { %14501 = vst [vmem:[#allocation90_spill] sm:$0xff] %v11286_v29  ;;  %9116 = vmatprep.mubr.msk.f32.mxu1 %vm1087_vm4, %v11262_v53  ;;  %14503 = vst [vmem:[#allocation92_spill] sm:$0xff] %v11300_v14  ;;  %v14318_v29 = vrot.slane %v11270_v52, 4  ;;  %v4647_v56 = vrot.slane %v10915_v20, 3  ;;  %v11305_v40 = vadd.f32 %v10551_v6, %v780_v16  ;;  %v3446_v41 = vsel %vm3364_vm5, %v3443_v60, %v3445_v13 }
 0x17b   :  { %14502 = vst [vmem:[#allocation91_spill] sm:$0xff] %v11295_v3  ;;  %v3448_v39 = vsel %vm3364_vm5, %v3445_v13, %v3447_v28  ;;  %v14505_v36 = vrot.slane %v11270_v52, 1  ;;  %9433 = vmatprep.mubr.msk.f32.mxu0 %vm1087_vm4, %v3446_v41  ;;  %v3451_v18 = vrot.slane %v11295_v3, 2  ;;  %v11326_v13 = vld [vmem:[#allocation5] ss:$0 sm:$0xff] }
 0x17c   :  { %14504 = vst [vmem:[#allocation93_spill] sm:$0xff] %v11305_v40  ;;  %v11319_v20 = vsel %vm1376_vm1, %v5918_v44, %v14318_v29  ;;  %v8955_v6 = vpop.f32.mrb[46].mxu0  ;;  %v3449_v60 = vrot.slane %v11305_v40, 2  ;;  %v14509_v44 = vrot.slane %v10875_v51, 3  ;;  %v4651_v29 = vrot.slane %v10949_v32, 3 }
 0x17d   :  { %v11312_v58 = vsel %vm2126_vm6, %v2205_v21, %v14505_v36  ;;  %14507 = vst [vmem:[#allocation95_spill] sm:$0xff] %v11319_v20  ;;  %9117 = vmatmul.mubr.msk.f32.gmra.mrb[40].mxu1 %vm1087_vm4, %v11305_v40  ;;  %9434 = vmatmul.mubr.msk.f32.gmra.mrb[142].mxu0 %vm1087_vm4, %v3448_v39  ;;  %v4649_v21 = vrot.slane %v10961_v37, 3  ;;  %v11329_v41 = vadd.f32 %v11326_v13, %v8955_v6  ;;  %v790_v16 = vpop.f32.mrb[47].mxu0 }
 0x17e   :  { %14506 = vst [vmem:[#allocation94_spill] sm:$0xff] %v11312_v58  ;;  %9119 = vmatprep.mubr.msk.f32.mxu1 %vm1087_vm4, %v11295_v3  ;;  %v11336_v36 = vsel %vm4602_vm7, %v14509_v44, %v4645_v7  ;;  %v11339_v39 = vsel %vm4602_vm7, %v4645_v7, %v4647_v56  ;;  %v11343_v37 = vadd.f32 %v11326_v13, %v790_v16 }
 0x17f   :  { %14508 = vst [vmem:[#allocation96_spill] sm:$0xff] %v11329_v41  ;;  %14510 = vst [vmem:[#allocation97_spill] sm:$0xff] %v11336_v36  ;;  %v3450_v6 = vsel %vm3364_vm5, %v3447_v28, %v3449_v60  ;;  %v3452_v20 = vsel %vm3364_vm5, %v3449_v60, %v3451_v18  ;;  %v3455_v14 = vrot.slane %v11329_v41, 2  ;;  %v11359_v28 = vsel %vm4602_vm7, %v4647_v56, %v4649_v21 }
 0x180   :  { %14511 = vst [vmem:[#allocation98_spill] sm:$0xff] %v11339_v39  ;;  %14512 = vst [vmem:[#allocation99_spill] sm:$0xff] %v11343_v37  ;;  %9436 = vmatprep.mubr.msk.f32.mxu0 %vm1087_vm4, %v3450_v6  ;;  %v8958_v51 = vpop.f32.mrb[48].mxu0  ;;  %v3453_v7 = vrot.slane %v11343_v37, 2  ;;  %v11362_v60 = vsel %vm4602_vm7, %v4649_v21, %v4651_v29 }
 0x181   :  { %9120 = vmatmul.mubr.msk.f32.gmra.mrb[42].mxu1 %vm1087_vm4, %v11343_v37  ;;  %9437 = vmatmul.mubr.msk.f32.gmra.mrb[144].mxu0 %vm1087_vm4, %v3452_v20  ;;  %v11354_v32 = vadd.f32 %v11326_v13, %v8958_v51  ;;  %v800_v16 = vpop.f32.mrb[49].mxu0  ;;  %14514 = vst [vmem:[#allocation101_spill] sm:$0xff] %v11359_v28  ;;  %14515 = vst [vmem:[#allocation102_spill] sm:$0xff] %v11362_v60 }
 0x182   :  { %9122 = vmatprep.mubr.msk.f32.mxu1 %vm1087_vm4, %v11329_v41  ;;  %v11365_v44 = vadd.f32 %v11326_v13, %v800_v16  ;;  %v3454_v20 = vsel %vm3364_vm5, %v3451_v18, %v3453_v7  ;;  %v3456_v6 = vsel %vm3364_vm5, %v3453_v7, %v3455_v14  ;;  %v4653_v18 = vrot.slane %v10995_v61, 3 }
 0x183   :  { %14513 = vst [vmem:[#allocation100_spill] sm:$0xff] %v11354_v32  ;;  %9439 = vmatprep.mubr.msk.f32.mxu0 %vm1087_vm4, %v3454_v20  ;;  %v3459_v51 = vrot.slane %v11354_v32, 2  ;;  %v4654_v7 = vrot.slane %v10987_v38, 3 }
 0x184   :  { %14516 = vst [vmem:[#allocation103_spill] sm:$0xff] %v11365_v44  ;;  %v8961_v39 = vpop.f32.mrb[50].mxu0  ;;  %v3457_v29 = vrot.slane %v11365_v44, 2 }
 0x185   :  { %9123 = vmatmul.mubr.msk.f32.gmra.mrb[44].mxu1 %vm1087_vm4, %v11365_v44  ;;  %9440 = vmatmul.mubr.msk.f32.gmra.mrb[146].mxu0 %vm1087_vm4, %v3456_v6  ;;  %v11376_v56 = vadd.f32 %v11326_v13, %v8961_v39  ;;  %v810_v21 = vpop.f32.mrb[51].mxu0 }
 0x186   :  { %9125 = vmatprep.mubr.msk.f32.mxu1 %vm1087_vm4, %v11354_v32  ;;  %v11383_v16 = vadd.f32 %v11326_v13, %v810_v21  ;;  %v3458_v20 = vsel %vm3364_vm5, %v3455_v14, %v3457_v29  ;;  %v3460_v6 = vsel %vm3364_vm5, %v3457_v29, %v3459_v51  ;;  %v11397_v14 = vsel %vm4602_vm7, %v4653_v18, %v4654_v7 }
 0x187   :  { %14517 = vst [vmem:[#allocation104_spill] sm:$0xff] %v11376_v56  ;;  %9442 = vmatprep.mubr.msk.f32.mxu0 %vm1087_vm4, %v3458_v20  ;;  %v3463_v39 = vrot.slane %v11376_v56, 2  ;;  %14520 = vst [vmem:[#allocation107_spill] sm:$0xff] %v11397_v14  ;;  %v4656_v29 = vrot.slane %v11031_v9, 3 }
 0x188   :  { %14518 = vst [vmem:[#allocation105_spill] sm:$0xff] %v11383_v16  ;;  %v8964_v60 = vpop.f32.mrb[52].mxu0  ;;  %v3461_v61 = vrot.slane %v11383_v16, 2 }
 0x189   :  { %9126 = vmatmul.mubr.msk.f32.gmra.mrb[46].mxu1 %vm1087_vm4, %v11383_v16  ;;  %9443 = vmatmul.mubr.msk.f32.gmra.mrb[148].mxu0 %vm1087_vm4, %v3460_v6  ;;  %v11394_v38 = vadd.f32 %v11326_v13, %v8964_v60  ;;  %v820_v21 = vpop.f32.mrb[53].mxu0 }
 0x18a   :  { %v11401_v20 = vadd.f32 %v11326_v13, %v820_v21  ;;  %v3462_v28 = vsel %vm3364_vm5, %v3459_v51, %v3461_v61  ;;  %v3464_v36 = vsel %vm3364_vm5, %v3461_v61, %v3463_v39  ;;  %v11417_v51 = vsel %vm4602_vm7, %v4654_v7, %v4656_v29 }
 0x18b   :  { %14519 = vst [vmem:[#allocation106_spill] sm:$0xff] %v11394_v38  ;;  %9445 = vmatprep.mubr.msk.f32.mxu0 %vm1087_vm4, %v3462_v28  ;;  %v3466_v6 = vrot.slane %v11394_v38, 2  ;;  %14523 = vst [vmem:[#allocation110_spill] sm:$0xff] %v11417_v51  ;;  %v4658_v28 = vrot.slane %v11021_v19, 3 }
 0x18c   :  { %14521 = vst [vmem:[#allocation108_spill] sm:$0xff] %v11401_v20  ;;  %v8967_v56 = vpop.f32.mrb[54].mxu0  ;;  %9128 = vmatprep.mubr.msk.f32.mxu1 %vm1087_vm4, %v11401_v20  ;;  %v3465_v60 = vrot.slane %v11401_v20, 2 }
 0x18d   :  { %9446 = vmatmul.mubr.msk.f32.gmra.mrb[150].mxu0 %vm1087_vm4, %v3464_v36  ;;  %v11412_v9 = vadd.f32 %v11326_v13, %v8967_v56  ;;  %v830_v18 = vpop.f32.mrb[55].mxu0  ;;  %9129 = vmatmul.mubr.msk.f32.gmra.mrb[48].mxu1 %vm1087_vm4, %v11394_v38  ;;  %v4660_v36 = vrot.slane %v11064_v34, 3  ;;  %v11431_v51 = vsel %vm4602_vm7, %v4656_v29, %v4658_v28 }
 0x18e   :  { %v11421_v39 = vadd.f32 %v11326_v13, %v830_v18  ;;  %v3467_v61 = vsel %vm3364_vm5, %v3465_v60, %v3466_v6  ;;  %14525 = vst [vmem:[#allocation112_spill] sm:$0xff] %v11431_v51  ;;  %v4662_v60 = vrot.slane %v11054_v8, 3 }
 0x18f   :  { %14522 = vst [vmem:[#allocation109_spill] sm:$0xff] %v11412_v9  ;;  %9448 = vmatprep.mubr.msk.f32.mxu0 %vm1087_vm4, %v3467_v61  ;;  %v3470_v56 = vrot.slane %v11412_v9, 2  ;;  %v11439_v34 = vsel %vm4602_vm7, %v4658_v28, %v4660_v36  ;;  %v4664_v61 = vrot.slane %v11104_v63, 3 }
 0x190   :  { %14524 = vst [vmem:[#allocation111_spill] sm:$0xff] %v11421_v39  ;;  %v8970_v21 = vpop.f32.mrb[56].mxu0  ;;  %9131 = vmatprep.mubr.msk.f32.mxu1 %vm1087_vm4, %v11421_v39  ;;  %v3468_v7 = vrot.slane %v11421_v39, 2  ;;  %14527 = vst [vmem:[#allocation114_spill] sm:$0xff] %v11439_v34 }
 0x191   :  { %v11434_v19 = vadd.f32 %v11326_v13, %v8970_v21  ;;  %v840_v18 = vpop.f32.mrb[57].mxu0  ;;  %9132 = vmatmul.mubr.msk.f32.gmra.mrb[50].mxu1 %vm1087_vm4, %v11412_v9 }
 0x192   :  { %v11444_v14 = vadd.f32 %v11326_v13, %v840_v18  ;;  %v3469_v29 = vsel %vm3364_vm5, %v3466_v6, %v3468_v7  ;;  %v3471_v51 = vsel %vm3364_vm5, %v3468_v7, %v3470_v56  ;;  %v11460_v6 = vsel %vm4602_vm7, %v4660_v36, %v4662_v60 }
 0x193   :  { %14526 = vst [vmem:[#allocation113_spill] sm:$0xff] %v11434_v19  ;;  %9449 = vmatmul.mubr.msk.f32.gmra.mrb[152].mxu0 %vm1087_vm4, %v3469_v29  ;;  %v3474_v21 = vrot.slane %v11434_v19, 2  ;;  %14530 = vst [vmem:[#allocation117_spill] sm:$0xff] %v11460_v6  ;;  %v11463_v7 = vsel %vm4602_vm7, %v4662_v60, %v4664_v61 }
 0x194   :  { %14528 = vst [vmem:[#allocation115_spill] sm:$0xff] %v11444_v14  ;;  %v8973_v39 = vpop.f32.mrb[58].mxu0  ;;  %9134 = vmatprep.mubr.msk.f32.mxu1 %vm1087_vm4, %v11444_v14  ;;  %9451 = vmatprep.mubr.msk.f32.mxu0 %vm1087_vm4, %v3471_v51  ;;  %v3472_v8 = vrot.slane %v11444_v14, 2  ;;  %14531 = vst [vmem:[#allocation118_spill] sm:$0xff] %v11463_v7 }
 0x195   :  { %v11455_v63 = vadd.f32 %v11326_v13, %v8973_v39  ;;  %v850_v28 = vpop.f32.mrb[59].mxu0  ;;  %9135 = vmatmul.mubr.msk.f32.gmra.mrb[52].mxu1 %vm1087_vm4, %v11434_v19 }
 0x196   :  { %v11466_v18 = vadd.f32 %v11326_v13, %v850_v28  ;;  %v3473_v51 = vsel %vm3364_vm5, %v3470_v56, %v3472_v8  ;;  %v3475_v29 = vsel %vm3364_vm5, %v3472_v8, %v3474_v21  ;;  %v4666_v56 = vrot.slane %v11090_v59, 3 }
 0x197   :  { %14529 = vst [vmem:[#allocation116_spill] sm:$0xff] %v11455_v63  ;;  %9452 = vmatmul.mubr.msk.f32.gmra.mrb[154].mxu0 %vm1087_vm4, %v3473_v51  ;;  %v3478_v39 = vrot.slane %v11455_v63, 2  ;;  %v4668_v8 = vrot.slane %v11138_v12, 3 }
 0x198   :  { %14532 = vst [vmem:[#allocation119_spill] sm:$0xff] %v11466_v18  ;;  %v8976_v34 = vpop.f32.mrb[60].mxu0  ;;  %9137 = vmatprep.mubr.msk.f32.mxu1 %vm1087_vm4, %v11466_v18  ;;  %9454 = vmatprep.mubr.msk.f32.mxu0 %vm1087_vm4, %v3475_v29  ;;  %v3476_v36 = vrot.slane %v11466_v18, 2 }
 0x199   :  { %v11477_v60 = vadd.f32 %v11326_v13, %v8976_v34  ;;  %v860_v28 = vpop.f32.mrb[61].mxu0  ;;  %9138 = vmatmul.mubr.msk.f32.gmra.mrb[54].mxu1 %vm1087_vm4, %v11455_v63 }
 0x19a   :  { %v11484_v51 = vadd.f32 %v11326_v13, %v860_v28  ;;  %v3477_v7 = vsel %vm3364_vm5, %v3474_v21, %v3476_v36  ;;  %v3479_v29 = vsel %vm3364_vm5, %v3476_v36, %v3478_v39  ;;  %v11500_v21 = vsel %vm4602_vm7, %v4664_v61, %v4666_v56 }
 0x19b   :  { %14533 = vst [vmem:[#allocation120_spill] sm:$0xff] %v11477_v60  ;;  %9455 = vmatmul.mubr.msk.f32.gmra.mrb[156].mxu0 %vm1087_vm4, %v3477_v7  ;;  %v3482_v34 = vrot.slane %v11477_v60, 2  ;;  %14536 = vst [vmem:[#allocation123_spill] sm:$0xff] %v11500_v21  ;;  %v11503_v7 = vsel %vm4602_vm7, %v4666_v56, %v4668_v8 }
 0x19c   :  { %14534 = vst [vmem:[#allocation121_spill] sm:$0xff] %v11484_v51  ;;  %v8979_v6 = vpop.f32.mrb[62].mxu0  ;;  %9140 = vmatprep.mubr.msk.f32.mxu1 %vm1087_vm4, %v11484_v51  ;;  %9457 = vmatprep.mubr.msk.f32.mxu0 %vm1087_vm4, %v3479_v29  ;;  %v3480_v59 = vrot.slane %v11484_v51, 2  ;;  %14537 = vst [vmem:[#allocation124_spill] sm:$0xff] %v11503_v7 }
 0x19d   :  { %v11495_v12 = vadd.f32 %v11326_v13, %v8979_v6  ;;  %v870_v28 = vpop.f32.mrb[63].mxu0  ;;  %9141 = vmatmul.mubr.msk.f32.gmra.mrb[56].mxu1 %vm1087_vm4, %v11477_v60 }
 0x19e   :  { %v11506_v36 = vadd.f32 %v11326_v13, %v870_v28  ;;  %v3481_v29 = vsel %vm3364_vm5, %v3478_v39, %v3480_v59  ;;  %v3483_v51 = vsel %vm3364_vm5, %v3480_v59, %v3482_v34  ;;  %v4670_v39 = vrot.slane %v11130_v15, 3 }
 0x19f   :  { %14535 = vst [vmem:[#allocation122_spill] sm:$0xff] %v11495_v12  ;;  %9458 = vmatmul.mubr.msk.f32.gmra.mrb[158].mxu0 %vm1087_vm4, %v3481_v29  ;;  %v3486_v6 = vrot.slane %v11495_v12, 2 }
 0x1a0   :  { %14538 = vst [vmem:[#allocation125_spill] sm:$0xff] %v11506_v36  ;;  %v8982_v63 = vpop.f32.mrb[64].mxu0  ;;  %9143 = vmatprep.mubr.msk.f32.mxu1 %vm1087_vm4, %v11506_v36  ;;  %9460 = vmatprep.mubr.msk.f32.mxu0 %vm1087_vm4, %v3483_v51  ;;  %v3484_v61 = vrot.slane %v11506_v36, 2 }
 0x1a1   :  { %v11517_v56 = vadd.f32 %v11326_v13, %v8982_v63  ;;  %v880_v28 = vpop.f32.mrb[65].mxu0  ;;  %9144 = vmatmul.mubr.msk.f32.gmra.mrb[58].mxu1 %vm1087_vm4, %v11495_v12  ;;  %v4672_v63 = vrot.slane %v11175_v35, 3 }
 0x1a2   :  { %v11523_v59 = vadd.f32 %v11326_v13, %v880_v28  ;;  %v3485_v29 = vsel %vm3364_vm5, %v3482_v34, %v3484_v61  ;;  %v3487_v7 = vsel %vm3364_vm5, %v3484_v61, %v3486_v6  ;;  %v11537_v34 = vsel %vm4602_vm7, %v4668_v8, %v4670_v39 }
 0x1a3   :  { %14539 = vst [vmem:[#allocation126_spill] sm:$0xff] %v11517_v56  ;;  %9146 = vmatprep.mubr.msk.f32.mxu1 %vm1087_vm4, %v11517_v56  ;;  %9461 = vmatmul.mubr.msk.f32.gmra.mrb[160].mxu0 %vm1087_vm4, %v3485_v29  ;;  %14542 = vst [vmem:[#allocation129_spill] sm:$0xff] %v11537_v34 }
 0x1a4   :  { %14540 = vst [vmem:[#allocation127_spill] sm:$0xff] %v11523_v59  ;;  %v8985_v51 = vpop.f32.mrb[66].mxu0  ;;  %9463 = vmatprep.mubr.msk.f32.mxu0 %vm1087_vm4, %v3487_v7  ;;  %v3488_v21 = vrot.slane %v11523_v59, 2  ;;  %v11546_v7 = vsel %vm4602_vm7, %v4670_v39, %v4672_v63 }
 0x1a5   :  { %v11534_v15 = vadd.f32 %v11326_v13, %v8985_v51  ;;  %v890_v28 = vpop.f32.mrb[67].mxu0  ;;  %14544 = vst [vmem:[#allocation131_spill] sm:$0xff] %v11546_v7  ;;  %v3490_v51 = vrot.slane %v11517_v56, 2 }
 0x1a6   :  { %v11540_v61 = vadd.f32 %v11326_v13, %v890_v28  ;;  %v3489_v12 = vsel %vm3364_vm5, %v3486_v6, %v3488_v21  ;;  %v4676_v21 = vrot.slane %v11212_v23, 3 }
 0x1a7   :  { %14541 = vst [vmem:[#allocation128_spill] sm:$0xff] %v11534_v15  ;;  %9464 = vmatmul.mubr.msk.f32.gmra.mrb[162].mxu0 %vm1087_vm4, %v3489_v12  ;;  %v3493_v35 = vrot.slane %v11534_v15, 2  ;;  %v4674_v12 = vrot.slane %v11163_v27, 3 }
 0x1a8   :  { %14543 = vst [vmem:[#allocation130_spill] sm:$0xff] %v11540_v61  ;;  %v8988_v29 = vpop.f32.mrb[68].mxu0  ;;  %9147 = vmatmul.mubr.msk.f32.gmra.mrb[60].mxu1 %vm1087_vm4, %v11540_v61  ;;  %v3491_v8 = vrot.slane %v11540_v61, 2 }
 0x1a9   :  { %v11553_v28 = vadd.f32 %v11326_v13, %v8988_v29  ;;  %v900_v34 = vpop.f32.mrb[69].mxu0  ;;  %9149 = vmatprep.mubr.msk.f32.mxu1 %vm1087_vm4, %v11534_v15 }
 0x1aa   :  { %v11560_v6 = vadd.f32 %v11326_v13, %v900_v34  ;;  %v3492_v39 = vsel %vm3364_vm5, %v3490_v51, %v3491_v8  ;;  %v3494_v7 = vsel %vm3364_vm5, %v3491_v8, %v3493_v35  ;;  %v11576_v51 = vsel %vm4602_vm7, %v4672_v63, %v4674_v12 }
 0x1ab   :  { %14545 = vst [vmem:[#allocation132_spill] sm:$0xff] %v11553_v28  ;;  %9466 = vmatprep.mubr.msk.f32.mxu0 %vm1087_vm4, %v3492_v39  ;;  %v3497_v29 = vrot.slane %v11553_v28, 2  ;;  %14548 = vst [vmem:[#allocation135_spill] sm:$0xff] %v11576_v51  ;;  %v11579_v8 = vsel %vm4602_vm7, %v4674_v12, %v4676_v21  ;;  %v4679_v39 = vrot.slane %v11239_v1, 3 }
 0x1ac   :  { %14546 = vst [vmem:[#allocation133_spill] sm:$0xff] %v11560_v6  ;;  %v8991_v56 = vpop.f32.mrb[70].mxu0  ;;  %9150 = vmatmul.mubr.msk.f32.gmra.mrb[62].mxu1 %vm1087_vm4, %v11560_v6  ;;  %9467 = vmatmul.mubr.msk.f32.gmra.mrb[164].mxu0 %vm1087_vm4, %v3494_v7  ;;  %v3495_v27 = vrot.slane %v11560_v6, 2  ;;  %14549 = vst [vmem:[#allocation136_spill] sm:$0xff] %v11579_v8 }
 0x1ad   :  { %v11571_v23 = vadd.f32 %v11326_v13, %v8991_v56  ;;  %v910_v34 = vpop.f32.mrb[71].mxu0  ;;  %9152 = vmatprep.mubr.msk.f32.mxu1 %vm1087_vm4, %v11553_v28  ;;  %v4678_v28 = vrot.slane %v11200_v26, 3  ;;  %v4681_v26 = vrot.slane %v11235_v17, 3 }
 0x1ae   :  { %v11583_v15 = vadd.f32 %v11326_v13, %v910_v34  ;;  %v3496_v7 = vsel %vm3364_vm5, %v3493_v35, %v3495_v27  ;;  %v3498_v56 = vsel %vm3364_vm5, %v3495_v27, %v3497_v29 }
 0x1af   :  { %14547 = vst [vmem:[#allocation134_spill] sm:$0xff] %v11571_v23  ;;  %9469 = vmatprep.mubr.msk.f32.mxu0 %vm1087_vm4, %v3496_v7  ;;  %v3501_v6 = vrot.slane %v11571_v23, 2  ;;  %v11600_v21 = vsel %vm4602_vm7, %v4678_v28, %v4679_v39 }
 0x1b0   :  { %14550 = vst [vmem:[#allocation137_spill] sm:$0xff] %v11583_v15  ;;  %v8994_v63 = vpop.f32.mrb[72].mxu0  ;;  %9153 = vmatmul.mubr.msk.f32.gmra.mrb[64].mxu1 %vm1087_vm4, %v11583_v15  ;;  %9470 = vmatmul.mubr.msk.f32.gmra.mrb[166].mxu0 %vm1087_vm4, %v3498_v56  ;;  %v3499_v1 = vrot.slane %v11583_v15, 2  ;;  %14552 = vst [vmem:[#allocation139_spill] sm:$0xff] %v11600_v21 }
 0x1b1   :  { %v11595_v12 = vadd.f32 %v11326_v13, %v8994_v63  ;;  %v920_v35 = vpop.f32.mrb[73].mxu0  ;;  %9155 = vmatprep.mubr.msk.f32.mxu1 %vm1087_vm4, %v11571_v23 }
 0x1b2   :  { %v11604_v27 = vadd.f32 %v11326_v13, %v920_v35  ;;  %v3500_v34 = vsel %vm3364_vm5, %v3497_v29, %v3499_v1  ;;  %v3502_v7 = vsel %vm3364_vm5, %v3499_v1, %v3501_v6  ;;  %v11620_v29 = vsel %vm4602_vm7, %v4679_v39, %v4681_v26 }
 0x1b3   :  { %14551 = vst [vmem:[#allocation138_spill] sm:$0xff] %v11595_v12  ;;  %9472 = vmatprep.mubr.msk.f32.mxu0 %vm1087_vm4, %v3500_v34  ;;  %v3505_v56 = vrot.slane %v11595_v12, 2  ;;  %14555 = vst [vmem:[#allocation142_spill] sm:$0xff] %v11620_v29 }
 0x1b4   :  { %14553 = vst [vmem:[#allocation140_spill] sm:$0xff] %v11604_v27  ;;  %v8997_v63 = vpop.f32.mrb[74].mxu0  ;;  %9156 = vmatmul.mubr.msk.f32.gmra.mrb[66].mxu1 %vm1087_vm4, %v11604_v27  ;;  %9473 = vmatmul.mubr.msk.f32.gmra.mrb[168].mxu0 %vm1087_vm4, %v3502_v7  ;;  %v3503_v28 = vrot.slane %v11604_v27, 2 }
 0x1b5   :  { %v11615_v17 = vadd.f32 %v11326_v13, %v8997_v63  ;;  %v930_v35 = vpop.f32.mrb[75].mxu0  ;;  %9158 = vmatprep.mubr.msk.f32.mxu1 %vm1087_vm4, %v11595_v12 }
 0x1b6   :  { %v11624_v34 = vadd.f32 %v11326_v13, %v930_v35  ;;  %v3504_v21 = vsel %vm3364_vm5, %v3501_v6, %v3503_v28  ;;  %v3506_v7 = vsel %vm3364_vm5, %v3503_v28, %v3505_v56  ;;  %v14557_v6 = vrot.slane %v11270_v52, 3 }
 0x1b7   :  { %14554 = vst [vmem:[#allocation141_spill] sm:$0xff] %v11615_v17  ;;  %9475 = vmatprep.mubr.msk.f32.mxu0 %vm1087_vm4, %v3504_v21  ;;  %v3509_v63 = vrot.slane %v11615_v17, 2 }
 0x1b8   :  { %14556 = vst [vmem:[#allocation143_spill] sm:$0xff] %v11624_v34  ;;  %v9000_v8 = vpop.f32.mrb[76].mxu0  ;;  %9159 = vmatmul.mubr.msk.f32.gmra.mrb[68].mxu1 %vm1087_vm4, %v11624_v34  ;;  %9476 = vmatmul.mubr.msk.f32.gmra.mrb[170].mxu0 %vm1087_vm4, %v3506_v7  ;;  %v3507_v39 = vrot.slane %v11624_v34, 2  ;;  %v11642_v21 = vsel %vm4602_vm7, %v4681_v26, %v14557_v6 }
 0x1b9   :  { %v11635_v1 = vadd.f32 %v11326_v13, %v9000_v8  ;;  %v940_v35 = vpop.f32.mrb[77].mxu0  ;;  %9161 = vmatprep.mubr.msk.f32.mxu1 %vm1087_vm4, %v11615_v17  ;;  %14558 = vst [vmem:[#allocation144_spill] sm:$0xff] %v11642_v21 }
 0x1ba   :  { %v11645_v28 = vadd.f32 %v11326_v13, %v940_v35  ;;  %v3508_v29 = vsel %vm3364_vm5, %v3505_v56, %v3507_v39  ;;  %v3510_v7 = vsel %vm3364_vm5, %v3507_v39, %v3509_v63 }
 0x1bb   :  { %9478 = vmatprep.mubr.msk.f32.mxu0 %vm1087_vm4, %v3508_v29  ;;  %v3513_v8 = vrot.slane %v11635_v1, 2  ;;  %v5988_v51 = vrot.slane %v11635_v1, 4  ;;  %v2275_v56 = vrot.slane %v11635_v1, 1 }
 0x1bc   :  { %v9003_v34 = vpop.f32.mrb[78].mxu0  ;;  %9162 = vmatmul.mubr.msk.f32.gmra.mrb[70].mxu1 %vm1087_vm4, %v11645_v28  ;;  %9479 = vmatmul.mubr.msk.f32.gmra.mrb[172].mxu0 %vm1087_vm4, %v3510_v7  ;;  %v3511_v26 = vrot.slane %v11645_v28, 2  ;;  %v14347_v35 = vrot.slane %v11645_v28, 1  ;;  %v14350_v6 = vrot.slane %v11645_v28, 4 }
 0x1bd   :  { %v11659_v39 = vadd.f32 %v11326_v13, %v9003_v34  ;;  %v950_v29 = vpop.f32.mrb[79].mxu0 }
 0x1be   :  { %v11663_v21 = vadd.f32 %v11326_v13, %v950_v29  ;;  %v3512_v17 = vsel %vm3364_vm5, %v3509_v63, %v3511_v26  ;;  %v3514_v12 = vsel %vm3364_vm5, %v3511_v26, %v3513_v8  ;;  %v11672_v27 = vsel %vm2126_vm6, %v14347_v35, %v2275_v56 }
 0x1bf   :  { %9481 = vmatprep.mubr.msk.f32.mxu0 %vm1087_vm4, %v3512_v17  ;;  %v3516_v7 = vrot.slane %v11659_v39, 2  ;;  %14559 = vst [vmem:[#allocation145_spill] sm:$0xff] %v11672_v27  ;;  %v2278_v34 = vrot.slane %v11659_v39, 1  ;;  %v11683_v17 = vsel %vm1376_vm1, %v14350_v6, %v5988_v51 }
 0x1c0   :  { %v9006_v23 = vpop.f32.mrb[80].mxu0  ;;  %9164 = vmatprep.mubr.msk.f32.mxu1 %vm1087_vm4, %v11663_v21  ;;  %9482 = vmatmul.mubr.msk.f32.gmra.mrb[174].mxu0 %vm1087_vm4, %v3514_v12  ;;  %v3515_v63 = vrot.slane %v11663_v21, 2  ;;  %v2277_v8 = vrot.slane %v11663_v21, 1  ;;  %14560 = vst [vmem:[#allocation146_spill] sm:$0xff] %v11683_v17  ;;  %v5990_v26 = vrot.slane %v11663_v21, 4  ;;  %v5991_v12 = vrot.slane %v11659_v39, 4 }
 0x1c1   :  { %v11687_v56 = vadd.f32 %v11326_v13, %v9006_v23  ;;  %v960_v29 = vpop.f32.mrb[81].mxu0  ;;  %9165 = vmatmul.mubr.msk.f32.gmra.mrb[72].mxu1 %vm1087_vm4, %v11659_v39 }
 0x1c2   :  { %v11693_v35 = vadd.f32 %v11326_v13, %v960_v29  ;;  %v3517_v27 = vsel %vm3364_vm5, %v3515_v63, %v3516_v7  ;;  %v11697_v15 = vsel %vm2126_vm6, %v2277_v8, %v2278_v34  ;;  %v11703_v6 = vsel %vm1376_vm1, %v5990_v26, %v5991_v12 }
 0x1c3   :  { %14561 = vst [vmem:[#allocation147_spill] sm:$0xff] %v11697_v15  ;;  %9484 = vmatprep.mubr.msk.f32.mxu0 %vm1087_vm4, %v3517_v27  ;;  %v3520_v51 = vrot.slane %v11687_v56, 2  ;;  %v2282_v23 = vrot.slane %v11687_v56, 1  ;;  %14562 = vst [vmem:[#allocation148_spill] sm:$0xff] %v11703_v6  ;;  %v5995_v15 = vrot.slane %v11687_v56, 4 }
 0x1c4   :  { %v9009_v17 = vpop.f32.mrb[82].mxu0  ;;  %9167 = vmatprep.mubr.msk.f32.mxu1 %vm1087_vm4, %v11693_v35  ;;  %v3518_v29 = vrot.slane %v11693_v35, 2  ;;  %v2280_v63 = vrot.slane %v11693_v35, 1  ;;  %v5993_v8 = vrot.slane %v11693_v35, 4 }
 0x1c5   :  { %v11712_v27 = vadd.f32 %v11326_v13, %v9009_v17  ;;  %v970_v61 = vpop.f32.mrb[83].mxu0  ;;  %9168 = vmatmul.mubr.msk.f32.gmra.mrb[74].mxu1 %vm1087_vm4, %v11687_v56 }
 0x1c6   :  { %v11717_v26 = vadd.f32 %v11326_v13, %v970_v61  ;;  %v3519_v6 = vsel %vm3364_vm5, %v3516_v7, %v3518_v29  ;;  %v3521_v59 = vsel %vm3364_vm5, %v3518_v29, %v3520_v51  ;;  %v11722_v36 = vsel %vm2126_vm6, %v2278_v34, %v2280_v63 }
 0x1c7   :  { %14563 = vst [vmem:[#allocation149_spill] sm:$0xff] %v11722_v36  ;;  %9485 = vmatmul.mubr.msk.f32.gmra.mrb[176].mxu0 %vm1087_vm4, %v3519_v6  ;;  %v3524_v60 = vrot.slane %v11712_v27, 2  ;;  %v11727_v17 = vsel %vm2126_vm6, %v2280_v63, %v2282_v23  ;;  %v11730_v18 = vsel %vm1376_vm1, %v5991_v12, %v5993_v8  ;;  %v2286_v61 = vrot.slane %v11712_v27, 1 }
 0x1c8   :  { %14564 = vst [vmem:[#allocation150_spill] sm:$0xff] %v11727_v17  ;;  %14565 = vst [vmem:[#allocation151_spill] sm:$0xff] %v11730_v18  ;;  %v9012_v19 = vpop.f32.mrb[84].mxu0  ;;  %9170 = vmatprep.mubr.msk.f32.mxu1 %vm1087_vm4, %v11717_v26  ;;  %9487 = vmatprep.mubr.msk.f32.mxu0 %vm1087_vm4, %v3521_v59  ;;  %v3522_v7 = vrot.slane %v11717_v26, 2  ;;  %v2284_v6 = vrot.slane %v11717_v26, 1  ;;  %v11739_v34 = vsel %vm1376_vm1, %v5993_v8, %v5995_v15  ;;  %v5997_v29 = vrot.slane %v11717_v26, 4 }
 0x1c9   :  { %14566 = vst [vmem:[#allocation152_spill] sm:$0xff] %v11739_v34  ;;  %v11743_v12 = vadd.f32 %v11326_v13, %v9012_v19  ;;  %v980_v63 = vpop.f32.mrb[85].mxu0  ;;  %9171 = vmatmul.mubr.msk.f32.gmra.mrb[76].mxu1 %vm1087_vm4, %v11712_v27  ;;  %v5999_v18 = vrot.slane %v11712_v27, 4 }
 0x1ca   :  { %v11749_v59 = vadd.f32 %v11326_v13, %v980_v63  ;;  %v3523_v17 = vsel %vm3364_vm5, %v3520_v51, %v3522_v7  ;;  %v3525_v36 = vsel %vm3364_vm5, %v3522_v7, %v3524_v60  ;;  %v11754_v8 = vsel %vm2126_vm6, %v2282_v23, %v2284_v6 }
 0x1cb   :  { %14567 = vst [vmem:[#allocation153_spill] sm:$0xff] %v11754_v8  ;;  %9488 = vmatmul.mubr.msk.f32.gmra.mrb[178].mxu0 %vm1087_vm4, %v3523_v17  ;;  %v3528_v19 = vrot.slane %v11743_v12, 2  ;;  %v11759_v34 = vsel %vm2126_vm6, %v2284_v6, %v2286_v61  ;;  %v11762_v14 = vsel %vm1376_vm1, %v5995_v15, %v5997_v29  ;;  %v2290_v63 = vrot.slane %v11743_v12, 1 }
 0x1cc   :  { %14568 = vst [vmem:[#allocation154_spill] sm:$0xff] %v11759_v34  ;;  %14569 = vst [vmem:[#allocation155_spill] sm:$0xff] %v11762_v14  ;;  %v9015_v9 = vpop.f32.mrb[86].mxu0  ;;  %9173 = vmatprep.mubr.msk.f32.mxu1 %vm1087_vm4, %v11749_v59  ;;  %9490 = vmatprep.mubr.msk.f32.mxu0 %vm1087_vm4, %v3525_v36  ;;  %v3526_v51 = vrot.slane %v11749_v59, 2  ;;  %v2288_v23 = vrot.slane %v11749_v59, 1  ;;  %v11771_v17 = vsel %vm1376_vm1, %v5997_v29, %v5999_v18  ;;  %v6001_v7 = vrot.slane %v11749_v59, 4 }
 0x1cd   :  { %14570 = vst [vmem:[#allocation156_spill] sm:$0xff] %v11771_v17  ;;  %v11775_v15 = vadd.f32 %v11326_v13, %v9015_v9  ;;  %v990_v6 = vpop.f32.mrb[87].mxu0  ;;  %9174 = vmatmul.mubr.msk.f32.gmra.mrb[78].mxu1 %vm1087_vm4, %v11743_v12  ;;  %v6003_v14 = vrot.slane %v11743_v12, 4 }
 0x1ce   :  { %v11781_v36 = vadd.f32 %v11326_v13, %v990_v6  ;;  %v3527_v34 = vsel %vm3364_vm5, %v3524_v60, %v3526_v51  ;;  %v3529_v8 = vsel %vm3364_vm5, %v3526_v51, %v3528_v19  ;;  %v11786_v29 = vsel %vm2126_vm6, %v2286_v61, %v2288_v23 }
 0x1cf   :  { %14571 = vst [vmem:[#allocation157_spill] sm:$0xff] %v11786_v29  ;;  %9491 = vmatmul.mubr.msk.f32.gmra.mrb[180].mxu0 %vm1087_vm4, %v3527_v34  ;;  %v3532_v9 = vrot.slane %v11775_v15, 2  ;;  %v11791_v17 = vsel %vm2126_vm6, %v2288_v23, %v2290_v63  ;;  %v11794_v38 = vsel %vm1376_vm1, %v5999_v18, %v6001_v7  ;;  %v2294_v6 = vrot.slane %v11775_v15, 1 }
 0x1d0   :  { %14572 = vst [vmem:[#allocation158_spill] sm:$0xff] %v11791_v17  ;;  %14573 = vst [vmem:[#allocation159_spill] sm:$0xff] %v11794_v38  ;;  %v9018_v20 = vpop.f32.mrb[88].mxu0  ;;  %9176 = vmatprep.mubr.msk.f32.mxu1 %vm1087_vm4, %v11781_v36  ;;  %9493 = vmatprep.mubr.msk.f32.mxu0 %vm1087_vm4, %v3529_v8  ;;  %v3530_v60 = vrot.slane %v11781_v36, 2  ;;  %v2292_v61 = vrot.slane %v11781_v36, 1  ;;  %v11803_v34 = vsel %vm1376_vm1, %v6001_v7, %v6003_v14  ;;  %v6005_v51 = vrot.slane %v11781_v36, 4 }
 0x1d1   :  { %14574 = vst [vmem:[#allocation160_spill] sm:$0xff] %v11803_v34  ;;  %v11807_v18 = vadd.f32 %v11326_v13, %v9018_v20  ;;  %v1000_v23 = vpop.f32.mrb[89].mxu0  ;;  %9177 = vmatmul.mubr.msk.f32.gmra.mrb[80].mxu1 %vm1087_vm4, %v11775_v15  ;;  %v6007_v38 = vrot.slane %v11775_v15, 4 }
 0x1d2   :  { %v11813_v8 = vadd.f32 %v11326_v13, %v1000_v23  ;;  %v3531_v17 = vsel %vm3364_vm5, %v3528_v19, %v3530_v60  ;;  %v3533_v29 = vsel %vm3364_vm5, %v3530_v60, %v3532_v9  ;;  %v11818_v7 = vsel %vm2126_vm6, %v2290_v63, %v2292_v61 }
 0x1d3   :  { %14575 = vst [vmem:[#allocation161_spill] sm:$0xff] %v11818_v7  ;;  %9494 = vmatmul.mubr.msk.f32.gmra.mrb[182].mxu0 %vm1087_vm4, %v3531_v17  ;;  %v3536_v20 = vrot.slane %v11807_v18, 2  ;;  %v11823_v34 = vsel %vm2126_vm6, %v2292_v61, %v2294_v6  ;;  %v11826_v16 = vsel %vm1376_vm1, %v6003_v14, %v6005_v51  ;;  %v2298_v23 = vrot.slane %v11807_v18, 1 }
 0x1d4   :  { %14576 = vst [vmem:[#allocation162_spill] sm:$0xff] %v11823_v34  ;;  %14577 = vst [vmem:[#allocation163_spill] sm:$0xff] %v11826_v16  ;;  %v9021_v32 = vpop.f32.mrb[90].mxu0  ;;  %9179 = vmatprep.mubr.msk.f32.mxu1 %vm1087_vm4, %v11813_v8  ;;  %9496 = vmatprep.mubr.msk.f32.mxu0 %vm1087_vm4, %v3533_v29  ;;  %v3534_v19 = vrot.slane %v11813_v8, 2  ;;  %v2296_v63 = vrot.slane %v11813_v8, 1  ;;  %v11835_v17 = vsel %vm1376_vm1, %v6005_v51, %v6007_v38  ;;  %v6009_v60 = vrot.slane %v11813_v8, 4 }
 0x1d5   :  { %14578 = vst [vmem:[#allocation164_spill] sm:$0xff] %v11835_v17  ;;  %v11839_v14 = vadd.f32 %v11326_v13, %v9021_v32  ;;  %v1010_v61 = vpop.f32.mrb[91].mxu0  ;;  %9180 = vmatmul.mubr.msk.f32.gmra.mrb[82].mxu1 %vm1087_vm4, %v11807_v18  ;;  %v6011_v16 = vrot.slane %v11807_v18, 4 }
 0x1d6   :  { %v11845_v29 = vadd.f32 %v11326_v13, %v1010_v61  ;;  %v3535_v34 = vsel %vm3364_vm5, %v3532_v9, %v3534_v19  ;;  %v3537_v7 = vsel %vm3364_vm5, %v3534_v19, %v3536_v20  ;;  %v11850_v51 = vsel %vm2126_vm6, %v2294_v6, %v2296_v63 }
 0x1d7   :  { %14579 = vst [vmem:[#allocation165_spill] sm:$0xff] %v11850_v51  ;;  %9182 = vmatprep.mubr.msk.f32.mxu1 %vm1087_vm4, %v11839_v14  ;;  %9497 = vmatmul.mubr.msk.f32.gmra.mrb[184].mxu0 %vm1087_vm4, %v3535_v34  ;;  %v11856_v32 = vsel %vm2126_vm6, %v2296_v63, %v2298_v23  ;;  %v11859_v17 = vsel %vm1376_vm1, %v6007_v38, %v6009_v60 }
 0x1d8   :  { %14580 = vst [vmem:[#allocation166_spill] sm:$0xff] %v11856_v32  ;;  %14581 = vst [vmem:[#allocation167_spill] sm:$0xff] %v11859_v17  ;;  %v6013_v61 = vrot.slane %v11845_v29, 4  ;;  %v9024_v44 = vpop.f32.mrb[92].mxu0  ;;  %9499 = vmatprep.mubr.msk.f32.mxu0 %vm1087_vm4, %v3537_v7  ;;  %v3538_v9 = vrot.slane %v11845_v29, 2  ;;  %v2300_v6 = vrot.slane %v11845_v29, 1  ;;  %v11869_v34 = vsel %vm1376_vm1, %v6009_v60, %v6011_v16 }
 0x1d9   :  { %v11866_v19 = vadd.f32 %v11326_v13, %v9024_v44  ;;  %v1020_v51 = vpop.f32.mrb[93].mxu0  ;;  %14582 = vst [vmem:[#allocation168_spill] sm:$0xff] %v11869_v34  ;;  %v3540_v44 = vrot.slane %v11839_v14, 2  ;;  %v2302_v60 = vrot.slane %v11839_v14, 1 }
 0x1da   :  { %v11872_v63 = vadd.f32 %v11326_v13, %v1020_v51  ;;  %v3539_v38 = vsel %vm3364_vm5, %v3536_v20, %v3538_v9  ;;  %v11876_v17 = vsel %vm2126_vm6, %v2298_v23, %v2300_v6  ;;  %v11879_v7 = vsel %vm1376_vm1, %v6011_v16, %v6013_v61 }
 0x1db   :  { %14583 = vst [vmem:[#allocation169_spill] sm:$0xff] %v11876_v17  ;;  %14584 = vst [vmem:[#allocation170_spill] sm:$0xff] %v11879_v7  ;;  %9500 = vmatmul.mubr.msk.f32.gmra.mrb[186].mxu0 %vm1087_vm4, %v3539_v38  ;;  %v3543_v32 = vrot.slane %v11866_v19, 2  ;;  %v2305_v34 = vrot.slane %v11866_v19, 1  ;;  %v6018_v61 = vrot.slane %v11866_v19, 4  ;;  %v6015_v38 = vrot.slane %v11839_v14, 4 }
 0x1dc   :  { %v9027_v51 = vpop.f32.mrb[94].mxu0  ;;  %9183 = vmatmul.mubr.msk.f32.gmra.mrb[84].mxu1 %vm1087_vm4, %v11872_v63  ;;  %v3541_v20 = vrot.slane %v11872_v63, 2  ;;  %v2303_v23 = vrot.slane %v11872_v63, 1  ;;  %v6016_v16 = vrot.slane %v11872_v63, 4 }
 0x1dd   :  { %v11893_v9 = vadd.f32 %v11326_v13, %v9027_v51  ;;  %v1030_v6 = vpop.f32.mrb[95].mxu0  ;;  %9185 = vmatprep.mubr.msk.f32.mxu1 %vm1087_vm4, %v11866_v19 }
 0x1de   :  { %v11899_v7 = vadd.f32 %v11326_v13, %v1030_v6  ;;  %v3542_v17 = vsel %vm3364_vm5, %v3540_v44, %v3541_v20  ;;  %v3544_v41 = vsel %vm3364_vm5, %v3541_v20, %v3543_v32  ;;  %v11904_v37 = vsel %vm2126_vm6, %v2302_v60, %v2303_v23 }
 0x1df   :  { %14585 = vst [vmem:[#allocation171_spill] sm:$0xff] %v11904_v37  ;;  %9502 = vmatprep.mubr.msk.f32.mxu0 %vm1087_vm4, %v3542_v17  ;;  %v3547_v51 = vrot.slane %v11893_v9, 2  ;;  %v11909_v3 = vsel %vm2126_vm6, %v2303_v23, %v2305_v34  ;;  %v11912_v52 = vsel %vm1376_vm1, %v6015_v38, %v6016_v16  ;;  %v2309_v6 = vrot.slane %v11893_v9, 1 }
 0x1e0   :  { %14586 = vst [vmem:[#allocation172_spill] sm:$0xff] %v11909_v3  ;;  %14587 = vst [vmem:[#allocation173_spill] sm:$0xff] %v11912_v52  ;;  %v9030_v58 = vpop.f32.mrb[96].mxu0  ;;  %9186 = vmatmul.mubr.msk.f32.gmra.mrb[86].mxu1 %vm1087_vm4, %v11899_v7  ;;  %9503 = vmatmul.mubr.msk.f32.gmra.mrb[188].mxu0 %vm1087_vm4, %v3544_v41  ;;  %v3545_v44 = vrot.slane %v11899_v7, 2  ;;  %v2307_v17 = vrot.slane %v11899_v7, 1  ;;  %v11921_v60 = vsel %vm1376_vm1, %v6016_v16, %v6018_v61  ;;  %v6020_v20 = vrot.slane %v11899_v7, 4 }
 0x1e1   :  { %14588 = vst [vmem:[#allocation174_spill] sm:$0xff] %v11921_v60  ;;  %v11925_v23 = vadd.f32 %v11326_v13, %v9030_v58  ;;  %v1040_v38 = vpop.f32.mrb[97].mxu0  ;;  %9188 = vmatprep.mubr.msk.f32.mxu1 %vm1087_vm4, %v11893_v9  ;;  %v6022_v52 = vrot.slane %v11893_v9, 4 }
 0x1e2   :  { %v11931_v41 = vadd.f32 %v11326_v13, %v1040_v38  ;;  %v3546_v3 = vsel %vm3364_vm5, %v3543_v32, %v3545_v44  ;;  %v3548_v37 = vsel %vm3364_vm5, %v3545_v44, %v3547_v51  ;;  %v11936_v16 = vsel %vm2126_vm6, %v2305_v34, %v2307_v17 }
 0x1e3   :  { %14589 = vst [vmem:[#allocation175_spill] sm:$0xff] %v11936_v16  ;;  %9505 = vmatprep.mubr.msk.f32.mxu0 %vm1087_vm4, %v3546_v3  ;;  %v3551_v58 = vrot.slane %v11925_v23, 2  ;;  %v11941_v60 = vsel %vm2126_vm6, %v2307_v17, %v2309_v6  ;;  %v11944_v40 = vsel %vm1376_vm1, %v6018_v61, %v6020_v20  ;;  %v2313_v38 = vrot.slane %v11925_v23, 1 }
 0x1e4   :  { %14590 = vst [vmem:[#allocation176_spill] sm:$0xff] %v11941_v60  ;;  %14591 = vst [vmem:[#allocation177_spill] sm:$0xff] %v11944_v40  ;;  %v9033_v53 = vpop.f32.mrb[98].mxu0  ;;  %9189 = vmatmul.mubr.msk.f32.gmra.mrb[88].mxu1 %vm1087_vm4, %v11931_v41  ;;  %9506 = vmatmul.mubr.msk.f32.gmra.mrb[190].mxu0 %vm1087_vm4, %v3548_v37  ;;  %v3549_v32 = vrot.slane %v11931_v41, 2  ;;  %v2311_v3 = vrot.slane %v11931_v41, 1  ;;  %v11953_v34 = vsel %vm1376_vm1, %v6020_v20, %v6022_v52  ;;  %v6024_v44 = vrot.slane %v11931_v41, 4 }
 0x1e5   :  { %14592 = vst [vmem:[#allocation178_spill] sm:$0xff] %v11953_v34  ;;  %v11957_v61 = vadd.f32 %v11326_v13, %v9033_v53  ;;  %v1050_v17 = vpop.f32.mrb[99].mxu0  ;;  %9191 = vmatprep.mubr.msk.f32.mxu1 %vm1087_vm4, %v11925_v23  ;;  %v6026_v40 = vrot.slane %v11925_v23, 4 }
 0x1e6   :  { %v11963_v37 = vadd.f32 %v11326_v13, %v1050_v17  ;;  %v3550_v60 = vsel %vm3364_vm5, %v3547_v51, %v3549_v32  ;;  %v3552_v16 = vsel %vm3364_vm5, %v3549_v32, %v3551_v58  ;;  %v11968_v20 = vsel %vm2126_vm6, %v2309_v6, %v2311_v3 }
 0x1e7   :  { %14593 = vst [vmem:[#allocation179_spill] sm:$0xff] %v11957_v61  ;;  %14595 = vst [vmem:[#allocation181_spill] sm:$0xff] %v11968_v20  ;;  %9508 = vmatprep.mubr.msk.f32.mxu0 %vm1087_vm4, %v3550_v60  ;;  %v3555_v53 = vrot.slane %v11957_v61, 2  ;;  %v11973_v34 = vsel %vm2126_vm6, %v2311_v3, %v2313_v38  ;;  %v11976_v57 = vsel %vm1376_vm1, %v6022_v52, %v6024_v44  ;;  %v2317_v17 = vrot.slane %v11957_v61, 1 }
 0x1e8   :  { %14594 = vst [vmem:[#allocation180_spill] sm:$0xff] %v11963_v37  ;;  %14596 = vst [vmem:[#allocation182_spill] sm:$0xff] %v11973_v34  ;;  %v9036_v42 = vpop.f32.mrb[100].mxu0  ;;  %9192 = vmatmul.mubr.msk.f32.gmra.mrb[90].mxu1 %vm1087_vm4, %v11963_v37  ;;  %9509 = vmatmul.mubr.msk.f32.gmra.mrb[192].mxu0 %vm1087_vm4, %v3552_v16  ;;  %v3553_v51 = vrot.slane %v11963_v37, 2  ;;  %v2315_v6 = vrot.slane %v11963_v37, 1  ;;  %v11985_v60 = vsel %vm1376_vm1, %v6024_v44, %v6026_v40  ;;  %v6028_v32 = vrot.slane %v11963_v37, 4 }
 0x1e9   :  { %14597 = vst [vmem:[#allocation183_spill] sm:$0xff] %v11976_v57  ;;  %14598 = vst [vmem:[#allocation184_spill] sm:$0xff] %v11985_v60  ;;  %v11989_v52 = vadd.f32 %v11326_v13, %v9036_v42  ;;  %v1060_v3 = vpop.f32.mrb[101].mxu0  ;;  %9194 = vmatprep.mubr.msk.f32.mxu1 %vm1087_vm4, %v11957_v61  ;;  %v6030_v57 = vrot.slane %v11957_v61, 4 }
 0x1ea   :  { %v11995_v16 = vadd.f32 %v11326_v13, %v1060_v3  ;;  %v3554_v34 = vsel %vm3364_vm5, %v3551_v58, %v3553_v51  ;;  %v3556_v20 = vsel %vm3364_vm5, %v3553_v51, %v3555_v53  ;;  %v12000_v44 = vsel %vm2126_vm6, %v2313_v38, %v2315_v6 }
 0x1eb   :  { %14599 = vst [vmem:[#allocation185_spill] sm:$0xff] %v11989_v52  ;;  %14601 = vst [vmem:[#allocation187_spill] sm:$0xff] %v12000_v44  ;;  %9511 = vmatprep.mubr.msk.f32.mxu0 %vm1087_vm4, %v3554_v34  ;;  %v3559_v42 = vrot.slane %v11989_v52, 2  ;;  %v12005_v60 = vsel %vm2126_vm6, %v2315_v6, %v2317_v17  ;;  %v12008_v0 = vsel %vm1376_vm1, %v6026_v40, %v6028_v32  ;;  %v2321_v3 = vrot.slane %v11989_v52, 1 }
 0x1ec   :  { %14600 = vst [vmem:[#allocation186_spill] sm:$0xff] %v11995_v16  ;;  %14602 = vst [vmem:[#allocation188_spill] sm:$0xff] %v12005_v60  ;;  %v9039_v61 = vpop.f32.mrb[102].mxu0  ;;  %9195 = vmatmul.mubr.msk.f32.gmra.mrb[92].mxu1 %vm1087_vm4, %v11995_v16  ;;  %9512 = vmatmul.mubr.msk.f32.gmra.mrb[194].mxu0 %vm1087_vm4, %v3556_v20  ;;  %v3557_v58 = vrot.slane %v11995_v16, 2  ;;  %v2319_v38 = vrot.slane %v11995_v16, 1  ;;  %v12017_v34 = vsel %vm1376_vm1, %v6028_v32, %v6030_v57  ;;  %v6032_v51 = vrot.slane %v11995_v16, 4 }
 0x1ed   :  { %14603 = vst [vmem:[#allocation189_spill] sm:$0xff] %v12008_v0  ;;  %14604 = vst [vmem:[#allocation190_spill] sm:$0xff] %v12017_v34  ;;  %v12021_v40 = vadd.f32 %v11326_v13, %v9039_v61  ;;  %v1070_v6 = vpop.f32.mrb[103].mxu0  ;;  %9197 = vmatprep.mubr.msk.f32.mxu1 %vm1087_vm4, %v11989_v52  ;;  %v6034_v0 = vrot.slane %v11989_v52, 4  ;;  %v4806_v32 = vld [vmem:[#allocation7 + $0xd0] sm:$0xff]  ;;  %v4807_v34 = vld [vmem:[#allocation7 + $0xd8] sm:$0xff] }
 0x1ee   :  { %v12027_v20 = vadd.f32 %v11326_v13, %v1070_v6  ;;  %v3558_v60 = vsel %vm3364_vm5, %v3555_v53, %v3557_v58  ;;  %v3560_v44 = vsel %vm3364_vm5, %v3557_v58, %v3559_v42  ;;  %v12032_v16 = vsel %vm2126_vm6, %v2317_v17, %v2319_v38 }
 0x1ef   :  { %14605 = vst [vmem:[#allocation191_spill] sm:$0xff] %v12032_v16  ;;  %v6038_v61 = vrot.slane %v12021_v40, 4  ;;  %9514 = vmatprep.mubr.msk.f32.mxu0 %vm1087_vm4, %v3558_v60  ;;  %v3563_v37 = vrot.slane %v12021_v40, 2  ;;  %v12038_v52 = vsel %vm2126_vm6, %v2319_v38, %v2321_v3  ;;  %v12046_v17 = vsel %vm1376_vm1, %v6030_v57, %v6032_v51 }
 0x1f0   :  { %14606 = vst [vmem:[#allocation192_spill] sm:$0xff] %v12038_v52  ;;  %9198 = vmatmul.mubr.msk.f32.gmra.mrb[94].mxu1 %vm1087_vm4, %v12027_v20  ;;  %9515 = vmatmul.mubr.msk.f32.gmra.mrb[196].mxu0 %vm1087_vm4, %v3560_v44  ;;  %v3561_v13 = vrot.slane %v12027_v20, 2  ;;  %v2323_v53 = vrot.slane %v12027_v20, 1  ;;  %v2325_v58 = vrot.slane %v12021_v40, 1  ;;  %v9898_v60 = vpack.c.bf16 %v4807_v34, %v4806_v32 }
 0x1f1   :  { %9216 = vmatprep.mubr.msk.f32.mxu1 %vm1087_vm4, %v10571_v30  ;;  %v12052_v38 = vsel %vm1376_vm1, %v6032_v51, %v6034_v0  ;;  %v6036_v6 = vrot.slane %v12027_v20, 4 }
 0x1f2   :  { %v3562_v44 = vsel %vm3364_vm5, %v3559_v42, %v3561_v13  ;;  %v3564_v52 = vsel %vm3364_vm5, %v3561_v13, %v3563_v37  ;;  %v12058_v16 = vsel %vm2126_vm6, %v2321_v3, %v2323_v53  ;;  %v12061_v57 = vsel %vm2126_vm6, %v2323_v53, %v2325_v58  ;;  %v4808_v37 = vld [vmem:[#allocation7 + $0xe0] sm:$0xff]  ;;  %v4809_v42 = vld [vmem:[#allocation7 + $0xe8] sm:$0xff] }
 0x1f3   :  { %9517 = vmatprep.mubr.msk.f32.mxu0 %vm1087_vm4, %v3562_v44  ;;  %v12065_v30 = vsel %vm1376_vm1, %v6034_v0, %v6036_v6  ;;  %v12068_v34 = vsel %vm1376_vm1, %v6036_v6, %v6038_v61  ;;  %v9902_v0 = vpack.c.bf16 %v4809_v42, %v4808_v37  ;;  %v4751_v3 = vrot.slane %v11635_v1, 3 }
 0x1f4   :  { %9217 = vmatmul.mubr.msk.f32.vlgmr.msra.gmra.mrb[96].mxu1 %vm1087_vm4, %v10596_v47  ;;  %9518 = vmatmul.mubr.msk.f32.gmra.mrb[198].mxu0 %vm1087_vm4, %v3564_v52  ;;  %v4770_v13 = vrot.slane %v11775_v15, 3  ;;  %v4772_v53 = vrot.slane %v11813_v8, 3  ;;  %v4781_v6 = vrot.slane %v11866_v19, 3  ;;  %v4801_v42 = vrot.slane %v12021_v40, 3 }
 0x1f5   :  { %9897 = vmatpush3.bf16.msra.mxu1 %v11255_v48  ;;  %9219 = vmatprep.mubr.msk.f32.mxu1 %vm1087_vm4, %v10601_v49  ;;  %v4753_v49 = vrot.slane %v11663_v21, 3  ;;  %v4756_v48 = vrot.slane %v11693_v35, 3  ;;  %v4762_v21 = vrot.slane %v11712_v27, 3 }
 0x1f6   :  { %9696 = vmatprep.mubr.msk.f32.mxu0 %vm1087_vm4, %v10574_v31  ;;  %9899 = vmatprep.subr.bf16.mxu1 %v9898_v60  ;;  %v14395_v31 = vrot.slane %v11645_v28, 3 }
 0x1f8   :  { %v9058_v51 = vpop.f32.mrb[0].mxu1  ;;  %9220 = vmatmul.mubr.msk.f32.gmra.mrb[98].mxu1 %vm1087_vm4, %v10636_v2  ;;  %9697 = vmatmul.mubr.msk.f32.vlgmr.msra.gmra.mrb[200].mxu0 %vm1087_vm4, %v10604_v50  ;;  %v4776_v2 = vrot.slane %v11845_v29, 3  ;;  %v4764_v29 = vrot.slane %v11749_v59, 3 }
 0x1f9   :  { %1927 = vst.msk [vmem:[#allocation2 + $0x8] sm:$0xff] %vm1925_vm8, %v9058_v51  ;;  %v1446_v47 = vpop.f32.mrb[1].mxu1  ;;  %9222 = vmatprep.mubr.msk.f32.mxu1 %vm1087_vm4, %v10641_v4  ;;  %9699 = vmatprep.mubr.msk.f32.mxu0 %vm1087_vm4, %v10613_v55  ;;  %v12099_v55 = vsel %vm4602_vm7, %v14395_v31, %v4751_v3  ;;  %v4754_v4 = vrot.slane %v11659_v39, 3  ;;  %v14677_v31 = vld [vmem:[#allocation75_spill] sm:$0xff] }
 0x1fa   :  { %1926 = vst.msk [vmem:[#allocation2] sm:$0xff] %vm1925_vm8, %v1446_v47  ;;  %9901 = vmatpush3.bf16.msra.mxu1 %v9898_v60  ;;  %14607 = vst [vmem:[#allocation193_spill] sm:$0xff] %v12099_v55  ;;  %v12135_v32 = vsel %vm4602_vm7, %v4762_v21, %v4764_v29  ;;  %v4779_v60 = vrot.slane %v11872_v63, 3  ;;  %v4787_v47 = vrot.slane %v11931_v41, 3 }
 0x1fb   :  { %9903 = vmatprep.subr.bf16.mxu1 %v9902_v0  ;;  %v12116_v39 = vsel %vm4602_vm7, %v4753_v49, %v4754_v4  ;;  %14613 = vst [vmem:[#allocation199_spill] sm:$0xff] %v12135_v32  ;;  %v14624_v49 = vld [vmem:[#allocation180_spill] sm:$0xff] }
 0x1fc   :  { %v9061_v50 = vpop.f32.mrb[2].mxu1  ;;  %9223 = vmatmul.mubr.msk.f32.gmra.mrb[100].mxu1 %vm1087_vm4, %v10670_v22  ;;  %9700 = vmatmul.mubr.msk.f32.gmra.mrb[202].mxu0 %vm1087_vm4, %v10644_v5  ;;  %v4758_v5 = vrot.slane %v11687_v56, 3  ;;  %v4760_v22 = vrot.slane %v11717_v26, 3  ;;  %14608 = vst [vmem:[#allocation194_spill] sm:$0xff] %v12116_v39  ;;  %v4768_v56 = vrot.slane %v11781_v36, 3  ;;  %v12181_v37 = vsel %vm4602_vm7, %v4779_v60, %v4781_v6 }
 0x1fd   :  { %1929 = vst.msk [vmem:[#allocation2 + $0x18] sm:$0xff] %vm1925_vm8, %v9061_v50  ;;  %v1456_v1 = vpop.f32.mrb[3].mxu1  ;;  %9225 = vmatprep.mubr.msk.f32.mxu1 %vm1087_vm4, %v10675_v24  ;;  %9702 = vmatprep.mubr.msk.f32.mxu0 %vm1087_vm4, %v10653_v11  ;;  %v12119_v24 = vsel %vm4602_vm7, %v4754_v4, %v4756_v48  ;;  %v4766_v11 = vrot.slane %v11743_v12, 3  ;;  %14621 = vst [vmem:[#allocation207_spill] sm:$0xff] %v12181_v37  ;;  %v14625_v50 = vld [vmem:[#allocation179_spill] sm:$0xff] }
 0x1fe   :  { %1928 = vst.msk [vmem:[#allocation2 + $0x10] sm:$0xff] %vm1925_vm8, %v1456_v1  ;;  %v12113_v35 = vpop.f32.mrb[104].mxu0  ;;  %9905 = vmatpush3.bf16.msra.mxu1 %v9902_v0  ;;  %14609 = vst [vmem:[#allocation195_spill] sm:$0xff] %v12119_v24  ;;  %v12126_v27 = vsel %vm4602_vm7, %v4756_v48, %v4758_v5  ;;  %v12129_v59 = vsel %vm4602_vm7, %v4758_v5, %v4760_v22  ;;  %v12132_v52 = vsel %vm4602_vm7, %v4760_v22, %v4762_v21  ;;  %v14627_v1 = vld [vmem:[#allocation186_spill] sm:$0xff] }
 0x1ff   :  { %v12123_v26 = vpop.f32.mrb[105].mxu0  ;;  %14610 = vst [vmem:[#allocation196_spill] sm:$0xff] %v12126_v27  ;;  %14611 = vst [vmem:[#allocation197_spill] sm:$0xff] %v12129_v59  ;;  %v12142_v12 = vsel %vm4602_vm7, %v4764_v29, %v4766_v11  ;;  %v12145_v36 = vsel %vm4602_vm7, %v4766_v11, %v4768_v56  ;;  %v12162_v8 = vsel %vm4602_vm7, %v4768_v56, %v4770_v13  ;;  %v4793_v4 = vrot.slane %v14625_v50, 3  ;;  %v14646_v50 = vld [vmem:[#allocation29_spill] sm:$0xff] }
 0x200   :  { %14612 = vst [vmem:[#allocation198_spill] sm:$0xff] %v12132_v52  ;;  %v9064_v61 = vpop.f32.mrb[4].mxu1  ;;  %9226 = vmatmul.mubr.msk.f32.gmra.mrb[102].mxu1 %vm1087_vm4, %v10712_v45  ;;  %9703 = vmatmul.mubr.msk.f32.gmra.mrb[204].mxu0 %vm1087_vm4, %v10678_v25  ;;  %14614 = vst [vmem:[#allocation200_spill] sm:$0xff] %v12142_v12  ;;  %v4774_v25 = vrot.slane %v11807_v18, 3  ;;  %v4778_v45 = vrot.slane %v11839_v14, 3  ;;  %v4785_v18 = vrot.slane %v11893_v9, 3 }
 0x201   :  { %14615 = vst [vmem:[#allocation201_spill] sm:$0xff] %v12145_v36  ;;  %1931 = vst.msk [vmem:[#allocation2 + $0x28] sm:$0xff] %vm1925_vm8, %v9064_v61  ;;  %v1466_v58 = vpop.f32.mrb[5].mxu1  ;;  %9228 = vmatprep.mubr.msk.f32.mxu1 %vm1087_vm4, %v10717_v43  ;;  %9705 = vmatprep.mubr.msk.f32.mxu0 %vm1087_vm4, %v10687_v33  ;;  %v12165_v43 = vsel %vm4602_vm7, %v4770_v13, %v4772_v53  ;;  %v4783_v33 = vrot.slane %v11899_v7, 3  ;;  %v4810_v7 = vld [vmem:[#allocation7 + $0xf0] sm:$0xff]  ;;  %v4795_v5 = vrot.slane %v14627_v1, 3 }
 0x202   :  { %1930 = vst.msk [vmem:[#allocation2 + $0x20] sm:$0xff] %vm1925_vm8, %v1466_v58  ;;  %v12159_v15 = vpop.f32.mrb[106].mxu0  ;;  %14616 = vst [vmem:[#allocation202_spill] sm:$0xff] %v12162_v8  ;;  %v12172_v14 = vsel %vm4602_vm7, %v4772_v53, %v4774_v25  ;;  %v12175_v19 = vsel %vm4602_vm7, %v4774_v25, %v4776_v2  ;;  %v12178_v63 = vsel %vm4602_vm7, %v4778_v45, %v4779_v60  ;;  %v4811_v9 = vld [vmem:[#allocation7 + $0xf8] sm:$0xf]  ;;  %v4791_v2 = vrot.slane %v14624_v49, 3 }
 0x203   :  { %14617 = vst [vmem:[#allocation203_spill] sm:$0xff] %v12165_v43  ;;  %v12169_v44 = vpop.f32.mrb[107].mxu0  ;;  %14618 = vst [vmem:[#allocation204_spill] sm:$0xff] %v12172_v14  ;;  %v12189_v3 = vsel %vm4602_vm7, %v4781_v6, %v4783_v33  ;;  %v12192_v51 = vsel %vm4602_vm7, %v4783_v33, %v4785_v18  ;;  %v12207_v41 = vsel %vm4602_vm7, %v4785_v18, %v4787_v47  ;;  %v14633_v13 = vld [vmem:[#allocation23_spill] sm:$0xff]  ;;  %v14638_v60 = vld [vmem:[#allocation26_spill] sm:$0xff] }
 0x204   :  { %14619 = vst [vmem:[#allocation205_spill] sm:$0xff] %v12175_v19  ;;  %14620 = vst [vmem:[#allocation206_spill] sm:$0xff] %v12178_v63  ;;  %v9067_v0 = vpop.f32.mrb[6].mxu1  ;;  %9229 = vmatmul.mubr.msk.f32.gmra.mrb[104].mxu1 %vm1087_vm4, %v10746_v10  ;;  %9706 = vmatmul.mubr.msk.f32.gmra.mrb[206].mxu0 %vm1087_vm4, %v10720_v46  ;;  %v9906_v46 = vpack.c.bf16 %v4811_v9, %v4810_v7  ;;  %v4789_v10 = vrot.slane %v11925_v23, 3  ;;  %v12223_v56 = vsel %vm4602_vm7, %v4791_v2, %v4793_v4  ;;  %v14634_v53 = vld [vmem:[#allocation19_spill] sm:$0xff]  ;;  %v14639_v6 = vld [vmem:[#allocation20_spill] sm:$0xff] }
 0x205   :  { %14622 = vst [vmem:[#allocation208_spill] sm:$0xff] %v12189_v3  ;;  %14623 = vst [vmem:[#allocation209_spill] sm:$0xff] %v12192_v51  ;;  %v1476_v40 = vpop.f32.mrb[7].mxu1  ;;  %9231 = vmatprep.mubr.msk.f32.mxu1 %vm1087_vm4, %v10753_v62  ;;  %9708 = vmatprep.mubr.msk.f32.mxu0 %vm1087_vm4, %v10729_v54  ;;  %v14628_v62 = vld [vmem:[#allocation185_spill] sm:$0xff]  ;;  %v4799_v54 = vrot.slane %v12027_v20, 3  ;;  %v12230_v20 = vsel %vm4602_vm7, %v4793_v4, %v4795_v5  ;;  %v14641_v9 = vld [vmem:[#allocation27_spill] sm:$0xff] }
 0x206   :  { %1933 = vst.msk [vmem:[#allocation2 + $0x38] sm:$0xff] %vm1925_vm8, %v9067_v0  ;;  %1932 = vst.msk [vmem:[#allocation2 + $0x30] sm:$0xff] %vm1925_vm8, %v1476_v40  ;;  %v12204_v48 = vpop.f32.mrb[108].mxu0  ;;  %v4797_v22 = vrot.slane %v14628_v62, 3  ;;  %9908 = vmatprep.subr.msk.bf16.mxu1 %vm10298_vm3, %v9906_v46  ;;  %v12217_v29 = vsel %vm4602_vm7, %v4787_v47, %v4789_v10  ;;  %v12220_v11 = vsel %vm4602_vm7, %v4789_v10, %v4791_v2  ;;  %v14642_v47 = vld [vmem:[#allocation24_spill] sm:$0xff]  ;;  %v14643_v40 = vld [vmem:[#allocation31_spill] sm:$0xff] }
 0x207   :  { %14626 = vst [vmem:[#allocation180_spill] sm:$0xff] %v12207_v41  ;;  %v12212_v21 = vpop.f32.mrb[109].mxu0  ;;  %14630 = vst [vmem:[#allocation179_spill] sm:$0xff] %v12217_v29  ;;  %v12244_v33 = vsel %vm4602_vm7, %v4799_v54, %v4801_v42  ;;  %9911 = vmatpush3.bf16.msk.msra.mxu1 %vm10298_vm3, %v9906_v46  ;;  %v14644_v10 = vld [vmem:[#allocation28_spill] sm:$0xff]  ;;  %v14647_v4 = vld [vmem:[#allocation37_spill] sm:$0xff] }
 0x208   :  { %14631 = vst [vmem:[#allocation186_spill] sm:$0xff] %v12220_v11  ;;  %14632 = vst [vmem:[#allocation185_spill] sm:$0xff] %v12223_v56  ;;  %v9070_v61 = vpop.f32.mrb[8].mxu1  ;;  %9232 = vmatmul.mubr.msk.f32.gmra.mrb[106].mxu1 %vm1087_vm4, %v14633_v13  ;;  %9709 = vmatmul.mubr.msk.f32.gmra.mrb[208].mxu0 %vm1087_vm4, %v14634_v53  ;;  %v12233_v58 = vsel %vm4602_vm7, %v4795_v5, %v4797_v22  ;;  %v12236_v25 = vsel %vm4602_vm7, %v4797_v22, %v4799_v54  ;;  %v14645_v2 = vld [vmem:[#allocation32_spill] sm:$0xff]  ;;  %v14648_v1 = vld [vmem:[#allocation33_spill] sm:$0xff] }
 0x209   :  { %14635 = vst [vmem:[#allocation13_spill] sm:$0xff] %v12230_v20  ;;  %14636 = vst [vmem:[#allocation23_spill] sm:$0xff] %v12233_v58  ;;  %v1486_v45 = vpop.f32.mrb[9].mxu1  ;;  %9234 = vmatprep.mubr.msk.f32.mxu1 %vm1087_vm4, %v14638_v60  ;;  %9711 = vmatprep.mubr.msk.f32.mxu0 %vm1087_vm4, %v14639_v6  ;;  %v14649_v23 = vld [vmem:[#allocation38_spill] sm:$0xff]  ;;  %v14651_v13 = vld [vmem:[#allocation41_spill] sm:$0xff] }
 0x20a   :  { %14637 = vst [vmem:[#allocation19_spill] sm:$0xff] %v12236_v25  ;;  %1935 = vst.msk [vmem:[#allocation2 + $0x48] sm:$0xff] %vm1925_vm8, %v9070_v61  ;;  %v12247_v18 = vpop.f32.mrb[110].mxu0  ;;  %v14650_v61 = vld [vmem:[#allocation34_spill] sm:$0xff]  ;;  %v14652_v53 = vld [vmem:[#allocation39_spill] sm:$0xff] }
 0x20b   :  { %14640 = vst [vmem:[#allocation26_spill] sm:$0xff] %v12244_v33  ;;  %1934 = vst.msk [vmem:[#allocation2 + $0x40] sm:$0xff] %vm1925_vm8, %v1486_v45  ;;  %v12251_v0 = vpop.f32.mrb[111].mxu0  ;;  %v14680_v33 = vld [vmem:[#allocation73_spill] sm:$0xff]  ;;  %v14691_v56 = vld [vmem:[#allocation86_spill] sm:$0xff] }
 0x20c   :  { %v9073_v7 = vpop.f32.mrb[10].mxu1  ;;  %9235 = vmatmul.mubr.msk.f32.gmra.mrb[108].mxu1 %vm1087_vm4, %v14641_v9  ;;  %9712 = vmatmul.mubr.msk.f32.gmra.mrb[210].mxu0 %vm1087_vm4, %v14642_v47  ;;  %v14654_v47 = vld [vmem:[#allocation40_spill] sm:$0xff]  ;;  %v14692_v29 = vld [vmem:[#allocation89_spill] sm:$0xff]  ;;  %v14695_v41 = vld [vmem:[#allocation94_spill] sm:$0xff] }
 0x20d   :  { %1937 = vst.msk [vmem:[#allocation2 + $0x58] sm:$0xff] %vm1925_vm8, %v9073_v7  ;;  %v1496_v42 = vpop.f32.mrb[11].mxu1  ;;  %9237 = vmatprep.mubr.msk.f32.mxu1 %vm1087_vm4, %v14643_v40  ;;  %9714 = vmatprep.mubr.msk.f32.mxu0 %vm1087_vm4, %v14644_v10  ;;  %v14653_v7 = vld [vmem:[#allocation42_spill] sm:$0xff]  ;;  %v14656_v40 = vld [vmem:[#allocation43_spill] sm:$0xff]  ;;  %v14708_v52 = vld [vmem:[#allocation96_spill] sm:$0xff] }
 0x20e   :  { %1936 = vst.msk [vmem:[#allocation2 + $0x50] sm:$0xff] %vm1925_vm8, %v1496_v42  ;;  %v12263_v46 = vpop.f32.mrb[112].mxu0  ;;  %v14655_v42 = vld [vmem:[#allocation46_spill] sm:$0xff]  ;;  %v14701_v63 = vld [vmem:[#allocation91_spill] sm:$0xff] }
 0x20f   :  { %v12265_v49 = vpop.f32.mrb[113].mxu0  ;;  %v2213_v19 = vrot.slane %v14701_v63, 1  ;;  %v5926_v59 = vrot.slane %v14701_v63, 4 }
 0x210   :  { %9238 = vmatmul.mubr.msk.f32.gmra.mrb[110].mxu1 %vm1087_vm4, %v14645_v2  ;;  %9715 = vmatmul.mubr.msk.f32.gmra.mrb[212].mxu0 %vm1087_vm4, %v14646_v50 }
 0x211   :  { %9240 = vmatprep.mubr.msk.f32.mxu1 %vm1087_vm4, %v14647_v4  ;;  %9717 = vmatprep.mubr.msk.f32.mxu0 %vm1087_vm4, %v14648_v1  ;;  %v14657_v4 = vld [vmem:[#allocation47_spill] sm:$0xff] }
 0x212   :  { %v12275_v5 = vpop.f32.mrb[114].mxu0 }
 0x213   :  { %v9076_v62 = vpop.f32.mrb[12].mxu1  ;;  %v12277_v22 = vpop.f32.mrb[115].mxu0 }
 0x214   :  { %1939 = vst.msk [vmem:[#allocation2 + $0x68] sm:$0xff] %vm1925_vm8, %v9076_v62  ;;  %v1506_v54 = vpop.f32.mrb[13].mxu1  ;;  %9241 = vmatmul.mubr.msk.f32.gmra.mrb[112].mxu1 %vm1087_vm4, %v14649_v23  ;;  %9718 = vmatmul.mubr.msk.f32.gmra.mrb[214].mxu0 %vm1087_vm4, %v14650_v61  ;;  %v14658_v62 = vld [vmem:[#allocation44_spill] sm:$0xff] }
 0x215   :  { %1938 = vst.msk [vmem:[#allocation2 + $0x60] sm:$0xff] %vm1925_vm8, %v1506_v54  ;;  %9243 = vmatprep.mubr.msk.f32.mxu1 %vm1087_vm4, %v14651_v13  ;;  %9720 = vmatprep.mubr.msk.f32.mxu0 %vm1087_vm4, %v14652_v53  ;;  %v14659_v54 = vld [vmem:[#allocation51_spill] sm:$0xff]  ;;  %v14660_v23 = vld [vmem:[#allocation48_spill] sm:$0xff] }
 0x217   :  { %v9079_v45 = vpop.f32.mrb[14].mxu1  ;;  %v12289_v60 = vpop.f32.mrb[116].mxu0 }
 0x218   :  { %1941 = vst.msk [vmem:[#allocation2 + $0x78] sm:$0xff] %vm1925_vm8, %v9079_v45  ;;  %v1516_v6 = vpop.f32.mrb[15].mxu1  ;;  %9244 = vmatmul.mubr.msk.f32.gmra.mrb[114].mxu1 %vm1087_vm4, %v14653_v7  ;;  %v12294_v9 = vpop.f32.mrb[117].mxu0  ;;  %9721 = vmatmul.mubr.msk.f32.gmra.mrb[216].mxu0 %vm1087_vm4, %v14654_v47  ;;  %v14661_v45 = vld [vmem:[#allocation52_spill] sm:$0xff]  ;;  %v14662_v7 = vld [vmem:[#allocation49_spill] sm:$0xff] }
 0x219   :  { %1940 = vst.msk [vmem:[#allocation2 + $0x70] sm:$0xff] %vm1925_vm8, %v1516_v6  ;;  %9246 = vmatprep.mubr.msk.f32.mxu1 %vm1087_vm4, %v14655_v42  ;;  %9723 = vmatprep.mubr.msk.f32.mxu0 %vm1087_vm4, %v14656_v40  ;;  %v14663_v47 = vld [vmem:[#allocation56_spill] sm:$0xff]  ;;  %v14664_v42 = vld [vmem:[#allocation53_spill] sm:$0xff] }
 0x21b   :  { %v9082_v10 = vpop.f32.mrb[16].mxu1  ;;  %v12303_v2 = vpop.f32.mrb[118].mxu0 }
 0x21c   :  { %1943 = vst.msk [vmem:[#allocation2 + $0x88] sm:$0xff] %vm1925_vm8, %v9082_v10  ;;  %v1526_v50 = vpop.f32.mrb[17].mxu1  ;;  %9247 = vmatmul.mubr.msk.f32.gmra.mrb[116].mxu1 %vm1087_vm4, %v14657_v4  ;;  %v12308_v1 = vpop.f32.mrb[119].mxu0  ;;  %9724 = vmatmul.mubr.msk.f32.gmra.mrb[218].mxu0 %vm1087_vm4, %v14658_v62  ;;  %v14665_v4 = vld [vmem:[#allocation60_spill] sm:$0xff] }
 0x21d   :  { %1942 = vst.msk [vmem:[#allocation2 + $0x80] sm:$0xff] %vm1925_vm8, %v1526_v50  ;;  %9249 = vmatprep.mubr.msk.f32.mxu1 %vm1087_vm4, %v14659_v54  ;;  %9726 = vmatprep.mubr.msk.f32.mxu0 %vm1087_vm4, %v14660_v23  ;;  %v14666_v54 = vld [vmem:[#allocation54_spill] sm:$0xff]  ;;  %v14667_v23 = vld [vmem:[#allocation61_spill] sm:$0xff] }
 0x21f   :  { %v9085_v61 = vpop.f32.mrb[18].mxu1  ;;  %v12317_v13 = vpop.f32.mrb[120].mxu0 }
 0x220   :  { %1945 = vst.msk [vmem:[#allocation2 + $0x98] sm:$0xff] %vm1925_vm8, %v9085_v61  ;;  %v1536_v53 = vpop.f32.mrb[19].mxu1  ;;  %9250 = vmatmul.mubr.msk.f32.gmra.mrb[118].mxu1 %vm1087_vm4, %v14661_v45  ;;  %v12322_v6 = vpop.f32.mrb[121].mxu0  ;;  %9727 = vmatmul.mubr.msk.f32.gmra.mrb[220].mxu0 %vm1087_vm4, %v14662_v7  ;;  %v14668_v61 = vld [vmem:[#allocation57_spill] sm:$0xff] }
 0x221   :  { %1944 = vst.msk [vmem:[#allocation2 + $0x90] sm:$0xff] %vm1925_vm8, %v1536_v53  ;;  %9252 = vmatprep.mubr.msk.f32.mxu1 %vm1087_vm4, %v14663_v47  ;;  %9729 = vmatprep.mubr.msk.f32.mxu0 %vm1087_vm4, %v14664_v42  ;;  %v14669_v47 = vld [vmem:[#allocation66_spill] sm:$0xff] }
 0x223   :  { %v9088_v40 = vpop.f32.mrb[20].mxu1  ;;  %v12331_v10 = vpop.f32.mrb[122].mxu0 }
 0x224   :  { %1947 = vst.msk [vmem:[#allocation2 + $0xa8] sm:$0xff] %vm1925_vm8, %v9088_v40  ;;  %v1546_v50 = vpop.f32.mrb[21].mxu1  ;;  %9253 = vmatmul.mubr.msk.f32.gmra.mrb[120].mxu1 %vm1087_vm4, %v14665_v4  ;;  %v12336_v62 = vpop.f32.mrb[123].mxu0  ;;  %9730 = vmatmul.mubr.msk.f32.gmra.mrb[222].mxu0 %vm1087_vm4, %v14666_v54  ;;  %v14670_v40 = vld [vmem:[#allocation62_spill] sm:$0xff]  ;;  %v14672_v4 = vld [vmem:[#allocation63_spill] sm:$0xff] }
 0x225   :  { %1946 = vst.msk [vmem:[#allocation2 + $0xa0] sm:$0xff] %vm1925_vm8, %v1546_v50  ;;  %9255 = vmatprep.mubr.msk.f32.mxu1 %vm1087_vm4, %v14667_v23  ;;  %9732 = vmatprep.mubr.msk.f32.mxu0 %vm1087_vm4, %v14668_v61  ;;  %v14671_v50 = vld [vmem:[#allocation67_spill] sm:$0xff]  ;;  %v14673_v61 = vld [vmem:[#allocation70_spill] sm:$0xff] }
 0x227   :  { %v9091_v53 = vpop.f32.mrb[22].mxu1  ;;  %v12345_v45 = vpop.f32.mrb[124].mxu0 }
 0x228   :  { %1949 = vst.msk [vmem:[#allocation2 + $0xb8] sm:$0xff] %vm1925_vm8, %v9091_v53  ;;  %v1556_v7 = vpop.f32.mrb[23].mxu1  ;;  %9256 = vmatmul.mubr.msk.f32.gmra.mrb[122].mxu1 %vm1087_vm4, %v14669_v47  ;;  %v12350_v42 = vpop.f32.mrb[125].mxu0  ;;  %9733 = vmatmul.mubr.msk.f32.gmra.mrb[224].mxu0 %vm1087_vm4, %v14670_v40  ;;  %v14674_v47 = vld [vmem:[#allocation68_spill] sm:$0xff]  ;;  %v14675_v40 = vld [vmem:[#allocation71_spill] sm:$0xff] }
 0x229   :  { %1948 = vst.msk [vmem:[#allocation2 + $0xb0] sm:$0xff] %vm1925_vm8, %v1556_v7  ;;  %9258 = vmatprep.mubr.msk.f32.mxu1 %vm1087_vm4, %v14671_v50  ;;  %9735 = vmatprep.mubr.msk.f32.mxu0 %vm1087_vm4, %v14672_v4  ;;  %v14676_v50 = vld [vmem:[#allocation69_spill] sm:$0xff] }
 0x22b   :  { %v12359_v54 = vpop.f32.mrb[126].mxu0 }
 0x22c   :  { %v9094_v23 = vpop.f32.mrb[24].mxu1  ;;  %9259 = vmatmul.mubr.msk.f32.gmra.mrb[124].mxu1 %vm1087_vm4, %v14673_v61  ;;  %v12363_v53 = vpop.f32.mrb[127].mxu0  ;;  %9736 = vmatmul.mubr.msk.f32.gmra.mrb[226].mxu0 %vm1087_vm4, %v14674_v47  ;;  %v14678_v61 = vld [vmem:[#allocation72_spill] sm:$0xff] }
 0x22d   :  { %1951 = vst.msk [vmem:[#allocation2 + $0xc8] sm:$0xff] %vm1925_vm8, %v9094_v23  ;;  %v1566_v7 = vpop.f32.mrb[25].mxu1  ;;  %9261 = vmatprep.mubr.msk.f32.mxu1 %vm1087_vm4, %v14675_v40  ;;  %9738 = vmatprep.mubr.msk.f32.mxu0 %vm1087_vm4, %v14676_v50  ;;  %v14679_v23 = vld [vmem:[#allocation76_spill] sm:$0xff] }
 0x22e   :  { %1950 = vst.msk [vmem:[#allocation2 + $0xc0] sm:$0xff] %vm1925_vm8, %v1566_v7 }
 0x230   :  { %v9097_v4 = vpop.f32.mrb[26].mxu1  ;;  %9262 = vmatmul.mubr.msk.f32.gmra.mrb[126].mxu1 %vm1087_vm4, %v14677_v31  ;;  %9739 = vmatmul.mubr.msk.f32.gmra.mrb[228].mxu0 %vm1087_vm4, %v14678_v61  ;;  %v14681_v31 = vld [vmem:[#allocation80_spill] sm:$0xff]  ;;  %v14682_v61 = vld [vmem:[#allocation77_spill] sm:$0xff] }
 0x231   :  { %1953 = vst.msk [vmem:[#allocation2 + $0xd8] sm:$0xff] %vm1925_vm8, %v9097_v4  ;;  %v1576_v47 = vpop.f32.mrb[27].mxu1  ;;  %9264 = vmatprep.mubr.msk.f32.mxu1 %vm1087_vm4, %v14679_v23  ;;  %9741 = vmatprep.mubr.msk.f32.mxu0 %vm1087_vm4, %v14680_v33  ;;  %v14683_v23 = vld [vmem:[#allocation81_spill] sm:$0xff]  ;;  %v14684_v33 = vld [vmem:[#allocation78_spill] sm:$0xff] }
 0x232   :  { %1952 = vst.msk [vmem:[#allocation2 + $0xd0] sm:$0xff] %vm1925_vm8, %v1576_v47  ;;  %v12383_v40 = vpop.f32.mrb[128].mxu0 }
 0x233   :  { %v12385_v7 = vpop.f32.mrb[129].mxu0 }
 0x234   :  { %v9100_v50 = vpop.f32.mrb[28].mxu1  ;;  %9265 = vmatmul.mubr.msk.f32.gmra.mrb[128].mxu1 %vm1087_vm4, %v14681_v31  ;;  %9742 = vmatmul.mubr.msk.f32.gmra.mrb[230].mxu0 %vm1087_vm4, %v14682_v61  ;;  %v14685_v31 = vld [vmem:[#allocation84_spill] sm:$0xff]  ;;  %v14686_v61 = vld [vmem:[#allocation82_spill] sm:$0xff] }
 0x235   :  { %1955 = vst.msk [vmem:[#allocation2 + $0xe8] sm:$0xff] %vm1925_vm8, %v9100_v50  ;;  %v1586_v4 = vpop.f32.mrb[29].mxu1  ;;  %9267 = vmatprep.mubr.msk.f32.mxu1 %vm1087_vm4, %v14683_v23  ;;  %9744 = vmatprep.mubr.msk.f32.mxu0 %vm1087_vm4, %v14684_v33  ;;  %v14687_v23 = vld [vmem:[#allocation88_spill] sm:$0xff]  ;;  %v14688_v33 = vld [vmem:[#allocation83_spill] sm:$0xff] }
 0x236   :  { %1954 = vst.msk [vmem:[#allocation2 + $0xe0] sm:$0xff] %vm1925_vm8, %v1586_v4  ;;  %v12397_v47 = vpop.f32.mrb[130].mxu0 }
 0x237   :  { %v12399_v25 = vpop.f32.mrb[131].mxu0 }
 0x238   :  { %v9103_v58 = vpop.f32.mrb[30].mxu1  ;;  %9268 = vmatmul.mubr.msk.f32.gmra.mrb[130].mxu1 %vm1087_vm4, %v14685_v31  ;;  %9745 = vmatmul.mubr.msk.f32.gmra.mrb[232].mxu0 %vm1087_vm4, %v14686_v61  ;;  %v2209_v31 = vrot.slane %v14691_v56, 1  ;;  %v14694_v61 = vld [vmem:[#allocation93_spill] sm:$0xff] }
 0x239   :  { %1957 = vst.msk [vmem:[#allocation2 + $0xf8] sm:$0xff] %vm1925_vm8, %v9103_v58  ;;  %v1596_v50 = vpop.f32.mrb[31].mxu1  ;;  %9270 = vmatprep.mubr.msk.f32.mxu1 %vm1087_vm4, %v14687_v23  ;;  %9747 = vmatprep.mubr.msk.f32.mxu0 %vm1087_vm4, %v14688_v33  ;;  %v14693_v58 = vld [vmem:[#allocation85_spill] sm:$0xff]  ;;  %v2211_v23 = vrot.slane %v14694_v61, 1  ;;  %v5924_v8 = vrot.slane %v14694_v61, 4 }
 0x23a   :  { %1956 = vst.msk [vmem:[#allocation2 + $0xf0] sm:$0xff] %vm1925_vm8, %v1596_v50  ;;  %v14696_v50 = vld [vmem:[#allocation90_spill] sm:$0xff] }
 0x23b   :  { %v12411_v4 = vpop.f32.mrb[132].mxu0 }
 0x23c   :  { %14689 = vst [vmem:[#allocation20_spill] sm:$0xff] %v12411_v4  ;;  %v12413_v20 = vpop.f32.mrb[133].mxu0  ;;  %9271 = vmatmul.mubr.msk.f32.gmra.mrb[132].mxu1 %vm1087_vm4, %v14692_v29  ;;  %9748 = vmatmul.mubr.msk.f32.gmra.mrb[234].mxu0 %vm1087_vm4, %v14693_v58  ;;  %v14699_v29 = vld [vmem:[#allocation87_spill] sm:$0xff] }
 0x23d   :  { %14690 = vst [vmem:[#allocation27_spill] sm:$0xff] %v12413_v20  ;;  %v9106_v11 = vpop.f32.mrb[32].mxu1  ;;  %9273 = vmatprep.mubr.msk.f32.mxu1 %vm1087_vm4, %v14695_v41  ;;  %9750 = vmatprep.mubr.msk.f32.mxu0 %vm1087_vm4, %v14696_v50  ;;  %v14700_v37 = vrot.slane %v14699_v29, 1  ;;  %v14702_v41 = vld [vmem:[#allocation92_spill] sm:$0xff]  ;;  %v14703_v50 = vld [vmem:[#allocation99_spill] sm:$0xff] }
 0x23e   :  { %1959 = vst.msk [vmem:[#allocation2 + $0x108] sm:$0xff] %vm1925_vm8, %v9106_v11  ;;  %v1606_v33 = vpop.f32.mrb[33].mxu1  ;;  %v5922_v11 = vrot.slane %v14691_v56, 4  ;;  %v2215_v43 = vrot.slane %v14703_v50, 1 }
 0x23f   :  { %1958 = vst.msk [vmem:[#allocation2 + $0x100] sm:$0xff] %vm1925_vm8, %v1606_v33  ;;  %v12427_v51 = vpop.f32.mrb[134].mxu0  ;;  %v2210_v58 = vsel %vm2126_vm6, %v14700_v37, %v2209_v31  ;;  %v2212_v33 = vsel %vm2126_vm6, %v2209_v31, %v2211_v23  ;;  %v14704_v37 = vld [vmem:[#allocation95_spill] sm:$0xff]  ;;  %v2214_v31 = vsel %vm2126_vm6, %v2211_v23, %v2213_v19  ;;  %v5928_v23 = vrot.slane %v14703_v50, 4 }
 0x240   :  { %14697 = vst [vmem:[#allocation24_spill] sm:$0xff] %v12427_v51  ;;  %v12429_v3 = vpop.f32.mrb[135].mxu0  ;;  %9274 = vmatmul.mubr.msk.f32.gmra.mrb[134].mxu1 %vm1087_vm4, %v2210_v58  ;;  %9751 = vmatmul.mubr.msk.f32.gmra.mrb[236].mxu0 %vm1087_vm4, %v14702_v41  ;;  %v14707_v41 = vrot.slane %v14699_v29, 4 }
 0x241   :  { %14698 = vst [vmem:[#allocation31_spill] sm:$0xff] %v12429_v3  ;;  %v9109_v14 = vpop.f32.mrb[34].mxu1  ;;  %9276 = vmatprep.mubr.msk.f32.mxu1 %vm1087_vm4, %v2212_v33  ;;  %9753 = vmatprep.mubr.msk.f32.mxu0 %vm1087_vm4, %v14704_v37  ;;  %v5925_v33 = vsel %vm1376_vm1, %v5922_v11, %v5924_v8  ;;  %v14709_v37 = vld [vmem:[#allocation103_spill] sm:$0xff] }
 0x242   :  { %1961 = vst.msk [vmem:[#allocation2 + $0x118] sm:$0xff] %vm1925_vm8, %v9109_v14  ;;  %v1616_v36 = vpop.f32.mrb[35].mxu1  ;;  %v5923_v32 = vsel %vm1376_vm1, %v14707_v41, %v5922_v11  ;;  %v2217_v14 = vrot.slane %v14708_v52, 1  ;;  %v2219_v27 = vrot.slane %v14709_v37, 1  ;;  %v5930_v11 = vrot.slane %v14708_v52, 4 }
 0x243   :  { %1960 = vst.msk [vmem:[#allocation2 + $0x110] sm:$0xff] %vm1925_vm8, %v1616_v36  ;;  %v12447_v58 = vpop.f32.mrb[136].mxu0  ;;  %v2216_v36 = vsel %vm2126_vm6, %v2213_v19, %v2215_v43  ;;  %v14712_v19 = vld [vmem:[#allocation100_spill] sm:$0xff] }
 0x244   :  { %14705 = vst [vmem:[#allocation28_spill] sm:$0xff] %v12447_v58  ;;  %v12449_v12 = vpop.f32.mrb[137].mxu0  ;;  %9277 = vmatmul.mubr.msk.f32.gmra.mrb[136].mxu1 %vm1087_vm4, %v2214_v31  ;;  %9754 = vmatmul.mubr.msk.f32.gmra.mrb[238].mxu0 %vm1087_vm4, %v5923_v32  ;;  %v2218_v31 = vsel %vm2126_vm6, %v2215_v43, %v2217_v14  ;;  %v5927_v32 = vsel %vm1376_vm1, %v5924_v8, %v5926_v59  ;;  %v2221_v55 = vrot.slane %v14712_v19, 1  ;;  %v5932_v43 = vrot.slane %v14709_v37, 4 }
 0x245   :  { %14706 = vst [vmem:[#allocation32_spill] sm:$0xff] %v12449_v12  ;;  %9279 = vmatprep.mubr.msk.f32.mxu1 %vm1087_vm4, %v2216_v36  ;;  %9756 = vmatprep.mubr.msk.f32.mxu0 %vm1087_vm4, %v5925_v33  ;;  %v2220_v36 = vsel %vm2126_vm6, %v2217_v14, %v2219_v27  ;;  %v5929_v33 = vsel %vm1376_vm1, %v5926_v59, %v5928_v23  ;;  %v14715_v59 = vld [vmem:[#allocation104_spill] sm:$0xff] }
 0x246   :  { %v5931_v14 = vsel %vm1376_vm1, %v5928_v23, %v5930_v11  ;;  %v2225_v58 = vrot.slane %v14715_v59, 1  ;;  %v14718_v23 = vld [vmem:[#allocation106_spill] sm:$0xff] }
 0x247   :  { %v12465_v41 = vpop.f32.mrb[138].mxu0  ;;  %v2228_v20 = vrot.slane %v14718_v23, 1 }
 0x248   :  { %14710 = vst [vmem:[#allocation29_spill] sm:$0xff] %v12465_v41  ;;  %v9112_v24 = vpop.f32.mrb[36].mxu1  ;;  %v12467_v39 = vpop.f32.mrb[139].mxu0  ;;  %9280 = vmatmul.mubr.msk.f32.gmra.mrb[138].mxu1 %vm1087_vm4, %v2218_v31  ;;  %9757 = vmatmul.mubr.msk.f32.gmra.mrb[240].mxu0 %vm1087_vm4, %v5927_v32  ;;  %v2222_v32 = vsel %vm2126_vm6, %v2219_v27, %v2221_v55  ;;  %v14717_v27 = vld [vmem:[#allocation108_spill] sm:$0xff] }
 0x249   :  { %14711 = vst [vmem:[#allocation37_spill] sm:$0xff] %v12467_v39  ;;  %1963 = vst.msk [vmem:[#allocation2 + $0x128] sm:$0xff] %vm1925_vm8, %v9112_v24  ;;  %v1626_v12 = vpop.f32.mrb[37].mxu1  ;;  %v14713_v39 = vld [vmem:[#allocation105_spill] sm:$0xff]  ;;  %9282 = vmatprep.mubr.msk.f32.mxu1 %vm1087_vm4, %v2220_v36  ;;  %9759 = vmatprep.mubr.msk.f32.mxu0 %vm1087_vm4, %v5929_v33  ;;  %v5934_v24 = vrot.slane %v14712_v19, 4  ;;  %v2227_v51 = vrot.slane %v14717_v27, 1 }
 0x24a   :  { %v2223_v41 = vrot.slane %v14713_v39, 1  ;;  %1962 = vst.msk [vmem:[#allocation2 + $0x120] sm:$0xff] %vm1925_vm8, %v1626_v12  ;;  %v5936_v3 = vrot.slane %v14713_v39, 4  ;;  %v5938_v39 = vrot.slane %v14715_v59, 4 }
 0x24c   :  { %v9115_v8 = vpop.f32.mrb[38].mxu1  ;;  %v12484_v31 = vpop.f32.mrb[140].mxu0  ;;  %9283 = vmatmul.mubr.msk.f32.gmra.mrb[140].mxu1 %vm1087_vm4, %v2222_v32  ;;  %9760 = vmatmul.mubr.msk.f32.gmra.mrb[242].mxu0 %vm1087_vm4, %v5931_v14  ;;  %v2224_v33 = vsel %vm2126_vm6, %v2221_v55, %v2223_v41  ;;  %v2226_v14 = vsel %vm2126_vm6, %v2223_v41, %v2225_v58  ;;  %v5937_v55 = vsel %vm1376_vm1, %v5934_v24, %v5936_v3  ;;  %v5940_v58 = vrot.slane %v14717_v27, 4 }
 0x24d   :  { %14714 = vst [vmem:[#allocation33_spill] sm:$0xff] %v12484_v31  ;;  %1965 = vst.msk [vmem:[#allocation2 + $0x138] sm:$0xff] %vm1925_vm8, %v9115_v8  ;;  %v1636_v12 = vpop.f32.mrb[39].mxu1  ;;  %v12492_v36 = vpop.f32.mrb[141].mxu0  ;;  %v5933_v31 = vsel %vm1376_vm1, %v5930_v11, %v5932_v43  ;;  %9285 = vmatprep.mubr.msk.f32.mxu1 %vm1087_vm4, %v2224_v33  ;;  %v5935_v8 = vsel %vm1376_vm1, %v5932_v43, %v5934_v24  ;;  %v14720_v11 = vld [vmem:[#allocation111_spill] sm:$0xff]  ;;  %v2229_v43 = vsel %vm2126_vm6, %v2227_v51, %v2228_v20 }
 0x24e   :  { %14716 = vst [vmem:[#allocation38_spill] sm:$0xff] %v12492_v36  ;;  %1964 = vst.msk [vmem:[#allocation2 + $0x130] sm:$0xff] %vm1925_vm8, %v1636_v12  ;;  %9762 = vmatprep.mubr.msk.f32.mxu0 %vm1087_vm4, %v5933_v31  ;;  %v2230_v4 = vrot.slane %v14720_v11, 1  ;;  %v14722_v31 = vld [vmem:[#allocation109_spill] sm:$0xff]  ;;  %v5941_v41 = vrot.slane %v14718_v23, 4  ;;  %v14724_v51 = vld [vmem:[#allocation115_spill] sm:$0xff] }
 0x24f   :  { %v5943_v59 = vrot.slane %v14720_v11, 4 }
 0x250   :  { %v9118_v32 = vpop.f32.mrb[40].mxu1  ;;  %v12503_v36 = vpop.f32.mrb[142].mxu0  ;;  %9286 = vmatmul.mubr.msk.f32.gmra.mrb[142].mxu1 %vm1087_vm4, %v2226_v14  ;;  %9763 = vmatmul.mubr.msk.f32.gmra.mrb[244].mxu0 %vm1087_vm4, %v5935_v8  ;;  %v2231_v14 = vsel %vm2126_vm6, %v2228_v20, %v2230_v4  ;;  %v5939_v8 = vsel %vm1376_vm1, %v5936_v3, %v5938_v39  ;;  %v14726_v20 = vld [vmem:[#allocation113_spill] sm:$0xff]  ;;  %v5945_v39 = vrot.slane %v14722_v31, 4 }
 0x251   :  { %14719 = vst [vmem:[#allocation34_spill] sm:$0xff] %v12503_v36  ;;  %1967 = vst.msk [vmem:[#allocation2 + $0x148] sm:$0xff] %vm1925_vm8, %v9118_v32  ;;  %v1646_v12 = vpop.f32.mrb[41].mxu1  ;;  %v12511_v33 = vpop.f32.mrb[143].mxu0  ;;  %v2232_v36 = vrot.slane %v14722_v31, 1  ;;  %9288 = vmatprep.mubr.msk.f32.mxu1 %vm1087_vm4, %v2229_v43  ;;  %9765 = vmatprep.mubr.msk.f32.mxu0 %vm1087_vm4, %v5937_v55  ;;  %v5942_v43 = vsel %vm1376_vm1, %v5940_v58, %v5941_v41  ;;  %v5947_v58 = vrot.slane %v14724_v51, 4 }
 0x252   :  { %14721 = vst [vmem:[#allocation41_spill] sm:$0xff] %v12511_v33  ;;  %1966 = vst.msk [vmem:[#allocation2 + $0x140] sm:$0xff] %vm1925_vm8, %v1646_v12  ;;  %v2234_v33 = vrot.slane %v14724_v51, 1 }
 0x253   :  { %v2233_v55 = vsel %vm2126_vm6, %v2230_v4, %v2232_v36  ;;  %v14728_v4 = vld [vmem:[#allocation119_spill] sm:$0xff] }
 0x254   :  { %v9121_v24 = vpop.f32.mrb[42].mxu1  ;;  %v12521_v32 = vpop.f32.mrb[144].mxu0  ;;  %9289 = vmatmul.mubr.msk.f32.gmra.mrb[144].mxu1 %vm1087_vm4, %v2231_v14  ;;  %9766 = vmatmul.mubr.msk.f32.gmra.mrb[246].mxu0 %vm1087_vm4, %v5939_v8  ;;  %v2235_v14 = vsel %vm2126_vm6, %v2232_v36, %v2234_v33  ;;  %v5944_v8 = vsel %vm1376_vm1, %v5941_v41, %v5943_v59  ;;  %v14730_v36 = vld [vmem:[#allocation116_spill] sm:$0xff]  ;;  %v5949_v41 = vrot.slane %v14726_v20, 4 }
 0x255   :  { %14723 = vst [vmem:[#allocation39_spill] sm:$0xff] %v12521_v32  ;;  %1969 = vst.msk [vmem:[#allocation2 + $0x158] sm:$0xff] %vm1925_vm8, %v9121_v24  ;;  %v1656_v23 = vpop.f32.mrb[43].mxu1  ;;  %v12529_v12 = vpop.f32.mrb[145].mxu0  ;;  %v2236_v32 = vrot.slane %v14726_v20, 1  ;;  %9291 = vmatprep.mubr.msk.f32.mxu1 %vm1087_vm4, %v2233_v55  ;;  %9768 = vmatprep.mubr.msk.f32.mxu0 %vm1087_vm4, %v5942_v43  ;;  %v5946_v43 = vsel %vm1376_vm1, %v5943_v59, %v5945_v39  ;;  %v5951_v59 = vrot.slane %v14728_v4, 4 }
 0x256   :  { %14725 = vst [vmem:[#allocation42_spill] sm:$0xff] %v12529_v12  ;;  %1968 = vst.msk [vmem:[#allocation2 + $0x150] sm:$0xff] %vm1925_vm8, %v1656_v23  ;;  %v2238_v12 = vrot.slane %v14728_v4, 1 }
 0x257   :  { %v2237_v55 = vsel %vm2126_vm6, %v2234_v33, %v2236_v32  ;;  %v14732_v33 = vld [vmem:[#allocation121_spill] sm:$0xff] }
 0x258   :  { %v9124_v3 = vpop.f32.mrb[44].mxu1  ;;  %v12539_v24 = vpop.f32.mrb[146].mxu0  ;;  %9292 = vmatmul.mubr.msk.f32.gmra.mrb[146].mxu1 %vm1087_vm4, %v2235_v14  ;;  %9769 = vmatmul.mubr.msk.f32.gmra.mrb[248].mxu0 %vm1087_vm4, %v5944_v8  ;;  %v5948_v8 = vsel %vm1376_vm1, %v5945_v39, %v5947_v58  ;;  %v2242_v51 = vrot.slane %v14732_v33, 1  ;;  %v5953_v39 = vrot.slane %v14730_v36, 4 }
 0x259   :  { %14727 = vst [vmem:[#allocation40_spill] sm:$0xff] %v12539_v24  ;;  %1971 = vst.msk [vmem:[#allocation2 + $0x168] sm:$0xff] %vm1925_vm8, %v9124_v3  ;;  %v1666_v31 = vpop.f32.mrb[45].mxu1  ;;  %v12547_v23 = vpop.f32.mrb[147].mxu0  ;;  %v2240_v24 = vrot.slane %v14730_v36, 1  ;;  %9294 = vmatprep.mubr.msk.f32.mxu1 %vm1087_vm4, %v2237_v55  ;;  %9771 = vmatprep.mubr.msk.f32.mxu0 %vm1087_vm4, %v5946_v43  ;;  %v5950_v43 = vsel %vm1376_vm1, %v5947_v58, %v5949_v41  ;;  %v5955_v58 = vrot.slane %v14732_v33, 4 }
 0x25a   :  { %14729 = vst [vmem:[#allocation46_spill] sm:$0xff] %v12547_v23  ;;  %1970 = vst.msk [vmem:[#allocation2 + $0x160] sm:$0xff] %vm1925_vm8, %v1666_v31  ;;  %v2239_v23 = vsel %vm2126_vm6, %v2236_v32, %v2238_v12  ;;  %v14734_v32 = vld [vmem:[#allocation120_spill] sm:$0xff] }
 0x25b   :  { %v2241_v55 = vsel %vm2126_vm6, %v2238_v12, %v2240_v24 }
 0x25c   :  { %v9127_v3 = vpop.f32.mrb[46].mxu1  ;;  %v12557_v14 = vpop.f32.mrb[148].mxu0  ;;  %9295 = vmatmul.mubr.msk.f32.gmra.mrb[148].mxu1 %vm1087_vm4, %v2239_v23  ;;  %9772 = vmatmul.mubr.msk.f32.gmra.mrb[250].mxu0 %vm1087_vm4, %v5948_v8  ;;  %v2243_v23 = vsel %vm2126_vm6, %v2240_v24, %v2242_v51  ;;  %v5952_v8 = vsel %vm1376_vm1, %v5949_v41, %v5951_v59  ;;  %v5957_v24 = vrot.slane %v14734_v32, 4 }
 0x25d   :  { %14731 = vst [vmem:[#allocation43_spill] sm:$0xff] %v12557_v14  ;;  %1973 = vst.msk [vmem:[#allocation2 + $0x178] sm:$0xff] %vm1925_vm8, %v9127_v3  ;;  %v1676_v20 = vpop.f32.mrb[47].mxu1  ;;  %v12565_v31 = vpop.f32.mrb[149].mxu0  ;;  %v2244_v14 = vrot.slane %v14734_v32, 1  ;;  %9297 = vmatprep.mubr.msk.f32.mxu1 %vm1087_vm4, %v2241_v55  ;;  %9774 = vmatprep.mubr.msk.f32.mxu0 %vm1087_vm4, %v5950_v43  ;;  %v5954_v55 = vsel %vm1376_vm1, %v5951_v59, %v5953_v39  ;;  %v14738_v43 = vld [vmem:[#allocation122_spill] sm:$0xff] }
 0x25e   :  { %14733 = vst [vmem:[#allocation47_spill] sm:$0xff] %v12565_v31  ;;  %1972 = vst.msk [vmem:[#allocation2 + $0x170] sm:$0xff] %vm1925_vm8, %v1676_v20  ;;  %v14736_v31 = vld [vmem:[#allocation125_spill] sm:$0xff] }
 0x25f   :  { %v2246_v12 = vrot.slane %v14736_v31, 1  ;;  %v2245_v20 = vsel %vm2126_vm6, %v2242_v51, %v2244_v14  ;;  %v14739_v51 = vld [vmem:[#allocation127_spill] sm:$0xff]  ;;  %v5959_v59 = vrot.slane %v14736_v31, 4 }
 0x260   :  { %v12575_v3 = vpop.f32.mrb[150].mxu0  ;;  %v9130_v4 = vpop.f32.mrb[48].mxu1  ;;  %9298 = vmatmul.mubr.msk.f32.gmra.mrb[150].mxu1 %vm1087_vm4, %v2243_v23  ;;  %9775 = vmatmul.mubr.msk.f32.gmra.mrb[252].mxu0 %vm1087_vm4, %v5952_v8  ;;  %v5956_v8 = vsel %vm1376_vm1, %v5953_v39, %v5955_v58 }
 0x261   :  { %14735 = vst [vmem:[#allocation44_spill] sm:$0xff] %v12575_v3  ;;  %v12582_v36 = vpop.f32.mrb[151].mxu0  ;;  %v2248_v3 = vrot.slane %v14738_v43, 1  ;;  %1975 = vst.msk [vmem:[#allocation2 + $0x188] sm:$0xff] %vm1925_vm8, %v9130_v4  ;;  %v1686_v41 = vpop.f32.mrb[49].mxu1  ;;  %9300 = vmatprep.mubr.msk.f32.mxu1 %vm1087_vm4, %v2245_v20  ;;  %9777 = vmatprep.mubr.msk.f32.mxu0 %vm1087_vm4, %v5954_v55  ;;  %v2247_v23 = vsel %vm2126_vm6, %v2244_v14, %v2246_v12  ;;  %v5958_v20 = vsel %vm1376_vm1, %v5955_v58, %v5957_v24  ;;  %v14740_v55 = vld [vmem:[#allocation130_spill] sm:$0xff] }
 0x262   :  { %14737 = vst [vmem:[#allocation51_spill] sm:$0xff] %v12582_v36  ;;  %1974 = vst.msk [vmem:[#allocation2 + $0x180] sm:$0xff] %vm1925_vm8, %v1686_v41  ;;  %v2250_v36 = vrot.slane %v14739_v51, 1  ;;  %v2253_v32 = vrot.slane %v14740_v55, 1  ;;  %v5961_v41 = vrot.slane %v14738_v43, 4  ;;  %v5960_v43 = vsel %vm1376_vm1, %v5957_v24, %v5959_v59 }
 0x263   :  { %v2249_v4 = vsel %vm2126_vm6, %v2246_v12, %v2248_v3  ;;  %v5963_v12 = vrot.slane %v14739_v51, 4  ;;  %v5966_v51 = vrot.slane %v14740_v55, 4 }
 0x264   :  { %v9133_v33 = vpop.f32.mrb[50].mxu1  ;;  %9301 = vmatmul.mubr.msk.f32.gmra.mrb[152].mxu1 %vm1087_vm4, %v2247_v23  ;;  %9778 = vmatmul.mubr.msk.f32.gmra.mrb[254].mxu0 %vm1087_vm4, %v5956_v8  ;;  %v14742_v23 = vld [vmem:[#allocation126_spill] sm:$0xff]  ;;  %v2251_v31 = vsel %vm2126_vm6, %v2248_v3, %v2250_v36 }
 0x265   :  { %1977 = vst.msk [vmem:[#allocation2 + $0x198] sm:$0xff] %vm1925_vm8, %v9133_v33  ;;  %v1696_v14 = vpop.f32.mrb[51].mxu1  ;;  %9303 = vmatprep.mubr.msk.f32.mxu1 %vm1087_vm4, %v2249_v4  ;;  %9780 = vmatprep.mubr.msk.f32.mxu0 %vm1087_vm4, %v5958_v20  ;;  %v2252_v8 = vrot.slane %v14742_v23, 1  ;;  %v14744_v33 = vld [vmem:[#allocation128_spill] sm:$0xff]  ;;  %v5962_v20 = vsel %vm1376_vm1, %v5959_v59, %v5961_v41  ;;  %v5965_v3 = vrot.slane %v14742_v23, 4  ;;  %v5964_v59 = vsel %vm1376_vm1, %v5961_v41, %v5963_v12 }
 0x266   :  { %1976 = vst.msk [vmem:[#allocation2 + $0x190] sm:$0xff] %vm1925_vm8, %v1696_v14  ;;  %v12607_v39 = vpop.f32.mrb[152].mxu0  ;;  %v2255_v11 = vrot.slane %v14744_v33, 1  ;;  %v14745_v14 = vld [vmem:[#allocation133_spill] sm:$0xff] }
 0x267   :  { %14741 = vst [vmem:[#allocation48_spill] sm:$0xff] %v12607_v39  ;;  %v12611_v58 = vpop.f32.mrb[153].mxu0  ;;  %v2254_v4 = vsel %vm2126_vm6, %v2252_v8, %v2253_v32  ;;  %v2257_v39 = vrot.slane %v14745_v14, 1  ;;  %v14748_v8 = vld [vmem:[#allocation132_spill] sm:$0xff] }
 0x268   :  { %14743 = vst [vmem:[#allocation52_spill] sm:$0xff] %v12611_v58  ;;  %v9136_v27 = vpop.f32.mrb[52].mxu1  ;;  %9304 = vmatmul.mubr.msk.f32.gmra.mrb[154].mxu1 %vm1087_vm4, %v2251_v31  ;;  %9781 = vmatmul.mubr.msk.f32.gmra.mrb[0].mxu0 %vm1087_vm4, %v5960_v43  ;;  %v2256_v24 = vsel %vm2126_vm6, %v2253_v32, %v2255_v11  ;;  %v2259_v58 = vrot.slane %v14748_v8, 1 }
 0x269   :  { %1979 = vst.msk [vmem:[#allocation2 + $0x1a8] sm:$0xff] %vm1925_vm8, %v9136_v27  ;;  %v1706_v36 = vpop.f32.mrb[53].mxu1  ;;  %9306 = vmatprep.mubr.msk.f32.mxu1 %vm1087_vm4, %v2254_v4  ;;  %9783 = vmatprep.mubr.msk.f32.mxu0 %vm1087_vm4, %v5962_v20  ;;  %v5968_v27 = vrot.slane %v14744_v33, 4  ;;  %v2258_v4 = vsel %vm2126_vm6, %v2255_v11, %v2257_v39  ;;  %v5967_v20 = vsel %vm1376_vm1, %v5965_v3, %v5966_v51 }
 0x26a   :  { %1978 = vst.msk [vmem:[#allocation2 + $0x1a0] sm:$0xff] %vm1925_vm8, %v1706_v36  ;;  %v12626_v31 = vpop.f32.mrb[154].mxu0  ;;  %v14749_v36 = vld [vmem:[#allocation137_spill] sm:$0xff]  ;;  %v2260_v11 = vsel %vm2126_vm6, %v2257_v39, %v2259_v58 }
 0x26b   :  { %14746 = vst [vmem:[#allocation49_spill] sm:$0xff] %v12626_v31  ;;  %v12629_v43 = vpop.f32.mrb[155].mxu0  ;;  %v2261_v31 = vrot.slane %v14749_v36, 1  ;;  %v5969_v3 = vsel %vm1376_vm1, %v5966_v51, %v5968_v27 }
 0x26c   :  { %14747 = vst [vmem:[#allocation56_spill] sm:$0xff] %v12629_v43  ;;  %v9139_v55 = vpop.f32.mrb[54].mxu1  ;;  %9307 = vmatmul.mubr.msk.f32.gmra.mrb[156].mxu1 %vm1087_vm4, %v2256_v24  ;;  %9784 = vmatmul.mubr.msk.f32.gmra.mrb[2].mxu0 %vm1087_vm4, %v5964_v59  ;;  %v5970_v43 = vrot.slane %v14745_v14, 4  ;;  %v14752_v24 = vld [vmem:[#allocation134_spill] sm:$0xff]  ;;  %v5972_v14 = vrot.slane %v14748_v8, 4 }
 0x26d   :  { %1981 = vst.msk [vmem:[#allocation2 + $0x1b8] sm:$0xff] %vm1925_vm8, %v9139_v55  ;;  %v1716_v32 = vpop.f32.mrb[55].mxu1  ;;  %9309 = vmatprep.mubr.msk.f32.mxu1 %vm1087_vm4, %v2258_v4  ;;  %9786 = vmatprep.mubr.msk.f32.mxu0 %vm1087_vm4, %v5967_v20  ;;  %v2263_v59 = vrot.slane %v14752_v24, 1  ;;  %v2262_v4 = vsel %vm2126_vm6, %v2259_v58, %v2261_v31 }
 0x26e   :  { %1980 = vst.msk [vmem:[#allocation2 + $0x1b0] sm:$0xff] %vm1925_vm8, %v1716_v32  ;;  %v12645_v41 = vpop.f32.mrb[156].mxu0  ;;  %v5971_v20 = vsel %vm1376_vm1, %v5968_v27, %v5970_v43  ;;  %v14753_v32 = vld [vmem:[#allocation140_spill] sm:$0xff]  ;;  %v5973_v27 = vsel %vm1376_vm1, %v5970_v43, %v5972_v14 }
 0x26f   :  { %14750 = vst [vmem:[#allocation53_spill] sm:$0xff] %v12645_v41  ;;  %v12647_v12 = vpop.f32.mrb[157].mxu0  ;;  %v2265_v41 = vrot.slane %v14753_v32, 1  ;;  %v2264_v58 = vsel %vm2126_vm6, %v2261_v31, %v2263_v59 }
 0x270   :  { %14751 = vst [vmem:[#allocation60_spill] sm:$0xff] %v12647_v12  ;;  %v9142_v55 = vpop.f32.mrb[56].mxu1  ;;  %9310 = vmatmul.mubr.msk.f32.gmra.mrb[158].mxu1 %vm1087_vm4, %v2260_v11  ;;  %9787 = vmatmul.mubr.msk.f32.gmra.mrb[4].mxu0 %vm1087_vm4, %v5969_v3  ;;  %v5974_v12 = vrot.slane %v14749_v36, 4  ;;  %v14756_v3 = vld [vmem:[#allocation138_spill] sm:$0xff]  ;;  %v5976_v36 = vrot.slane %v14752_v24, 4 }
 0x271   :  { %1983 = vst.msk [vmem:[#allocation2 + $0x1c8] sm:$0xff] %vm1925_vm8, %v9142_v55  ;;  %v1726_v51 = vpop.f32.mrb[57].mxu1  ;;  %9312 = vmatprep.mubr.msk.f32.mxu1 %vm1087_vm4, %v2262_v4  ;;  %9789 = vmatprep.mubr.msk.f32.mxu0 %vm1087_vm4, %v5971_v20  ;;  %v2267_v8 = vrot.slane %v14756_v3, 1  ;;  %v2266_v4 = vsel %vm2126_vm6, %v2263_v59, %v2265_v41 }
 0x272   :  { %1982 = vst.msk [vmem:[#allocation2 + $0x1c0] sm:$0xff] %vm1925_vm8, %v1726_v51  ;;  %v12663_v39 = vpop.f32.mrb[158].mxu0  ;;  %v5975_v20 = vsel %vm1376_vm1, %v5972_v14, %v5974_v12  ;;  %v14757_v51 = vld [vmem:[#allocation143_spill] sm:$0xff]  ;;  %v5977_v14 = vsel %vm1376_vm1, %v5974_v12, %v5976_v36 }
 0x273   :  { %14754 = vst [vmem:[#allocation54_spill] sm:$0xff] %v12663_v39  ;;  %v12665_v11 = vpop.f32.mrb[159].mxu0  ;;  %v2269_v39 = vrot.slane %v14757_v51, 1  ;;  %v2268_v59 = vsel %vm2126_vm6, %v2265_v41, %v2267_v8 }
 0x274   :  { %14755 = vst [vmem:[#allocation61_spill] sm:$0xff] %v12665_v11  ;;  %v9145_v55 = vpop.f32.mrb[58].mxu1  ;;  %9313 = vmatmul.mubr.msk.f32.gmra.mrb[160].mxu1 %vm1087_vm4, %v2264_v58  ;;  %9790 = vmatmul.mubr.msk.f32.gmra.mrb[6].mxu0 %vm1087_vm4, %v5973_v27  ;;  %v5978_v11 = vrot.slane %v14753_v32, 4  ;;  %v14759_v27 = vld [vmem:[#allocation141_spill] sm:$0xff]  ;;  %v5980_v32 = vrot.slane %v14756_v3, 4 }
 0x275   :  { %1985 = vst.msk [vmem:[#allocation2 + $0x1d8] sm:$0xff] %vm1925_vm8, %v9145_v55  ;;  %v1736_v31 = vpop.f32.mrb[59].mxu1  ;;  %9315 = vmatprep.mubr.msk.f32.mxu1 %vm1087_vm4, %v2266_v4  ;;  %9792 = vmatprep.mubr.msk.f32.mxu0 %vm1087_vm4, %v5975_v20  ;;  %v2271_v24 = vrot.slane %v14759_v27, 1  ;;  %v2270_v55 = vsel %vm2126_vm6, %v2267_v8, %v2269_v39  ;;  %v5982_v20 = vrot.slane %v14757_v51, 4 }
 0x276   :  { %1984 = vst.msk [vmem:[#allocation2 + $0x1d0] sm:$0xff] %vm1925_vm8, %v1736_v31  ;;  %v12681_v43 = vpop.f32.mrb[160].mxu0  ;;  %v5979_v4 = vsel %vm1376_vm1, %v5976_v36, %v5978_v11  ;;  %v14760_v36 = vrot.slane %v11645_v28, 1 }
 0x277   :  { %v12683_v58 = vpop.f32.mrb[161].mxu0 }
 0x278   :  { %14758 = vst [vmem:[#allocation57_spill] sm:$0xff] %v12683_v58  ;;  %9316 = vmatmul.mubr.msk.f32.gmra.mrb[162].mxu1 %vm1087_vm4, %v2268_v59  ;;  %9793 = vmatmul.mubr.msk.f32.gmra.mrb[8].mxu0 %vm1087_vm4, %v5977_v14  ;;  %v2272_v58 = vsel %vm2126_vm6, %v2269_v39, %v2271_v24  ;;  %v5981_v59 = vsel %vm1376_vm1, %v5978_v11, %v5980_v32  ;;  %v5984_v14 = vrot.slane %v14759_v27, 4 }
 0x279   :  { %9318 = vmatprep.mubr.msk.f32.mxu1 %vm1087_vm4, %v2270_v55  ;;  %9795 = vmatprep.mubr.msk.f32.mxu0 %vm1087_vm4, %v5979_v4  ;;  %v2274_v55 = vsel %vm2126_vm6, %v2271_v24, %v14760_v36  ;;  %v5983_v4 = vsel %vm1376_vm1, %v5980_v32, %v5982_v20  ;;  %v14762_v32 = vrot.slane %v11645_v28, 4  ;;  %v14763_v36 = vld [vmem:[#allocation147_spill] sm:$0xff] }
 0x27a   :  { %v12696_v41 = vpop.f32.mrb[162].mxu0 }
 0x27b   :  { %v9148_v12 = vpop.f32.mrb[60].mxu1  ;;  %v12698_v31 = vpop.f32.mrb[163].mxu0 }
 0x27c   :  { %1987 = vst.msk [vmem:[#allocation2 + $0x1e8] sm:$0xff] %vm1925_vm8, %v9148_v12  ;;  %v1746_v8 = vpop.f32.mrb[61].mxu1  ;;  %9319 = vmatmul.mubr.msk.f32.gmra.mrb[164].mxu1 %vm1087_vm4, %v2272_v58  ;;  %9796 = vmatmul.mubr.msk.f32.gmra.mrb[10].mxu0 %vm1087_vm4, %v5981_v59  ;;  %v5985_v12 = vsel %vm1376_vm1, %v5982_v20, %v5984_v14  ;;  %v14761_v59 = vld [vmem:[#allocation145_spill] sm:$0xff] }
 0x27d   :  { %1986 = vst.msk [vmem:[#allocation2 + $0x1e0] sm:$0xff] %vm1925_vm8, %v1746_v8  ;;  %9321 = vmatprep.mubr.msk.f32.mxu1 %vm1087_vm4, %v2274_v55  ;;  %9798 = vmatprep.mubr.msk.f32.mxu0 %vm1087_vm4, %v5983_v4  ;;  %v5987_v8 = vsel %vm1376_vm1, %v5984_v14, %v14762_v32  ;;  %v14766_v14 = vld [vmem:[#allocation150_spill] sm:$0xff] }
 0x27f   :  { %v9151_v39 = vpop.f32.mrb[62].mxu1  ;;  %v12713_v11 = vpop.f32.mrb[164].mxu0 }
 0x280   :  { %1989 = vst.msk [vmem:[#allocation2 + $0x1f8] sm:$0xff] %vm1925_vm8, %v9151_v39  ;;  %v1756_v58 = vpop.f32.mrb[63].mxu1  ;;  %9322 = vmatmul.mubr.msk.f32.gmra.mrb[166].mxu1 %vm1087_vm4, %v14761_v59  ;;  %v12719_v24 = vpop.f32.mrb[165].mxu0  ;;  %9799 = vmatmul.mubr.msk.f32.gmra.mrb[12].mxu0 %vm1087_vm4, %v5985_v12  ;;  %v14764_v39 = vld [vmem:[#allocation149_spill] sm:$0xff]  ;;  %v14765_v59 = vld [vmem:[#allocation146_spill] sm:$0xff] }
 0x281   :  { %1988 = vst.msk [vmem:[#allocation2 + $0x1f0] sm:$0xff] %vm1925_vm8, %v1756_v58  ;;  %9324 = vmatprep.mubr.msk.f32.mxu1 %vm1087_vm4, %v14763_v36  ;;  %9801 = vmatprep.mubr.msk.f32.mxu0 %vm1087_vm4, %v5987_v8  ;;  %v14767_v58 = vld [vmem:[#allocation148_spill] sm:$0xff] }
 0x283   :  { %v9154_v20 = vpop.f32.mrb[64].mxu1  ;;  %v12729_v55 = vpop.f32.mrb[166].mxu0 }
 0x284   :  { %1991 = vst.msk [vmem:[#allocation2 + $0x208] sm:$0xff] %vm1925_vm8, %v9154_v20  ;;  %v1766_v4 = vpop.f32.mrb[65].mxu1  ;;  %9325 = vmatmul.mubr.msk.f32.gmra.mrb[168].mxu1 %vm1087_vm4, %v14764_v39  ;;  %v12734_v12 = vpop.f32.mrb[167].mxu0  ;;  %9802 = vmatmul.mubr.msk.f32.gmra.mrb[14].mxu0 %vm1087_vm4, %v14765_v59  ;;  %v14769_v20 = vld [vmem:[#allocation153_spill] sm:$0xff]  ;;  %v14771_v59 = vld [vmem:[#allocation151_spill] sm:$0xff] }
 0x285   :  { %1990 = vst.msk [vmem:[#allocation2 + $0x200] sm:$0xff] %vm1925_vm8, %v1766_v4  ;;  %9327 = vmatprep.mubr.msk.f32.mxu1 %vm1087_vm4, %v14766_v14  ;;  %9804 = vmatprep.mubr.msk.f32.mxu0 %vm1087_vm4, %v14767_v58  ;;  %v14772_v4 = vld [vmem:[#allocation154_spill] sm:$0xff]  ;;  %v14773_v14 = vld [vmem:[#allocation152_spill] sm:$0xff] }
 0x287   :  { %v9157_v32 = vpop.f32.mrb[66].mxu1  ;;  %v12743_v8 = vpop.f32.mrb[168].mxu0 }
 0x288   :  { %14768 = vst [vmem:[#allocation66_spill] sm:$0xff] %v12743_v8  ;;  %1993 = vst.msk [vmem:[#allocation2 + $0x218] sm:$0xff] %vm1925_vm8, %v9157_v32  ;;  %v1776_v36 = vpop.f32.mrb[67].mxu1  ;;  %9328 = vmatmul.mubr.msk.f32.gmra.mrb[170].mxu1 %vm1087_vm4, %v14769_v20  ;;  %v12748_v39 = vpop.f32.mrb[169].mxu0  ;;  %9805 = vmatmul.mubr.msk.f32.gmra.mrb[16].mxu0 %vm1087_vm4, %v14771_v59  ;;  %v14775_v20 = vld [vmem:[#allocation157_spill] sm:$0xff]  ;;  %v14777_v59 = vld [vmem:[#allocation155_spill] sm:$0xff] }
 0x289   :  { %14770 = vst [vmem:[#allocation62_spill] sm:$0xff] %v12748_v39  ;;  %1992 = vst.msk [vmem:[#allocation2 + $0x210] sm:$0xff] %vm1925_vm8, %v1776_v36  ;;  %9330 = vmatprep.mubr.msk.f32.mxu1 %vm1087_vm4, %v14772_v4  ;;  %9807 = vmatprep.mubr.msk.f32.mxu0 %vm1087_vm4, %v14773_v14  ;;  %v14778_v36 = vld [vmem:[#allocation158_spill] sm:$0xff]  ;;  %v14779_v4 = vld [vmem:[#allocation156_spill] sm:$0xff] }
 0x28b   :  { %v9160_v58 = vpop.f32.mrb[68].mxu1  ;;  %v12757_v8 = vpop.f32.mrb[170].mxu0 }
 0x28c   :  { %14774 = vst [vmem:[#allocation67_spill] sm:$0xff] %v12757_v8  ;;  %1995 = vst.msk [vmem:[#allocation2 + $0x228] sm:$0xff] %vm1925_vm8, %v9160_v58  ;;  %v1786_v32 = vpop.f32.mrb[69].mxu1  ;;  %9331 = vmatmul.mubr.msk.f32.gmra.mrb[172].mxu1 %vm1087_vm4, %v14775_v20  ;;  %v12762_v39 = vpop.f32.mrb[171].mxu0  ;;  %9808 = vmatmul.mubr.msk.f32.gmra.mrb[18].mxu0 %vm1087_vm4, %v14777_v59  ;;  %v14781_v20 = vld [vmem:[#allocation161_spill] sm:$0xff]  ;;  %v14783_v59 = vld [vmem:[#allocation159_spill] sm:$0xff] }
 0x28d   :  { %14776 = vst [vmem:[#allocation63_spill] sm:$0xff] %v12762_v39  ;;  %1994 = vst.msk [vmem:[#allocation2 + $0x220] sm:$0xff] %vm1925_vm8, %v1786_v32  ;;  %9333 = vmatprep.mubr.msk.f32.mxu1 %vm1087_vm4, %v14778_v36  ;;  %9810 = vmatprep.mubr.msk.f32.mxu0 %vm1087_vm4, %v14779_v4  ;;  %v14784_v32 = vld [vmem:[#allocation162_spill] sm:$0xff]  ;;  %v14785_v36 = vld [vmem:[#allocation160_spill] sm:$0xff] }
 0x28f   :  { %v9163_v14 = vpop.f32.mrb[70].mxu1  ;;  %v12771_v8 = vpop.f32.mrb[172].mxu0 }
 0x290   :  { %14780 = vst [vmem:[#allocation70_spill] sm:$0xff] %v12771_v8  ;;  %1997 = vst.msk [vmem:[#allocation2 + $0x238] sm:$0xff] %vm1925_vm8, %v9163_v14  ;;  %v1796_v58 = vpop.f32.mrb[71].mxu1  ;;  %9334 = vmatmul.mubr.msk.f32.gmra.mrb[174].mxu1 %vm1087_vm4, %v14781_v20  ;;  %v12776_v39 = vpop.f32.mrb[173].mxu0  ;;  %9811 = vmatmul.mubr.msk.f32.gmra.mrb[20].mxu0 %vm1087_vm4, %v14783_v59  ;;  %v14787_v8 = vld [vmem:[#allocation165_spill] sm:$0xff]  ;;  %v14790_v59 = vld [vmem:[#allocation166_spill] sm:$0xff] }
 0x291   :  { %14782 = vst [vmem:[#allocation68_spill] sm:$0xff] %v12776_v39  ;;  %1996 = vst.msk [vmem:[#allocation2 + $0x230] sm:$0xff] %vm1925_vm8, %v1796_v58  ;;  %9336 = vmatprep.mubr.msk.f32.mxu1 %vm1087_vm4, %v14784_v32  ;;  %9813 = vmatprep.mubr.msk.f32.mxu0 %vm1087_vm4, %v14785_v36  ;;  %v14789_v39 = vld [vmem:[#allocation163_spill] sm:$0xff]  ;;  %v14791_v32 = vld [vmem:[#allocation164_spill] sm:$0xff] }
 0x293   :  { %v12785_v4 = vpop.f32.mrb[174].mxu0 }
 0x294   :  { %14786 = vst [vmem:[#allocation71_spill] sm:$0xff] %v12785_v4  ;;  %v9166_v14 = vpop.f32.mrb[72].mxu1  ;;  %9337 = vmatmul.mubr.msk.f32.gmra.mrb[176].mxu1 %vm1087_vm4, %v14787_v8  ;;  %v12789_v20 = vpop.f32.mrb[175].mxu0  ;;  %9814 = vmatmul.mubr.msk.f32.gmra.mrb[22].mxu0 %vm1087_vm4, %v14789_v39  ;;  %v14792_v4 = vld [vmem:[#allocation169_spill] sm:$0xff]  ;;  %v14793_v8 = vld [vmem:[#allocation167_spill] sm:$0xff] }
 0x295   :  { %14788 = vst [vmem:[#allocation69_spill] sm:$0xff] %v12789_v20  ;;  %1999 = vst.msk [vmem:[#allocation2 + $0x248] sm:$0xff] %vm1925_vm8, %v9166_v14  ;;  %v1806_v58 = vpop.f32.mrb[73].mxu1  ;;  %9339 = vmatprep.mubr.msk.f32.mxu1 %vm1087_vm4, %v14790_v59  ;;  %9816 = vmatprep.mubr.msk.f32.mxu0 %vm1087_vm4, %v14791_v32  ;;  %v14794_v14 = vld [vmem:[#allocation171_spill] sm:$0xff]  ;;  %v14795_v20 = vld [vmem:[#allocation168_spill] sm:$0xff] }
 0x296   :  { %1998 = vst.msk [vmem:[#allocation2 + $0x240] sm:$0xff] %vm1925_vm8, %v1806_v58 }
 0x298   :  { %v9169_v36 = vpop.f32.mrb[74].mxu1  ;;  %9340 = vmatmul.mubr.msk.f32.gmra.mrb[178].mxu1 %vm1087_vm4, %v14792_v4  ;;  %9817 = vmatmul.mubr.msk.f32.gmra.mrb[24].mxu0 %vm1087_vm4, %v14793_v8  ;;  %v14798_v4 = vld [vmem:[#allocation172_spill] sm:$0xff]  ;;  %v14799_v8 = vld [vmem:[#allocation170_spill] sm:$0xff] }
 0x299   :  { %2001 = vst.msk [vmem:[#allocation2 + $0x258] sm:$0xff] %vm1925_vm8, %v9169_v36  ;;  %v1816_v39 = vpop.f32.mrb[75].mxu1  ;;  %9342 = vmatprep.mubr.msk.f32.mxu1 %vm1087_vm4, %v14794_v14  ;;  %9819 = vmatprep.mubr.msk.f32.mxu0 %vm1087_vm4, %v14795_v20  ;;  %v14800_v14 = vld [vmem:[#allocation175_spill] sm:$0xff]  ;;  %v14801_v20 = vld [vmem:[#allocation173_spill] sm:$0xff] }
 0x29a   :  { %2000 = vst.msk [vmem:[#allocation2 + $0x250] sm:$0xff] %vm1925_vm8, %v1816_v39  ;;  %v12809_v59 = vpop.f32.mrb[176].mxu0 }
 0x29b   :  { %14796 = vst [vmem:[#allocation75_spill] sm:$0xff] %v12809_v59  ;;  %v12811_v58 = vpop.f32.mrb[177].mxu0 }
 0x29c   :  { %14797 = vst [vmem:[#allocation72_spill] sm:$0xff] %v12811_v58  ;;  %v9172_v32 = vpop.f32.mrb[76].mxu1  ;;  %9343 = vmatmul.mubr.msk.f32.gmra.mrb[180].mxu1 %vm1087_vm4, %v14798_v4  ;;  %9820 = vmatmul.mubr.msk.f32.gmra.mrb[26].mxu0 %vm1087_vm4, %v14799_v8  ;;  %v14804_v4 = vld [vmem:[#allocation176_spill] sm:$0xff]  ;;  %v14805_v8 = vld [vmem:[#allocation174_spill] sm:$0xff] }
 0x29d   :  { %2003 = vst.msk [vmem:[#allocation2 + $0x268] sm:$0xff] %vm1925_vm8, %v9172_v32  ;;  %v1826_v36 = vpop.f32.mrb[77].mxu1  ;;  %9345 = vmatprep.mubr.msk.f32.mxu1 %vm1087_vm4, %v14800_v14  ;;  %9822 = vmatprep.mubr.msk.f32.mxu0 %vm1087_vm4, %v14801_v20  ;;  %v14806_v14 = vld [vmem:[#allocation181_spill] sm:$0xff] }
 0x29e   :  { %2002 = vst.msk [vmem:[#allocation2 + $0x260] sm:$0xff] %vm1925_vm8, %v1826_v36  ;;  %v12823_v39 = vpop.f32.mrb[178].mxu0  ;;  %v14807_v20 = vld [vmem:[#allocation177_spill] sm:$0xff] }
 0x29f   :  { %14802 = vst [vmem:[#allocation76_spill] sm:$0xff] %v12823_v39  ;;  %v12825_v58 = vpop.f32.mrb[179].mxu0 }
 0x2a0   :  { %14803 = vst [vmem:[#allocation73_spill] sm:$0xff] %v12825_v58  ;;  %v9175_v59 = vpop.f32.mrb[78].mxu1  ;;  %9346 = vmatmul.mubr.msk.f32.gmra.mrb[182].mxu1 %vm1087_vm4, %v14804_v4  ;;  %9823 = vmatmul.mubr.msk.f32.gmra.mrb[28].mxu0 %vm1087_vm4, %v14805_v8  ;;  %v14810_v4 = vld [vmem:[#allocation182_spill] sm:$0xff] }
 0x2a1   :  { %2005 = vst.msk [vmem:[#allocation2 + $0x278] sm:$0xff] %vm1925_vm8, %v9175_v59  ;;  %v1836_v32 = vpop.f32.mrb[79].mxu1  ;;  %9348 = vmatprep.mubr.msk.f32.mxu1 %vm1087_vm4, %v14806_v14  ;;  %9825 = vmatprep.mubr.msk.f32.mxu0 %vm1087_vm4, %v14807_v20  ;;  %v14811_v8 = vld [vmem:[#allocation178_spill] sm:$0xff]  ;;  %v14812_v14 = vld [vmem:[#allocation187_spill] sm:$0xff] }
 0x2a2   :  { %2004 = vst.msk [vmem:[#allocation2 + $0x270] sm:$0xff] %vm1925_vm8, %v1836_v32  ;;  %v12837_v36 = vpop.f32.mrb[180].mxu0  ;;  %v14813_v20 = vld [vmem:[#allocation183_spill] sm:$0xff] }
 0x2a3   :  { %14808 = vst [vmem:[#allocation80_spill] sm:$0xff] %v12837_v36  ;;  %v12839_v58 = vpop.f32.mrb[181].mxu0 }
 0x2a4   :  { %14809 = vst [vmem:[#allocation77_spill] sm:$0xff] %v12839_v58  ;;  %v9178_v39 = vpop.f32.mrb[80].mxu1  ;;  %9349 = vmatmul.mubr.msk.f32.gmra.mrb[184].mxu1 %vm1087_vm4, %v14810_v4  ;;  %9826 = vmatmul.mubr.msk.f32.gmra.mrb[30].mxu0 %vm1087_vm4, %v14811_v8  ;;  %v14816_v4 = vld [vmem:[#allocation188_spill] sm:$0xff] }
 0x2a5   :  { %2007 = vst.msk [vmem:[#allocation2 + $0x288] sm:$0xff] %vm1925_vm8, %v9178_v39  ;;  %v1846_v59 = vpop.f32.mrb[81].mxu1  ;;  %9351 = vmatprep.mubr.msk.f32.mxu1 %vm1087_vm4, %v14812_v14  ;;  %9828 = vmatprep.mubr.msk.f32.mxu0 %vm1087_vm4, %v14813_v20  ;;  %v14817_v8 = vld [vmem:[#allocation184_spill] sm:$0xff]  ;;  %v14818_v14 = vld [vmem:[#allocation191_spill] sm:$0xff]  ;;  %v14819_v20 = vld [vmem:[#allocation189_spill] sm:$0xff] }
 0x2a6   :  { %2006 = vst.msk [vmem:[#allocation2 + $0x280] sm:$0xff] %vm1925_vm8, %v1846_v59  ;;  %v12851_v32 = vpop.f32.mrb[182].mxu0 }
 0x2a7   :  { %14814 = vst [vmem:[#allocation81_spill] sm:$0xff] %v12851_v32  ;;  %v12853_v58 = vpop.f32.mrb[183].mxu0  ;;  %v14821_v32 = vld [vmem:[#allocation192_spill] sm:$0xff] }
 0x2a8   :  { %14815 = vst [vmem:[#allocation78_spill] sm:$0xff] %v12853_v58  ;;  %v9181_v36 = vpop.f32.mrb[82].mxu1  ;;  %9352 = vmatmul.mubr.msk.f32.gmra.mrb[186].mxu1 %vm1087_vm4, %v14816_v4  ;;  %9829 = vmatmul.mubr.msk.f32.gmra.mrb[32].mxu0 %vm1087_vm4, %v14817_v8  ;;  %v14822_v4 = vld [vmem:[#allocation190_spill] sm:$0xff] }
 0x2a9   :  { %2009 = vst.msk [vmem:[#allocation2 + $0x298] sm:$0xff] %vm1925_vm8, %v9181_v36  ;;  %v1856_v39 = vpop.f32.mrb[83].mxu1  ;;  %9354 = vmatprep.mubr.msk.f32.mxu1 %vm1087_vm4, %v14818_v14  ;;  %9831 = vmatprep.mubr.msk.f32.mxu0 %vm1087_vm4, %v14819_v20 }
 0x2aa   :  { %2008 = vst.msk [vmem:[#allocation2 + $0x290] sm:$0xff] %vm1925_vm8, %v1856_v39  ;;  %v12865_v59 = vpop.f32.mrb[184].mxu0 }
 0x2ab   :  { %v12867_v58 = vpop.f32.mrb[185].mxu0 }
 0x2ac   :  { %14820 = vst [vmem:[#allocation84_spill] sm:$0xff] %v12867_v58  ;;  %9355 = vmatmul.mubr.msk.f32.gmra.mrb[188].mxu1 %vm1087_vm4, %v14821_v32  ;;  %9832 = vmatmul.mubr.msk.f32.gmra.mrb[34].mxu0 %vm1087_vm4, %v14822_v4  ;;  %v14851_v58 = vld [vmem:[#allocation55_spill] sm:$0xff] }
 0x2ad   :  { %9357 = vmatprep.mubr.msk.f32.mxu1 %vm1087_vm4, %v12058_v16  ;;  %9834 = vmatprep.mubr.msk.f32.mxu0 %vm1087_vm4, %v12046_v17  ;;  %v14825_v16 = vld [vmem:[#allocation14_spill] sm:$0xff] }
 0x2ae   :  { %v12877_v36 = vpop.f32.mrb[186].mxu0 }
 0x2af   :  { %14823 = vst [vmem:[#allocation82_spill] sm:$0xff] %v12877_v36  ;;  %v9184_v8 = vpop.f32.mrb[84].mxu1  ;;  %v12879_v39 = vpop.f32.mrb[187].mxu0  ;;  %v14849_v36 = vld [vmem:[#allocation50_spill] sm:$0xff] }
 0x2b0   :  { %14824 = vst [vmem:[#allocation88_spill] sm:$0xff] %v12879_v39  ;;  %2011 = vst.msk [vmem:[#allocation2 + $0x2a8] sm:$0xff] %vm1925_vm8, %v9184_v8  ;;  %v1866_v14 = vpop.f32.mrb[85].mxu1  ;;  %9358 = vmatmul.mubr.msk.f32.gmra.mrb[190].mxu1 %vm1087_vm4, %v12061_v57  ;;  %9835 = vmatmul.mubr.msk.f32.gmra.mrb[36].mxu0 %vm1087_vm4, %v12052_v38  ;;  %v14828_v57 = vld [vmem:[#allocation15_spill] sm:$0xff]  ;;  %v14829_v38 = vld [vmem:[#allocation16_spill] sm:$0xff] }
 0x2b1   :  { %2010 = vst.msk [vmem:[#allocation2 + $0x2a0] sm:$0xff] %vm1925_vm8, %v1866_v14  ;;  %9536 = vmatprep.mubr.msk.f32.mxu1 %vm1087_vm4, %v14825_v16  ;;  %9837 = vmatprep.mubr.msk.f32.mxu0 %vm1087_vm4, %v12065_v30 }
 0x2b3   :  { %v9187_v17 = vpop.f32.mrb[86].mxu1  ;;  %v12891_v32 = vpop.f32.mrb[188].mxu0 }
 0x2b4   :  { %14826 = vst [vmem:[#allocation83_spill] sm:$0xff] %v12891_v32  ;;  %2013 = vst.msk [vmem:[#allocation2 + $0x2b8] sm:$0xff] %vm1925_vm8, %v9187_v17  ;;  %v1876_v20 = vpop.f32.mrb[87].mxu1  ;;  %v12894_v4 = vpop.f32.mrb[189].mxu0  ;;  %9537 = vmatmul.mubr.msk.f32.vlgmr.msra.gmra.mrb[192].mxu1 %vm1087_vm4, %v14828_v57  ;;  %9838 = vmatmul.mubr.msk.f32.gmra.mrb[38].mxu0 %vm1087_vm4, %v12068_v34  ;;  %v14832_v17 = vld [vmem:[#allocation17_spill] sm:$0xff]  ;;  %v14833_v57 = vld [vmem:[#allocation18_spill] sm:$0xff] }
 0x2b5   :  { %14827 = vst [vmem:[#allocation86_spill] sm:$0xff] %v12894_v4  ;;  %2012 = vst.msk [vmem:[#allocation2 + $0x2b0] sm:$0xff] %vm1925_vm8, %v1876_v20  ;;  %9539 = vmatprep.mubr.msk.f32.mxu1 %vm1087_vm4, %v14829_v38  ;;  %v2022_v32 = vld [vmem:[#allocation2] sm:$0xff] }
 0x2b7   :  { %v9190_v30 = vpop.f32.mrb[88].mxu1  ;;  %v12903_v8 = vpop.f32.mrb[190].mxu0 }
 0x2b8   :  { %14830 = vst [vmem:[#allocation89_spill] sm:$0xff] %v12903_v8  ;;  %2015 = vst.msk [vmem:[#allocation2 + $0x2c8] sm:$0xff] %vm1925_vm8, %v9190_v30  ;;  %v1886_v14 = vpop.f32.mrb[89].mxu1  ;;  %v12906_v16 = vpop.f32.mrb[191].mxu0  ;;  %9540 = vmatmul.mubr.msk.f32.gmra.mrb[194].mxu1 %vm1087_vm4, %v14832_v17  ;;  %v14836_v30 = vld [vmem:[#allocation21_spill] sm:$0xff] }
 0x2b9   :  { %14831 = vst [vmem:[#allocation85_spill] sm:$0xff] %v12906_v16  ;;  %2014 = vst.msk [vmem:[#allocation2 + $0x2c0] sm:$0xff] %vm1925_vm8, %v1886_v14  ;;  %9542 = vmatprep.mubr.msk.f32.mxu1 %vm1087_vm4, %v14833_v57  ;;  %v14837_v16 = vld [vmem:[#allocation22_spill] sm:$0xff] }
 0x2bb   :  { %v9193_v34 = vpop.f32.mrb[90].mxu1  ;;  %v12913_v20 = vpop.f32.mrb[192].mxu0 }
 0x2bc   :  { %14834 = vst [vmem:[#allocation93_spill] sm:$0xff] %v12913_v20  ;;  %2017 = vst.msk [vmem:[#allocation2 + $0x2d8] sm:$0xff] %vm1925_vm8, %v9193_v34  ;;  %v1896_v38 = vpop.f32.mrb[91].mxu1  ;;  %v12916_v8 = vpop.f32.mrb[193].mxu0  ;;  %9543 = vmatmul.mubr.msk.f32.gmra.mrb[196].mxu1 %vm1087_vm4, %v14836_v30  ;;  %v14840_v34 = vld [vmem:[#allocation25_spill] sm:$0xff] }
 0x2bd   :  { %14835 = vst [vmem:[#allocation94_spill] sm:$0xff] %v12916_v8  ;;  %2016 = vst.msk [vmem:[#allocation2 + $0x2d0] sm:$0xff] %vm1925_vm8, %v1896_v38  ;;  %9545 = vmatprep.mubr.msk.f32.mxu1 %vm1087_vm4, %v14837_v16  ;;  %v14841_v8 = vld [vmem:[#allocation30_spill] sm:$0xff] }
 0x2bf   :  { %v9196_v14 = vpop.f32.mrb[92].mxu1  ;;  %v12923_v17 = vpop.f32.mrb[194].mxu0 }
 0x2c0   :  { %14838 = vst [vmem:[#allocation90_spill] sm:$0xff] %v12923_v17  ;;  %2019 = vst.msk [vmem:[#allocation2 + $0x2e8] sm:$0xff] %vm1925_vm8, %v9196_v14  ;;  %v1906_v57 = vpop.f32.mrb[93].mxu1  ;;  %v12926_v20 = vpop.f32.mrb[195].mxu0  ;;  %9546 = vmatmul.mubr.msk.f32.gmra.mrb[198].mxu1 %vm1087_vm4, %v14840_v34  ;;  %v14844_v14 = vld [vmem:[#allocation35_spill] sm:$0xff] }
 0x2c1   :  { %14839 = vst [vmem:[#allocation87_spill] sm:$0xff] %v12926_v20  ;;  %2018 = vst.msk [vmem:[#allocation2 + $0x2e0] sm:$0xff] %vm1925_vm8, %v1906_v57  ;;  %9548 = vmatprep.mubr.msk.f32.mxu1 %vm1087_vm4, %v14841_v8  ;;  %v14845_v20 = vld [vmem:[#allocation36_spill] sm:$0xff] }
 0x2c2   :  { %v2023_v57 = vld [vmem:[#allocation2 + $0x8] sm:$0xff] }
 0x2c3   :  { %v9199_v38 = vpop.f32.mrb[94].mxu1  ;;  %v12933_v30 = vpop.f32.mrb[196].mxu0 }
 0x2c4   :  { %14842 = vst [vmem:[#allocation91_spill] sm:$0xff] %v12933_v30  ;;  %2021 = vst.msk [vmem:[#allocation2 + $0x2f8] sm:$0xff] %vm1925_vm8, %v9199_v38  ;;  %v1916_v16 = vpop.f32.mrb[95].mxu1  ;;  %v12936_v17 = vpop.f32.mrb[197].mxu0  ;;  %9549 = vmatmul.mubr.msk.f32.gmra.mrb[200].mxu1 %vm1087_vm4, %v14844_v14  ;;  %v14848_v38 = vld [vmem:[#allocation45_spill] sm:$0xff] }
 0x2c5   :  { %14843 = vst [vmem:[#allocation92_spill] sm:$0xff] %v12936_v17  ;;  %2020 = vst.msk [vmem:[#allocation2 + $0x2f0] sm:$0xff] %vm1925_vm8, %v1916_v16  ;;  %9551 = vmatprep.mubr.msk.f32.mxu1 %vm1087_vm4, %v14845_v20  ;;  %v2025_v20 = vld [vmem:[#allocation2 + $0x18] sm:$0xff] }
 0x2c7   :  { %v9218_v34 = vpop.f32.mrb[96].mxu1  ;;  %v12943_v4 = vpop.f32.mrb[198].mxu0 }
 0x2c8   :  { %14846 = vst [vmem:[#allocation99_spill] sm:$0xff] %v12943_v4  ;;  %v3077_v8 = vadd.f32 %v9218_v34, %v2023_v57  ;;  %v2597_v30 = vpop.f32.mrb[97].mxu1  ;;  %v12945_v39 = vpop.f32.mrb[199].mxu0  ;;  %9552 = vmatmul.mubr.msk.f32.gmra.mrb[202].mxu1 %vm1087_vm4, %v14848_v38  ;;  %v2024_v34 = vld [vmem:[#allocation2 + $0x10] sm:$0xff] }
 0x2c9   :  { %14847 = vst [vmem:[#allocation95_spill] sm:$0xff] %v12945_v39  ;;  %v3076_v17 = vadd.f32 %v2597_v30, %v2022_v32  ;;  %9554 = vmatprep.mubr.msk.f32.mxu1 %vm1087_vm4, %v14849_v36  ;;  %v14853_v30 = vld [vmem:[#allocation58_spill] sm:$0xff]  ;;  %v2027_v36 = vld [vmem:[#allocation2 + $0x28] sm:$0xff] }
 0x2ca   :  { %3173 = vst.msk [vmem:[#allocation2 + $0x8] sm:$0xff] %vm1925_vm8, %v3077_v8 }
 0x2cb   :  { %3172 = vst.msk [vmem:[#allocation2] sm:$0xff] %vm1925_vm8, %v3076_v17  ;;  %v9221_v16 = vpop.f32.mrb[98].mxu1  ;;  %v12953_v14 = vpop.f32.mrb[200].mxu0 }
 0x2cc   :  { %14850 = vst [vmem:[#allocation96_spill] sm:$0xff] %v12953_v14  ;;  %v3079_v57 = vadd.f32 %v9221_v16, %v2025_v20  ;;  %v2607_v4 = vpop.f32.mrb[99].mxu1  ;;  %9555 = vmatmul.mubr.msk.f32.gmra.mrb[204].mxu1 %vm1087_vm4, %v14851_v58  ;;  %v12957_v39 = vpop.f32.mrb[201].mxu0  ;;  %v2026_v20 = vld [vmem:[#allocation2 + $0x20] sm:$0xff] }
 0x2cd   :  { %14852 = vst [vmem:[#allocation103_spill] sm:$0xff] %v12957_v39  ;;  %v3078_v32 = vadd.f32 %v2607_v4, %v2024_v34  ;;  %9557 = vmatprep.mubr.msk.f32.mxu1 %vm1087_vm4, %v14853_v30  ;;  %v14855_v14 = vld [vmem:[#allocation59_spill] sm:$0xff]  ;;  %v14857_v34 = vld [vmem:[#allocation64_spill] sm:$0xff] }
 0x2ce   :  { %3175 = vst.msk [vmem:[#allocation2 + $0x18] sm:$0xff] %vm1925_vm8, %v3079_v57 }
 0x2cf   :  { %3174 = vst.msk [vmem:[#allocation2 + $0x10] sm:$0xff] %vm1925_vm8, %v3078_v32  ;;  %v9224_v17 = vpop.f32.mrb[100].mxu1  ;;  %v12963_v8 = vpop.f32.mrb[202].mxu0 }
 0x2d0   :  { %14854 = vst [vmem:[#allocation100_spill] sm:$0xff] %v12963_v8  ;;  %v3081_v38 = vadd.f32 %v9224_v17, %v2027_v36  ;;  %v2617_v16 = vpop.f32.mrb[101].mxu1  ;;  %9558 = vmatmul.mubr.msk.f32.gmra.mrb[206].mxu1 %vm1087_vm4, %v14855_v14  ;;  %v12967_v58 = vpop.f32.mrb[203].mxu0  ;;  %v2029_v36 = vld [vmem:[#allocation2 + $0x38] sm:$0xff] }
 0x2d1   :  { %14856 = vst [vmem:[#allocation126_spill] sm:$0xff] %v12967_v58  ;;  %v3080_v4 = vadd.f32 %v2617_v16, %v2026_v20  ;;  %9560 = vmatprep.mubr.msk.f32.mxu1 %vm1087_vm4, %v14857_v34  ;;  %v3269_v30 = vld [vmem:[#allocation2 + $0x8] sm:$0xff]  ;;  %v2028_v58 = vld [vmem:[#allocation2 + $0x30] sm:$0xff] }
 0x2d2   :  { %3177 = vst.msk [vmem:[#allocation2 + $0x28] sm:$0xff] %vm1925_vm8, %v3081_v38  ;;  %v4315_v57 = vadd.f32 %v12113_v35, %v3269_v30  ;;  %v3268_v32 = vld [vmem:[#allocation2] sm:$0xff]  ;;  %v14858_v16 = vld [vmem:[#allocation65_spill] sm:$0xff]  ;;  %v14859_v38 = vld [vmem:[#allocation74_spill] sm:$0xff] }
 0x2d3   :  { %3176 = vst.msk [vmem:[#allocation2 + $0x20] sm:$0xff] %vm1925_vm8, %v3080_v4  ;;  %v9227_v17 = vpop.f32.mrb[102].mxu1  ;;  %v12974_v8 = vpop.f32.mrb[204].mxu0  ;;  %v4314_v14 = vadd.f32 %v12123_v26, %v3268_v32  ;;  %v2031_v32 = vld [vmem:[#allocation2 + $0x48] sm:$0xff] }
 0x2d4   :  { %v3083_v39 = vadd.f32 %v9227_v17, %v2029_v36  ;;  %v2627_v20 = vpop.f32.mrb[103].mxu1  ;;  %9561 = vmatmul.mubr.msk.f32.gmra.mrb[208].mxu1 %vm1087_vm4, %v14858_v16  ;;  %v12979_v34 = vpop.f32.mrb[205].mxu0  ;;  %4411 = vst.msk [vmem:[#allocation2 + $0x8] sm:$0xff] %vm1925_vm8, %v4315_v57 }
 0x2d5   :  { %v3082_v35 = vadd.f32 %v2627_v20, %v2028_v58  ;;  %9563 = vmatprep.mubr.msk.f32.mxu1 %vm1087_vm4, %v14859_v38  ;;  %4410 = vst.msk [vmem:[#allocation2] sm:$0xff] %vm1925_vm8, %v4314_v14  ;;  %v3271_v4 = vld [vmem:[#allocation2 + $0x18] sm:$0xff]  ;;  %v2030_v20 = vld [vmem:[#allocation2 + $0x40] sm:$0xff] }
 0x2d6   :  { %3179 = vst.msk [vmem:[#allocation2 + $0x38] sm:$0xff] %vm1925_vm8, %v3083_v39  ;;  %v4317_v26 = vadd.f32 %v12159_v15, %v3271_v4  ;;  %v3270_v30 = vld [vmem:[#allocation2 + $0x10] sm:$0xff]  ;;  %v14860_v38 = vld [vmem:[#allocation79_spill] sm:$0xff] }
 0x2d7   :  { %3178 = vst.msk [vmem:[#allocation2 + $0x30] sm:$0xff] %vm1925_vm8, %v3082_v35  ;;  %v9230_v36 = vpop.f32.mrb[104].mxu1  ;;  %v12988_v17 = vpop.f32.mrb[206].mxu0  ;;  %v4316_v57 = vadd.f32 %v12169_v44, %v3270_v30  ;;  %v14861_v39 = vld [vmem:[#allocation97_spill] sm:$0xff]  ;;  %v2033_v30 = vld [vmem:[#allocation2 + $0x58] sm:$0xff] }
 0x2d8   :  { %v3085_v58 = vadd.f32 %v9230_v36, %v2031_v32  ;;  %v2637_v16 = vpop.f32.mrb[105].mxu1  ;;  %9564 = vmatmul.mubr.msk.f32.gmra.mrb[210].mxu1 %vm1087_vm4, %v14860_v38  ;;  %v12993_v14 = vpop.f32.mrb[207].mxu0  ;;  %4413 = vst.msk [vmem:[#allocation2 + $0x18] sm:$0xff] %vm1925_vm8, %v4317_v26 }
 0x2d9   :  { %v3084_v15 = vadd.f32 %v2637_v16, %v2030_v20  ;;  %9566 = vmatprep.mubr.msk.f32.mxu1 %vm1087_vm4, %v14861_v39  ;;  %4412 = vst.msk [vmem:[#allocation2 + $0x10] sm:$0xff] %vm1925_vm8, %v4316_v57  ;;  %v3273_v35 = vld [vmem:[#allocation2 + $0x28] sm:$0xff]  ;;  %v2032_v16 = vld [vmem:[#allocation2 + $0x50] sm:$0xff] }
 0x2da   :  { %3181 = vst.msk [vmem:[#allocation2 + $0x48] sm:$0xff] %vm1925_vm8, %v3085_v58  ;;  %v4319_v44 = vadd.f32 %v12204_v48, %v3273_v35  ;;  %v3272_v4 = vld [vmem:[#allocation2 + $0x20] sm:$0xff]  ;;  %v14862_v39 = vld [vmem:[#allocation98_spill] sm:$0xff]  ;;  %v14863_v58 = vld [vmem:[#allocation101_spill] sm:$0xff] }
 0x2db   :  { %3180 = vst.msk [vmem:[#allocation2 + $0x40] sm:$0xff] %vm1925_vm8, %v3084_v15  ;;  %v9233_v32 = vpop.f32.mrb[106].mxu1  ;;  %v13002_v36 = vpop.f32.mrb[208].mxu0  ;;  %v4318_v26 = vadd.f32 %v12212_v21, %v3272_v4  ;;  %v2035_v4 = vld [vmem:[#allocation2 + $0x68] sm:$0xff] }
 0x2dc   :  { %v3087_v20 = vadd.f32 %v9233_v32, %v2033_v30  ;;  %v2647_v38 = vpop.f32.mrb[107].mxu1  ;;  %9567 = vmatmul.mubr.msk.f32.gmra.mrb[212].mxu1 %vm1087_vm4, %v14862_v39  ;;  %v13007_v57 = vpop.f32.mrb[209].mxu0  ;;  %4415 = vst.msk [vmem:[#allocation2 + $0x28] sm:$0xff] %vm1925_vm8, %v4319_v44 }
 0x2dd   :  { %v3086_v48 = vadd.f32 %v2647_v38, %v2032_v16  ;;  %9569 = vmatprep.mubr.msk.f32.mxu1 %vm1087_vm4, %v14863_v58  ;;  %4414 = vst.msk [vmem:[#allocation2 + $0x20] sm:$0xff] %vm1925_vm8, %v4318_v26  ;;  %v3275_v15 = vld [vmem:[#allocation2 + $0x38] sm:$0xff]  ;;  %v2034_v38 = vld [vmem:[#allocation2 + $0x60] sm:$0xff] }
 0x2de   :  { %3183 = vst.msk [vmem:[#allocation2 + $0x58] sm:$0xff] %vm1925_vm8, %v3087_v20  ;;  %v4321_v21 = vadd.f32 %v12247_v18, %v3275_v15  ;;  %v3274_v35 = vld [vmem:[#allocation2 + $0x30] sm:$0xff]  ;;  %v14865_v20 = vld [vmem:[#allocation107_spill] sm:$0xff] }
 0x2df   :  { %3182 = vst.msk [vmem:[#allocation2 + $0x50] sm:$0xff] %vm1925_vm8, %v3086_v48  ;;  %v9236_v30 = vpop.f32.mrb[108].mxu1  ;;  %v13016_v32 = vpop.f32.mrb[210].mxu0  ;;  %v4320_v44 = vadd.f32 %v12251_v0, %v3274_v35  ;;  %v14864_v58 = vld [vmem:[#allocation102_spill] sm:$0xff] }
 0x2e0   :  { %v3089_v16 = vadd.f32 %v9236_v30, %v2035_v4  ;;  %v2657_v39 = vpop.f32.mrb[109].mxu1  ;;  %9570 = vmatmul.mubr.msk.f32.gmra.mrb[214].mxu1 %vm1087_vm4, %v14864_v58  ;;  %v13021_v26 = vpop.f32.mrb[211].mxu0  ;;  %4417 = vst.msk [vmem:[#allocation2 + $0x38] sm:$0xff] %vm1925_vm8, %v4321_v21  ;;  %v2037_v35 = vld [vmem:[#allocation2 + $0x78] sm:$0xff] }
 0x2e1   :  { %v3088_v18 = vadd.f32 %v2657_v39, %v2034_v38  ;;  %9572 = vmatprep.mubr.msk.f32.mxu1 %vm1087_vm4, %v14865_v20  ;;  %4416 = vst.msk [vmem:[#allocation2 + $0x30] sm:$0xff] %vm1925_vm8, %v4320_v44  ;;  %v3277_v48 = vld [vmem:[#allocation2 + $0x48] sm:$0xff]  ;;  %v2036_v39 = vld [vmem:[#allocation2 + $0x70] sm:$0xff] }
 0x2e2   :  { %3185 = vst.msk [vmem:[#allocation2 + $0x68] sm:$0xff] %vm1925_vm8, %v3089_v16  ;;  %v4323_v0 = vadd.f32 %v12263_v46, %v3277_v48  ;;  %v3276_v15 = vld [vmem:[#allocation2 + $0x40] sm:$0xff]  ;;  %v14866_v20 = vld [vmem:[#allocation110_spill] sm:$0xff] }
 0x2e3   :  { %3184 = vst.msk [vmem:[#allocation2 + $0x60] sm:$0xff] %vm1925_vm8, %v3088_v18  ;;  %v9239_v4 = vpop.f32.mrb[110].mxu1  ;;  %v13030_v30 = vpop.f32.mrb[212].mxu0  ;;  %v4322_v21 = vadd.f32 %v12265_v49, %v3276_v15  ;;  %v14867_v16 = vld [vmem:[#allocation112_spill] sm:$0xff] }
 0x2e4   :  { %v3091_v38 = vadd.f32 %v9239_v4, %v2037_v35  ;;  %v2667_v58 = vpop.f32.mrb[111].mxu1  ;;  %9573 = vmatmul.mubr.msk.f32.gmra.mrb[216].mxu1 %vm1087_vm4, %v14866_v20  ;;  %v13035_v44 = vpop.f32.mrb[213].mxu0  ;;  %4419 = vst.msk [vmem:[#allocation2 + $0x48] sm:$0xff] %vm1925_vm8, %v4323_v0  ;;  %v2039_v15 = vld [vmem:[#allocation2 + $0x88] sm:$0xff] }
 0x2e5   :  { %v3090_v46 = vadd.f32 %v2667_v58, %v2036_v39  ;;  %9575 = vmatprep.mubr.msk.f32.mxu1 %vm1087_vm4, %v14867_v16  ;;  %4418 = vst.msk [vmem:[#allocation2 + $0x40] sm:$0xff] %vm1925_vm8, %v4322_v21  ;;  %v3279_v18 = vld [vmem:[#allocation2 + $0x58] sm:$0xff]  ;;  %v2038_v58 = vld [vmem:[#allocation2 + $0x80] sm:$0xff] }
 0x2e6   :  { %3187 = vst.msk [vmem:[#allocation2 + $0x78] sm:$0xff] %vm1925_vm8, %v3091_v38  ;;  %v4325_v49 = vadd.f32 %v12275_v5, %v3279_v18  ;;  %v3278_v48 = vld [vmem:[#allocation2 + $0x50] sm:$0xff] }
 0x2e7   :  { %3186 = vst.msk [vmem:[#allocation2 + $0x70] sm:$0xff] %vm1925_vm8, %v3090_v46  ;;  %v9242_v35 = vpop.f32.mrb[112].mxu1  ;;  %v13044_v4 = vpop.f32.mrb[214].mxu0  ;;  %v4324_v0 = vadd.f32 %v12277_v22, %v3278_v48  ;;  %v14868_v16 = vld [vmem:[#allocation114_spill] sm:$0xff]  ;;  %v14869_v38 = vld [vmem:[#allocation117_spill] sm:$0xff] }
 0x2e8   :  { %v3093_v39 = vadd.f32 %v9242_v35, %v2039_v15  ;;  %v2677_v20 = vpop.f32.mrb[113].mxu1  ;;  %9576 = vmatmul.mubr.msk.f32.gmra.mrb[218].mxu1 %vm1087_vm4, %v14868_v16  ;;  %v13049_v21 = vpop.f32.mrb[215].mxu0  ;;  %4421 = vst.msk [vmem:[#allocation2 + $0x58] sm:$0xff] %vm1925_vm8, %v4325_v49  ;;  %v2041_v48 = vld [vmem:[#allocation2 + $0x98] sm:$0xff] }
 0x2e9   :  { %v3092_v5 = vadd.f32 %v2677_v20, %v2038_v58  ;;  %9578 = vmatprep.mubr.msk.f32.mxu1 %vm1087_vm4, %v14869_v38  ;;  %4420 = vst.msk [vmem:[#allocation2 + $0x50] sm:$0xff] %vm1925_vm8, %v4324_v0  ;;  %v3281_v46 = vld [vmem:[#allocation2 + $0x68] sm:$0xff]  ;;  %v2040_v20 = vld [vmem:[#allocation2 + $0x90] sm:$0xff] }
 0x2ea   :  { %3189 = vst.msk [vmem:[#allocation2 + $0x88] sm:$0xff] %vm1925_vm8, %v3093_v39  ;;  %v4327_v22 = vadd.f32 %v12289_v60, %v3281_v46  ;;  %v3280_v18 = vld [vmem:[#allocation2 + $0x60] sm:$0xff]  ;;  %v14870_v38 = vld [vmem:[#allocation118_spill] sm:$0xff] }
 0x2eb   :  { %3188 = vst.msk [vmem:[#allocation2 + $0x80] sm:$0xff] %vm1925_vm8, %v3092_v5  ;;  %v9245_v15 = vpop.f32.mrb[114].mxu1  ;;  %v13058_v35 = vpop.f32.mrb[216].mxu0  ;;  %v4326_v49 = vadd.f32 %v12294_v9, %v3280_v18  ;;  %v14871_v39 = vld [vmem:[#allocation123_spill] sm:$0xff]  ;;  %v2043_v18 = vld [vmem:[#allocation2 + $0xa8] sm:$0xff] }
 0x2ec   :  { %v3095_v58 = vadd.f32 %v9245_v15, %v2041_v48  ;;  %v2687_v16 = vpop.f32.mrb[115].mxu1  ;;  %9579 = vmatmul.mubr.msk.f32.gmra.mrb[220].mxu1 %vm1087_vm4, %v14870_v38  ;;  %v13063_v0 = vpop.f32.mrb[217].mxu0  ;;  %4423 = vst.msk [vmem:[#allocation2 + $0x68] sm:$0xff] %vm1925_vm8, %v4327_v22 }
 0x2ed   :  { %v3094_v60 = vadd.f32 %v2687_v16, %v2040_v20  ;;  %9581 = vmatprep.mubr.msk.f32.mxu1 %vm1087_vm4, %v14871_v39  ;;  %4422 = vst.msk [vmem:[#allocation2 + $0x60] sm:$0xff] %vm1925_vm8, %v4326_v49  ;;  %v3283_v5 = vld [vmem:[#allocation2 + $0x78] sm:$0xff]  ;;  %v2042_v16 = vld [vmem:[#allocation2 + $0xa0] sm:$0xff] }
 0x2ee   :  { %3191 = vst.msk [vmem:[#allocation2 + $0x98] sm:$0xff] %vm1925_vm8, %v3095_v58  ;;  %v4329_v9 = vadd.f32 %v12303_v2, %v3283_v5  ;;  %v3282_v46 = vld [vmem:[#allocation2 + $0x70] sm:$0xff]  ;;  %v14872_v39 = vld [vmem:[#allocation124_spill] sm:$0xff] }
 0x2ef   :  { %3190 = vst.msk [vmem:[#allocation2 + $0x90] sm:$0xff] %vm1925_vm8, %v3094_v60  ;;  %v9248_v48 = vpop.f32.mrb[116].mxu1  ;;  %v13072_v15 = vpop.f32.mrb[218].mxu0  ;;  %v4328_v22 = vadd.f32 %v12308_v1, %v3282_v46  ;;  %v14873_v58 = vld [vmem:[#allocation129_spill] sm:$0xff]  ;;  %v2045_v46 = vld [vmem:[#allocation2 + $0xb8] sm:$0xff] }
 0x2f0   :  { %v3097_v20 = vadd.f32 %v9248_v48, %v2043_v18  ;;  %v2697_v38 = vpop.f32.mrb[117].mxu1  ;;  %9582 = vmatmul.mubr.msk.f32.gmra.mrb[222].mxu1 %vm1087_vm4, %v14872_v39  ;;  %v13077_v49 = vpop.f32.mrb[219].mxu0  ;;  %4425 = vst.msk [vmem:[#allocation2 + $0x78] sm:$0xff] %vm1925_vm8, %v4329_v9 }
 0x2f1   :  { %v3096_v2 = vadd.f32 %v2697_v38, %v2042_v16  ;;  %9584 = vmatprep.mubr.msk.f32.mxu1 %vm1087_vm4, %v14873_v58  ;;  %4424 = vst.msk [vmem:[#allocation2 + $0x70] sm:$0xff] %vm1925_vm8, %v4328_v22  ;;  %v3285_v60 = vld [vmem:[#allocation2 + $0x88] sm:$0xff]  ;;  %v2044_v38 = vld [vmem:[#allocation2 + $0xb0] sm:$0xff]  ;;  %v14874_v58 = vld [vmem:[#allocation131_spill] sm:$0xff] }
 0x2f2   :  { %3193 = vst.msk [vmem:[#allocation2 + $0xa8] sm:$0xff] %vm1925_vm8, %v3097_v20  ;;  %v4331_v1 = vadd.f32 %v12317_v13, %v3285_v60  ;;  %v3284_v5 = vld [vmem:[#allocation2 + $0x80] sm:$0xff] }
 0x2f3   :  { %3192 = vst.msk [vmem:[#allocation2 + $0xa0] sm:$0xff] %vm1925_vm8, %v3096_v2  ;;  %v9251_v18 = vpop.f32.mrb[118].mxu1  ;;  %v13086_v48 = vpop.f32.mrb[220].mxu0  ;;  %v4330_v9 = vadd.f32 %v12322_v6, %v3284_v5  ;;  %v14875_v20 = vld [vmem:[#allocation135_spill] sm:$0xff]  ;;  %v2047_v5 = vld [vmem:[#allocation2 + $0xc8] sm:$0xff] }
 0x2f4   :  { %v3099_v16 = vadd.f32 %v9251_v18, %v2045_v46  ;;  %v2707_v39 = vpop.f32.mrb[119].mxu1  ;;  %9585 = vmatmul.mubr.msk.f32.gmra.mrb[224].mxu1 %vm1087_vm4, %v14874_v58  ;;  %v13091_v22 = vpop.f32.mrb[221].mxu0  ;;  %4427 = vst.msk [vmem:[#allocation2 + $0x88] sm:$0xff] %vm1925_vm8, %v4331_v1 }
 0x2f5   :  { %v3098_v13 = vadd.f32 %v2707_v39, %v2044_v38  ;;  %9587 = vmatprep.mubr.msk.f32.mxu1 %vm1087_vm4, %v14875_v20  ;;  %4426 = vst.msk [vmem:[#allocation2 + $0x80] sm:$0xff] %vm1925_vm8, %v4330_v9  ;;  %v3287_v2 = vld [vmem:[#allocation2 + $0x98] sm:$0xff]  ;;  %v2046_v39 = vld [vmem:[#allocation2 + $0xc0] sm:$0xff] }
 0x2f6   :  { %3195 = vst.msk [vmem:[#allocation2 + $0xb8] sm:$0xff] %vm1925_vm8, %v3099_v16  ;;  %v4333_v6 = vadd.f32 %v12331_v10, %v3287_v2  ;;  %v3286_v60 = vld [vmem:[#allocation2 + $0x90] sm:$0xff]  ;;  %v14876_v20 = vld [vmem:[#allocation136_spill] sm:$0xff]  ;;  %v14877_v16 = vld [vmem:[#allocation139_spill] sm:$0xff] }
 0x2f7   :  { %3194 = vst.msk [vmem:[#allocation2 + $0xb0] sm:$0xff] %vm1925_vm8, %v3098_v13  ;;  %v9254_v46 = vpop.f32.mrb[120].mxu1  ;;  %v13100_v18 = vpop.f32.mrb[222].mxu0  ;;  %v4332_v1 = vadd.f32 %v12336_v62, %v3286_v60  ;;  %v2049_v60 = vld [vmem:[#allocation2 + $0xd8] sm:$0xff] }
 0x2f8   :  { %v3101_v38 = vadd.f32 %v9254_v46, %v2047_v5  ;;  %v2717_v58 = vpop.f32.mrb[121].mxu1  ;;  %9588 = vmatmul.mubr.msk.f32.gmra.mrb[226].mxu1 %vm1087_vm4, %v14876_v20  ;;  %v13105_v9 = vpop.f32.mrb[223].mxu0  ;;  %4429 = vst.msk [vmem:[#allocation2 + $0x98] sm:$0xff] %vm1925_vm8, %v4333_v6  ;;  %v4685_v6 = vrot.slane %v14691_v56, 3  ;;  %v2048_v20 = vld [vmem:[#allocation2 + $0xd0] sm:$0xff] }
 0x2f9   :  { %v3100_v10 = vadd.f32 %v2717_v58, %v2046_v39  ;;  %9590 = vmatprep.mubr.msk.f32.mxu1 %vm1087_vm4, %v14877_v16  ;;  %4428 = vst.msk [vmem:[#allocation2 + $0x90] sm:$0xff] %vm1925_vm8, %v4332_v1  ;;  %v3289_v13 = vld [vmem:[#allocation2 + $0xa8] sm:$0xff]  ;;  %v14878_v1 = vld [vmem:[#allocation142_spill] sm:$0xff] }
 0x2fa   :  { %3197 = vst.msk [vmem:[#allocation2 + $0xc8] sm:$0xff] %vm1925_vm8, %v3101_v38  ;;  %v4335_v62 = vadd.f32 %v12345_v45, %v3289_v13  ;;  %v3288_v2 = vld [vmem:[#allocation2 + $0xa0] sm:$0xff]  ;;  %v4687_v45 = vrot.slane %v14694_v61, 3  ;;  %v14880_v61 = vrot.slane %v14699_v29, 3 }
 0x2fb   :  { %3196 = vst.msk [vmem:[#allocation2 + $0xc0] sm:$0xff] %vm1925_vm8, %v3100_v10  ;;  %v9257_v5 = vpop.f32.mrb[122].mxu1  ;;  %v13114_v46 = vpop.f32.mrb[224].mxu0  ;;  %v4334_v39 = vadd.f32 %v12350_v42, %v3288_v2  ;;  %v14879_v13 = vld [vmem:[#allocation144_spill] sm:$0xff] }
 0x2fc   :  { %v3103_v58 = vadd.f32 %v9257_v5, %v2049_v60  ;;  %v2727_v16 = vpop.f32.mrb[123].mxu1  ;;  %9591 = vmatmul.mubr.msk.f32.gmra.mrb[228].mxu1 %vm1087_vm4, %v14878_v1  ;;  %v13120_v38 = vpop.f32.mrb[225].mxu0  ;;  %4431 = vst.msk [vmem:[#allocation2 + $0xa8] sm:$0xff] %vm1925_vm8, %v4335_v62  ;;  %v2051_v60 = vld [vmem:[#allocation2 + $0xe8] sm:$0xff]  ;;  %v4686_v62 = vsel %vm4602_vm7, %v14880_v61, %v4685_v6 }
 0x2fd   :  { %v3102_v10 = vadd.f32 %v2727_v16, %v2048_v20  ;;  %9593 = vmatprep.mubr.msk.f32.mxu1 %vm1087_vm4, %v14879_v13  ;;  %4430 = vst.msk [vmem:[#allocation2 + $0xa0] sm:$0xff] %vm1925_vm8, %v4334_v39  ;;  %v3291_v56 = vld [vmem:[#allocation2 + $0xb8] sm:$0xff]  ;;  %v4689_v20 = vrot.slane %v14701_v63, 3  ;;  %v2050_v13 = vld [vmem:[#allocation2 + $0xe0] sm:$0xff] }
 0x2fe   :  { %3199 = vst.msk [vmem:[#allocation2 + $0xd8] sm:$0xff] %vm1925_vm8, %v3103_v58  ;;  %v4337_v42 = vadd.f32 %v12359_v54, %v3291_v56  ;;  %v3290_v2 = vld [vmem:[#allocation2 + $0xb0] sm:$0xff]  ;;  %v4691_v56 = vrot.slane %v14703_v50, 3 }
 0x2ff   :  { %3198 = vst.msk [vmem:[#allocation2 + $0xd0] sm:$0xff] %vm1925_vm8, %v3102_v10  ;;  %v9260_v5 = vpop.f32.mrb[124].mxu1  ;;  %v13130_v1 = vpop.f32.mrb[226].mxu0  ;;  %v4336_v39 = vadd.f32 %v12363_v53, %v3290_v2  ;;  %v4688_v10 = vsel %vm4602_vm7, %v4685_v6, %v4687_v45  ;;  %v4690_v50 = vsel %vm4602_vm7, %v4687_v45, %v4689_v20 }
 0x300   :  { %v3105_v16 = vadd.f32 %v9260_v5, %v2051_v60  ;;  %v2737_v58 = vpop.f32.mrb[125].mxu1  ;;  %9594 = vmatmul.mubr.msk.f32.gmra.mrb[230].mxu1 %vm1087_vm4, %v4686_v62  ;;  %v13138_v54 = vpop.f32.mrb[227].mxu0  ;;  %4433 = vst.msk [vmem:[#allocation2 + $0xb8] sm:$0xff] %vm1925_vm8, %v4337_v42  ;;  %v2053_v60 = vld [vmem:[#allocation2 + $0xf8] sm:$0xff]  ;;  %v4693_v42 = vrot.slane %v14708_v52, 3 }
 0x301   :  { %v3104_v29 = vadd.f32 %v2737_v58, %v2050_v13  ;;  %9596 = vmatprep.mubr.msk.f32.mxu1 %vm1087_vm4, %v4688_v10  ;;  %4432 = vst.msk [vmem:[#allocation2 + $0xb0] sm:$0xff] %vm1925_vm8, %v4336_v39  ;;  %v3293_v63 = vld [vmem:[#allocation2 + $0xc8] sm:$0xff]  ;;  %v2052_v39 = vld [vmem:[#allocation2 + $0xf0] sm:$0xff]  ;;  %v4695_v58 = vrot.slane %v14709_v37, 3 }
 0x302   :  { %3201 = vst.msk [vmem:[#allocation2 + $0xe8] sm:$0xff] %vm1925_vm8, %v3105_v16  ;;  %v4339_v53 = vadd.f32 %v12383_v40, %v3293_v63  ;;  %v3292_v2 = vld [vmem:[#allocation2 + $0xc0] sm:$0xff]  ;;  %v4692_v40 = vsel %vm4602_vm7, %v4689_v20, %v4691_v56  ;;  %v4694_v37 = vsel %vm4602_vm7, %v4691_v56, %v4693_v42 }
 0x303   :  { %3200 = vst.msk [vmem:[#allocation2 + $0xe0] sm:$0xff] %vm1925_vm8, %v3104_v29  ;;  %v9263_v5 = vpop.f32.mrb[126].mxu1  ;;  %v13148_v6 = vpop.f32.mrb[228].mxu0  ;;  %v4338_v61 = vadd.f32 %v12385_v7, %v3292_v2  ;;  %v2055_v29 = vld [vmem:[#allocation2 + $0x108] sm:$0xff] }
 0x304   :  { %v3107_v62 = vadd.f32 %v9263_v5, %v2053_v60  ;;  %v2747_v13 = vpop.f32.mrb[127].mxu1  ;;  %9597 = vmatmul.mubr.msk.f32.gmra.mrb[232].mxu1 %vm1087_vm4, %v4690_v50  ;;  %v13154_v16 = vpop.f32.mrb[229].mxu0  ;;  %4435 = vst.msk [vmem:[#allocation2 + $0xc8] sm:$0xff] %vm1925_vm8, %v4339_v53  ;;  %v4697_v53 = vrot.slane %v14712_v19, 3  ;;  %v2054_v5 = vld [vmem:[#allocation2 + $0x100] sm:$0xff] }
 0x305   :  { %v3106_v10 = vadd.f32 %v2747_v13, %v2052_v39  ;;  %9599 = vmatprep.mubr.msk.f32.mxu1 %vm1087_vm4, %v4692_v40  ;;  %4434 = vst.msk [vmem:[#allocation2 + $0xc0] sm:$0xff] %vm1925_vm8, %v4338_v61  ;;  %v3295_v52 = vld [vmem:[#allocation2 + $0xd8] sm:$0xff] }
 0x306   :  { %3203 = vst.msk [vmem:[#allocation2 + $0xf8] sm:$0xff] %vm1925_vm8, %v3107_v62  ;;  %v4341_v7 = vadd.f32 %v12397_v47, %v3295_v52  ;;  %v3294_v45 = vld [vmem:[#allocation2 + $0xd0] sm:$0xff]  ;;  %v4696_v47 = vsel %vm4602_vm7, %v4693_v42, %v4695_v58 }
 0x307   :  { %3202 = vst.msk [vmem:[#allocation2 + $0xf0] sm:$0xff] %vm1925_vm8, %v3106_v10  ;;  %v9266_v63 = vpop.f32.mrb[128].mxu1  ;;  %v13164_v20 = vpop.f32.mrb[230].mxu0  ;;  %v4340_v2 = vadd.f32 %v12399_v25, %v3294_v45  ;;  %v14881_v62 = vld [vmem:[#allocation105_spill] sm:$0xff]  ;;  %v14882_v25 = vld [vmem:[#allocation20_spill] sm:$0xff]  ;;  %v2057_v10 = vld [vmem:[#allocation2 + $0x118] sm:$0xff]  ;;  %v4698_v45 = vsel %vm4602_vm7, %v4695_v58, %v4697_v53 }
 0x308   :  { %v3109_v60 = vadd.f32 %v9266_v63, %v2055_v29  ;;  %v2757_v50 = vpop.f32.mrb[129].mxu1  ;;  %9600 = vmatmul.mubr.msk.f32.gmra.mrb[234].mxu1 %vm1087_vm4, %v4694_v37  ;;  %v13170_v61 = vpop.f32.mrb[231].mxu0  ;;  %v4699_v39 = vrot.slane %v14881_v62, 3  ;;  %4437 = vst.msk [vmem:[#allocation2 + $0xd8] sm:$0xff] %vm1925_vm8, %v4341_v7  ;;  %v14883_v7 = vld [vmem:[#allocation104_spill] sm:$0xff]  ;;  %v14884_v63 = vld [vmem:[#allocation27_spill] sm:$0xff] }
 0x309   :  { %v3108_v13 = vadd.f32 %v2757_v50, %v2054_v5  ;;  %9602 = vmatprep.mubr.msk.f32.mxu1 %vm1087_vm4, %v4696_v47  ;;  %4436 = vst.msk [vmem:[#allocation2 + $0xd0] sm:$0xff] %vm1925_vm8, %v4340_v2  ;;  %v3297_v19 = vld [vmem:[#allocation2 + $0xe8] sm:$0xff]  ;;  %v4701_v29 = vrot.slane %v14883_v7, 3  ;;  %v2056_v2 = vld [vmem:[#allocation2 + $0x110] sm:$0xff] }
 0x30a   :  { %3205 = vst.msk [vmem:[#allocation2 + $0x108] sm:$0xff] %vm1925_vm8, %v3109_v60  ;;  %v4343_v56 = vadd.f32 %v14882_v25, %v3297_v19  ;;  %v3296_v40 = vld [vmem:[#allocation2 + $0xe0] sm:$0xff]  ;;  %v4700_v47 = vsel %vm4602_vm7, %v4697_v53, %v4699_v39  ;;  %v14887_v19 = vld [vmem:[#allocation106_spill] sm:$0xff]  ;;  %v2059_v53 = vld [vmem:[#allocation2 + $0x128] sm:$0xff] }
 0x30b   :  { %3204 = vst.msk [vmem:[#allocation2 + $0x100] sm:$0xff] %vm1925_vm8, %v3108_v13  ;;  %v9269_v52 = vpop.f32.mrb[130].mxu1  ;;  %v13180_v42 = vpop.f32.mrb[232].mxu0  ;;  %v4342_v37 = vadd.f32 %v14884_v63, %v3296_v40  ;;  %v14886_v62 = vld [vmem:[#allocation108_spill] sm:$0xff]  ;;  %v4704_v25 = vrot.slane %v14887_v19, 3 }
 0x30c   :  { %v3111_v5 = vadd.f32 %v9269_v52, %v2057_v10  ;;  %v2767_v50 = vpop.f32.mrb[131].mxu1  ;;  %9603 = vmatmul.mubr.msk.f32.gmra.mrb[236].mxu1 %vm1087_vm4, %v4698_v45  ;;  %v13186_v60 = vpop.f32.mrb[233].mxu0  ;;  %v4703_v13 = vrot.slane %v14886_v62, 3  ;;  %4439 = vst.msk [vmem:[#allocation2 + $0xe8] sm:$0xff] %vm1925_vm8, %v4343_v56  ;;  %v14888_v10 = vld [vmem:[#allocation24_spill] sm:$0xff]  ;;  %v4702_v62 = vsel %vm4602_vm7, %v4699_v39, %v4701_v29  ;;  %v14890_v56 = vld [vmem:[#allocation111_spill] sm:$0xff] }
 0x30d   :  { %14885 = vst [vmem:[#allocation128_spill] sm:$0xff] %v13186_v60  ;;  %v3110_v58 = vadd.f32 %v2767_v50, %v2056_v2  ;;  %9605 = vmatprep.mubr.msk.f32.mxu1 %vm1087_vm4, %v4700_v47  ;;  %4438 = vst.msk [vmem:[#allocation2 + $0xe0] sm:$0xff] %vm1925_vm8, %v4342_v37  ;;  %v3299_v40 = vld [vmem:[#allocation2 + $0xf8] sm:$0xff]  ;;  %v4706_v2 = vrot.slane %v14890_v56, 3  ;;  %v2058_v37 = vld [vmem:[#allocation2 + $0x120] sm:$0xff] }
 0x30e   :  { %3207 = vst.msk [vmem:[#allocation2 + $0x118] sm:$0xff] %vm1925_vm8, %v3111_v5  ;;  %v4345_v52 = vadd.f32 %v14888_v10, %v3299_v40  ;;  %v3298_v45 = vld [vmem:[#allocation2 + $0xf0] sm:$0xff]  ;;  %v14891_v50 = vld [vmem:[#allocation31_spill] sm:$0xff]  ;;  %v4705_v40 = vsel %vm4602_vm7, %v4703_v13, %v4704_v25  ;;  %v14893_v29 = vld [vmem:[#allocation28_spill] sm:$0xff] }
 0x30f   :  { %3206 = vst.msk [vmem:[#allocation2 + $0x110] sm:$0xff] %vm1925_vm8, %v3110_v58  ;;  %v9272_v7 = vpop.f32.mrb[132].mxu1  ;;  %v13197_v63 = vpop.f32.mrb[234].mxu0  ;;  %v4344_v47 = vadd.f32 %v14891_v50, %v3298_v45  ;;  %v14892_v58 = vld [vmem:[#allocation109_spill] sm:$0xff]  ;;  %v4707_v56 = vsel %vm4602_vm7, %v4704_v25, %v4706_v2  ;;  %v14896_v50 = vld [vmem:[#allocation32_spill] sm:$0xff] }
 0x310   :  { %14889 = vst [vmem:[#allocation138_spill] sm:$0xff] %v13197_v63  ;;  %v3113_v19 = vadd.f32 %v9272_v7, %v2059_v53  ;;  %v2777_v60 = vpop.f32.mrb[133].mxu1  ;;  %9606 = vmatmul.mubr.msk.f32.gmra.mrb[238].mxu1 %vm1087_vm4, %v4702_v62  ;;  %v13203_v5 = vpop.f32.mrb[235].mxu0  ;;  %v4708_v10 = vrot.slane %v14892_v58, 3  ;;  %4441 = vst.msk [vmem:[#allocation2 + $0xf8] sm:$0xff] %vm1925_vm8, %v4345_v52  ;;  %v2061_v7 = vld [vmem:[#allocation2 + $0x138] sm:$0xff] }
 0x311   :  { %v3112_v63 = vadd.f32 %v2777_v60, %v2058_v37  ;;  %9608 = vmatprep.mubr.msk.f32.mxu1 %vm1087_vm4, %v4705_v40  ;;  %4440 = vst.msk [vmem:[#allocation2 + $0xf0] sm:$0xff] %vm1925_vm8, %v4344_v47  ;;  %v3301_v39 = vld [vmem:[#allocation2 + $0x108] sm:$0xff]  ;;  %v14895_v52 = vld [vmem:[#allocation115_spill] sm:$0xff]  ;;  %v2060_v47 = vld [vmem:[#allocation2 + $0x130] sm:$0xff] }
 0x312   :  { %3209 = vst.msk [vmem:[#allocation2 + $0x128] sm:$0xff] %vm1925_vm8, %v3113_v19  ;;  %v4347_v45 = vadd.f32 %v14893_v29, %v3301_v39  ;;  %v3300_v53 = vld [vmem:[#allocation2 + $0x100] sm:$0xff]  ;;  %v4710_v60 = vrot.slane %v14895_v52, 3  ;;  %v4709_v39 = vsel %vm4602_vm7, %v4706_v2, %v4708_v10 }
 0x313   :  { %3208 = vst.msk [vmem:[#allocation2 + $0x120] sm:$0xff] %vm1925_vm8, %v3112_v63  ;;  %v9275_v62 = vpop.f32.mrb[134].mxu1  ;;  %v13213_v13 = vpop.f32.mrb[236].mxu0  ;;  %v4346_v37 = vadd.f32 %v14896_v50, %v3300_v53  ;;  %v14898_v63 = vld [vmem:[#allocation113_spill] sm:$0xff] }
 0x314   :  { %14894 = vst [vmem:[#allocation143_spill] sm:$0xff] %v13213_v13  ;;  %v3115_v40 = vadd.f32 %v9275_v62, %v2061_v7  ;;  %v2787_v58 = vpop.f32.mrb[135].mxu1  ;;  %9609 = vmatmul.mubr.msk.f32.gmra.mrb[240].mxu1 %vm1087_vm4, %v4707_v56  ;;  %v13219_v19 = vpop.f32.mrb[237].mxu0  ;;  %v4712_v29 = vrot.slane %v14898_v63, 3  ;;  %4443 = vst.msk [vmem:[#allocation2 + $0x108] sm:$0xff] %vm1925_vm8, %v4347_v45  ;;  %v14899_v53 = vld [vmem:[#allocation29_spill] sm:$0xff]  ;;  %v4711_v50 = vsel %vm4602_vm7, %v4708_v10, %v4710_v60 }
 0x315   :  { %14897 = vst [vmem:[#allocation141_spill] sm:$0xff] %v13219_v19  ;;  %v3114_v13 = vadd.f32 %v2787_v58, %v2060_v47  ;;  %9611 = vmatprep.mubr.msk.f32.mxu1 %vm1087_vm4, %v4709_v39  ;;  %4442 = vst.msk [vmem:[#allocation2 + $0x100] sm:$0xff] %vm1925_vm8, %v4346_v37  ;;  %v3303_v25 = vld [vmem:[#allocation2 + $0x118] sm:$0xff]  ;;  %v2063_v56 = vld [vmem:[#allocation2 + $0x148] sm:$0xff] }
 0x316   :  { %3211 = vst.msk [vmem:[#allocation2 + $0x138] sm:$0xff] %vm1925_vm8, %v3115_v40  ;;  %v4349_v7 = vadd.f32 %v14899_v53, %v3303_v25  ;;  %v3302_v62 = vld [vmem:[#allocation2 + $0x110] sm:$0xff]  ;;  %v14901_v45 = vld [vmem:[#allocation119_spill] sm:$0xff]  ;;  %v4713_v25 = vsel %vm4602_vm7, %v4710_v60, %v4712_v29 }
 0x317   :  { %3210 = vst.msk [vmem:[#allocation2 + $0x130] sm:$0xff] %vm1925_vm8, %v3114_v13  ;;  %v9278_v52 = vpop.f32.mrb[136].mxu1  ;;  %v13229_v2 = vpop.f32.mrb[238].mxu0  ;;  %v4714_v47 = vrot.slane %v14901_v45, 3  ;;  %v14902_v58 = vld [vmem:[#allocation37_spill] sm:$0xff]  ;;  %v2062_v37 = vld [vmem:[#allocation2 + $0x140] sm:$0xff] }
 0x318   :  { %14900 = vst [vmem:[#allocation145_spill] sm:$0xff] %v13229_v2  ;;  %v4348_v39 = vadd.f32 %v14902_v58, %v3302_v62  ;;  %v3117_v63 = vadd.f32 %v9278_v52, %v2063_v56  ;;  %v2797_v19 = vpop.f32.mrb[137].mxu1  ;;  %9612 = vmatmul.mubr.msk.f32.gmra.mrb[242].mxu1 %vm1087_vm4, %v4711_v50  ;;  %v13235_v40 = vpop.f32.mrb[239].mxu0  ;;  %v14904_v13 = vld [vmem:[#allocation116_spill] sm:$0xff]  ;;  %4445 = vst.msk [vmem:[#allocation2 + $0x118] sm:$0xff] %vm1925_vm8, %v4349_v7  ;;  %v14905_v62 = vld [vmem:[#allocation33_spill] sm:$0xff] }
 0x319   :  { %14903 = vst [vmem:[#allocation147_spill] sm:$0xff] %v13235_v40  ;;  %v4716_v53 = vrot.slane %v14904_v13, 3  ;;  %v3116_v2 = vadd.f32 %v2797_v19, %v2062_v37  ;;  %9614 = vmatprep.mubr.msk.f32.mxu1 %vm1087_vm4, %v4713_v25  ;;  %v3305_v10 = vld [vmem:[#allocation2 + $0x128] sm:$0xff]  ;;  %v2065_v50 = vld [vmem:[#allocation2 + $0x158] sm:$0xff]  ;;  %v4715_v58 = vsel %vm4602_vm7, %v4712_v29, %v4714_v47 }
 0x31a   :  { %4444 = vst.msk [vmem:[#allocation2 + $0x110] sm:$0xff] %vm1925_vm8, %v4348_v39  ;;  %3213 = vst.msk [vmem:[#allocation2 + $0x148] sm:$0xff] %vm1925_vm8, %v3117_v63  ;;  %v4351_v56 = vadd.f32 %v14905_v62, %v3305_v10  ;;  %v3304_v52 = vld [vmem:[#allocation2 + $0x120] sm:$0xff]  ;;  %v14907_v7 = vld [vmem:[#allocation121_spill] sm:$0xff] }
 0x31b   :  { %3212 = vst.msk [vmem:[#allocation2 + $0x140] sm:$0xff] %vm1925_vm8, %v3116_v2  ;;  %v9281_v45 = vpop.f32.mrb[138].mxu1  ;;  %v13245_v60 = vpop.f32.mrb[240].mxu0  ;;  %v4718_v19 = vrot.slane %v14907_v7, 3  ;;  %v14908_v37 = vld [vmem:[#allocation38_spill] sm:$0xff]  ;;  %v4717_v10 = vsel %vm4602_vm7, %v4714_v47, %v4716_v53  ;;  %v14910_v2 = vld [vmem:[#allocation120_spill] sm:$0xff] }
 0x31c   :  { %14906 = vst [vmem:[#allocation149_spill] sm:$0xff] %v13245_v60  ;;  %v4350_v25 = vadd.f32 %v14908_v37, %v3304_v52  ;;  %v3119_v13 = vadd.f32 %v9281_v45, %v2065_v50  ;;  %v2064_v39 = vld [vmem:[#allocation2 + $0x150] sm:$0xff]  ;;  %v2807_v40 = vpop.f32.mrb[139].mxu1  ;;  %9615 = vmatmul.mubr.msk.f32.gmra.mrb[244].mxu1 %vm1087_vm4, %v4715_v58  ;;  %v13251_v63 = vpop.f32.mrb[241].mxu0  ;;  %v4720_v62 = vrot.slane %v14910_v2, 3  ;;  %4447 = vst.msk [vmem:[#allocation2 + $0x128] sm:$0xff] %vm1925_vm8, %v4351_v56 }
 0x31d   :  { %14909 = vst [vmem:[#allocation146_spill] sm:$0xff] %v13251_v63  ;;  %v3118_v60 = vadd.f32 %v2807_v40, %v2064_v39  ;;  %9617 = vmatprep.mubr.msk.f32.mxu1 %vm1087_vm4, %v4717_v10  ;;  %v3307_v29 = vld [vmem:[#allocation2 + $0x138] sm:$0xff]  ;;  %v2067_v58 = vld [vmem:[#allocation2 + $0x168] sm:$0xff]  ;;  %v4719_v37 = vsel %vm4602_vm7, %v4716_v53, %v4718_v19 }
 0x31e   :  { %4446 = vst.msk [vmem:[#allocation2 + $0x120] sm:$0xff] %vm1925_vm8, %v4350_v25  ;;  %3215 = vst.msk [vmem:[#allocation2 + $0x158] sm:$0xff] %vm1925_vm8, %v3119_v13  ;;  %v14911_v52 = vld [vmem:[#allocation34_spill] sm:$0xff]  ;;  %v14913_v56 = vld [vmem:[#allocation125_spill] sm:$0xff] }
 0x31f   :  { %v4353_v50 = vadd.f32 %v14911_v52, %v3307_v29  ;;  %v3306_v45 = vld [vmem:[#allocation2 + $0x130] sm:$0xff]  ;;  %3214 = vst.msk [vmem:[#allocation2 + $0x150] sm:$0xff] %vm1925_vm8, %v3118_v60  ;;  %v9284_v7 = vpop.f32.mrb[140].mxu1  ;;  %v13261_v47 = vpop.f32.mrb[242].mxu0  ;;  %v4722_v40 = vrot.slane %v14913_v56, 3  ;;  %v2066_v25 = vld [vmem:[#allocation2 + $0x160] sm:$0xff]  ;;  %v4721_v29 = vsel %vm4602_vm7, %v4718_v19, %v4720_v62 }
 0x320   :  { %14912 = vst [vmem:[#allocation150_spill] sm:$0xff] %v13261_v47  ;;  %v14914_v39 = vld [vmem:[#allocation41_spill] sm:$0xff]  ;;  %v3121_v2 = vadd.f32 %v9284_v7, %v2067_v58  ;;  %v2817_v63 = vpop.f32.mrb[141].mxu1  ;;  %9618 = vmatmul.mubr.msk.f32.gmra.mrb[246].mxu1 %vm1087_vm4, %v4719_v37  ;;  %v13267_v13 = vpop.f32.mrb[243].mxu0  ;;  %v14916_v60 = vld [vmem:[#allocation122_spill] sm:$0xff] }
 0x321   :  { %v4352_v10 = vadd.f32 %v14914_v39, %v3306_v45  ;;  %14915 = vst [vmem:[#allocation148_spill] sm:$0xff] %v13267_v13  ;;  %v4724_v52 = vrot.slane %v14916_v60, 3  ;;  %4449 = vst.msk [vmem:[#allocation2 + $0x138] sm:$0xff] %vm1925_vm8, %v4353_v50  ;;  %v3120_v47 = vadd.f32 %v2817_v63, %v2066_v25  ;;  %9620 = vmatprep.mubr.msk.f32.mxu1 %vm1087_vm4, %v4721_v29  ;;  %v3309_v53 = vld [vmem:[#allocation2 + $0x148] sm:$0xff]  ;;  %v14917_v45 = vld [vmem:[#allocation39_spill] sm:$0xff] }
 0x322   :  { %3217 = vst.msk [vmem:[#allocation2 + $0x168] sm:$0xff] %vm1925_vm8, %v3121_v2  ;;  %v4355_v58 = vadd.f32 %v14917_v45, %v3309_v53  ;;  %v3308_v7 = vld [vmem:[#allocation2 + $0x140] sm:$0xff]  ;;  %v2069_v37 = vld [vmem:[#allocation2 + $0x178] sm:$0xff]  ;;  %v4723_v39 = vsel %vm4602_vm7, %v4720_v62, %v4722_v40 }
 0x323   :  { %4448 = vst.msk [vmem:[#allocation2 + $0x130] sm:$0xff] %vm1925_vm8, %v4352_v10  ;;  %3216 = vst.msk [vmem:[#allocation2 + $0x160] sm:$0xff] %vm1925_vm8, %v3120_v47  ;;  %v9287_v56 = vpop.f32.mrb[142].mxu1  ;;  %v13277_v19 = vpop.f32.mrb[244].mxu0  ;;  %v14919_v50 = vld [vmem:[#allocation127_spill] sm:$0xff]  ;;  %v14920_v25 = vld [vmem:[#allocation42_spill] sm:$0xff]  ;;  %v4725_v53 = vsel %vm4602_vm7, %v4722_v40, %v4724_v52 }
 0x324   :  { %14918 = vst [vmem:[#allocation153_spill] sm:$0xff] %v13277_v19  ;;  %v4726_v63 = vrot.slane %v14919_v50, 3  ;;  %v4354_v29 = vadd.f32 %v14920_v25, %v3308_v7  ;;  %v3123_v60 = vadd.f32 %v9287_v56, %v2069_v37  ;;  %v2068_v10 = vld [vmem:[#allocation2 + $0x170] sm:$0xff]  ;;  %v2827_v13 = vpop.f32.mrb[143].mxu1  ;;  %9621 = vmatmul.mubr.msk.f32.gmra.mrb[248].mxu1 %vm1087_vm4, %v4723_v39  ;;  %v13283_v2 = vpop.f32.mrb[245].mxu0  ;;  %4451 = vst.msk [vmem:[#allocation2 + $0x148] sm:$0xff] %vm1925_vm8, %v4355_v58 }
 0x325   :  { %v14921_v47 = vld [vmem:[#allocation130_spill] sm:$0xff]  ;;  %v3122_v19 = vadd.f32 %v2827_v13, %v2068_v10  ;;  %9623 = vmatprep.mubr.msk.f32.mxu1 %vm1087_vm4, %v4725_v53  ;;  %v4728_v7 = vrot.slane %v14742_v23, 3  ;;  %v14922_v37 = vld [vmem:[#allocation40_spill] sm:$0xff]  ;;  %v4731_v58 = vrot.slane %v14744_v33, 3 }
 0x326   :  { %v4729_v45 = vrot.slane %v14921_v47, 3  ;;  %4450 = vst.msk [vmem:[#allocation2 + $0x140] sm:$0xff] %vm1925_vm8, %v4354_v29  ;;  %v3311_v62 = vld [vmem:[#allocation2 + $0x158] sm:$0xff]  ;;  %3219 = vst.msk [vmem:[#allocation2 + $0x178] sm:$0xff] %vm1925_vm8, %v3123_v60  ;;  %v3310_v39 = vld [vmem:[#allocation2 + $0x150] sm:$0xff]  ;;  %v4727_v13 = vsel %vm4602_vm7, %v4724_v52, %v4726_v63 }
 0x327   :  { %v4357_v56 = vadd.f32 %v14922_v37, %v3311_v62  ;;  %3218 = vst.msk [vmem:[#allocation2 + $0x170] sm:$0xff] %vm1925_vm8, %v3122_v19  ;;  %v2071_v40 = vld [vmem:[#allocation2 + $0x188] sm:$0xff]  ;;  %v9290_v50 = vpop.f32.mrb[144].mxu1  ;;  %v13294_v25 = vpop.f32.mrb[246].mxu0  ;;  %v14924_v10 = vld [vmem:[#allocation46_spill] sm:$0xff]  ;;  %v2070_v47 = vld [vmem:[#allocation2 + $0x180] sm:$0xff] }
 0x328   :  { %14923 = vst [vmem:[#allocation151_spill] sm:$0xff] %v13294_v25  ;;  %v4356_v29 = vadd.f32 %v14924_v10, %v3310_v39  ;;  %v3125_v53 = vadd.f32 %v9290_v50, %v2071_v40  ;;  %v2837_v60 = vpop.f32.mrb[145].mxu1  ;;  %9624 = vmatmul.mubr.msk.f32.gmra.mrb[250].mxu1 %vm1087_vm4, %v4727_v13  ;;  %v13300_v23 = vpop.f32.mrb[247].mxu0  ;;  %v4730_v62 = vsel %vm4602_vm7, %v4728_v7, %v4729_v45  ;;  %v14925_v19 = vld [vmem:[#allocation133_spill] sm:$0xff]  ;;  %v14926_v52 = vld [vmem:[#allocation43_spill] sm:$0xff] }
 0x329   :  { %v4733_v37 = vrot.slane %v14925_v19, 3  ;;  %4453 = vst.msk [vmem:[#allocation2 + $0x158] sm:$0xff] %vm1925_vm8, %v4357_v56  ;;  %v3124_v25 = vadd.f32 %v2837_v60, %v2070_v47  ;;  %9626 = vmatprep.mubr.msk.f32.mxu1 %vm1087_vm4, %v4730_v62  ;;  %v3313_v33 = vld [vmem:[#allocation2 + $0x168] sm:$0xff]  ;;  %v2073_v40 = vld [vmem:[#allocation2 + $0x198] sm:$0xff]  ;;  %v4732_v13 = vsel %vm4602_vm7, %v4729_v45, %v4731_v58 }
 0x32a   :  { %4452 = vst.msk [vmem:[#allocation2 + $0x150] sm:$0xff] %vm1925_vm8, %v4356_v29  ;;  %3221 = vst.msk [vmem:[#allocation2 + $0x188] sm:$0xff] %vm1925_vm8, %v3125_v53  ;;  %v4359_v63 = vadd.f32 %v14926_v52, %v3313_v33  ;;  %v3312_v39 = vld [vmem:[#allocation2 + $0x160] sm:$0xff]  ;;  %v2072_v29 = vld [vmem:[#allocation2 + $0x190] sm:$0xff] }
 0x32b   :  { %3220 = vst.msk [vmem:[#allocation2 + $0x180] sm:$0xff] %vm1925_vm8, %v3124_v25  ;;  %v9293_v50 = vpop.f32.mrb[146].mxu1  ;;  %v13310_v7 = vpop.f32.mrb[248].mxu0  ;;  %v14928_v56 = vld [vmem:[#allocation132_spill] sm:$0xff]  ;;  %v14929_v47 = vld [vmem:[#allocation47_spill] sm:$0xff]  ;;  %v4734_v33 = vsel %vm4602_vm7, %v4731_v58, %v4733_v37  ;;  %v14931_v25 = vld [vmem:[#allocation137_spill] sm:$0xff] }
 0x32c   :  { %14927 = vst [vmem:[#allocation154_spill] sm:$0xff] %v13310_v7  ;;  %v4735_v10 = vrot.slane %v14928_v56, 3  ;;  %v4358_v60 = vadd.f32 %v14929_v47, %v3312_v39  ;;  %v3127_v62 = vadd.f32 %v9293_v50, %v2073_v40  ;;  %v2847_v19 = vpop.f32.mrb[147].mxu1  ;;  %9627 = vmatmul.mubr.msk.f32.gmra.mrb[252].mxu1 %vm1087_vm4, %v4732_v13  ;;  %v13316_v53 = vpop.f32.mrb[249].mxu0  ;;  %v4737_v52 = vrot.slane %v14931_v25, 3  ;;  %4455 = vst.msk [vmem:[#allocation2 + $0x168] sm:$0xff] %vm1925_vm8, %v4359_v63 }
 0x32d   :  { %14930 = vst [vmem:[#allocation152_spill] sm:$0xff] %v13316_v53  ;;  %v3126_v7 = vadd.f32 %v2847_v19, %v2072_v29  ;;  %9629 = vmatprep.mubr.msk.f32.mxu1 %vm1087_vm4, %v4734_v33  ;;  %v3315_v45 = vld [vmem:[#allocation2 + $0x178] sm:$0xff]  ;;  %v14932_v39 = vld [vmem:[#allocation44_spill] sm:$0xff] }
 0x32e   :  { %4454 = vst.msk [vmem:[#allocation2 + $0x160] sm:$0xff] %vm1925_vm8, %v4358_v60  ;;  %3223 = vst.msk [vmem:[#allocation2 + $0x198] sm:$0xff] %vm1925_vm8, %v3127_v62  ;;  %v4361_v40 = vadd.f32 %v14932_v39, %v3315_v45  ;;  %v3314_v50 = vld [vmem:[#allocation2 + $0x170] sm:$0xff]  ;;  %v2075_v13 = vld [vmem:[#allocation2 + $0x1a8] sm:$0xff]  ;;  %v4736_v47 = vsel %vm4602_vm7, %v4733_v37, %v4735_v10  ;;  %v4738_v45 = vsel %vm4602_vm7, %v4735_v10, %v4737_v52 }
 0x32f   :  { %3222 = vst.msk [vmem:[#allocation2 + $0x190] sm:$0xff] %vm1925_vm8, %v3126_v7  ;;  %v9296_v56 = vpop.f32.mrb[148].mxu1  ;;  %v13326_v58 = vpop.f32.mrb[250].mxu0  ;;  %v14934_v63 = vld [vmem:[#allocation134_spill] sm:$0xff]  ;;  %v14935_v19 = vld [vmem:[#allocation51_spill] sm:$0xff]  ;;  %v14936_v7 = vld [vmem:[#allocation140_spill] sm:$0xff] }
 0x330   :  { %14933 = vst [vmem:[#allocation157_spill] sm:$0xff] %v13326_v58  ;;  %v4739_v29 = vrot.slane %v14934_v63, 3  ;;  %v4360_v33 = vadd.f32 %v14935_v19, %v3314_v50  ;;  %v3129_v25 = vadd.f32 %v9296_v56, %v2075_v13  ;;  %v2074_v60 = vld [vmem:[#allocation2 + $0x1a0] sm:$0xff]  ;;  %v2857_v53 = vpop.f32.mrb[149].mxu1  ;;  %9630 = vmatmul.mubr.msk.f32.gmra.mrb[254].mxu1 %vm1087_vm4, %v4736_v47  ;;  %v13332_v62 = vpop.f32.mrb[251].mxu0  ;;  %v4741_v39 = vrot.slane %v14936_v7, 3 }
 0x331   :  { %4457 = vst.msk [vmem:[#allocation2 + $0x178] sm:$0xff] %vm1925_vm8, %v4361_v40  ;;  %v3128_v58 = vadd.f32 %v2857_v53, %v2074_v60  ;;  %9632 = vmatprep.mubr.msk.f32.mxu1 %vm1087_vm4, %v4738_v45  ;;  %v3317_v37 = vld [vmem:[#allocation2 + $0x188] sm:$0xff]  ;;  %v2077_v47 = vld [vmem:[#allocation2 + $0x1b8] sm:$0xff]  ;;  %v4743_v53 = vrot.slane %v14756_v3, 3 }
 0x332   :  { %4456 = vst.msk [vmem:[#allocation2 + $0x170] sm:$0xff] %vm1925_vm8, %v4360_v33  ;;  %3225 = vst.msk [vmem:[#allocation2 + $0x1a8] sm:$0xff] %vm1925_vm8, %v3129_v25  ;;  %v14937_v50 = vld [vmem:[#allocation48_spill] sm:$0xff]  ;;  %v4740_v19 = vsel %vm4602_vm7, %v4737_v52, %v4739_v29  ;;  %v2076_v33 = vld [vmem:[#allocation2 + $0x1b0] sm:$0xff] }
 0x333   :  { %v4363_v13 = vadd.f32 %v14937_v50, %v3317_v37  ;;  %v3316_v56 = vld [vmem:[#allocation2 + $0x180] sm:$0xff]  ;;  %3224 = vst.msk [vmem:[#allocation2 + $0x1a0] sm:$0xff] %vm1925_vm8, %v3128_v58  ;;  %v9299_v63 = vpop.f32.mrb[150].mxu1  ;;  %v13342_v10 = vpop.f32.mrb[252].mxu0  ;;  %v4742_v37 = vsel %vm4602_vm7, %v4739_v29, %v4741_v39  ;;  %v4745_v58 = vrot.slane %v14757_v51, 3  ;;  %v14939_v52 = vld [vmem:[#allocation49_spill] sm:$0xff]  ;;  %v4744_v51 = vsel %vm4602_vm7, %v4741_v39, %v4743_v53 }
 0x334   :  { %v14938_v40 = vld [vmem:[#allocation52_spill] sm:$0xff]  ;;  %v3131_v45 = vadd.f32 %v9299_v63, %v2077_v47  ;;  %v2867_v7 = vpop.f32.mrb[151].mxu1  ;;  %9633 = vmatmul.mubr.msk.f32.gmra.mrb[0].mxu1 %vm1087_vm4, %v4740_v19  ;;  %v13348_v25 = vpop.f32.mrb[253].mxu0 }
 0x335   :  { %v4362_v60 = vadd.f32 %v14938_v40, %v3316_v56  ;;  %4459 = vst.msk [vmem:[#allocation2 + $0x188] sm:$0xff] %vm1925_vm8, %v4363_v13  ;;  %v3130_v50 = vadd.f32 %v2867_v7, %v2076_v33  ;;  %9635 = vmatprep.mubr.msk.f32.mxu1 %vm1087_vm4, %v4742_v37  ;;  %v3319_v3 = vld [vmem:[#allocation2 + $0x198] sm:$0xff]  ;;  %v2079_v63 = vld [vmem:[#allocation2 + $0x1c8] sm:$0xff]  ;;  %v4747_v13 = vrot.slane %v14759_v27, 3 }
 0x336   :  { %3227 = vst.msk [vmem:[#allocation2 + $0x1b8] sm:$0xff] %vm1925_vm8, %v3131_v45  ;;  %v4365_v56 = vadd.f32 %v14939_v52, %v3319_v3  ;;  %v3318_v47 = vld [vmem:[#allocation2 + $0x190] sm:$0xff]  ;;  %v14940_v40 = vld [vmem:[#allocation56_spill] sm:$0xff]  ;;  %v4746_v3 = vsel %vm4602_vm7, %v4743_v53, %v4745_v58 }
 0x337   :  { %4458 = vst.msk [vmem:[#allocation2 + $0x180] sm:$0xff] %vm1925_vm8, %v4362_v60  ;;  %3226 = vst.msk [vmem:[#allocation2 + $0x1b0] sm:$0xff] %vm1925_vm8, %v3130_v50  ;;  %v9302_v19 = vpop.f32.mrb[152].mxu1  ;;  %v13358_v29 = vpop.f32.mrb[254].mxu0  ;;  %v4364_v33 = vadd.f32 %v14940_v40, %v3318_v47  ;;  %v2078_v60 = vld [vmem:[#allocation2 + $0x1c0] sm:$0xff]  ;;  %v14941_v27 = vld [vmem:[#allocation53_spill] sm:$0xff]  ;;  %v4748_v53 = vsel %vm4602_vm7, %v4745_v58, %v4747_v13 }
 0x338   :  { %v3133_v7 = vadd.f32 %v9302_v19, %v2079_v63  ;;  %v2877_v37 = vpop.f32.mrb[153].mxu1  ;;  %9636 = vmatmul.mubr.msk.f32.gmra.mrb[2].mxu1 %vm1087_vm4, %v4744_v51  ;;  %v13364_v45 = vpop.f32.mrb[255].mxu0  ;;  %4461 = vst.msk [vmem:[#allocation2 + $0x198] sm:$0xff] %vm1925_vm8, %v4365_v56  ;;  %v2081_v63 = vld [vmem:[#allocation2 + $0x1d8] sm:$0xff]  ;;  %v14942_v56 = vld [vmem:[#allocation60_spill] sm:$0xff] }
 0x339   :  { %v3132_v50 = vadd.f32 %v2877_v37, %v2078_v60  ;;  %9638 = vmatprep.mubr.msk.f32.mxu1 %vm1087_vm4, %v4746_v3  ;;  %4460 = vst.msk [vmem:[#allocation2 + $0x190] sm:$0xff] %vm1925_vm8, %v4364_v33  ;;  %v3321_v39 = vld [vmem:[#allocation2 + $0x1a8] sm:$0xff]  ;;  %v2080_v37 = vld [vmem:[#allocation2 + $0x1d0] sm:$0xff] }
 0x33a   :  { %3229 = vst.msk [vmem:[#allocation2 + $0x1c8] sm:$0xff] %vm1925_vm8, %v3133_v7  ;;  %v4367_v52 = vadd.f32 %v14941_v27, %v3321_v39  ;;  %v3320_v47 = vld [vmem:[#allocation2 + $0x1a0] sm:$0xff]  ;;  %v14943_v7 = vrot.slane %v11645_v28, 3  ;;  %v14944_v27 = vld [vmem:[#allocation54_spill] sm:$0xff] }
 0x33b   :  { %3228 = vst.msk [vmem:[#allocation2 + $0x1c0] sm:$0xff] %vm1925_vm8, %v3132_v50  ;;  %v9305_v19 = vpop.f32.mrb[154].mxu1  ;;  %v13373_v51 = vpop.f32.mrb[0].mxu0  ;;  %v4366_v40 = vadd.f32 %v14942_v56, %v3320_v47 }
 0x33c   :  { %v3135_v60 = vadd.f32 %v9305_v19, %v2081_v63  ;;  %v2887_v3 = vpop.f32.mrb[155].mxu1  ;;  %9639 = vmatmul.mubr.msk.f32.gmra.mrb[4].mxu1 %vm1087_vm4, %v4748_v53  ;;  %v13378_v33 = vpop.f32.mrb[1].mxu0  ;;  %v4750_v39 = vsel %vm4602_vm7, %v4747_v13, %v14943_v7  ;;  %4463 = vst.msk [vmem:[#allocation2 + $0x1a8] sm:$0xff] %vm1925_vm8, %v4367_v52  ;;  %v2083_v19 = vld [vmem:[#allocation2 + $0x1e8] sm:$0xff] }
 0x33d   :  { %v3134_v50 = vadd.f32 %v2887_v3, %v2080_v37  ;;  %9641 = vmatprep.mubr.msk.f32.mxu1 %vm1087_vm4, %v4750_v39  ;;  %4462 = vst.msk [vmem:[#allocation2 + $0x1a0] sm:$0xff] %vm1925_vm8, %v4366_v40  ;;  %v3323_v58 = vld [vmem:[#allocation2 + $0x1b8] sm:$0xff]  ;;  %v14945_v13 = vld [vmem:[#allocation61_spill] sm:$0xff]  ;;  %v2082_v37 = vld [vmem:[#allocation2 + $0x1e0] sm:$0xff] }
 0x33e   :  { %3231 = vst.msk [vmem:[#allocation2 + $0x1d8] sm:$0xff] %vm1925_vm8, %v3135_v60  ;;  %v4369_v47 = vadd.f32 %v14944_v27, %v3323_v58  ;;  %v3322_v63 = vld [vmem:[#allocation2 + $0x1b0] sm:$0xff] }
 0x33f   :  { %3230 = vst.msk [vmem:[#allocation2 + $0x1d0] sm:$0xff] %vm1925_vm8, %v3134_v50  ;;  %v9308_v53 = vpop.f32.mrb[156].mxu1  ;;  %v13389_v28 = vpop.f32.mrb[2].mxu0  ;;  %v4368_v56 = vadd.f32 %v14945_v13, %v3322_v63  ;;  %v14946_v7 = vld [vmem:[#allocation193_spill] sm:$0xff]  ;;  %v14947_v39 = vld [vmem:[#allocation194_spill] sm:$0xff] }
 0x340   :  { %v3137_v52 = vadd.f32 %v9308_v53, %v2083_v19  ;;  %v2897_v3 = vpop.f32.mrb[157].mxu1  ;;  %9642 = vmatmul.mubr.msk.f32.gmra.mrb[6].mxu1 %vm1087_vm4, %v14946_v7  ;;  %v13394_v40 = vpop.f32.mrb[3].mxu0  ;;  %4465 = vst.msk [vmem:[#allocation2 + $0x1b8] sm:$0xff] %vm1925_vm8, %v4369_v47  ;;  %v2085_v63 = vld [vmem:[#allocation2 + $0x1f8] sm:$0xff]  ;;  %v14948_v13 = vld [vmem:[#allocation57_spill] sm:$0xff] }
 0x341   :  { %v3136_v60 = vadd.f32 %v2897_v3, %v2082_v37  ;;  %9644 = vmatprep.mubr.msk.f32.mxu1 %vm1087_vm4, %v14947_v39  ;;  %4464 = vst.msk [vmem:[#allocation2 + $0x1b0] sm:$0xff] %vm1925_vm8, %v4368_v56  ;;  %v3325_v50 = vld [vmem:[#allocation2 + $0x1c8] sm:$0xff]  ;;  %v2084_v3 = vld [vmem:[#allocation2 + $0x1f0] sm:$0xff]  ;;  %v14949_v39 = vld [vmem:[#allocation195_spill] sm:$0xff] }
 0x342   :  { %3233 = vst.msk [vmem:[#allocation2 + $0x1e8] sm:$0xff] %vm1925_vm8, %v3137_v52  ;;  %v4371_v58 = vadd.f32 %v12681_v43, %v3325_v50  ;;  %v3324_v27 = vld [vmem:[#allocation2 + $0x1c0] sm:$0xff] }
 0x343   :  { %3232 = vst.msk [vmem:[#allocation2 + $0x1e0] sm:$0xff] %vm1925_vm8, %v3136_v60  ;;  %v9311_v19 = vpop.f32.mrb[158].mxu1  ;;  %v13403_v53 = vpop.f32.mrb[4].mxu0  ;;  %v4370_v47 = vadd.f32 %v14948_v13, %v3324_v27  ;;  %v14950_v52 = vld [vmem:[#allocation196_spill] sm:$0xff] }
 0x344   :  { %v3139_v37 = vadd.f32 %v9311_v19, %v2085_v63  ;;  %v2907_v7 = vpop.f32.mrb[159].mxu1  ;;  %9645 = vmatmul.mubr.msk.f32.gmra.mrb[8].mxu1 %vm1087_vm4, %v14949_v39  ;;  %v13408_v56 = vpop.f32.mrb[5].mxu0  ;;  %4467 = vst.msk [vmem:[#allocation2 + $0x1c8] sm:$0xff] %vm1925_vm8, %v4371_v58  ;;  %v2087_v63 = vld [vmem:[#allocation2 + $0x208] sm:$0xff] }
 0x345   :  { %v3138_v43 = vadd.f32 %v2907_v7, %v2084_v3  ;;  %9647 = vmatprep.mubr.msk.f32.mxu1 %vm1087_vm4, %v14950_v52  ;;  %4466 = vst.msk [vmem:[#allocation2 + $0x1c0] sm:$0xff] %vm1925_vm8, %v4370_v47  ;;  %v3327_v60 = vld [vmem:[#allocation2 + $0x1d8] sm:$0xff]  ;;  %v2086_v7 = vld [vmem:[#allocation2 + $0x200] sm:$0xff]  ;;  %v14951_v52 = vld [vmem:[#allocation197_spill] sm:$0xff] }
 0x346   :  { %3235 = vst.msk [vmem:[#allocation2 + $0x1f8] sm:$0xff] %vm1925_vm8, %v3139_v37  ;;  %v4373_v50 = vadd.f32 %v12696_v41, %v3327_v60  ;;  %v3326_v27 = vld [vmem:[#allocation2 + $0x1d0] sm:$0xff] }
 0x347   :  { %3234 = vst.msk [vmem:[#allocation2 + $0x1f0] sm:$0xff] %vm1925_vm8, %v3138_v43  ;;  %v9314_v19 = vpop.f32.mrb[160].mxu1  ;;  %v13417_v13 = vpop.f32.mrb[6].mxu0  ;;  %v4372_v58 = vadd.f32 %v12698_v31, %v3326_v27  ;;  %v14952_v37 = vld [vmem:[#allocation198_spill] sm:$0xff] }
 0x348   :  { %v3141_v3 = vadd.f32 %v9314_v19, %v2087_v63  ;;  %v2917_v39 = vpop.f32.mrb[161].mxu1  ;;  %9648 = vmatmul.mubr.msk.f32.gmra.mrb[10].mxu1 %vm1087_vm4, %v14951_v52  ;;  %v13422_v47 = vpop.f32.mrb[7].mxu0  ;;  %4469 = vst.msk [vmem:[#allocation2 + $0x1d8] sm:$0xff] %vm1925_vm8, %v4373_v50  ;;  %v2089_v27 = vld [vmem:[#allocation2 + $0x218] sm:$0xff] }
 0x349   :  { %v3140_v41 = vadd.f32 %v2917_v39, %v2086_v7  ;;  %9650 = vmatprep.mubr.msk.f32.mxu1 %vm1087_vm4, %v14952_v37  ;;  %4468 = vst.msk [vmem:[#allocation2 + $0x1d0] sm:$0xff] %vm1925_vm8, %v4372_v58  ;;  %v3329_v43 = vld [vmem:[#allocation2 + $0x1e8] sm:$0xff]  ;;  %v2088_v39 = vld [vmem:[#allocation2 + $0x210] sm:$0xff]  ;;  %v14953_v37 = vld [vmem:[#allocation199_spill] sm:$0xff] }
 0x34a   :  { %3237 = vst.msk [vmem:[#allocation2 + $0x208] sm:$0xff] %vm1925_vm8, %v3141_v3  ;;  %v4375_v31 = vadd.f32 %v12713_v11, %v3329_v43  ;;  %v3328_v60 = vld [vmem:[#allocation2 + $0x1e0] sm:$0xff] }
 0x34b   :  { %3236 = vst.msk [vmem:[#allocation2 + $0x200] sm:$0xff] %vm1925_vm8, %v3140_v41  ;;  %v9317_v63 = vpop.f32.mrb[162].mxu1  ;;  %v13431_v19 = vpop.f32.mrb[8].mxu0  ;;  %v4374_v50 = vadd.f32 %v12719_v24, %v3328_v60  ;;  %v14954_v3 = vld [vmem:[#allocation200_spill] sm:$0xff] }
 0x34c   :  { %v3143_v7 = vadd.f32 %v9317_v63, %v2089_v27  ;;  %v2927_v52 = vpop.f32.mrb[163].mxu1  ;;  %9651 = vmatmul.mubr.msk.f32.gmra.mrb[12].mxu1 %vm1087_vm4, %v14953_v37  ;;  %v13436_v58 = vpop.f32.mrb[9].mxu0  ;;  %4471 = vst.msk [vmem:[#allocation2 + $0x1e8] sm:$0xff] %vm1925_vm8, %v4375_v31  ;;  %v2091_v60 = vld [vmem:[#allocation2 + $0x228] sm:$0xff] }
 0x34d   :  { %v3142_v11 = vadd.f32 %v2927_v52, %v2088_v39  ;;  %9653 = vmatprep.mubr.msk.f32.mxu1 %vm1087_vm4, %v14954_v3  ;;  %4470 = vst.msk [vmem:[#allocation2 + $0x1e0] sm:$0xff] %vm1925_vm8, %v4374_v50  ;;  %v3331_v41 = vld [vmem:[#allocation2 + $0x1f8] sm:$0xff]  ;;  %v2090_v52 = vld [vmem:[#allocation2 + $0x220] sm:$0xff]  ;;  %v14956_v3 = vld [vmem:[#allocation201_spill] sm:$0xff] }
 0x34e   :  { %3239 = vst.msk [vmem:[#allocation2 + $0x218] sm:$0xff] %vm1925_vm8, %v3143_v7  ;;  %v4377_v24 = vadd.f32 %v12729_v55, %v3331_v41  ;;  %v3330_v43 = vld [vmem:[#allocation2 + $0x1f0] sm:$0xff] }
 0x34f   :  { %3238 = vst.msk [vmem:[#allocation2 + $0x210] sm:$0xff] %vm1925_vm8, %v3142_v11  ;;  %v9320_v27 = vpop.f32.mrb[164].mxu1  ;;  %v13445_v63 = vpop.f32.mrb[10].mxu0  ;;  %v4376_v31 = vadd.f32 %v12734_v12, %v3330_v43  ;;  %v14958_v7 = vld [vmem:[#allocation202_spill] sm:$0xff] }
 0x350   :  { %14955 = vst [vmem:[#allocation155_spill] sm:$0xff] %v13445_v63  ;;  %v3145_v39 = vadd.f32 %v9320_v27, %v2091_v60  ;;  %v2937_v37 = vpop.f32.mrb[165].mxu1  ;;  %9654 = vmatmul.mubr.msk.f32.gmra.mrb[14].mxu1 %vm1087_vm4, %v14956_v3  ;;  %v13450_v50 = vpop.f32.mrb[11].mxu0  ;;  %4473 = vst.msk [vmem:[#allocation2 + $0x1f8] sm:$0xff] %vm1925_vm8, %v4377_v24  ;;  %v14959_v12 = vld [vmem:[#allocation66_spill] sm:$0xff] }
 0x351   :  { %14957 = vst [vmem:[#allocation158_spill] sm:$0xff] %v13450_v50  ;;  %v3144_v55 = vadd.f32 %v2937_v37, %v2090_v52  ;;  %9656 = vmatprep.mubr.msk.f32.mxu1 %vm1087_vm4, %v14958_v7  ;;  %4472 = vst.msk [vmem:[#allocation2 + $0x1f0] sm:$0xff] %vm1925_vm8, %v4376_v31  ;;  %v3333_v11 = vld [vmem:[#allocation2 + $0x208] sm:$0xff]  ;;  %v2093_v60 = vld [vmem:[#allocation2 + $0x238] sm:$0xff] }
 0x352   :  { %3241 = vst.msk [vmem:[#allocation2 + $0x228] sm:$0xff] %vm1925_vm8, %v3145_v39  ;;  %v4379_v41 = vadd.f32 %v14959_v12, %v3333_v11  ;;  %v3332_v43 = vld [vmem:[#allocation2 + $0x200] sm:$0xff]  ;;  %v14961_v50 = vld [vmem:[#allocation62_spill] sm:$0xff] }
 0x353   :  { %3240 = vst.msk [vmem:[#allocation2 + $0x220] sm:$0xff] %vm1925_vm8, %v3144_v55  ;;  %v9323_v27 = vpop.f32.mrb[166].mxu1  ;;  %v13459_v3 = vpop.f32.mrb[12].mxu0  ;;  %v4378_v24 = vadd.f32 %v14961_v50, %v3332_v43  ;;  %v2092_v37 = vld [vmem:[#allocation2 + $0x230] sm:$0xff]  ;;  %v14962_v7 = vld [vmem:[#allocation203_spill] sm:$0xff]  ;;  %v14964_v11 = vld [vmem:[#allocation204_spill] sm:$0xff] }
 0x354   :  { %14960 = vst [vmem:[#allocation156_spill] sm:$0xff] %v13459_v3  ;;  %v3147_v52 = vadd.f32 %v9323_v27, %v2093_v60  ;;  %v2947_v63 = vpop.f32.mrb[167].mxu1  ;;  %9657 = vmatmul.mubr.msk.f32.gmra.mrb[16].mxu1 %vm1087_vm4, %v14962_v7  ;;  %v13464_v31 = vpop.f32.mrb[13].mxu0  ;;  %4475 = vst.msk [vmem:[#allocation2 + $0x208] sm:$0xff] %vm1925_vm8, %v4379_v41  ;;  %v14965_v50 = vld [vmem:[#allocation67_spill] sm:$0xff]  ;;  %v2095_v60 = vld [vmem:[#allocation2 + $0x248] sm:$0xff] }
 0x355   :  { %14963 = vst [vmem:[#allocation161_spill] sm:$0xff] %v13464_v31  ;;  %v3146_v39 = vadd.f32 %v2947_v63, %v2092_v37  ;;  %9659 = vmatprep.mubr.msk.f32.mxu1 %vm1087_vm4, %v14964_v11  ;;  %4474 = vst.msk [vmem:[#allocation2 + $0x200] sm:$0xff] %vm1925_vm8, %v4378_v24  ;;  %v3335_v55 = vld [vmem:[#allocation2 + $0x218] sm:$0xff]  ;;  %v2094_v37 = vld [vmem:[#allocation2 + $0x240] sm:$0xff] }
 0x356   :  { %3243 = vst.msk [vmem:[#allocation2 + $0x238] sm:$0xff] %vm1925_vm8, %v3147_v52  ;;  %v4381_v12 = vadd.f32 %v14965_v50, %v3335_v55  ;;  %v3334_v43 = vld [vmem:[#allocation2 + $0x210] sm:$0xff]  ;;  %v14967_v31 = vld [vmem:[#allocation63_spill] sm:$0xff] }
 0x357   :  { %3242 = vst.msk [vmem:[#allocation2 + $0x230] sm:$0xff] %vm1925_vm8, %v3146_v39  ;;  %v9326_v27 = vpop.f32.mrb[168].mxu1  ;;  %v13473_v7 = vpop.f32.mrb[14].mxu0  ;;  %v4380_v41 = vadd.f32 %v14967_v31, %v3334_v43  ;;  %v14968_v11 = vld [vmem:[#allocation205_spill] sm:$0xff]  ;;  %v14970_v55 = vld [vmem:[#allocation206_spill] sm:$0xff] }
 0x358   :  { %14966 = vst [vmem:[#allocation159_spill] sm:$0xff] %v13473_v7  ;;  %v3149_v63 = vadd.f32 %v9326_v27, %v2095_v60  ;;  %v2957_v3 = vpop.f32.mrb[169].mxu1  ;;  %9660 = vmatmul.mubr.msk.f32.gmra.mrb[18].mxu1 %vm1087_vm4, %v14968_v11  ;;  %v13478_v24 = vpop.f32.mrb[15].mxu0  ;;  %4477 = vst.msk [vmem:[#allocation2 + $0x218] sm:$0xff] %vm1925_vm8, %v4381_v12  ;;  %v14971_v31 = vld [vmem:[#allocation70_spill] sm:$0xff] }
 0x359   :  { %14969 = vst [vmem:[#allocation162_spill] sm:$0xff] %v13478_v24  ;;  %v3148_v52 = vadd.f32 %v2957_v3, %v2094_v37  ;;  %9662 = vmatprep.mubr.msk.f32.mxu1 %vm1087_vm4, %v14970_v55  ;;  %4476 = vst.msk [vmem:[#allocation2 + $0x210] sm:$0xff] %vm1925_vm8, %v4380_v41  ;;  %v3337_v39 = vld [vmem:[#allocation2 + $0x228] sm:$0xff]  ;;  %v2097_v60 = vld [vmem:[#allocation2 + $0x258] sm:$0xff] }
 0x35a   :  { %3245 = vst.msk [vmem:[#allocation2 + $0x248] sm:$0xff] %vm1925_vm8, %v3149_v63  ;;  %v4383_v50 = vadd.f32 %v14971_v31, %v3337_v39  ;;  %v3336_v43 = vld [vmem:[#allocation2 + $0x220] sm:$0xff]  ;;  %v2096_v37 = vld [vmem:[#allocation2 + $0x250] sm:$0xff] }
 0x35b   :  { %3244 = vst.msk [vmem:[#allocation2 + $0x240] sm:$0xff] %vm1925_vm8, %v3148_v52  ;;  %v9329_v27 = vpop.f32.mrb[170].mxu1  ;;  %v13487_v11 = vpop.f32.mrb[16].mxu0  ;;  %v14973_v24 = vld [vmem:[#allocation68_spill] sm:$0xff]  ;;  %v14974_v55 = vld [vmem:[#allocation207_spill] sm:$0xff] }
 0x35c   :  { %14972 = vst [vmem:[#allocation160_spill] sm:$0xff] %v13487_v11  ;;  %v4382_v12 = vadd.f32 %v14973_v24, %v3336_v43  ;;  %v3151_v3 = vadd.f32 %v9329_v27, %v2097_v60  ;;  %v2967_v7 = vpop.f32.mrb[171].mxu1  ;;  %9663 = vmatmul.mubr.msk.f32.gmra.mrb[20].mxu1 %vm1087_vm4, %v14974_v55  ;;  %v13492_v41 = vpop.f32.mrb[17].mxu0  ;;  %4479 = vst.msk [vmem:[#allocation2 + $0x228] sm:$0xff] %vm1925_vm8, %v4383_v50  ;;  %v14976_v39 = vld [vmem:[#allocation208_spill] sm:$0xff]  ;;  %v14977_v24 = vld [vmem:[#allocation71_spill] sm:$0xff] }
 0x35d   :  { %14975 = vst [vmem:[#allocation165_spill] sm:$0xff] %v13492_v41  ;;  %v3150_v63 = vadd.f32 %v2967_v7, %v2096_v37  ;;  %9665 = vmatprep.mubr.msk.f32.mxu1 %vm1087_vm4, %v14976_v39  ;;  %v3339_v52 = vld [vmem:[#allocation2 + $0x238] sm:$0xff]  ;;  %v2099_v60 = vld [vmem:[#allocation2 + $0x268] sm:$0xff]  ;;  %v2098_v37 = vld [vmem:[#allocation2 + $0x260] sm:$0xff] }
 0x35e   :  { %4478 = vst.msk [vmem:[#allocation2 + $0x220] sm:$0xff] %vm1925_vm8, %v4382_v12  ;;  %3247 = vst.msk [vmem:[#allocation2 + $0x258] sm:$0xff] %vm1925_vm8, %v3151_v3  ;;  %v4385_v31 = vadd.f32 %v14977_v24, %v3339_v52  ;;  %v3338_v43 = vld [vmem:[#allocation2 + $0x230] sm:$0xff]  ;;  %v14982_v52 = vld [vmem:[#allocation180_spill] sm:$0xff] }
 0x35f   :  { %3246 = vst.msk [vmem:[#allocation2 + $0x250] sm:$0xff] %vm1925_vm8, %v3150_v63  ;;  %v9332_v27 = vpop.f32.mrb[172].mxu1  ;;  %v13501_v55 = vpop.f32.mrb[18].mxu0  ;;  %v14979_v41 = vld [vmem:[#allocation69_spill] sm:$0xff] }
 0x360   :  { %14978 = vst [vmem:[#allocation163_spill] sm:$0xff] %v13501_v55  ;;  %v4384_v50 = vadd.f32 %v14979_v41, %v3338_v43  ;;  %v3153_v7 = vadd.f32 %v9332_v27, %v2099_v60  ;;  %v2977_v11 = vpop.f32.mrb[173].mxu1  ;;  %v14980_v39 = vld [vmem:[#allocation209_spill] sm:$0xff]  ;;  %v13506_v12 = vpop.f32.mrb[19].mxu0  ;;  %4481 = vst.msk [vmem:[#allocation2 + $0x238] sm:$0xff] %vm1925_vm8, %v4385_v31  ;;  %v14983_v41 = vld [vmem:[#allocation75_spill] sm:$0xff] }
 0x361   :  { %9666 = vmatmul.mubr.msk.f32.gmra.mrb[22].mxu1 %vm1087_vm4, %v14980_v39  ;;  %14981 = vst [vmem:[#allocation166_spill] sm:$0xff] %v13506_v12  ;;  %v3152_v3 = vadd.f32 %v2977_v11, %v2098_v37  ;;  %v3341_v63 = vld [vmem:[#allocation2 + $0x248] sm:$0xff]  ;;  %v2101_v60 = vld [vmem:[#allocation2 + $0x278] sm:$0xff]  ;;  %v2100_v37 = vld [vmem:[#allocation2 + $0x270] sm:$0xff] }
 0x362   :  { %9668 = vmatprep.mubr.msk.f32.mxu1 %vm1087_vm4, %v14982_v52  ;;  %4480 = vst.msk [vmem:[#allocation2 + $0x230] sm:$0xff] %vm1925_vm8, %v4384_v50  ;;  %3249 = vst.msk [vmem:[#allocation2 + $0x268] sm:$0xff] %vm1925_vm8, %v3153_v7  ;;  %v4387_v24 = vadd.f32 %v14983_v41, %v3341_v63  ;;  %v3340_v43 = vld [vmem:[#allocation2 + $0x240] sm:$0xff]  ;;  %v14988_v63 = vld [vmem:[#allocation186_spill] sm:$0xff] }
 0x363   :  { %3248 = vst.msk [vmem:[#allocation2 + $0x260] sm:$0xff] %vm1925_vm8, %v3152_v3  ;;  %v9335_v27 = vpop.f32.mrb[174].mxu1  ;;  %v13515_v39 = vpop.f32.mrb[20].mxu0  ;;  %v14985_v12 = vld [vmem:[#allocation72_spill] sm:$0xff]  ;;  %v14986_v52 = vld [vmem:[#allocation179_spill] sm:$0xff] }
 0x364   :  { %14984 = vst [vmem:[#allocation164_spill] sm:$0xff] %v13515_v39  ;;  %v4386_v31 = vadd.f32 %v14985_v12, %v3340_v43  ;;  %v3155_v11 = vadd.f32 %v9335_v27, %v2101_v60  ;;  %v2987_v55 = vpop.f32.mrb[175].mxu1  ;;  %v13520_v50 = vpop.f32.mrb[21].mxu0  ;;  %4483 = vst.msk [vmem:[#allocation2 + $0x248] sm:$0xff] %vm1925_vm8, %v4387_v24  ;;  %v14989_v12 = vld [vmem:[#allocation76_spill] sm:$0xff] }
 0x365   :  { %9669 = vmatmul.mubr.msk.f32.gmra.mrb[24].mxu1 %vm1087_vm4, %v14986_v52  ;;  %14987 = vst [vmem:[#allocation169_spill] sm:$0xff] %v13520_v50  ;;  %v3154_v7 = vadd.f32 %v2987_v55, %v2100_v37  ;;  %v3343_v3 = vld [vmem:[#allocation2 + $0x258] sm:$0xff]  ;;  %v2103_v60 = vld [vmem:[#allocation2 + $0x288] sm:$0xff]  ;;  %v2102_v37 = vld [vmem:[#allocation2 + $0x280] sm:$0xff] }
 0x366   :  { %9671 = vmatprep.mubr.msk.f32.mxu1 %vm1087_vm4, %v14988_v63  ;;  %4482 = vst.msk [vmem:[#allocation2 + $0x240] sm:$0xff] %vm1925_vm8, %v4386_v31  ;;  %3251 = vst.msk [vmem:[#allocation2 + $0x278] sm:$0xff] %vm1925_vm8, %v3155_v11  ;;  %v4389_v41 = vadd.f32 %v14989_v12, %v3343_v3  ;;  %v3342_v43 = vld [vmem:[#allocation2 + $0x250] sm:$0xff] }
 0x367   :  { %3250 = vst.msk [vmem:[#allocation2 + $0x270] sm:$0xff] %vm1925_vm8, %v3154_v7  ;;  %v9338_v27 = vpop.f32.mrb[176].mxu1  ;;  %v13529_v52 = vpop.f32.mrb[22].mxu0  ;;  %v14991_v50 = vld [vmem:[#allocation73_spill] sm:$0xff] }
 0x368   :  { %14990 = vst [vmem:[#allocation167_spill] sm:$0xff] %v13529_v52  ;;  %v4388_v24 = vadd.f32 %v14991_v50, %v3342_v43  ;;  %v3157_v55 = vadd.f32 %v9338_v27, %v2103_v60  ;;  %v2997_v39 = vpop.f32.mrb[177].mxu1  ;;  %v14992_v63 = vld [vmem:[#allocation185_spill] sm:$0xff]  ;;  %v13534_v31 = vpop.f32.mrb[23].mxu0  ;;  %4485 = vst.msk [vmem:[#allocation2 + $0x258] sm:$0xff] %vm1925_vm8, %v4389_v41  ;;  %v14995_v50 = vld [vmem:[#allocation80_spill] sm:$0xff] }
 0x369   :  { %9672 = vmatmul.mubr.msk.f32.gmra.mrb[26].mxu1 %vm1087_vm4, %v14992_v63  ;;  %14993 = vst [vmem:[#allocation171_spill] sm:$0xff] %v13534_v31  ;;  %v3156_v11 = vadd.f32 %v2997_v39, %v2102_v37  ;;  %v14994_v3 = vld [vmem:[#allocation13_spill] sm:$0xff]  ;;  %v2105_v60 = vld [vmem:[#allocation2 + $0x298] sm:$0xff] }
 0x36a   :  { %9674 = vmatprep.mubr.msk.f32.mxu1 %vm1087_vm4, %v14994_v3  ;;  %4484 = vst.msk [vmem:[#allocation2 + $0x250] sm:$0xff] %vm1925_vm8, %v4388_v24  ;;  %v3345_v7 = vld [vmem:[#allocation2 + $0x268] sm:$0xff]  ;;  %3253 = vst.msk [vmem:[#allocation2 + $0x288] sm:$0xff] %vm1925_vm8, %v3157_v55  ;;  %v3344_v43 = vld [vmem:[#allocation2 + $0x260] sm:$0xff] }
 0x36b   :  { %v4391_v12 = vadd.f32 %v14995_v50, %v3345_v7  ;;  %3252 = vst.msk [vmem:[#allocation2 + $0x280] sm:$0xff] %vm1925_vm8, %v3156_v11  ;;  %v9341_v27 = vpop.f32.mrb[178].mxu1  ;;  %v13543_v63 = vpop.f32.mrb[24].mxu0  ;;  %v14997_v31 = vld [vmem:[#allocation77_spill] sm:$0xff]  ;;  %v14998_v3 = vld [vmem:[#allocation23_spill] sm:$0xff] }
 0x36c   :  { %14996 = vst [vmem:[#allocation168_spill] sm:$0xff] %v13543_v63  ;;  %v4390_v41 = vadd.f32 %v14997_v31, %v3344_v43  ;;  %v3159_v39 = vadd.f32 %v9341_v27, %v2105_v60  ;;  %v2104_v37 = vld [vmem:[#allocation2 + $0x290] sm:$0xff]  ;;  %v3007_v52 = vpop.f32.mrb[179].mxu1  ;;  %v13548_v24 = vpop.f32.mrb[25].mxu0  ;;  %v15000_v7 = vld [vmem:[#allocation19_spill] sm:$0xff]  ;;  %v2107_v60 = vld [vmem:[#allocation2 + $0x2a8] sm:$0xff] }
 0x36d   :  { %9675 = vmatmul.mubr.msk.f32.gmra.mrb[28].mxu1 %vm1087_vm4, %v14998_v3  ;;  %14999 = vst [vmem:[#allocation172_spill] sm:$0xff] %v13548_v24  ;;  %4487 = vst.msk [vmem:[#allocation2 + $0x268] sm:$0xff] %vm1925_vm8, %v4391_v12  ;;  %v3158_v55 = vadd.f32 %v3007_v52, %v2104_v37  ;;  %v3347_v11 = vld [vmem:[#allocation2 + $0x278] sm:$0xff]  ;;  %v15001_v31 = vld [vmem:[#allocation81_spill] sm:$0xff] }
 0x36e   :  { %9677 = vmatprep.mubr.msk.f32.mxu1 %vm1087_vm4, %v15000_v7  ;;  %4486 = vst.msk [vmem:[#allocation2 + $0x260] sm:$0xff] %vm1925_vm8, %v4390_v41  ;;  %3255 = vst.msk [vmem:[#allocation2 + $0x298] sm:$0xff] %vm1925_vm8, %v3159_v39  ;;  %v4393_v50 = vadd.f32 %v15001_v31, %v3347_v11  ;;  %v3346_v43 = vld [vmem:[#allocation2 + $0x270] sm:$0xff]  ;;  %v2106_v37 = vld [vmem:[#allocation2 + $0x2a0] sm:$0xff] }
 0x36f   :  { %3254 = vst.msk [vmem:[#allocation2 + $0x290] sm:$0xff] %vm1925_vm8, %v3158_v55  ;;  %v9344_v27 = vpop.f32.mrb[180].mxu1  ;;  %v13557_v3 = vpop.f32.mrb[26].mxu0  ;;  %v15003_v24 = vld [vmem:[#allocation78_spill] sm:$0xff] }
 0x370   :  { %15002 = vst [vmem:[#allocation170_spill] sm:$0xff] %v13557_v3  ;;  %v4392_v12 = vadd.f32 %v15003_v24, %v3346_v43  ;;  %v3161_v52 = vadd.f32 %v9344_v27, %v2107_v60  ;;  %v3017_v63 = vpop.f32.mrb[181].mxu1  ;;  %v15004_v7 = vld [vmem:[#allocation26_spill] sm:$0xff]  ;;  %v13562_v41 = vpop.f32.mrb[27].mxu0  ;;  %4489 = vst.msk [vmem:[#allocation2 + $0x278] sm:$0xff] %vm1925_vm8, %v4393_v50  ;;  %v15007_v27 = vld [vmem:[#allocation84_spill] sm:$0xff] }
 0x371   :  { %9678 = vmatmul.mubr.msk.f32.gmra.mrb[30].mxu1 %vm1087_vm4, %v15004_v7  ;;  %15005 = vst [vmem:[#allocation175_spill] sm:$0xff] %v13562_v41  ;;  %v3160_v39 = vadd.f32 %v3017_v63, %v2106_v37  ;;  %v3349_v55 = vld [vmem:[#allocation2 + $0x288] sm:$0xff]  ;;  %v2109_v24 = vld [vmem:[#allocation2 + $0x2b8] sm:$0xff]  ;;  %v2108_v3 = vld [vmem:[#allocation2 + $0x2b0] sm:$0xff] }
 0x372   :  { %4488 = vst.msk [vmem:[#allocation2 + $0x270] sm:$0xff] %vm1925_vm8, %v4392_v12  ;;  %3257 = vst.msk [vmem:[#allocation2 + $0x2a8] sm:$0xff] %vm1925_vm8, %v3161_v52  ;;  %v4395_v11 = vadd.f32 %v12865_v59, %v3349_v55  ;;  %v3348_v31 = vld [vmem:[#allocation2 + $0x280] sm:$0xff]  ;;  %v15009_v52 = vld [vmem:[#allocation82_spill] sm:$0xff] }
 0x373   :  { %3256 = vst.msk [vmem:[#allocation2 + $0x2a0] sm:$0xff] %vm1925_vm8, %v3160_v39  ;;  %v9347_v43 = vpop.f32.mrb[182].mxu1  ;;  %v13569_v60 = vpop.f32.mrb[28].mxu0  ;;  %v4394_v7 = vadd.f32 %v15007_v27, %v3348_v31  ;;  %v2111_v55 = vld [vmem:[#allocation2 + $0x2c8] sm:$0xff] }
 0x374   :  { %15006 = vst [vmem:[#allocation173_spill] sm:$0xff] %v13569_v60  ;;  %v3163_v41 = vadd.f32 %v9347_v43, %v2109_v24  ;;  %v3027_v50 = vpop.f32.mrb[183].mxu1  ;;  %v13572_v63 = vpop.f32.mrb[29].mxu0  ;;  %4491 = vst.msk [vmem:[#allocation2 + $0x288] sm:$0xff] %vm1925_vm8, %v4395_v11  ;;  %v15011_v43 = vld [vmem:[#allocation88_spill] sm:$0xff] }
 0x375   :  { %15008 = vst [vmem:[#allocation176_spill] sm:$0xff] %v13572_v63  ;;  %v3162_v12 = vadd.f32 %v3027_v50, %v2108_v3  ;;  %4490 = vst.msk [vmem:[#allocation2 + $0x280] sm:$0xff] %vm1925_vm8, %v4394_v7  ;;  %v3351_v59 = vld [vmem:[#allocation2 + $0x298] sm:$0xff]  ;;  %v2110_v60 = vld [vmem:[#allocation2 + $0x2c0] sm:$0xff] }
 0x376   :  { %3259 = vst.msk [vmem:[#allocation2 + $0x2b8] sm:$0xff] %vm1925_vm8, %v3163_v41  ;;  %v4397_v37 = vadd.f32 %v15009_v52, %v3351_v59  ;;  %v3350_v39 = vld [vmem:[#allocation2 + $0x290] sm:$0xff]  ;;  %v15013_v50 = vld [vmem:[#allocation83_spill] sm:$0xff] }
 0x377   :  { %3258 = vst.msk [vmem:[#allocation2 + $0x2b0] sm:$0xff] %vm1925_vm8, %v3162_v12  ;;  %v9350_v31 = vpop.f32.mrb[184].mxu1  ;;  %v13579_v24 = vpop.f32.mrb[30].mxu0  ;;  %v4396_v27 = vadd.f32 %v15011_v43, %v3350_v39  ;;  %v2113_v52 = vld [vmem:[#allocation2 + $0x2d8] sm:$0xff] }
 0x378   :  { %15010 = vst [vmem:[#allocation174_spill] sm:$0xff] %v13579_v24  ;;  %v3165_v63 = vadd.f32 %v9350_v31, %v2111_v55  ;;  %v3037_v11 = vpop.f32.mrb[185].mxu1  ;;  %v13582_v3 = vpop.f32.mrb[31].mxu0  ;;  %4493 = vst.msk [vmem:[#allocation2 + $0x298] sm:$0xff] %vm1925_vm8, %v4397_v37  ;;  %v15015_v31 = vld [vmem:[#allocation86_spill] sm:$0xff] }
 0x379   :  { %15012 = vst [vmem:[#allocation181_spill] sm:$0xff] %v13582_v3  ;;  %v3164_v7 = vadd.f32 %v3037_v11, %v2110_v60  ;;  %4492 = vst.msk [vmem:[#allocation2 + $0x290] sm:$0xff] %vm1925_vm8, %v4396_v27  ;;  %v3353_v41 = vld [vmem:[#allocation2 + $0x2a8] sm:$0xff]  ;;  %v2112_v24 = vld [vmem:[#allocation2 + $0x2d0] sm:$0xff] }
 0x37a   :  { %3261 = vst.msk [vmem:[#allocation2 + $0x2c8] sm:$0xff] %vm1925_vm8, %v3165_v63  ;;  %v4399_v12 = vadd.f32 %v15013_v50, %v3353_v41  ;;  %v3352_v59 = vld [vmem:[#allocation2 + $0x2a0] sm:$0xff]  ;;  %v15017_v11 = vld [vmem:[#allocation89_spill] sm:$0xff] }
 0x37b   :  { %3260 = vst.msk [vmem:[#allocation2 + $0x2c0] sm:$0xff] %vm1925_vm8, %v3164_v7  ;;  %v9353_v39 = vpop.f32.mrb[186].mxu1  ;;  %v13589_v55 = vpop.f32.mrb[32].mxu0  ;;  %v4398_v43 = vadd.f32 %v15015_v31, %v3352_v59  ;;  %v2115_v50 = vld [vmem:[#allocation2 + $0x2e8] sm:$0xff] }
 0x37c   :  { %15014 = vst [vmem:[#allocation177_spill] sm:$0xff] %v13589_v55  ;;  %v3167_v3 = vadd.f32 %v9353_v39, %v2113_v52  ;;  %v3047_v37 = vpop.f32.mrb[187].mxu1  ;;  %v13592_v60 = vpop.f32.mrb[33].mxu0  ;;  %4495 = vst.msk [vmem:[#allocation2 + $0x2a8] sm:$0xff] %vm1925_vm8, %v4399_v12  ;;  %v15019_v39 = vld [vmem:[#allocation85_spill] sm:$0xff]  ;;  %v2114_v55 = vld [vmem:[#allocation2 + $0x2e0] sm:$0xff] }
 0x37d   :  { %15016 = vst [vmem:[#allocation182_spill] sm:$0xff] %v13592_v60  ;;  %v3166_v27 = vadd.f32 %v3047_v37, %v2112_v24  ;;  %4494 = vst.msk [vmem:[#allocation2 + $0x2a0] sm:$0xff] %vm1925_vm8, %v4398_v43  ;;  %v3355_v63 = vld [vmem:[#allocation2 + $0x2b8] sm:$0xff]  ;;  %v15021_v37 = vld [vmem:[#allocation93_spill] sm:$0xff] }
 0x37e   :  { %3263 = vst.msk [vmem:[#allocation2 + $0x2d8] sm:$0xff] %vm1925_vm8, %v3167_v3  ;;  %v4401_v7 = vadd.f32 %v15017_v11, %v3355_v63  ;;  %v3354_v41 = vld [vmem:[#allocation2 + $0x2b0] sm:$0xff]  ;;  %v2117_v11 = vld [vmem:[#allocation2 + $0x2f8] sm:$0xff] }
 0x37f   :  { %3262 = vst.msk [vmem:[#allocation2 + $0x2d0] sm:$0xff] %vm1925_vm8, %v3166_v27  ;;  %v9356_v59 = vpop.f32.mrb[188].mxu1  ;;  %v13599_v52 = vpop.f32.mrb[34].mxu0  ;;  %v4400_v31 = vadd.f32 %v15019_v39, %v3354_v41 }
 0x380   :  { %15018 = vst [vmem:[#allocation178_spill] sm:$0xff] %v13599_v52  ;;  %v3169_v60 = vadd.f32 %v9356_v59, %v2115_v50  ;;  %v3057_v12 = vpop.f32.mrb[189].mxu1  ;;  %v13602_v24 = vpop.f32.mrb[35].mxu0  ;;  %4497 = vst.msk [vmem:[#allocation2 + $0x2b8] sm:$0xff] %vm1925_vm8, %v4401_v7  ;;  %v15023_v59 = vld [vmem:[#allocation94_spill] sm:$0xff] }
 0x381   :  { %15020 = vst [vmem:[#allocation187_spill] sm:$0xff] %v13602_v24  ;;  %v3168_v43 = vadd.f32 %v3057_v12, %v2114_v55  ;;  %4496 = vst.msk [vmem:[#allocation2 + $0x2b0] sm:$0xff] %vm1925_vm8, %v4400_v31  ;;  %v3357_v3 = vld [vmem:[#allocation2 + $0x2c8] sm:$0xff]  ;;  %v2116_v52 = vld [vmem:[#allocation2 + $0x2f0] sm:$0xff] }
 0x382   :  { %3265 = vst.msk [vmem:[#allocation2 + $0x2e8] sm:$0xff] %vm1925_vm8, %v3169_v60  ;;  %v4403_v27 = vadd.f32 %v15021_v37, %v3357_v3  ;;  %v3356_v63 = vld [vmem:[#allocation2 + $0x2c0] sm:$0xff]  ;;  %v15025_v12 = vld [vmem:[#allocation90_spill] sm:$0xff]  ;;  %v4507_v37 = vld [vmem:[#allocation2 + $0x8] sm:$0xff] }
 0x383   :  { %3264 = vst.msk [vmem:[#allocation2 + $0x2e0] sm:$0xff] %vm1925_vm8, %v3168_v43  ;;  %v9359_v41 = vpop.f32.mrb[190].mxu1  ;;  %v13609_v50 = vpop.f32.mrb[36].mxu0  ;;  %v4402_v39 = vadd.f32 %v15023_v59, %v3356_v63 }
 0x384   :  { %15022 = vst [vmem:[#allocation183_spill] sm:$0xff] %v13609_v50  ;;  %v3171_v24 = vadd.f32 %v9359_v41, %v2117_v11  ;;  %v3067_v7 = vpop.f32.mrb[191].mxu1  ;;  %v13612_v55 = vpop.f32.mrb[37].mxu0  ;;  %4499 = vst.msk [vmem:[#allocation2 + $0x2c8] sm:$0xff] %vm1925_vm8, %v4403_v27  ;;  %v15027_v41 = vld [vmem:[#allocation87_spill] sm:$0xff] }
 0x385   :  { %15024 = vst [vmem:[#allocation188_spill] sm:$0xff] %v13612_v55  ;;  %v3170_v31 = vadd.f32 %v3067_v7, %v2116_v52  ;;  %4498 = vst.msk [vmem:[#allocation2 + $0x2c0] sm:$0xff] %vm1925_vm8, %v4402_v39  ;;  %v3359_v60 = vld [vmem:[#allocation2 + $0x2d8] sm:$0xff]  ;;  %v4506_v50 = vld [vmem:[#allocation2] sm:$0xff] }
 0x386   :  { %3267 = vst.msk [vmem:[#allocation2 + $0x2f8] sm:$0xff] %vm1925_vm8, %v3171_v24  ;;  %v4405_v43 = vadd.f32 %v15025_v12, %v3359_v60  ;;  %v3358_v3 = vld [vmem:[#allocation2 + $0x2d0] sm:$0xff]  ;;  %v15029_v7 = vld [vmem:[#allocation91_spill] sm:$0xff] }
 0x387   :  { %3266 = vst.msk [vmem:[#allocation2 + $0x2f0] sm:$0xff] %vm1925_vm8, %v3170_v31  ;;  %v9538_v63 = vpop.f32.mrb[192].mxu1  ;;  %v13619_v11 = vpop.f32.mrb[38].mxu0  ;;  %v4404_v59 = vadd.f32 %v15027_v41, %v3358_v3  ;;  %v4509_v12 = vld [vmem:[#allocation2 + $0x18] sm:$0xff] }
 0x388   :  { %15026 = vst [vmem:[#allocation184_spill] sm:$0xff] %v13619_v11  ;;  %v5553_v55 = vadd.f32 %v9538_v63, %v4507_v37  ;;  %v5073_v27 = vpop.f32.mrb[193].mxu1  ;;  %v13622_v52 = vpop.f32.mrb[39].mxu0  ;;  %4501 = vst.msk [vmem:[#allocation2 + $0x2d8] sm:$0xff] %vm1925_vm8, %v4405_v43  ;;  %v15030_v37 = vld [vmem:[#allocation92_spill] sm:$0xff]  ;;  %v4508_v11 = vld [vmem:[#allocation2 + $0x10] sm:$0xff] }
 0x389   :  { %15028 = vst [vmem:[#allocation191_spill] sm:$0xff] %v13622_v52  ;;  %v5552_v39 = vadd.f32 %v5073_v27, %v4506_v50  ;;  %4500 = vst.msk [vmem:[#allocation2 + $0x2d0] sm:$0xff] %vm1925_vm8, %v4404_v59  ;;  %v3361_v24 = vld [vmem:[#allocation2 + $0x2e8] sm:$0xff] }
 0x38a   :  { %5649 = vst.msk [vmem:[#allocation2 + $0x8] sm:$0xff] %vm1925_vm8, %v5553_v55  ;;  %v4407_v31 = vadd.f32 %v15029_v7, %v3361_v24  ;;  %v3360_v60 = vld [vmem:[#allocation2 + $0x2e0] sm:$0xff] }
 0x38b   :  { %5648 = vst.msk [vmem:[#allocation2] sm:$0xff] %vm1925_vm8, %v5552_v39  ;;  %v9541_v3 = vpop.f32.mrb[194].mxu1  ;;  %v4406_v63 = vadd.f32 %v15030_v37, %v3360_v60  ;;  %v15031_v55 = vld [vmem:[#allocation99_spill] sm:$0xff]  ;;  %v4511_v39 = vld [vmem:[#allocation2 + $0x28] sm:$0xff] }
 0x38c   :  { %v5555_v41 = vadd.f32 %v9541_v3, %v4509_v12  ;;  %v5083_v52 = vpop.f32.mrb[195].mxu1  ;;  %4503 = vst.msk [vmem:[#allocation2 + $0x2e8] sm:$0xff] %vm1925_vm8, %v4407_v31  ;;  %v15032_v7 = vld [vmem:[#allocation95_spill] sm:$0xff]  ;;  %v15033_v31 = vld [vmem:[#allocation96_spill] sm:$0xff] }
 0x38d   :  { %v5554_v50 = vadd.f32 %v5083_v52, %v4508_v11  ;;  %4502 = vst.msk [vmem:[#allocation2 + $0x2e0] sm:$0xff] %vm1925_vm8, %v4406_v63  ;;  %v3363_v43 = vld [vmem:[#allocation2 + $0x2f8] sm:$0xff]  ;;  %v4510_v3 = vld [vmem:[#allocation2 + $0x20] sm:$0xff] }
 0x38e   :  { %5651 = vst.msk [vmem:[#allocation2 + $0x18] sm:$0xff] %vm1925_vm8, %v5555_v41  ;;  %v4409_v59 = vadd.f32 %v15031_v55, %v3363_v43  ;;  %v3362_v27 = vld [vmem:[#allocation2 + $0x2f0] sm:$0xff]  ;;  %v15034_v43 = vld [vmem:[#allocation103_spill] sm:$0xff] }
 0x38f   :  { %5650 = vst.msk [vmem:[#allocation2 + $0x10] sm:$0xff] %vm1925_vm8, %v5554_v50  ;;  %v9544_v24 = vpop.f32.mrb[196].mxu1  ;;  %v4408_v60 = vadd.f32 %v15032_v7, %v3362_v27  ;;  %v4513_v55 = vld [vmem:[#allocation2 + $0x38] sm:$0xff] }
 0x390   :  { %v5557_v12 = vadd.f32 %v9544_v24, %v4511_v39  ;;  %v5093_v37 = vpop.f32.mrb[197].mxu1  ;;  %4505 = vst.msk [vmem:[#allocation2 + $0x2f8] sm:$0xff] %vm1925_vm8, %v4409_v59  ;;  %v4512_v24 = vld [vmem:[#allocation2 + $0x30] sm:$0xff] }
 0x391   :  { %v5745_v11 = vld [vmem:[#allocation2 + $0x8] sm:$0xff]  ;;  %v5556_v52 = vadd.f32 %v5093_v37, %v4510_v3  ;;  %4504 = vst.msk [vmem:[#allocation2 + $0x2f0] sm:$0xff] %vm1925_vm8, %v4408_v60 }
 0x392   :  { %v6790_v63 = vadd.f32 %v15033_v31, %v5745_v11  ;;  %v5744_v41 = vld [vmem:[#allocation2] sm:$0xff]  ;;  %5653 = vst.msk [vmem:[#allocation2 + $0x28] sm:$0xff] %vm1925_vm8, %v5557_v12  ;;  %v15036_v12 = vld [vmem:[#allocation126_spill] sm:$0xff] }
 0x393   :  { %v6789_v50 = vadd.f32 %v15034_v43, %v5744_v41  ;;  %5652 = vst.msk [vmem:[#allocation2 + $0x20] sm:$0xff] %vm1925_vm8, %v5556_v52  ;;  %v9547_v27 = vpop.f32.mrb[198].mxu1  ;;  %v15035_v3 = vld [vmem:[#allocation100_spill] sm:$0xff] }
 0x394   :  { %6886 = vst.msk [vmem:[#allocation2 + $0x8] sm:$0xff] %vm1925_vm8, %v6790_v63  ;;  %v5559_v39 = vadd.f32 %v9547_v27, %v4513_v55  ;;  %v5103_v59 = vpop.f32.mrb[199].mxu1  ;;  %v4515_v52 = vld [vmem:[#allocation2 + $0x48] sm:$0xff]  ;;  %v4514_v43 = vld [vmem:[#allocation2 + $0x40] sm:$0xff] }
 0x395   :  { %6885 = vst.msk [vmem:[#allocation2] sm:$0xff] %vm1925_vm8, %v6789_v50  ;;  %v5747_v7 = vld [vmem:[#allocation2 + $0x18] sm:$0xff]  ;;  %v5558_v60 = vadd.f32 %v5103_v59, %v4512_v24  ;;  %v13649_v27 = vld [vmem:[#allocation8] ss:$0 sm:$0xff] }
 0x396   :  { %v6792_v37 = vadd.f32 %v15035_v3, %v5747_v7  ;;  %v5746_v11 = vld [vmem:[#allocation2 + $0x10] sm:$0xff]  ;;  %5655 = vst.msk [vmem:[#allocation2 + $0x38] sm:$0xff] %vm1925_vm8, %v5559_v39  ;;  %v4517_v3 = vld [vmem:[#allocation2 + $0x58] sm:$0xff] }
 0x397   :  { %v6791_v31 = vadd.f32 %v15036_v12, %v5746_v11  ;;  %5654 = vst.msk [vmem:[#allocation2 + $0x30] sm:$0xff] %vm1925_vm8, %v5558_v60  ;;  %v9550_v41 = vpop.f32.mrb[200].mxu1 }
 0x398   :  { %6888 = vst.msk [vmem:[#allocation2 + $0x18] sm:$0xff] %vm1925_vm8, %v6792_v37  ;;  %v5561_v63 = vadd.f32 %v9550_v41, %v4515_v52  ;;  %v5113_v55 = vpop.f32.mrb[201].mxu1  ;;  %v4516_v52 = vld [vmem:[#allocation2 + $0x50] sm:$0xff] }
 0x399   :  { %6887 = vst.msk [vmem:[#allocation2 + $0x10] sm:$0xff] %vm1925_vm8, %v6791_v31  ;;  %v5749_v50 = vld [vmem:[#allocation2 + $0x28] sm:$0xff]  ;;  %v5560_v24 = vadd.f32 %v5113_v55, %v4514_v43 }
 0x39a   :  { %v6794_v59 = vadd.f32 %v12974_v8, %v5749_v50  ;;  %v5748_v39 = vld [vmem:[#allocation2 + $0x20] sm:$0xff]  ;;  %5657 = vst.msk [vmem:[#allocation2 + $0x48] sm:$0xff] %vm1925_vm8, %v5561_v63 }
 0x39b   :  { %v6982_v7 = vld [vmem:[#allocation2 + $0x8] sm:$0xff]  ;;  %v6793_v60 = vadd.f32 %v12979_v34, %v5748_v39  ;;  %5656 = vst.msk [vmem:[#allocation2 + $0x40] sm:$0xff] %vm1925_vm8, %v5560_v24  ;;  %v9553_v37 = vpop.f32.mrb[202].mxu1 }
 0x39c   :  { %v7085_v11 = vadd.f32 %v13649_v27, %v6982_v7  ;;  %v6981_v12 = vld [vmem:[#allocation2] sm:$0xff]  ;;  %6890 = vst.msk [vmem:[#allocation2 + $0x28] sm:$0xff] %vm1925_vm8, %v6794_v59  ;;  %v5563_v31 = vadd.f32 %v9553_v37, %v4517_v3  ;;  %v5123_v41 = vpop.f32.mrb[203].mxu1  ;;  %v4519_v59 = vld [vmem:[#allocation2 + $0x68] sm:$0xff] }
 0x39d   :  { %v7084_v8 = vadd.f32 %v13649_v27, %v6981_v12  ;;  %6889 = vst.msk [vmem:[#allocation2 + $0x20] sm:$0xff] %vm1925_vm8, %v6793_v60  ;;  %v5751_v63 = vld [vmem:[#allocation2 + $0x38] sm:$0xff]  ;;  %v5562_v43 = vadd.f32 %v5123_v41, %v4516_v52 }
 0x39e   :  { %v7181_v55 = vmax.f32 %v7085_v11, 0.0  ;;  %v6796_v34 = vadd.f32 %v12988_v17, %v5751_v63  ;;  %v5750_v50 = vld [vmem:[#allocation2 + $0x30] sm:$0xff]  ;;  %5659 = vst.msk [vmem:[#allocation2 + $0x58] sm:$0xff] %vm1925_vm8, %v5563_v31  ;;  %v4518_v17 = vld [vmem:[#allocation2 + $0x60] sm:$0xff] }
 0x39f   :  { %v7180_v24 = vmax.f32 %v7084_v8, 0.0  ;;  %v6984_v39 = vld [vmem:[#allocation2 + $0x18] sm:$0xff]  ;;  %v6795_v7 = vadd.f32 %v12993_v14, %v5750_v50  ;;  %5658 = vst.msk [vmem:[#allocation2 + $0x50] sm:$0xff] %vm1925_vm8, %v5562_v43  ;;  %v9556_v3 = vpop.f32.mrb[204].mxu1 }
 0x3a0   :  { %7277 = vst.msk [vmem:[#allocation2 + $0x8] sm:$0xff] %vm1925_vm8, %v7181_v55  ;;  %v7087_v60 = vadd.f32 %v13649_v27, %v6984_v39  ;;  %v6983_v37 = vld [vmem:[#allocation2 + $0x10] sm:$0xff]  ;;  %6892 = vst.msk [vmem:[#allocation2 + $0x38] sm:$0xff] %vm1925_vm8, %v6796_v34  ;;  %v5565_v11 = vadd.f32 %v9556_v3, %v4519_v59  ;;  %v5133_v12 = vpop.f32.mrb[205].mxu1  ;;  %v4521_v50 = vld [vmem:[#allocation2 + $0x78] sm:$0xff] }
 0x3a1   :  { %7276 = vst.msk [vmem:[#allocation2] sm:$0xff] %vm1925_vm8, %v7180_v24  ;;  %v7086_v31 = vadd.f32 %v13649_v27, %v6983_v37  ;;  %6891 = vst.msk [vmem:[#allocation2 + $0x30] sm:$0xff] %vm1925_vm8, %v6795_v7  ;;  %v5753_v14 = vld [vmem:[#allocation2 + $0x48] sm:$0xff]  ;;  %v5564_v52 = vadd.f32 %v5133_v12, %v4518_v17 }
 0x3a2   :  { %v7183_v41 = vmax.f32 %v7087_v60, 0.0  ;;  %v6798_v8 = vadd.f32 %v13002_v36, %v5753_v14  ;;  %v5752_v63 = vld [vmem:[#allocation2 + $0x40] sm:$0xff]  ;;  %5661 = vst.msk [vmem:[#allocation2 + $0x68] sm:$0xff] %vm1925_vm8, %v5565_v11  ;;  %v4520_v36 = vld [vmem:[#allocation2 + $0x70] sm:$0xff] }
 0x3a3   :  { %v7182_v43 = vmax.f32 %v7086_v31, 0.0  ;;  %v6986_v55 = vld [vmem:[#allocation2 + $0x28] sm:$0xff]  ;;  %v6797_v34 = vadd.f32 %v13007_v57, %v5752_v63  ;;  %5660 = vst.msk [vmem:[#allocation2 + $0x60] sm:$0xff] %vm1925_vm8, %v5564_v52  ;;  %v9559_v24 = vpop.f32.mrb[206].mxu1  ;;  %v4522_v63 = vld [vmem:[#allocation2 + $0x80] sm:$0xff] }
 0x3a4   :  { %7279 = vst.msk [vmem:[#allocation2 + $0x18] sm:$0xff] %vm1925_vm8, %v7183_v41  ;;  %v7089_v39 = vadd.f32 %v13649_v27, %v6986_v55  ;;  %v6985_v7 = vld [vmem:[#allocation2 + $0x20] sm:$0xff]  ;;  %6894 = vst.msk [vmem:[#allocation2 + $0x48] sm:$0xff] %vm1925_vm8, %v6798_v8  ;;  %v5567_v59 = vadd.f32 %v9559_v24, %v4521_v50  ;;  %v5143_v3 = vpop.f32.mrb[207].mxu1  ;;  %v4523_v41 = vld [vmem:[#allocation2 + $0x88] sm:$0xff] }
 0x3a5   :  { %7278 = vst.msk [vmem:[#allocation2 + $0x10] sm:$0xff] %vm1925_vm8, %v7182_v43  ;;  %v7088_v60 = vadd.f32 %v13649_v27, %v6985_v7  ;;  %6893 = vst.msk [vmem:[#allocation2 + $0x40] sm:$0xff] %vm1925_vm8, %v6797_v34  ;;  %v5755_v57 = vld [vmem:[#allocation2 + $0x58] sm:$0xff]  ;;  %v5566_v37 = vadd.f32 %v5143_v3, %v4520_v36 }
 0x3a6   :  { %v7185_v11 = vmax.f32 %v7089_v39, 0.0  ;;  %v6800_v17 = vadd.f32 %v13016_v32, %v5755_v57  ;;  %v5754_v12 = vld [vmem:[#allocation2 + $0x50] sm:$0xff]  ;;  %5663 = vst.msk [vmem:[#allocation2 + $0x78] sm:$0xff] %vm1925_vm8, %v5567_v59 }
 0x3a7   :  { %v7184_v31 = vmax.f32 %v7088_v60, 0.0  ;;  %v6988_v14 = vld [vmem:[#allocation2 + $0x38] sm:$0xff]  ;;  %v6799_v52 = vadd.f32 %v13021_v26, %v5754_v12  ;;  %5662 = vst.msk [vmem:[#allocation2 + $0x70] sm:$0xff] %vm1925_vm8, %v5566_v37  ;;  %v9562_v8 = vpop.f32.mrb[208].mxu1 }
 0x3a8   :  { %v7372_v43 = vld [vmem:[#allocation2] ss:$2 sm:$0xff]  ;;  %v7468_v55 = vld [vmem:[#allocation2 + $0x1] ss:$2 sm:$0xff]  ;;  %7281 = vst.msk [vmem:[#allocation2 + $0x28] sm:$0xff] %vm1925_vm8, %v7185_v11  ;;  %v7091_v34 = vadd.f32 %v13649_v27, %v6988_v14  ;;  %v6987_v50 = vld [vmem:[#allocation2 + $0x30] sm:$0xff]  ;;  %v5569_v32 = vadd.f32 %v9562_v8, %v4523_v41 }
 0x3a9   :  { %6896 = vst.msk [vmem:[#allocation2 + $0x58] sm:$0xff] %vm1925_vm8, %v6800_v17  ;;  %v5153_v24 = vpop.f32.mrb[209].mxu1  ;;  %v7563_v39 = vmax.f32 %v7372_v43, %v7468_v55  ;;  %7280 = vst.msk [vmem:[#allocation2 + $0x20] sm:$0xff] %vm1925_vm8, %v7184_v31  ;;  %v7090_v26 = vadd.f32 %v13649_v27, %v6987_v50  ;;  %v5757_v7 = vld [vmem:[#allocation2 + $0x68] sm:$0xff]  ;;  %v4525_v17 = vld [vmem:[#allocation2 + $0x98] sm:$0xff] }
 0x3aa   :  { %6895 = vst.msk [vmem:[#allocation2 + $0x50] sm:$0xff] %vm1925_vm8, %v6799_v52  ;;  %v5568_v59 = vadd.f32 %v5153_v24, %v4522_v63  ;;  %v7187_v36 = vmax.f32 %v7091_v34, 0.0  ;;  %v6802_v3 = vadd.f32 %v13030_v30, %v5757_v7  ;;  %v5756_v60 = vld [vmem:[#allocation2 + $0x60] sm:$0xff]  ;;  %5665 = vst.msk [vmem:[#allocation2 + $0x88] sm:$0xff] %vm1925_vm8, %v5569_v32  ;;  %v4524_v31 = vld [vmem:[#allocation2 + $0x90] sm:$0xff] }
 0x3ab   :  { %7611 = vst.msk [vmem:[%s14317_s5] sm:$0xff] %vm1925_vm8, %v7563_v39  ;;  %v7186_v57 = vmax.f32 %v7090_v26, 0.0  ;;  %v6990_v37 = vld [vmem:[#allocation2 + $0x48] sm:$0xff]  ;;  %v6801_v11 = vadd.f32 %v13035_v44, %v5756_v60  ;;  %v9565_v12 = vpop.f32.mrb[210].mxu1 }
 0x3ac   :  { %5664 = vst.msk [vmem:[#allocation2 + $0x80] sm:$0xff] %vm1925_vm8, %v5568_v59  ;;  %v7374_v14 = vld [vmem:[#allocation2 + $0x10] ss:$2 sm:$0xff]  ;;  %v7470_v52 = vld [vmem:[#allocation2 + $0x11] ss:$2 sm:$0xff]  ;;  %7283 = vst.msk [vmem:[#allocation2 + $0x38] sm:$0xff] %vm1925_vm8, %v7187_v36  ;;  %v7093_v30 = vadd.f32 %v13649_v27, %v6990_v37  ;;  %v5571_v8 = vadd.f32 %v9565_v12, %v4525_v17 }
 0x3ad   :  { %v6989_v41 = vld [vmem:[#allocation2 + $0x40] sm:$0xff]  ;;  %6898 = vst.msk [vmem:[#allocation2 + $0x68] sm:$0xff] %vm1925_vm8, %v6802_v3  ;;  %v5163_v63 = vpop.f32.mrb[211].mxu1  ;;  %v7564_v43 = vmax.f32 %v7374_v14, %v7470_v52  ;;  %7282 = vst.msk [vmem:[#allocation2 + $0x30] sm:$0xff] %vm1925_vm8, %v7186_v57  ;;  %v5759_v55 = vld [vmem:[#allocation2 + $0x78] sm:$0xff] }
 0x3ae   :  { %v7092_v44 = vadd.f32 %v13649_v27, %v6989_v41  ;;  %6897 = vst.msk [vmem:[#allocation2 + $0x60] sm:$0xff] %vm1925_vm8, %v6801_v11  ;;  %v5570_v34 = vadd.f32 %v5163_v63, %v4524_v31  ;;  %v7189_v50 = vmax.f32 %v7093_v30, 0.0  ;;  %v6804_v32 = vadd.f32 %v13044_v4, %v5759_v55  ;;  %v5758_v24 = vld [vmem:[#allocation2 + $0x70] sm:$0xff]  ;;  %5667 = vst.msk [vmem:[#allocation2 + $0x98] sm:$0xff] %vm1925_vm8, %v5571_v8  ;;  %v4527_v59 = vld [vmem:[#allocation2 + $0xa8] sm:$0xff] }
 0x3af   :  { %7612 = vst.msk [vmem:[%s14317_s5 + $0x8] sm:$0xff] %vm1925_vm8, %v7564_v43  ;;  %v6803_v7 = vadd.f32 %v13049_v21, %v5758_v24  ;;  %v9568_v36 = vpop.f32.mrb[212].mxu1  ;;  %v4526_v3 = vld [vmem:[#allocation2 + $0xa0] sm:$0xff] }
 0x3b0   :  { %v7188_v39 = vmax.f32 %v7092_v44, 0.0  ;;  %v6992_v26 = vld [vmem:[#allocation2 + $0x58] sm:$0xff]  ;;  %5666 = vst.msk [vmem:[#allocation2 + $0x90] sm:$0xff] %vm1925_vm8, %v5570_v34  ;;  %v7376_v60 = vld [vmem:[#allocation2 + $0x20] ss:$2 sm:$0xff]  ;;  %7285 = vst.msk [vmem:[#allocation2 + $0x48] sm:$0xff] %vm1925_vm8, %v7189_v50  ;;  %v5573_v11 = vadd.f32 %v9568_v36, %v4527_v59 }
 0x3b1   :  { %v7472_v57 = vld [vmem:[#allocation2 + $0x21] ss:$2 sm:$0xff]  ;;  %v7095_v4 = vadd.f32 %v13649_v27, %v6992_v26  ;;  %v6991_v37 = vld [vmem:[#allocation2 + $0x50] sm:$0xff]  ;;  %6900 = vst.msk [vmem:[#allocation2 + $0x78] sm:$0xff] %vm1925_vm8, %v6804_v32  ;;  %v5173_v17 = vpop.f32.mrb[213].mxu1  ;;  %6899 = vst.msk [vmem:[#allocation2 + $0x70] sm:$0xff] %vm1925_vm8, %v6803_v7 }
 0x3b2   :  { %v7565_v12 = vmax.f32 %v7376_v60, %v7472_v57  ;;  %7284 = vst.msk [vmem:[#allocation2 + $0x40] sm:$0xff] %vm1925_vm8, %v7188_v39  ;;  %v7094_v21 = vadd.f32 %v13649_v27, %v6991_v37  ;;  %v5761_v31 = vld [vmem:[#allocation2 + $0x88] sm:$0xff]  ;;  %v5572_v14 = vadd.f32 %v5173_v17, %v4526_v3  ;;  %5669 = vst.msk [vmem:[#allocation2 + $0xa8] sm:$0xff] %vm1925_vm8, %v5573_v11  ;;  %v4529_v44 = vld [vmem:[#allocation2 + $0xb8] sm:$0xff] }
 0x3b3   :  { %v7191_v52 = vmax.f32 %v7095_v4, 0.0  ;;  %v6806_v30 = vadd.f32 %v13058_v35, %v5761_v31  ;;  %v5760_v41 = vld [vmem:[#allocation2 + $0x80] sm:$0xff]  ;;  %v9571_v55 = vpop.f32.mrb[214].mxu1  ;;  %v4528_v34 = vld [vmem:[#allocation2 + $0xb0] sm:$0xff]  ;;  %v4531_v17 = vld [vmem:[#allocation2 + $0xc8] sm:$0xff] }
 0x3b4   :  { %7613 = vst.msk [vmem:[%s14317_s5 + $0x10] sm:$0xff] %vm1925_vm8, %v7565_v12  ;;  %v7190_v8 = vmax.f32 %v7094_v21, 0.0  ;;  %v6994_v63 = vld [vmem:[#allocation2 + $0x68] sm:$0xff]  ;;  %v6805_v43 = vadd.f32 %v13063_v0, %v5760_v41  ;;  %5668 = vst.msk [vmem:[#allocation2 + $0xa0] sm:$0xff] %vm1925_vm8, %v5572_v14  ;;  %v7378_v50 = vld [vmem:[#allocation2 + $0x30] ss:$2 sm:$0xff]  ;;  %v5575_v39 = vadd.f32 %v9571_v55, %v4529_v44 }
 0x3b5   :  { %v7474_v32 = vld [vmem:[#allocation2 + $0x31] ss:$2 sm:$0xff]  ;;  %7287 = vst.msk [vmem:[#allocation2 + $0x58] sm:$0xff] %vm1925_vm8, %v7191_v52  ;;  %v7097_v35 = vadd.f32 %v13649_v27, %v6994_v63  ;;  %v6993_v24 = vld [vmem:[#allocation2 + $0x60] sm:$0xff]  ;;  %6902 = vst.msk [vmem:[#allocation2 + $0x88] sm:$0xff] %vm1925_vm8, %v6806_v30  ;;  %v5183_v26 = vpop.f32.mrb[215].mxu1 }
 0x3b6   :  { %v7566_v7 = vmax.f32 %v7378_v50, %v7474_v32  ;;  %7286 = vst.msk [vmem:[#allocation2 + $0x50] sm:$0xff] %vm1925_vm8, %v7190_v8  ;;  %v7096_v0 = vadd.f32 %v13649_v27, %v6993_v24  ;;  %6901 = vst.msk [vmem:[#allocation2 + $0x80] sm:$0xff] %vm1925_vm8, %v6805_v43  ;;  %v5763_v59 = vld [vmem:[#allocation2 + $0x98] sm:$0xff]  ;;  %v5574_v36 = vadd.f32 %v5183_v26, %v4528_v34  ;;  %v4530_v21 = vld [vmem:[#allocation2 + $0xc0] sm:$0xff] }
 0x3b7   :  { %v7193_v3 = vmax.f32 %v7097_v35, 0.0  ;;  %v6808_v60 = vadd.f32 %v13072_v15, %v5763_v59  ;;  %v5762_v57 = vld [vmem:[#allocation2 + $0x90] sm:$0xff]  ;;  %5671 = vst.msk [vmem:[#allocation2 + $0xb8] sm:$0xff] %vm1925_vm8, %v5575_v39  ;;  %v9574_v12 = vpop.f32.mrb[216].mxu1  ;;  %v4533_v24 = vld [vmem:[#allocation2 + $0xd8] sm:$0xff] }
 0x3b8   :  { %7614 = vst.msk [vmem:[%s14317_s5 + $0x18] sm:$0xff] %vm1925_vm8, %v7566_v7  ;;  %v7192_v4 = vmax.f32 %v7096_v0, 0.0  ;;  %v6996_v37 = vld [vmem:[#allocation2 + $0x78] sm:$0xff]  ;;  %v6807_v11 = vadd.f32 %v13077_v49, %v5762_v57  ;;  %5670 = vst.msk [vmem:[#allocation2 + $0xb0] sm:$0xff] %vm1925_vm8, %v5574_v36  ;;  %v6995_v52 = vld [vmem:[#allocation2 + $0x70] sm:$0xff]  ;;  %v5577_v30 = vadd.f32 %v9574_v12, %v4531_v17  ;;  %v5193_v41 = vpop.f32.mrb[217].mxu1 }
 0x3b9   :  { %v7380_v31 = vld [vmem:[#allocation2 + $0x40] ss:$2 sm:$0xff]  ;;  %v7476_v14 = vld [vmem:[#allocation2 + $0x41] ss:$2 sm:$0xff]  ;;  %7289 = vst.msk [vmem:[#allocation2 + $0x68] sm:$0xff] %vm1925_vm8, %v7193_v3  ;;  %v7099_v15 = vadd.f32 %v13649_v27, %v6996_v37  ;;  %6904 = vst.msk [vmem:[#allocation2 + $0x98] sm:$0xff] %vm1925_vm8, %v6808_v60  ;;  %v7098_v49 = vadd.f32 %v13649_v27, %v6995_v52  ;;  %v5576_v43 = vadd.f32 %v5193_v41, %v4530_v21 }
 0x3ba   :  { %v7567_v8 = vmax.f32 %v7380_v31, %v7476_v14  ;;  %7288 = vst.msk [vmem:[#allocation2 + $0x60] sm:$0xff] %vm1925_vm8, %v7192_v4  ;;  %6903 = vst.msk [vmem:[#allocation2 + $0x90] sm:$0xff] %vm1925_vm8, %v6807_v11  ;;  %v5765_v63 = vld [vmem:[#allocation2 + $0xa8] sm:$0xff]  ;;  %v4532_v26 = vld [vmem:[#allocation2 + $0xd0] sm:$0xff] }
 0x3bb   :  { %v7195_v44 = vmax.f32 %v7099_v15, 0.0  ;;  %v6810_v55 = vadd.f32 %v13086_v48, %v5765_v63  ;;  %v5764_v34 = vld [vmem:[#allocation2 + $0xa0] sm:$0xff]  ;;  %5673 = vst.msk [vmem:[#allocation2 + $0xc8] sm:$0xff] %vm1925_vm8, %v5577_v30  ;;  %v7194_v50 = vmax.f32 %v7098_v49, 0.0  ;;  %5672 = vst.msk [vmem:[#allocation2 + $0xc0] sm:$0xff] %vm1925_vm8, %v5576_v43  ;;  %v9577_v39 = vpop.f32.mrb[218].mxu1 }
 0x3bc   :  { %7615 = vst.msk [vmem:[%s14317_s5 + $0x20] sm:$0xff] %vm1925_vm8, %v7567_v8  ;;  %v6998_v32 = vld [vmem:[#allocation2 + $0x88] sm:$0xff]  ;;  %v6809_v35 = vadd.f32 %v13091_v22, %v5764_v34  ;;  %v5579_v36 = vadd.f32 %v9577_v39, %v4533_v24  ;;  %v5203_v3 = vpop.f32.mrb[219].mxu1  ;;  %v4534_v52 = vld [vmem:[#allocation2 + $0xe0] sm:$0xff] }
 0x3bd   :  { %v7382_v7 = vld [vmem:[#allocation2 + $0x50] ss:$2 sm:$0xff]  ;;  %v7478_v0 = vld [vmem:[#allocation2 + $0x51] ss:$2 sm:$0xff]  ;;  %7291 = vst.msk [vmem:[#allocation2 + $0x78] sm:$0xff] %vm1925_vm8, %v7195_v44  ;;  %v7101_v48 = vadd.f32 %v13649_v27, %v6998_v32  ;;  %v6997_v59 = vld [vmem:[#allocation2 + $0x80] sm:$0xff]  ;;  %v5578_v4 = vadd.f32 %v5203_v3, %v4532_v26 }
 0x3be   :  { %6906 = vst.msk [vmem:[#allocation2 + $0xa8] sm:$0xff] %vm1925_vm8, %v6810_v55  ;;  %v7568_v60 = vmax.f32 %v7382_v7, %v7478_v0  ;;  %7290 = vst.msk [vmem:[#allocation2 + $0x70] sm:$0xff] %vm1925_vm8, %v7194_v50  ;;  %v7100_v22 = vadd.f32 %v13649_v27, %v6997_v59  ;;  %v5767_v57 = vld [vmem:[#allocation2 + $0xb8] sm:$0xff]  ;;  %v4535_v14 = vld [vmem:[#allocation2 + $0xe8] sm:$0xff] }
 0x3bf   :  { %6905 = vst.msk [vmem:[#allocation2 + $0xa0] sm:$0xff] %vm1925_vm8, %v6809_v35  ;;  %v7197_v37 = vmax.f32 %v7101_v48, 0.0  ;;  %v6812_v11 = vadd.f32 %v13100_v18, %v5767_v57  ;;  %v5766_v17 = vld [vmem:[#allocation2 + $0xb0] sm:$0xff]  ;;  %5675 = vst.msk [vmem:[#allocation2 + $0xd8] sm:$0xff] %vm1925_vm8, %v5579_v36  ;;  %v9580_v15 = vpop.f32.mrb[220].mxu1  ;;  %v4537_v26 = vld [vmem:[#allocation2 + $0xf8] sm:$0xff] }
 0x3c0   :  { %7616 = vst.msk [vmem:[%s14317_s5 + $0x28] sm:$0xff] %vm1925_vm8, %v7568_v60  ;;  %v7196_v12 = vmax.f32 %v7100_v22, 0.0  ;;  %v7000_v21 = vld [vmem:[#allocation2 + $0x98] sm:$0xff]  ;;  %v6811_v31 = vadd.f32 %v13105_v9, %v5766_v17  ;;  %5674 = vst.msk [vmem:[#allocation2 + $0xd0] sm:$0xff] %vm1925_vm8, %v5578_v4  ;;  %v5581_v49 = vadd.f32 %v9580_v15, %v4535_v14  ;;  %v5213_v63 = vpop.f32.mrb[221].mxu1  ;;  %v4536_v0 = vld [vmem:[#allocation2 + $0xf0] sm:$0xff] }
 0x3c1   :  { %v7384_v30 = vld [vmem:[#allocation2 + $0x60] ss:$2 sm:$0xff]  ;;  %v7480_v41 = vld [vmem:[#allocation2 + $0x61] ss:$2 sm:$0xff]  ;;  %7293 = vst.msk [vmem:[#allocation2 + $0x88] sm:$0xff] %vm1925_vm8, %v7197_v37  ;;  %v7103_v18 = vadd.f32 %v13649_v27, %v7000_v21  ;;  %v6999_v8 = vld [vmem:[#allocation2 + $0x90] sm:$0xff]  ;;  %v5580_v55 = vadd.f32 %v5213_v63, %v4534_v52 }
 0x3c2   :  { %6908 = vst.msk [vmem:[#allocation2 + $0xb8] sm:$0xff] %vm1925_vm8, %v6812_v11  ;;  %v7569_v43 = vmax.f32 %v7384_v30, %v7480_v41  ;;  %7292 = vst.msk [vmem:[#allocation2 + $0x80] sm:$0xff] %vm1925_vm8, %v7196_v12  ;;  %v7102_v9 = vadd.f32 %v13649_v27, %v6999_v8  ;;  %v5769_v44 = vld [vmem:[#allocation2 + $0xc8] sm:$0xff]  ;;  %v5768_v32 = vld [vmem:[#allocation2 + $0xc0] sm:$0xff] }
 0x3c3   :  { %6907 = vst.msk [vmem:[#allocation2 + $0xb0] sm:$0xff] %vm1925_vm8, %v6811_v31  ;;  %v7199_v34 = vmax.f32 %v7103_v18, 0.0  ;;  %v6814_v50 = vadd.f32 %v13114_v46, %v5769_v44  ;;  %5677 = vst.msk [vmem:[#allocation2 + $0xe8] sm:$0xff] %vm1925_vm8, %v5581_v49  ;;  %v6813_v39 = vadd.f32 %v13120_v38, %v5768_v32  ;;  %v9583_v7 = vpop.f32.mrb[222].mxu1  ;;  %v4539_v14 = vld [vmem:[#allocation2 + $0x108] sm:$0xff]  ;;  %v4538_v52 = vld [vmem:[#allocation2 + $0x100] sm:$0xff] }
 0x3c4   :  { %7617 = vst.msk [vmem:[%s14317_s5 + $0x30] sm:$0xff] %vm1925_vm8, %v7569_v43  ;;  %v7198_v35 = vmax.f32 %v7102_v9, 0.0  ;;  %5676 = vst.msk [vmem:[#allocation2 + $0xe0] sm:$0xff] %vm1925_vm8, %v5580_v55  ;;  %v5583_v3 = vadd.f32 %v9583_v7, %v4537_v26  ;;  %v5223_v60 = vpop.f32.mrb[223].mxu1  ;;  %v4540_v26 = vld [vmem:[#allocation2 + $0x110] sm:$0xff] }
 0x3c5   :  { %v7002_v24 = vld [vmem:[#allocation2 + $0xa8] sm:$0xff]  ;;  %v7386_v48 = vld [vmem:[#allocation2 + $0x70] ss:$2 sm:$0xff]  ;;  %v7482_v59 = vld [vmem:[#allocation2 + $0x71] ss:$2 sm:$0xff]  ;;  %7295 = vst.msk [vmem:[#allocation2 + $0x98] sm:$0xff] %vm1925_vm8, %v7199_v34  ;;  %v5582_v4 = vadd.f32 %v5223_v60, %v4536_v0 }
 0x3c6   :  { %v7105_v46 = vadd.f32 %v13649_v27, %v7002_v24  ;;  %v7001_v36 = vld [vmem:[#allocation2 + $0xa0] sm:$0xff]  ;;  %6910 = vst.msk [vmem:[#allocation2 + $0xc8] sm:$0xff] %vm1925_vm8, %v6814_v50  ;;  %v7570_v22 = vmax.f32 %v7386_v48, %v7482_v59  ;;  %7294 = vst.msk [vmem:[#allocation2 + $0x90] sm:$0xff] %vm1925_vm8, %v7198_v35  ;;  %v5771_v57 = vld [vmem:[#allocation2 + $0xd8] sm:$0xff] }
 0x3c7   :  { %v7104_v38 = vadd.f32 %v13649_v27, %v7001_v36  ;;  %6909 = vst.msk [vmem:[#allocation2 + $0xc0] sm:$0xff] %vm1925_vm8, %v6813_v39  ;;  %v6816_v11 = vadd.f32 %v13130_v1, %v5771_v57  ;;  %v5770_v17 = vld [vmem:[#allocation2 + $0xd0] sm:$0xff]  ;;  %5679 = vst.msk [vmem:[#allocation2 + $0xf8] sm:$0xff] %vm1925_vm8, %v5583_v3  ;;  %v9586_v15 = vpop.f32.mrb[224].mxu1  ;;  %v4541_v24 = vld [vmem:[#allocation2 + $0x118] sm:$0xff] }
 0x3c8   :  { %v7201_v37 = vmax.f32 %v7105_v46, 0.0  ;;  %7618 = vst.msk [vmem:[%s14317_s5 + $0x38] sm:$0xff] %vm1925_vm8, %v7570_v22  ;;  %v6815_v31 = vadd.f32 %v13138_v54, %v5770_v17  ;;  %5678 = vst.msk [vmem:[#allocation2 + $0xf0] sm:$0xff] %vm1925_vm8, %v5582_v4  ;;  %v5585_v8 = vadd.f32 %v9586_v15, %v4539_v14  ;;  %v5233_v49 = vpop.f32.mrb[225].mxu1  ;;  %v4543_v17 = vld [vmem:[#allocation2 + $0x128] sm:$0xff] }
 0x3c9   :  { %v7200_v12 = vmax.f32 %v7104_v38, 0.0  ;;  %v7004_v21 = vld [vmem:[#allocation2 + $0xb8] sm:$0xff]  ;;  %v7388_v30 = vld [vmem:[#allocation2 + $0x80] ss:$2 sm:$0xff]  ;;  %v7484_v41 = vld [vmem:[#allocation2 + $0x81] ss:$2 sm:$0xff]  ;;  %v5584_v9 = vadd.f32 %v5233_v49, %v4538_v52 }
 0x3ca   :  { %7297 = vst.msk [vmem:[#allocation2 + $0xa8] sm:$0xff] %vm1925_vm8, %v7201_v37  ;;  %v7107_v1 = vadd.f32 %v13649_v27, %v7004_v21  ;;  %v7003_v18 = vld [vmem:[#allocation2 + $0xb0] sm:$0xff]  ;;  %6912 = vst.msk [vmem:[#allocation2 + $0xd8] sm:$0xff] %vm1925_vm8, %v6816_v11  ;;  %v7571_v63 = vmax.f32 %v7388_v30, %v7484_v41  ;;  %v5773_v43 = vld [vmem:[#allocation2 + $0xe8] sm:$0xff] }
 0x3cb   :  { %7296 = vst.msk [vmem:[#allocation2 + $0xa0] sm:$0xff] %vm1925_vm8, %v7200_v12  ;;  %v7106_v54 = vadd.f32 %v13649_v27, %v7003_v18  ;;  %6911 = vst.msk [vmem:[#allocation2 + $0xd0] sm:$0xff] %vm1925_vm8, %v6815_v31  ;;  %v6818_v55 = vadd.f32 %v13148_v6, %v5773_v43  ;;  %v5772_v34 = vld [vmem:[#allocation2 + $0xe0] sm:$0xff]  ;;  %v9589_v39 = vpop.f32.mrb[226].mxu1 }
 0x3cc   :  { %v7203_v44 = vmax.f32 %v7107_v1, 0.0  ;;  %5681 = vst.msk [vmem:[#allocation2 + $0x108] sm:$0xff] %vm1925_vm8, %v5585_v8  ;;  %7619 = vst.msk [vmem:[%s14317_s5 + $0x40] sm:$0xff] %vm1925_vm8, %v7571_v63  ;;  %v6817_v35 = vadd.f32 %v13154_v16, %v5772_v34  ;;  %v5587_v59 = vadd.f32 %v9589_v39, %v4541_v24  ;;  %v5243_v46 = vpop.f32.mrb[227].mxu1  ;;  %v4542_v21 = vld [vmem:[#allocation2 + $0x120] sm:$0xff] }
 0x3cd   :  { %v7202_v50 = vmax.f32 %v7106_v54, 0.0  ;;  %v7006_v32 = vld [vmem:[#allocation2 + $0xc8] sm:$0xff]  ;;  %5680 = vst.msk [vmem:[#allocation2 + $0x100] sm:$0xff] %vm1925_vm8, %v5584_v9  ;;  %v7390_v7 = vld [vmem:[#allocation2 + $0x90] ss:$2 sm:$0xff]  ;;  %6914 = vst.msk [vmem:[#allocation2 + $0xe8] sm:$0xff] %vm1925_vm8, %v6818_v55  ;;  %v5586_v60 = vadd.f32 %v5243_v46, %v4540_v26 }
 0x3ce   :  { %v7486_v0 = vld [vmem:[#allocation2 + $0x91] ss:$2 sm:$0xff]  ;;  %7299 = vst.msk [vmem:[#allocation2 + $0xb8] sm:$0xff] %vm1925_vm8, %v7203_v44  ;;  %v7109_v6 = vadd.f32 %v13649_v27, %v7006_v32  ;;  %v7005_v48 = vld [vmem:[#allocation2 + $0xc0] sm:$0xff]  ;;  %6913 = vst.msk [vmem:[#allocation2 + $0xe0] sm:$0xff] %vm1925_vm8, %v6817_v35 }
 0x3cf   :  { %v7572_v36 = vmax.f32 %v7390_v7, %v7486_v0  ;;  %7298 = vst.msk [vmem:[#allocation2 + $0xb0] sm:$0xff] %vm1925_vm8, %v7202_v50  ;;  %v7108_v16 = vadd.f32 %v13649_v27, %v7005_v48  ;;  %v5775_v3 = vld [vmem:[#allocation2 + $0xf8] sm:$0xff]  ;;  %v5774_v57 = vld [vmem:[#allocation2 + $0xf0] sm:$0xff]  ;;  %5683 = vst.msk [vmem:[#allocation2 + $0x118] sm:$0xff] %vm1925_vm8, %v5587_v59  ;;  %v9592_v12 = vpop.f32.mrb[228].mxu1 }
 0x3d0   :  { %v7205_v22 = vmax.f32 %v7109_v6, 0.0  ;;  %v6820_v38 = vadd.f32 %v13164_v20, %v5775_v3  ;;  %v6819_v11 = vadd.f32 %v13170_v61, %v5774_v57  ;;  %5682 = vst.msk [vmem:[#allocation2 + $0x110] sm:$0xff] %vm1925_vm8, %v5586_v60  ;;  %v5589_v52 = vadd.f32 %v9592_v12, %v4543_v17  ;;  %v5253_v30 = vpop.f32.mrb[229].mxu1  ;;  %v15037_v9 = vld [vmem:[#allocation128_spill] sm:$0xff]  ;;  %v4545_v55 = vld [vmem:[#allocation2 + $0x138] sm:$0xff]  ;;  %v4544_v50 = vld [vmem:[#allocation2 + $0x130] sm:$0xff] }
 0x3d1   :  { %7620 = vst.msk [vmem:[%s14317_s5 + $0x48] sm:$0xff] %vm1925_vm8, %v7572_v36  ;;  %v7204_v4 = vmax.f32 %v7108_v16, 0.0  ;;  %v7008_v37 = vld [vmem:[#allocation2 + $0xd8] sm:$0xff]  ;;  %v5588_v18 = vadd.f32 %v5253_v30, %v4542_v21 }
 0x3d2   :  { %v7392_v31 = vld [vmem:[#allocation2 + $0xa0] ss:$2 sm:$0xff]  ;;  %v7488_v14 = vld [vmem:[#allocation2 + $0xa1] ss:$2 sm:$0xff]  ;;  %7301 = vst.msk [vmem:[#allocation2 + $0xc8] sm:$0xff] %vm1925_vm8, %v7205_v22  ;;  %v7111_v20 = vadd.f32 %v13649_v27, %v7008_v37  ;;  %v7007_v15 = vld [vmem:[#allocation2 + $0xd0] sm:$0xff] }
 0x3d3   :  { %6916 = vst.msk [vmem:[#allocation2 + $0xf8] sm:$0xff] %vm1925_vm8, %v6820_v38  ;;  %v7573_v41 = vmax.f32 %v7392_v31, %v7488_v14  ;;  %7300 = vst.msk [vmem:[#allocation2 + $0xc0] sm:$0xff] %vm1925_vm8, %v7204_v4  ;;  %v7110_v61 = vadd.f32 %v13649_v27, %v7007_v15  ;;  %v5777_v1 = vld [vmem:[#allocation2 + $0x108] sm:$0xff]  ;;  %v9595_v34 = vpop.f32.mrb[230].mxu1  ;;  %v15038_v46 = vld [vmem:[#allocation138_spill] sm:$0xff] }
 0x3d4   :  { %6915 = vst.msk [vmem:[#allocation2 + $0xf0] sm:$0xff] %vm1925_vm8, %v6819_v11  ;;  %v7207_v8 = vmax.f32 %v7111_v20, 0.0  ;;  %v6822_v49 = vadd.f32 %v13180_v42, %v5777_v1  ;;  %v5776_v63 = vld [vmem:[#allocation2 + $0x100] sm:$0xff]  ;;  %5685 = vst.msk [vmem:[#allocation2 + $0x128] sm:$0xff] %vm1925_vm8, %v5589_v52  ;;  %v7010_v43 = vld [vmem:[#allocation2 + $0xe8] sm:$0xff]  ;;  %v5591_v39 = vadd.f32 %v9595_v34, %v4545_v55  ;;  %v5263_v26 = vpop.f32.mrb[231].mxu1 }
 0x3d5   :  { %7621 = vst.msk [vmem:[%s14317_s5 + $0x50] sm:$0xff] %vm1925_vm8, %v7573_v41  ;;  %v7206_v54 = vmax.f32 %v7110_v61, 0.0  ;;  %v6821_v44 = vadd.f32 %v15037_v9, %v5776_v63  ;;  %5684 = vst.msk [vmem:[#allocation2 + $0x120] sm:$0xff] %vm1925_vm8, %v5588_v18  ;;  %v7113_v42 = vadd.f32 %v13649_v27, %v7010_v43  ;;  %v7009_v24 = vld [vmem:[#allocation2 + $0xe0] sm:$0xff]  ;;  %v5590_v48 = vadd.f32 %v5263_v26, %v4544_v50  ;;  %v4547_v38 = vld [vmem:[#allocation2 + $0x148] sm:$0xff] }
 0x3d6   :  { %v7394_v32 = vld [vmem:[#allocation2 + $0xb0] ss:$2 sm:$0xff]  ;;  %v7490_v35 = vld [vmem:[#allocation2 + $0xb1] ss:$2 sm:$0xff]  ;;  %7303 = vst.msk [vmem:[#allocation2 + $0xd8] sm:$0xff] %vm1925_vm8, %v7207_v8  ;;  %6918 = vst.msk [vmem:[#allocation2 + $0x108] sm:$0xff] %vm1925_vm8, %v6822_v49  ;;  %v7112_v0 = vadd.f32 %v13649_v27, %v7009_v24 }
 0x3d7   :  { %v7574_v7 = vmax.f32 %v7394_v32, %v7490_v35  ;;  %7302 = vst.msk [vmem:[#allocation2 + $0xd0] sm:$0xff] %vm1925_vm8, %v7206_v54  ;;  %6917 = vst.msk [vmem:[#allocation2 + $0x100] sm:$0xff] %vm1925_vm8, %v6821_v44  ;;  %v5779_v6 = vld [vmem:[#allocation2 + $0x118] sm:$0xff]  ;;  %v7209_v59 = vmax.f32 %v7113_v42, 0.0  ;;  %v5778_v16 = vld [vmem:[#allocation2 + $0x110] sm:$0xff]  ;;  %v9598_v57 = vpop.f32.mrb[232].mxu1 }
 0x3d8   :  { %v6824_v36 = vadd.f32 %v15038_v46, %v5779_v6  ;;  %5687 = vst.msk [vmem:[#allocation2 + $0x138] sm:$0xff] %vm1925_vm8, %v5591_v39  ;;  %v7208_v3 = vmax.f32 %v7112_v0, 0.0  ;;  %v6823_v22 = vadd.f32 %v13203_v5, %v5778_v16  ;;  %5686 = vst.msk [vmem:[#allocation2 + $0x130] sm:$0xff] %vm1925_vm8, %v5590_v48  ;;  %v4546_v4 = vld [vmem:[#allocation2 + $0x140] sm:$0xff]  ;;  %v5593_v21 = vadd.f32 %v9598_v57, %v4547_v38  ;;  %v5273_v31 = vpop.f32.mrb[233].mxu1  ;;  %v15040_v8 = vld [vmem:[#allocation141_spill] sm:$0xff] }
 0x3d9   :  { %7622 = vst.msk [vmem:[%s14317_s5 + $0x58] sm:$0xff] %vm1925_vm8, %v7574_v7  ;;  %7305 = vst.msk [vmem:[#allocation2 + $0xe8] sm:$0xff] %vm1925_vm8, %v7209_v59  ;;  %v5592_v15 = vadd.f32 %v5273_v31, %v4546_v4  ;;  %v15039_v30 = vld [vmem:[#allocation143_spill] sm:$0xff]  ;;  %v4548_v43 = vld [vmem:[#allocation2 + $0x150] sm:$0xff] }
 0x3da   :  { %v7012_v60 = vld [vmem:[#allocation2 + $0xf8] sm:$0xff]  ;;  %v7396_v37 = vld [vmem:[#allocation2 + $0xc0] ss:$2 sm:$0xff]  ;;  %v7492_v11 = vld [vmem:[#allocation2 + $0xc1] ss:$2 sm:$0xff]  ;;  %6920 = vst.msk [vmem:[#allocation2 + $0x118] sm:$0xff] %vm1925_vm8, %v6824_v36 }
 0x3db   :  { %v7115_v17 = vadd.f32 %v13649_v27, %v7012_v60  ;;  %v7011_v12 = vld [vmem:[#allocation2 + $0xf0] sm:$0xff]  ;;  %v7575_v14 = vmax.f32 %v7396_v37, %v7492_v11  ;;  %7304 = vst.msk [vmem:[#allocation2 + $0xe0] sm:$0xff] %vm1925_vm8, %v7208_v3  ;;  %6919 = vst.msk [vmem:[#allocation2 + $0x110] sm:$0xff] %vm1925_vm8, %v6823_v22  ;;  %v5781_v20 = vld [vmem:[#allocation2 + $0x128] sm:$0xff]  ;;  %v9601_v54 = vpop.f32.mrb[234].mxu1 }
 0x3dc   :  { %v7114_v5 = vadd.f32 %v13649_v27, %v7011_v12  ;;  %v6826_v41 = vadd.f32 %v15039_v30, %v5781_v20  ;;  %v5780_v61 = vld [vmem:[#allocation2 + $0x120] sm:$0xff]  ;;  %5689 = vst.msk [vmem:[#allocation2 + $0x148] sm:$0xff] %vm1925_vm8, %v5593_v21  ;;  %5688 = vst.msk [vmem:[#allocation2 + $0x140] sm:$0xff] %vm1925_vm8, %v5592_v15  ;;  %v4549_v63 = vld [vmem:[#allocation2 + $0x158] sm:$0xff]  ;;  %v5283_v32 = vpop.f32.mrb[235].mxu1 }
 0x3dd   :  { %v7211_v52 = vmax.f32 %v7115_v17, 0.0  ;;  %7623 = vst.msk [vmem:[%s14317_s5 + $0x60] sm:$0xff] %vm1925_vm8, %v7575_v14  ;;  %v7014_v18 = vld [vmem:[#allocation2 + $0x108] sm:$0xff]  ;;  %v6825_v49 = vadd.f32 %v15040_v8, %v5780_v61  ;;  %v5595_v50 = vadd.f32 %v9601_v54, %v4549_v63  ;;  %v5594_v39 = vadd.f32 %v5283_v32, %v4548_v43  ;;  %v15042_v46 = vld [vmem:[#allocation147_spill] sm:$0xff]  ;;  %v4552_v8 = vld [vmem:[#allocation2 + $0x170] sm:$0xff] }
 0x3de   :  { %v7210_v1 = vmax.f32 %v7114_v5, 0.0  ;;  %v7398_v9 = vld [vmem:[#allocation2 + $0xd0] ss:$2 sm:$0xff]  ;;  %v7494_v44 = vld [vmem:[#allocation2 + $0xd1] ss:$2 sm:$0xff]  ;;  %v7117_v55 = vadd.f32 %v13649_v27, %v7014_v18  ;;  %v7013_v34 = vld [vmem:[#allocation2 + $0x100] sm:$0xff] }
 0x3df   :  { %7307 = vst.msk [vmem:[#allocation2 + $0xf8] sm:$0xff] %vm1925_vm8, %v7211_v52  ;;  %6922 = vst.msk [vmem:[#allocation2 + $0x128] sm:$0xff] %vm1925_vm8, %v6826_v41  ;;  %v7576_v35 = vmax.f32 %v7398_v9, %v7494_v44  ;;  %v7116_v42 = vadd.f32 %v13649_v27, %v7013_v34  ;;  %v5783_v24 = vld [vmem:[#allocation2 + $0x138] sm:$0xff]  ;;  %v15041_v7 = vld [vmem:[#allocation145_spill] sm:$0xff]  ;;  %v9604_v3 = vpop.f32.mrb[236].mxu1 }
 0x3e0   :  { %7306 = vst.msk [vmem:[#allocation2 + $0xf0] sm:$0xff] %vm1925_vm8, %v7210_v1  ;;  %6921 = vst.msk [vmem:[#allocation2 + $0x120] sm:$0xff] %vm1925_vm8, %v6825_v49  ;;  %v7213_v26 = vmax.f32 %v7117_v55, 0.0  ;;  %v6828_v0 = vadd.f32 %v15041_v7, %v5783_v24  ;;  %v5782_v6 = vld [vmem:[#allocation2 + $0x130] sm:$0xff]  ;;  %v4551_v16 = vld [vmem:[#allocation2 + $0x168] sm:$0xff]  ;;  %v5293_v11 = vpop.f32.mrb[237].mxu1 }
 0x3e1   :  { %5691 = vst.msk [vmem:[#allocation2 + $0x158] sm:$0xff] %vm1925_vm8, %v5595_v50  ;;  %7624 = vst.msk [vmem:[%s14317_s5 + $0x68] sm:$0xff] %vm1925_vm8, %v7576_v35  ;;  %v7212_v48 = vmax.f32 %v7116_v42, 0.0  ;;  %v7016_v59 = vld [vmem:[#allocation2 + $0x118] sm:$0xff]  ;;  %v6827_v36 = vadd.f32 %v15042_v46, %v5782_v6  ;;  %v4550_v60 = vld [vmem:[#allocation2 + $0x160] sm:$0xff]  ;;  %v5597_v37 = vadd.f32 %v9604_v3, %v4551_v16 }
 0x3e2   :  { %5690 = vst.msk [vmem:[#allocation2 + $0x150] sm:$0xff] %vm1925_vm8, %v5594_v39  ;;  %v7400_v22 = vld [vmem:[#allocation2 + $0xe0] ss:$2 sm:$0xff]  ;;  %v7496_v38 = vld [vmem:[#allocation2 + $0xe1] ss:$2 sm:$0xff]  ;;  %7309 = vst.msk [vmem:[#allocation2 + $0x108] sm:$0xff] %vm1925_vm8, %v7213_v26  ;;  %v7119_v57 = vadd.f32 %v13649_v27, %v7016_v59  ;;  %v5596_v31 = vadd.f32 %v5293_v11, %v4550_v60 }
 0x3e3   :  { %v7015_v4 = vld [vmem:[#allocation2 + $0x110] sm:$0xff]  ;;  %6924 = vst.msk [vmem:[#allocation2 + $0x138] sm:$0xff] %vm1925_vm8, %v6828_v0  ;;  %v7577_v17 = vmax.f32 %v7400_v22, %v7496_v38  ;;  %7308 = vst.msk [vmem:[#allocation2 + $0x100] sm:$0xff] %vm1925_vm8, %v7212_v48  ;;  %v5785_v21 = vld [vmem:[#allocation2 + $0x148] sm:$0xff]  ;;  %v9607_v18 = vpop.f32.mrb[238].mxu1 }
 0x3e4   :  { %v7118_v12 = vadd.f32 %v13649_v27, %v7015_v4  ;;  %6923 = vst.msk [vmem:[#allocation2 + $0x130] sm:$0xff] %vm1925_vm8, %v6827_v36  ;;  %v7215_v14 = vmax.f32 %v7119_v57, 0.0  ;;  %v15043_v5 = vld [vmem:[#allocation149_spill] sm:$0xff]  ;;  %v5784_v15 = vld [vmem:[#allocation2 + $0x140] sm:$0xff]  ;;  %5693 = vst.msk [vmem:[#allocation2 + $0x168] sm:$0xff] %vm1925_vm8, %v5597_v37  ;;  %v5303_v44 = vpop.f32.mrb[239].mxu1 }
 0x3e5   :  { %v6830_v20 = vadd.f32 %v15043_v5, %v5785_v21  ;;  %7625 = vst.msk [vmem:[%s14317_s5 + $0x70] sm:$0xff] %vm1925_vm8, %v7577_v17  ;;  %v15044_v41 = vld [vmem:[#allocation146_spill] sm:$0xff]  ;;  %5692 = vst.msk [vmem:[#allocation2 + $0x160] sm:$0xff] %vm1925_vm8, %v5596_v31  ;;  %v5598_v32 = vadd.f32 %v5303_v44, %v4552_v8  ;;  %v15046_v0 = vld [vmem:[#allocation148_spill] sm:$0xff] }
 0x3e6   :  { %v7214_v52 = vmax.f32 %v7118_v12, 0.0  ;;  %v7018_v30 = vld [vmem:[#allocation2 + $0x128] sm:$0xff]  ;;  %v6829_v61 = vadd.f32 %v15044_v41, %v5784_v15  ;;  %v4553_v1 = vld [vmem:[#allocation2 + $0x178] sm:$0xff]  ;;  %7311 = vst.msk [vmem:[#allocation2 + $0x118] sm:$0xff] %vm1925_vm8, %v7215_v14  ;;  %v4554_v46 = vld [vmem:[#allocation2 + $0x180] sm:$0xff] }
 0x3e7   :  { %v7402_v49 = vld [vmem:[#allocation2 + $0xf0] ss:$2 sm:$0xff]  ;;  %v7498_v63 = vld [vmem:[#allocation2 + $0xf1] ss:$2 sm:$0xff]  ;;  %v7121_v54 = vadd.f32 %v13649_v27, %v7018_v30  ;;  %v7017_v43 = vld [vmem:[#allocation2 + $0x120] sm:$0xff]  ;;  %6926 = vst.msk [vmem:[#allocation2 + $0x148] sm:$0xff] %vm1925_vm8, %v6830_v20  ;;  %v5599_v9 = vadd.f32 %v9607_v18, %v4553_v1 }
 0x3e8   :  { %v7578_v55 = vmax.f32 %v7402_v49, %v7498_v63  ;;  %7310 = vst.msk [vmem:[#allocation2 + $0x110] sm:$0xff] %vm1925_vm8, %v7214_v52  ;;  %v7120_v34 = vadd.f32 %v13649_v27, %v7017_v43  ;;  %6925 = vst.msk [vmem:[#allocation2 + $0x140] sm:$0xff] %vm1925_vm8, %v6829_v61  ;;  %v5787_v50 = vld [vmem:[#allocation2 + $0x158] sm:$0xff]  ;;  %v4555_v48 = vld [vmem:[#allocation2 + $0x188] sm:$0xff]  ;;  %v9610_v59 = vpop.f32.mrb[240].mxu1 }
 0x3e9   :  { %v7217_v35 = vmax.f32 %v7121_v54, 0.0  ;;  %v15045_v42 = vld [vmem:[#allocation150_spill] sm:$0xff]  ;;  %5695 = vst.msk [vmem:[#allocation2 + $0x178] sm:$0xff] %vm1925_vm8, %v5599_v9  ;;  %5694 = vst.msk [vmem:[#allocation2 + $0x170] sm:$0xff] %vm1925_vm8, %v5598_v32  ;;  %v5601_v22 = vadd.f32 %v9610_v59, %v4555_v48  ;;  %v5313_v38 = vpop.f32.mrb[241].mxu1  ;;  %v15047_v12 = vld [vmem:[#allocation153_spill] sm:$0xff] }
 0x3ea   :  { %v6832_v24 = vadd.f32 %v15045_v42, %v5787_v50  ;;  %v5786_v39 = vld [vmem:[#allocation2 + $0x150] sm:$0xff]  ;;  %7626 = vst.msk [vmem:[%s14317_s5 + $0x78] sm:$0xff] %vm1925_vm8, %v7578_v55  ;;  %v7216_v26 = vmax.f32 %v7120_v34, 0.0  ;;  %v7020_v7 = vld [vmem:[#allocation2 + $0x138] sm:$0xff]  ;;  %v7404_v36 = vld [vmem:[#allocation2 + $0x100] ss:$2 sm:$0xff]  ;;  %v5600_v11 = vadd.f32 %v5313_v38, %v4554_v46 }
 0x3eb   :  { %v6831_v6 = vadd.f32 %v15046_v0, %v5786_v39  ;;  %v7500_v16 = vld [vmem:[#allocation2 + $0x101] ss:$2 sm:$0xff]  ;;  %7313 = vst.msk [vmem:[#allocation2 + $0x128] sm:$0xff] %vm1925_vm8, %v7217_v35  ;;  %v7123_v3 = vadd.f32 %v13649_v27, %v7020_v7  ;;  %v7019_v60 = vld [vmem:[#allocation2 + $0x130] sm:$0xff]  ;;  %5697 = vst.msk [vmem:[#allocation2 + $0x188] sm:$0xff] %vm1925_vm8, %v5601_v22  ;;  %v9613_v15 = vpop.f32.mrb[242].mxu1 }
 0x3ec   :  { %6928 = vst.msk [vmem:[#allocation2 + $0x158] sm:$0xff] %vm1925_vm8, %v6832_v24  ;;  %v7579_v57 = vmax.f32 %v7404_v36, %v7500_v16  ;;  %7312 = vst.msk [vmem:[#allocation2 + $0x120] sm:$0xff] %vm1925_vm8, %v7216_v26  ;;  %v7122_v4 = vadd.f32 %v13649_v27, %v7019_v60  ;;  %v5789_v37 = vld [vmem:[#allocation2 + $0x168] sm:$0xff]  ;;  %v5788_v31 = vld [vmem:[#allocation2 + $0x160] sm:$0xff]  ;;  %v5323_v49 = vpop.f32.mrb[243].mxu1 }
 0x3ed   :  { %6927 = vst.msk [vmem:[#allocation2 + $0x150] sm:$0xff] %vm1925_vm8, %v6831_v6  ;;  %v7219_v17 = vmax.f32 %v7123_v3, 0.0  ;;  %v6834_v21 = vadd.f32 %v15047_v12, %v5789_v37  ;;  %v6833_v20 = vadd.f32 %v13283_v2, %v5788_v31  ;;  %5696 = vst.msk [vmem:[#allocation2 + $0x180] sm:$0xff] %vm1925_vm8, %v5600_v11  ;;  %v4557_v27 = vld [vmem:[#allocation2 + $0x198] sm:$0xff]  ;;  %v4556_v52 = vld [vmem:[#allocation2 + $0x190] sm:$0xff] }
 0x3ee   :  { %7627 = vst.msk [vmem:[%s14317_s5 + $0x80] sm:$0xff] %vm1925_vm8, %v7579_v57  ;;  %v7218_v14 = vmax.f32 %v7122_v4, 0.0  ;;  %v7022_v5 = vld [vmem:[#allocation2 + $0x148] sm:$0xff]  ;;  %v5603_v8 = vadd.f32 %v9613_v15, %v4557_v27  ;;  %v5602_v43 = vadd.f32 %v5323_v49, %v4556_v52  ;;  %v15048_v44 = vld [vmem:[#allocation151_spill] sm:$0xff]  ;;  %v15049_v60 = vld [vmem:[#allocation154_spill] sm:$0xff] }
 0x3ef   :  { %v7406_v30 = vld [vmem:[#allocation2 + $0x110] ss:$2 sm:$0xff]  ;;  %v7502_v41 = vld [vmem:[#allocation2 + $0x111] ss:$2 sm:$0xff]  ;;  %7315 = vst.msk [vmem:[#allocation2 + $0x138] sm:$0xff] %vm1925_vm8, %v7219_v17  ;;  %v7021_v18 = vld [vmem:[#allocation2 + $0x140] sm:$0xff] }
 0x3f0   :  { %v13923_v61 = vld [vmem:[#allocation8] ss:$0 sm:$0xff]  ;;  %6930 = vst.msk [vmem:[#allocation2 + $0x168] sm:$0xff] %vm1925_vm8, %v6834_v21  ;;  %v7580_v63 = vmax.f32 %v7406_v30, %v7502_v41  ;;  %7314 = vst.msk [vmem:[#allocation2 + $0x130] sm:$0xff] %vm1925_vm8, %v7218_v14  ;;  %v5791_v54 = vld [vmem:[#allocation2 + $0x178] sm:$0xff]  ;;  %v9616_v24 = vpop.f32.mrb[244].mxu1 }
 0x3f1   :  { %v7125_v1 = vadd.f32 %v13923_v61, %v7022_v5  ;;  %v7124_v2 = vadd.f32 %v13923_v61, %v7021_v18  ;;  %6929 = vst.msk [vmem:[#allocation2 + $0x160] sm:$0xff] %vm1925_vm8, %v6833_v20  ;;  %v6836_v55 = vadd.f32 %v15048_v44, %v5791_v54  ;;  %v5790_v34 = vld [vmem:[#allocation2 + $0x170] sm:$0xff]  ;;  %5699 = vst.msk [vmem:[#allocation2 + $0x198] sm:$0xff] %vm1925_vm8, %v5603_v8  ;;  %v4559_v42 = vld [vmem:[#allocation2 + $0x1a8] sm:$0xff]  ;;  %v5333_v59 = vpop.f32.mrb[245].mxu1 }
 0x3f2   :  { %7628 = vst.msk [vmem:[%s14317_s5 + $0x88] sm:$0xff] %vm1925_vm8, %v7580_v63  ;;  %v6835_v35 = vadd.f32 %v13300_v23, %v5790_v34  ;;  %5698 = vst.msk [vmem:[#allocation2 + $0x190] sm:$0xff] %vm1925_vm8, %v5602_v43  ;;  %v4558_v39 = vld [vmem:[#allocation2 + $0x1a0] sm:$0xff]  ;;  %v5605_v48 = vadd.f32 %v9616_v24, %v4559_v42  ;;  %v5793_v36 = vld [vmem:[#allocation2 + $0x188] sm:$0xff] }
 0x3f3   :  { %v7221_v9 = vmax.f32 %v7125_v1, 0.0  ;;  %v7220_v50 = vmax.f32 %v7124_v2, 0.0  ;;  %v7024_v32 = vld [vmem:[#allocation2 + $0x158] sm:$0xff]  ;;  %v7408_v26 = vld [vmem:[#allocation2 + $0x120] ss:$2 sm:$0xff]  ;;  %6932 = vst.msk [vmem:[#allocation2 + $0x178] sm:$0xff] %vm1925_vm8, %v6836_v55  ;;  %v5604_v16 = vadd.f32 %v5333_v59, %v4558_v39  ;;  %v6838_v22 = vadd.f32 %v15049_v60, %v5793_v36 }
 0x3f4   :  { %v7504_v7 = vld [vmem:[#allocation2 + $0x121] ss:$2 sm:$0xff]  ;;  %v7127_v0 = vadd.f32 %v13923_v61, %v7024_v32  ;;  %v7023_v6 = vld [vmem:[#allocation2 + $0x150] sm:$0xff]  ;;  %6931 = vst.msk [vmem:[#allocation2 + $0x170] sm:$0xff] %vm1925_vm8, %v6835_v35  ;;  %5701 = vst.msk [vmem:[#allocation2 + $0x1a8] sm:$0xff] %vm1925_vm8, %v5605_v48  ;;  %v9619_v12 = vpop.f32.mrb[246].mxu1 }
 0x3f5   :  { %7317 = vst.msk [vmem:[#allocation2 + $0x148] sm:$0xff] %vm1925_vm8, %v7221_v9  ;;  %v7581_v46 = vmax.f32 %v7408_v26, %v7504_v7  ;;  %7316 = vst.msk [vmem:[#allocation2 + $0x140] sm:$0xff] %vm1925_vm8, %v7220_v50  ;;  %v7126_v23 = vadd.f32 %v13923_v61, %v7023_v6  ;;  %v5792_v38 = vld [vmem:[#allocation2 + $0x180] sm:$0xff]  ;;  %v4561_v17 = vld [vmem:[#allocation2 + $0x1b8] sm:$0xff]  ;;  %v5343_v15 = vpop.f32.mrb[247].mxu1 }
 0x3f6   :  { %v7223_v3 = vmax.f32 %v7127_v0, 0.0  ;;  %v15050_v37 = vld [vmem:[#allocation152_spill] sm:$0xff]  ;;  %5700 = vst.msk [vmem:[#allocation2 + $0x1a0] sm:$0xff] %vm1925_vm8, %v5604_v16  ;;  %v4560_v21 = vld [vmem:[#allocation2 + $0x1b0] sm:$0xff]  ;;  %6934 = vst.msk [vmem:[#allocation2 + $0x188] sm:$0xff] %vm1925_vm8, %v6838_v22  ;;  %v5607_v27 = vadd.f32 %v9619_v12, %v4561_v17 }
 0x3f7   :  { %7629 = vst.msk [vmem:[%s14317_s5 + $0x90] sm:$0xff] %vm1925_vm8, %v7581_v46  ;;  %v7222_v57 = vmax.f32 %v7126_v23, 0.0  ;;  %v7026_v4 = vld [vmem:[#allocation2 + $0x168] sm:$0xff]  ;;  %v6837_v11 = vadd.f32 %v15050_v37, %v5792_v38  ;;  %v7410_v31 = vld [vmem:[#allocation2 + $0x130] ss:$2 sm:$0xff]  ;;  %v5606_v1 = vadd.f32 %v5343_v15, %v4560_v21  ;;  %v9622_v44 = vpop.f32.mrb[248].mxu1 }
 0x3f8   :  { %v7506_v14 = vld [vmem:[#allocation2 + $0x131] ss:$2 sm:$0xff]  ;;  %7319 = vst.msk [vmem:[#allocation2 + $0x158] sm:$0xff] %vm1925_vm8, %v7223_v3  ;;  %v7129_v5 = vadd.f32 %v13923_v61, %v7026_v4  ;;  %v7025_v20 = vld [vmem:[#allocation2 + $0x160] sm:$0xff]  ;;  %5703 = vst.msk [vmem:[#allocation2 + $0x1b8] sm:$0xff] %vm1925_vm8, %v5607_v27  ;;  %v5353_v24 = vpop.f32.mrb[249].mxu1 }
 0x3f9   :  { %v7582_v52 = vmax.f32 %v7410_v31, %v7506_v14  ;;  %7318 = vst.msk [vmem:[#allocation2 + $0x150] sm:$0xff] %vm1925_vm8, %v7222_v57  ;;  %v7128_v30 = vadd.f32 %v13923_v61, %v7025_v20  ;;  %6933 = vst.msk [vmem:[#allocation2 + $0x180] sm:$0xff] %vm1925_vm8, %v6837_v11  ;;  %v5795_v41 = vld [vmem:[#allocation2 + $0x198] sm:$0xff]  ;;  %v15051_v8 = vld [vmem:[#allocation157_spill] sm:$0xff] }
 0x3fa   :  { %v7225_v18 = vmax.f32 %v7129_v5, 0.0  ;;  %v6840_v49 = vadd.f32 %v15051_v8, %v5795_v41  ;;  %v5794_v63 = vld [vmem:[#allocation2 + $0x190] sm:$0xff]  ;;  %v7028_v54 = vld [vmem:[#allocation2 + $0x178] sm:$0xff]  ;;  %5702 = vst.msk [vmem:[#allocation2 + $0x1b0] sm:$0xff] %vm1925_vm8, %v5606_v1  ;;  %v4563_v9 = vld [vmem:[#allocation2 + $0x1c8] sm:$0xff] }
 0x3fb   :  { %7630 = vst.msk [vmem:[%s14317_s5 + $0x98] sm:$0xff] %vm1925_vm8, %v7582_v52  ;;  %v7224_v2 = vmax.f32 %v7128_v30, 0.0  ;;  %v6839_v43 = vadd.f32 %v13332_v62, %v5794_v63  ;;  %v4562_v55 = vld [vmem:[#allocation2 + $0x1c0] sm:$0xff]  ;;  %v7131_v32 = vadd.f32 %v13923_v61, %v7028_v54  ;;  %v7027_v35 = vld [vmem:[#allocation2 + $0x170] sm:$0xff]  ;;  %v5609_v42 = vadd.f32 %v9622_v44, %v4563_v9  ;;  %v5797_v26 = vld [vmem:[#allocation2 + $0x1a8] sm:$0xff]  ;;  %v9625_v16 = vpop.f32.mrb[250].mxu1 }
 0x3fc   :  { %v7412_v34 = vld [vmem:[#allocation2 + $0x140] ss:$2 sm:$0xff]  ;;  %v7508_v50 = vld [vmem:[#allocation2 + $0x141] ss:$2 sm:$0xff]  ;;  %7321 = vst.msk [vmem:[#allocation2 + $0x168] sm:$0xff] %vm1925_vm8, %v7225_v18  ;;  %6936 = vst.msk [vmem:[#allocation2 + $0x198] sm:$0xff] %vm1925_vm8, %v6840_v49  ;;  %v7130_v62 = vadd.f32 %v13923_v61, %v7027_v35  ;;  %v5608_v7 = vadd.f32 %v5353_v24, %v4562_v55  ;;  %v6842_v6 = vadd.f32 %v13342_v10, %v5797_v26 }
 0x3fd   :  { %v7583_v39 = vmax.f32 %v7412_v34, %v7508_v50  ;;  %7320 = vst.msk [vmem:[#allocation2 + $0x160] sm:$0xff] %vm1925_vm8, %v7224_v2  ;;  %6935 = vst.msk [vmem:[#allocation2 + $0x190] sm:$0xff] %vm1925_vm8, %v6839_v43  ;;  %v7227_v0 = vmax.f32 %v7131_v32, 0.0  ;;  %v5796_v48 = vld [vmem:[#allocation2 + $0x1a0] sm:$0xff]  ;;  %v7030_v46 = vld [vmem:[#allocation2 + $0x188] sm:$0xff]  ;;  %v5363_v4 = vpop.f32.mrb[251].mxu1 }
 0x3fe   :  { %5705 = vst.msk [vmem:[#allocation2 + $0x1c8] sm:$0xff] %vm1925_vm8, %v5609_v42  ;;  %v7226_v59 = vmax.f32 %v7130_v62, 0.0  ;;  %v6841_v23 = vadd.f32 %v13348_v25, %v5796_v48  ;;  %5704 = vst.msk [vmem:[#allocation2 + $0x1c0] sm:$0xff] %vm1925_vm8, %v5608_v7  ;;  %v4565_v36 = vld [vmem:[#allocation2 + $0x1d8] sm:$0xff]  ;;  %v4564_v3 = vld [vmem:[#allocation2 + $0x1d0] sm:$0xff]  ;;  %v7133_v10 = vadd.f32 %v13923_v61, %v7030_v46 }
 0x3ff   :  { %7631 = vst.msk [vmem:[%s14317_s5 + $0xa0] sm:$0xff] %vm1925_vm8, %v7583_v39  ;;  %7323 = vst.msk [vmem:[#allocation2 + $0x178] sm:$0xff] %vm1925_vm8, %v7227_v0  ;;  %v5611_v57 = vadd.f32 %v9625_v16, %v4565_v36  ;;  %v5799_v11 = vld [vmem:[#allocation2 + $0x1b8] sm:$0xff]  ;;  %v5610_v17 = vadd.f32 %v5363_v4, %v4564_v3  ;;  %v4567_v27 = vld [vmem:[#allocation2 + $0x1e8] sm:$0xff]  ;;  %v9628_v15 = vpop.f32.mrb[252].mxu1 }
 0x400   :  { %v7414_v60 = vld [vmem:[#allocation2 + $0x150] ss:$2 sm:$0xff]  ;;  %v7510_v22 = vld [vmem:[#allocation2 + $0x151] ss:$2 sm:$0xff]  ;;  %v7029_v38 = vld [vmem:[#allocation2 + $0x180] sm:$0xff]  ;;  %6938 = vst.msk [vmem:[#allocation2 + $0x1a8] sm:$0xff] %vm1925_vm8, %v6842_v6  ;;  %v6844_v21 = vadd.f32 %v13358_v29, %v5799_v11  ;;  %v5613_v18 = vadd.f32 %v9628_v15, %v4567_v27 }
 0x401   :  { %v7584_v37 = vmax.f32 %v7414_v60, %v7510_v22  ;;  %7322 = vst.msk [vmem:[#allocation2 + $0x170] sm:$0xff] %vm1925_vm8, %v7226_v59  ;;  %v7132_v25 = vadd.f32 %v13923_v61, %v7029_v38  ;;  %6937 = vst.msk [vmem:[#allocation2 + $0x1a0] sm:$0xff] %vm1925_vm8, %v6841_v23  ;;  %v7229_v12 = vmax.f32 %v7133_v10, 0.0  ;;  %v5798_v31 = vld [vmem:[#allocation2 + $0x1b0] sm:$0xff]  ;;  %v4566_v52 = vld [vmem:[#allocation2 + $0x1e0] sm:$0xff]  ;;  %v5373_v8 = vpop.f32.mrb[253].mxu1 }
 0x402   :  { %5707 = vst.msk [vmem:[#allocation2 + $0x1d8] sm:$0xff] %vm1925_vm8, %v5611_v57  ;;  %v6843_v20 = vadd.f32 %v13364_v45, %v5798_v31  ;;  %5706 = vst.msk [vmem:[#allocation2 + $0x1d0] sm:$0xff] %vm1925_vm8, %v5610_v17  ;;  %v5612_v2 = vadd.f32 %v5373_v8, %v4566_v52  ;;  %v4569_v50 = vld [vmem:[#allocation2 + $0x1f8] sm:$0xff]  ;;  %v4568_v35 = vld [vmem:[#allocation2 + $0x1f0] sm:$0xff] }
 0x403   :  { %7632 = vst.msk [vmem:[%s14317_s5 + $0xa8] sm:$0xff] %vm1925_vm8, %v7584_v37  ;;  %v7228_v14 = vmax.f32 %v7132_v25, 0.0  ;;  %v7032_v5 = vld [vmem:[#allocation2 + $0x198] sm:$0xff]  ;;  %7325 = vst.msk [vmem:[#allocation2 + $0x188] sm:$0xff] %vm1925_vm8, %v7229_v12  ;;  %v9631_v32 = vpop.f32.mrb[254].mxu1  ;;  %v4571_v3 = vld [vmem:[#allocation2 + $0x208] sm:$0xff] }
 0x404   :  { %v7416_v30 = vld [vmem:[#allocation2 + $0x160] ss:$2 sm:$0xff]  ;;  %v7512_v41 = vld [vmem:[#allocation2 + $0x161] ss:$2 sm:$0xff]  ;;  %v7135_v29 = vadd.f32 %v13923_v61, %v7032_v5  ;;  %v7031_v1 = vld [vmem:[#allocation2 + $0x190] sm:$0xff]  ;;  %6940 = vst.msk [vmem:[#allocation2 + $0x1b8] sm:$0xff] %vm1925_vm8, %v6844_v21  ;;  %v5615_v62 = vadd.f32 %v9631_v32, %v4569_v50 }
 0x405   :  { %v7585_v49 = vmax.f32 %v7416_v30, %v7512_v41  ;;  %7324 = vst.msk [vmem:[#allocation2 + $0x180] sm:$0xff] %vm1925_vm8, %v7228_v14  ;;  %v7134_v45 = vadd.f32 %v13923_v61, %v7031_v1  ;;  %6939 = vst.msk [vmem:[#allocation2 + $0x1b0] sm:$0xff] %vm1925_vm8, %v6843_v20  ;;  %v5801_v63 = vld [vmem:[#allocation2 + $0x1c8] sm:$0xff]  ;;  %v5800_v9 = vld [vmem:[#allocation2 + $0x1c0] sm:$0xff]  ;;  %v5383_v26 = vpop.f32.mrb[255].mxu1 }
 0x406   :  { %v7231_v54 = vmax.f32 %v7135_v29, 0.0  ;;  %v6846_v43 = vadd.f32 %v13373_v51, %v5801_v63  ;;  %5709 = vst.msk [vmem:[#allocation2 + $0x1e8] sm:$0xff] %vm1925_vm8, %v5613_v18  ;;  %v6845_v34 = vadd.f32 %v13378_v33, %v5800_v9  ;;  %5708 = vst.msk [vmem:[#allocation2 + $0x1e0] sm:$0xff] %vm1925_vm8, %v5612_v2  ;;  %v5614_v6 = vadd.f32 %v5383_v26, %v4568_v35  ;;  %v4570_v22 = vld [vmem:[#allocation2 + $0x200] sm:$0xff]  ;;  %v4573_v27 = vld [vmem:[#allocation2 + $0x218] sm:$0xff] }
 0x407   :  { %7633 = vst.msk [vmem:[%s14317_s5 + $0xb0] sm:$0xff] %vm1925_vm8, %v7585_v49  ;;  %v7230_v44 = vmax.f32 %v7134_v45, 0.0  ;;  %v7034_v55 = vld [vmem:[#allocation2 + $0x1a8] sm:$0xff]  ;;  %5711 = vst.msk [vmem:[#allocation2 + $0x1f8] sm:$0xff] %vm1925_vm8, %v5615_v62  ;;  %v9634_v60 = vpop.f32.mrb[0].mxu1  ;;  %v4572_v52 = vld [vmem:[#allocation2 + $0x210] sm:$0xff] }
 0x408   :  { %v7418_v42 = vld [vmem:[#allocation2 + $0x170] ss:$2 sm:$0xff]  ;;  %v7514_v24 = vld [vmem:[#allocation2 + $0x171] ss:$2 sm:$0xff]  ;;  %7327 = vst.msk [vmem:[#allocation2 + $0x198] sm:$0xff] %vm1925_vm8, %v7231_v54  ;;  %v7137_v51 = vadd.f32 %v13923_v61, %v7034_v55  ;;  %v7033_v39 = vld [vmem:[#allocation2 + $0x1a0] sm:$0xff]  ;;  %v5617_v4 = vadd.f32 %v9634_v60, %v4571_v3 }
 0x409   :  { %6942 = vst.msk [vmem:[#allocation2 + $0x1c8] sm:$0xff] %vm1925_vm8, %v6846_v43  ;;  %v7586_v7 = vmax.f32 %v7418_v42, %v7514_v24  ;;  %7326 = vst.msk [vmem:[#allocation2 + $0x190] sm:$0xff] %vm1925_vm8, %v7230_v44  ;;  %v7136_v33 = vadd.f32 %v13923_v61, %v7033_v39  ;;  %v5803_v0 = vld [vmem:[#allocation2 + $0x1d8] sm:$0xff]  ;;  %v5802_v46 = vld [vmem:[#allocation2 + $0x1d0] sm:$0xff]  ;;  %v5393_v37 = vpop.f32.mrb[1].mxu1 }
 0x40a   :  { %6941 = vst.msk [vmem:[#allocation2 + $0x1c0] sm:$0xff] %vm1925_vm8, %v6845_v34  ;;  %v7233_v48 = vmax.f32 %v7137_v51, 0.0  ;;  %v6848_v59 = vadd.f32 %v13389_v28, %v5803_v0  ;;  %v6847_v16 = vadd.f32 %v13394_v40, %v5802_v46  ;;  %5710 = vst.msk [vmem:[#allocation2 + $0x1f0] sm:$0xff] %vm1925_vm8, %v5614_v6  ;;  %v5616_v17 = vadd.f32 %v5393_v37, %v4570_v22  ;;  %v4575_v55 = vld [vmem:[#allocation2 + $0x228] sm:$0xff]  ;;  %v4574_v50 = vld [vmem:[#allocation2 + $0x220] sm:$0xff] }
 0x40b   :  { %7634 = vst.msk [vmem:[%s14317_s5 + $0xb8] sm:$0xff] %vm1925_vm8, %v7586_v7  ;;  %v7232_v23 = vmax.f32 %v7136_v33, 0.0  ;;  %v7036_v36 = vld [vmem:[#allocation2 + $0x1b8] sm:$0xff]  ;;  %5713 = vst.msk [vmem:[#allocation2 + $0x208] sm:$0xff] %vm1925_vm8, %v5617_v4  ;;  %v9637_v15 = vpop.f32.mrb[2].mxu1 }
 0x40c   :  { %v7420_v10 = vld [vmem:[#allocation2 + $0x180] ss:$2 sm:$0xff]  ;;  %v7516_v38 = vld [vmem:[#allocation2 + $0x181] ss:$2 sm:$0xff]  ;;  %7329 = vst.msk [vmem:[#allocation2 + $0x1a8] sm:$0xff] %vm1925_vm8, %v7233_v48  ;;  %v7139_v28 = vadd.f32 %v13923_v61, %v7036_v36  ;;  %v7035_v57 = vld [vmem:[#allocation2 + $0x1b0] sm:$0xff]  ;;  %v5619_v1 = vadd.f32 %v9637_v15, %v4573_v27 }
 0x40d   :  { %6944 = vst.msk [vmem:[#allocation2 + $0x1d8] sm:$0xff] %vm1925_vm8, %v6848_v59  ;;  %v7587_v25 = vmax.f32 %v7420_v10, %v7516_v38  ;;  %7328 = vst.msk [vmem:[#allocation2 + $0x1a0] sm:$0xff] %vm1925_vm8, %v7232_v23  ;;  %v7138_v40 = vadd.f32 %v13923_v61, %v7035_v57  ;;  %v5805_v11 = vld [vmem:[#allocation2 + $0x1e8] sm:$0xff]  ;;  %v5804_v31 = vld [vmem:[#allocation2 + $0x1e0] sm:$0xff]  ;;  %v5403_v18 = vpop.f32.mrb[3].mxu1 }
 0x40e   :  { %6943 = vst.msk [vmem:[#allocation2 + $0x1d0] sm:$0xff] %vm1925_vm8, %v6847_v16  ;;  %v7235_v12 = vmax.f32 %v7139_v28, 0.0  ;;  %v6850_v21 = vadd.f32 %v13403_v53, %v5805_v11  ;;  %v6849_v20 = vadd.f32 %v13408_v56, %v5804_v31  ;;  %5712 = vst.msk [vmem:[#allocation2 + $0x200] sm:$0xff] %vm1925_vm8, %v5616_v17  ;;  %v5807_v49 = vld [vmem:[#allocation2 + $0x1f8] sm:$0xff]  ;;  %v5618_v45 = vadd.f32 %v5403_v18, %v4572_v52  ;;  %v4576_v36 = vld [vmem:[#allocation2 + $0x230] sm:$0xff] }
 0x40f   :  { %7635 = vst.msk [vmem:[%s14317_s5 + $0xc0] sm:$0xff] %vm1925_vm8, %v7587_v25  ;;  %v7234_v14 = vmax.f32 %v7138_v40, 0.0  ;;  %v6852_v2 = vadd.f32 %v13417_v13, %v5807_v49  ;;  %5715 = vst.msk [vmem:[#allocation2 + $0x218] sm:$0xff] %vm1925_vm8, %v5619_v1  ;;  %v9640_v34 = vpop.f32.mrb[4].mxu1  ;;  %v4577_v46 = vld [vmem:[#allocation2 + $0x238] sm:$0xff]  ;;  %v4579_v31 = vld [vmem:[#allocation2 + $0x248] sm:$0xff] }
 0x410   :  { %v7038_v5 = vld [vmem:[#allocation2 + $0x1c8] sm:$0xff]  ;;  %v7422_v30 = vld [vmem:[#allocation2 + $0x190] ss:$2 sm:$0xff]  ;;  %v7518_v41 = vld [vmem:[#allocation2 + $0x191] ss:$2 sm:$0xff]  ;;  %7331 = vst.msk [vmem:[#allocation2 + $0x1b8] sm:$0xff] %vm1925_vm8, %v7235_v12  ;;  %v5621_v24 = vadd.f32 %v9640_v34, %v4575_v55 }
 0x411   :  { %v7141_v53 = vadd.f32 %v13923_v61, %v7038_v5  ;;  %v7037_v29 = vld [vmem:[#allocation2 + $0x1c0] sm:$0xff]  ;;  %6946 = vst.msk [vmem:[#allocation2 + $0x1e8] sm:$0xff] %vm1925_vm8, %v6850_v21  ;;  %v7588_v8 = vmax.f32 %v7422_v30, %v7518_v41  ;;  %7330 = vst.msk [vmem:[#allocation2 + $0x1b0] sm:$0xff] %vm1925_vm8, %v7234_v14  ;;  %v5806_v54 = vld [vmem:[#allocation2 + $0x1f0] sm:$0xff]  ;;  %v5413_v51 = vpop.f32.mrb[5].mxu1 }
 0x412   :  { %v7140_v56 = vadd.f32 %v13923_v61, %v7037_v29  ;;  %6945 = vst.msk [vmem:[#allocation2 + $0x1e0] sm:$0xff] %vm1925_vm8, %v6849_v20  ;;  %v6851_v44 = vadd.f32 %v13422_v47, %v5806_v54  ;;  %5714 = vst.msk [vmem:[#allocation2 + $0x210] sm:$0xff] %vm1925_vm8, %v5618_v45  ;;  %v5809_v62 = vld [vmem:[#allocation2 + $0x208] sm:$0xff]  ;;  %v5620_v26 = vadd.f32 %v5413_v51, %v4574_v50  ;;  %v15052_v37 = vld [vmem:[#allocation155_spill] sm:$0xff] }
 0x413   :  { %v7237_v63 = vmax.f32 %v7141_v53, 0.0  ;;  %7636 = vst.msk [vmem:[%s14317_s5 + $0xc8] sm:$0xff] %vm1925_vm8, %v7588_v8  ;;  %6948 = vst.msk [vmem:[#allocation2 + $0x1f8] sm:$0xff] %vm1925_vm8, %v6852_v2  ;;  %v6854_v33 = vadd.f32 %v13431_v19, %v5809_v62  ;;  %v9643_v23 = vpop.f32.mrb[6].mxu1  ;;  %v15053_v12 = vld [vmem:[#allocation158_spill] sm:$0xff]  ;;  %v4578_v5 = vld [vmem:[#allocation2 + $0x240] sm:$0xff] }
 0x414   :  { %v7236_v43 = vmax.f32 %v7140_v56, 0.0  ;;  %v7040_v9 = vld [vmem:[#allocation2 + $0x1d8] sm:$0xff]  ;;  %v7424_v32 = vld [vmem:[#allocation2 + $0x1a0] ss:$2 sm:$0xff]  ;;  %v7520_v35 = vld [vmem:[#allocation2 + $0x1a1] ss:$2 sm:$0xff]  ;;  %v5623_v22 = vadd.f32 %v9643_v23, %v4577_v46 }
 0x415   :  { %7333 = vst.msk [vmem:[#allocation2 + $0x1c8] sm:$0xff] %vm1925_vm8, %v7237_v63  ;;  %v7143_v13 = vadd.f32 %v13923_v61, %v7040_v9  ;;  %v7039_v42 = vld [vmem:[#allocation2 + $0x1d0] sm:$0xff]  ;;  %v7589_v39 = vmax.f32 %v7424_v32, %v7520_v35  ;;  %6947 = vst.msk [vmem:[#allocation2 + $0x1f0] sm:$0xff] %vm1925_vm8, %v6851_v44  ;;  %v5808_v0 = vld [vmem:[#allocation2 + $0x200] sm:$0xff]  ;;  %v5423_v10 = vpop.f32.mrb[7].mxu1 }
 0x416   :  { %7332 = vst.msk [vmem:[#allocation2 + $0x1c0] sm:$0xff] %vm1925_vm8, %v7236_v43  ;;  %v7142_v47 = vadd.f32 %v13923_v61, %v7039_v42  ;;  %5717 = vst.msk [vmem:[#allocation2 + $0x228] sm:$0xff] %vm1925_vm8, %v5621_v24  ;;  %v6853_v59 = vadd.f32 %v13436_v58, %v5808_v0  ;;  %v5811_v28 = vld [vmem:[#allocation2 + $0x218] sm:$0xff]  ;;  %v5622_v57 = vadd.f32 %v5423_v10, %v4576_v36  ;;  %v15054_v56 = vld [vmem:[#allocation156_spill] sm:$0xff] }
 0x417   :  { %v7239_v7 = vmax.f32 %v7143_v13, 0.0  ;;  %7637 = vst.msk [vmem:[%s14317_s5 + $0xd0] sm:$0xff] %vm1925_vm8, %v7589_v39  ;;  %5716 = vst.msk [vmem:[#allocation2 + $0x220] sm:$0xff] %vm1925_vm8, %v5620_v26  ;;  %v6856_v25 = vadd.f32 %v15052_v37, %v5811_v28  ;;  %v9646_v14 = vpop.f32.mrb[8].mxu1  ;;  %v15055_v54 = vld [vmem:[#allocation161_spill] sm:$0xff]  ;;  %v4581_v9 = vld [vmem:[#allocation2 + $0x258] sm:$0xff] }
 0x418   :  { %v7238_v6 = vmax.f32 %v7142_v47, 0.0  ;;  %v7042_v48 = vld [vmem:[#allocation2 + $0x1e8] sm:$0xff]  ;;  %v7426_v16 = vld [vmem:[#allocation2 + $0x1b0] ss:$2 sm:$0xff]  ;;  %v7522_v3 = vld [vmem:[#allocation2 + $0x1b1] ss:$2 sm:$0xff]  ;;  %v5625_v30 = vadd.f32 %v9646_v14, %v4579_v31 }
 0x419   :  { %7335 = vst.msk [vmem:[#allocation2 + $0x1d8] sm:$0xff] %vm1925_vm8, %v7239_v7  ;;  %v7145_v19 = vadd.f32 %v13923_v61, %v7042_v48  ;;  %v7041_v60 = vld [vmem:[#allocation2 + $0x1e0] sm:$0xff]  ;;  %6950 = vst.msk [vmem:[#allocation2 + $0x208] sm:$0xff] %vm1925_vm8, %v6854_v33  ;;  %v7590_v38 = vmax.f32 %v7426_v16, %v7522_v3  ;;  %v5810_v40 = vld [vmem:[#allocation2 + $0x210] sm:$0xff]  ;;  %v5433_v41 = vpop.f32.mrb[9].mxu1 }
 0x41a   :  { %7334 = vst.msk [vmem:[#allocation2 + $0x1d0] sm:$0xff] %vm1925_vm8, %v7238_v6  ;;  %v7144_v58 = vadd.f32 %v13923_v61, %v7041_v60  ;;  %6949 = vst.msk [vmem:[#allocation2 + $0x200] sm:$0xff] %vm1925_vm8, %v6853_v59  ;;  %v7044_v17 = vld [vmem:[#allocation2 + $0x1f8] sm:$0xff]  ;;  %v6855_v21 = vadd.f32 %v15053_v12, %v5810_v40  ;;  %v5624_v18 = vadd.f32 %v5433_v41, %v4578_v5  ;;  %v4580_v55 = vld [vmem:[#allocation2 + $0x250] sm:$0xff] }
 0x41b   :  { %v7241_v4 = vmax.f32 %v7145_v19, 0.0  ;;  %5719 = vst.msk [vmem:[#allocation2 + $0x238] sm:$0xff] %vm1925_vm8, %v5623_v22  ;;  %7638 = vst.msk [vmem:[%s14317_s5 + $0xd8] sm:$0xff] %vm1925_vm8, %v7590_v38  ;;  %v7147_v15 = vadd.f32 %v13923_v61, %v7044_v17  ;;  %v9649_v44 = vpop.f32.mrb[10].mxu1  ;;  %v15056_v26 = vld [vmem:[#allocation159_spill] sm:$0xff]  ;;  %v15057_v48 = vld [vmem:[#allocation162_spill] sm:$0xff] }
 0x41c   :  { %v7240_v11 = vmax.f32 %v7144_v58, 0.0  ;;  %5718 = vst.msk [vmem:[#allocation2 + $0x230] sm:$0xff] %vm1925_vm8, %v5622_v57  ;;  %v7043_v52 = vld [vmem:[#allocation2 + $0x1f0] sm:$0xff]  ;;  %6952 = vst.msk [vmem:[#allocation2 + $0x218] sm:$0xff] %vm1925_vm8, %v6856_v25  ;;  %v5627_v13 = vadd.f32 %v9649_v44, %v4581_v9  ;;  %v5443_v42 = vpop.f32.mrb[11].mxu1  ;;  %v4583_v46 = vld [vmem:[#allocation2 + $0x268] sm:$0xff] }
 0x41d   :  { %v7428_v20 = vld [vmem:[#allocation2 + $0x1c0] ss:$2 sm:$0xff]  ;;  %v7524_v27 = vld [vmem:[#allocation2 + $0x1c1] ss:$2 sm:$0xff]  ;;  %7337 = vst.msk [vmem:[#allocation2 + $0x1e8] sm:$0xff] %vm1925_vm8, %v7241_v4  ;;  %v7146_v29 = vadd.f32 %v13923_v61, %v7043_v52  ;;  %6951 = vst.msk [vmem:[#allocation2 + $0x210] sm:$0xff] %vm1925_vm8, %v6855_v21  ;;  %v5626_v47 = vadd.f32 %v5443_v42, %v4580_v55 }
 0x41e   :  { %v7591_v53 = vmax.f32 %v7428_v20, %v7524_v27  ;;  %7336 = vst.msk [vmem:[#allocation2 + $0x1e0] sm:$0xff] %vm1925_vm8, %v7240_v11  ;;  %v5813_v1 = vld [vmem:[#allocation2 + $0x228] sm:$0xff]  ;;  %v7243_v8 = vmax.f32 %v7147_v15, 0.0  ;;  %v5812_v45 = vld [vmem:[#allocation2 + $0x220] sm:$0xff]  ;;  %5721 = vst.msk [vmem:[#allocation2 + $0x248] sm:$0xff] %vm1925_vm8, %v5625_v30 }
 0x41f   :  { %v6858_v49 = vadd.f32 %v15054_v56, %v5813_v1  ;;  %v7242_v63 = vmax.f32 %v7146_v29, 0.0  ;;  %v6857_v43 = vadd.f32 %v15055_v54, %v5812_v45  ;;  %5720 = vst.msk [vmem:[#allocation2 + $0x240] sm:$0xff] %vm1925_vm8, %v5624_v18  ;;  %5723 = vst.msk [vmem:[#allocation2 + $0x258] sm:$0xff] %vm1925_vm8, %v5627_v13  ;;  %v9652_v23 = vpop.f32.mrb[12].mxu1  ;;  %v4582_v36 = vld [vmem:[#allocation2 + $0x260] sm:$0xff]  ;;  %v15059_v12 = vld [vmem:[#allocation165_spill] sm:$0xff] }
 0x420   :  { %7639 = vst.msk [vmem:[%s14317_s5 + $0xe0] sm:$0xff] %vm1925_vm8, %v7591_v53  ;;  %v7046_v2 = vld [vmem:[#allocation2 + $0x208] sm:$0xff]  ;;  %7339 = vst.msk [vmem:[#allocation2 + $0x1f8] sm:$0xff] %vm1925_vm8, %v7243_v8  ;;  %v5629_v22 = vadd.f32 %v9652_v23, %v4583_v46  ;;  %v5453_v10 = vpop.f32.mrb[13].mxu1  ;;  %v4585_v31 = vld [vmem:[#allocation2 + $0x278] sm:$0xff] }
 0x421   :  { %v7430_v34 = vld [vmem:[#allocation2 + $0x1d0] ss:$2 sm:$0xff]  ;;  %v7526_v50 = vld [vmem:[#allocation2 + $0x1d1] ss:$2 sm:$0xff]  ;;  %v7149_v32 = vadd.f32 %v13923_v61, %v7046_v2  ;;  %v7045_v35 = vld [vmem:[#allocation2 + $0x200] sm:$0xff]  ;;  %6954 = vst.msk [vmem:[#allocation2 + $0x228] sm:$0xff] %vm1925_vm8, %v6858_v49  ;;  %v5628_v57 = vadd.f32 %v5453_v10, %v4582_v36 }
 0x422   :  { %v7592_v24 = vmax.f32 %v7430_v34, %v7526_v50  ;;  %7338 = vst.msk [vmem:[#allocation2 + $0x1f0] sm:$0xff] %vm1925_vm8, %v7242_v63  ;;  %v7148_v51 = vadd.f32 %v13923_v61, %v7045_v35  ;;  %6953 = vst.msk [vmem:[#allocation2 + $0x220] sm:$0xff] %vm1925_vm8, %v6857_v43  ;;  %v5815_v39 = vld [vmem:[#allocation2 + $0x238] sm:$0xff]  ;;  %v15058_v37 = vld [vmem:[#allocation160_spill] sm:$0xff] }
 0x423   :  { %v7245_v62 = vmax.f32 %v7149_v32, 0.0  ;;  %v6860_v7 = vadd.f32 %v15056_v26, %v5815_v39  ;;  %v5814_v33 = vld [vmem:[#allocation2 + $0x230] sm:$0xff]  ;;  %v7048_v6 = vld [vmem:[#allocation2 + $0x218] sm:$0xff]  ;;  %5722 = vst.msk [vmem:[#allocation2 + $0x250] sm:$0xff] %vm1925_vm8, %v5626_v47  ;;  %5725 = vst.msk [vmem:[#allocation2 + $0x268] sm:$0xff] %vm1925_vm8, %v5629_v22  ;;  %v9655_v14 = vpop.f32.mrb[14].mxu1 }
 0x424   :  { %7640 = vst.msk [vmem:[%s14317_s5 + $0xe8] sm:$0xff] %vm1925_vm8, %v7592_v24  ;;  %v7244_v0 = vmax.f32 %v7148_v51, 0.0  ;;  %v6859_v59 = vadd.f32 %v15057_v48, %v5814_v33  ;;  %v7151_v19 = vadd.f32 %v13923_v61, %v7048_v6  ;;  %v7047_v60 = vld [vmem:[#allocation2 + $0x210] sm:$0xff]  ;;  %5724 = vst.msk [vmem:[#allocation2 + $0x260] sm:$0xff] %vm1925_vm8, %v5628_v57  ;;  %v5631_v30 = vadd.f32 %v9655_v14, %v4585_v31  ;;  %v5463_v41 = vpop.f32.mrb[15].mxu1  ;;  %v15060_v56 = vld [vmem:[#allocation163_spill] sm:$0xff] }
 0x425   :  { %v7432_v16 = vld [vmem:[#allocation2 + $0x1e0] ss:$2 sm:$0xff]  ;;  %v7528_v3 = vld [vmem:[#allocation2 + $0x1e1] ss:$2 sm:$0xff]  ;;  %7341 = vst.msk [vmem:[#allocation2 + $0x208] sm:$0xff] %vm1925_vm8, %v7245_v62  ;;  %6956 = vst.msk [vmem:[#allocation2 + $0x238] sm:$0xff] %vm1925_vm8, %v6860_v7  ;;  %v7150_v58 = vadd.f32 %v13923_v61, %v7047_v60 }
 0x426   :  { %v7593_v38 = vmax.f32 %v7432_v16, %v7528_v3  ;;  %7340 = vst.msk [vmem:[#allocation2 + $0x200] sm:$0xff] %vm1925_vm8, %v7244_v0  ;;  %6955 = vst.msk [vmem:[#allocation2 + $0x230] sm:$0xff] %vm1925_vm8, %v6859_v59  ;;  %v5817_v28 = vld [vmem:[#allocation2 + $0x248] sm:$0xff]  ;;  %v7247_v4 = vmax.f32 %v7151_v19, 0.0  ;;  %v5816_v40 = vld [vmem:[#allocation2 + $0x240] sm:$0xff] }
 0x427   :  { %v6862_v25 = vadd.f32 %v15058_v37, %v5817_v28  ;;  %v7246_v11 = vmax.f32 %v7150_v58, 0.0  ;;  %v6861_v21 = vadd.f32 %v15059_v12, %v5816_v40  ;;  %v4584_v5 = vld [vmem:[#allocation2 + $0x270] sm:$0xff]  ;;  %v5819_v1 = vld [vmem:[#allocation2 + $0x258] sm:$0xff]  ;;  %5727 = vst.msk [vmem:[#allocation2 + $0x278] sm:$0xff] %vm1925_vm8, %v5631_v30  ;;  %v4587_v9 = vld [vmem:[#allocation2 + $0x288] sm:$0xff]  ;;  %v9658_v44 = vpop.f32.mrb[16].mxu1 }
 0x428   :  { %7641 = vst.msk [vmem:[%s14317_s5 + $0xf0] sm:$0xff] %vm1925_vm8, %v7593_v38  ;;  %v7050_v17 = vld [vmem:[#allocation2 + $0x228] sm:$0xff]  ;;  %7343 = vst.msk [vmem:[#allocation2 + $0x218] sm:$0xff] %vm1925_vm8, %v7247_v4  ;;  %v5630_v18 = vadd.f32 %v5463_v41, %v4584_v5  ;;  %v6864_v49 = vadd.f32 %v15060_v56, %v5819_v1  ;;  %v15061_v54 = vld [vmem:[#allocation166_spill] sm:$0xff]  ;;  %v5633_v13 = vadd.f32 %v9658_v44, %v4587_v9  ;;  %v5473_v42 = vpop.f32.mrb[17].mxu1 }
 0x429   :  { %v7434_v20 = vld [vmem:[#allocation2 + $0x1f0] ss:$2 sm:$0xff]  ;;  %v7530_v27 = vld [vmem:[#allocation2 + $0x1f1] ss:$2 sm:$0xff]  ;;  %v7153_v15 = vadd.f32 %v13923_v61, %v7050_v17  ;;  %v7049_v52 = vld [vmem:[#allocation2 + $0x220] sm:$0xff]  ;;  %6958 = vst.msk [vmem:[#allocation2 + $0x248] sm:$0xff] %vm1925_vm8, %v6862_v25 }
 0x42a   :  { %v7594_v53 = vmax.f32 %v7434_v20, %v7530_v27  ;;  %7342 = vst.msk [vmem:[#allocation2 + $0x210] sm:$0xff] %vm1925_vm8, %v7246_v11  ;;  %v7152_v29 = vadd.f32 %v13923_v61, %v7049_v52  ;;  %6957 = vst.msk [vmem:[#allocation2 + $0x240] sm:$0xff] %vm1925_vm8, %v6861_v21  ;;  %v5818_v45 = vld [vmem:[#allocation2 + $0x250] sm:$0xff]  ;;  %v4586_v55 = vld [vmem:[#allocation2 + $0x280] sm:$0xff] }
 0x42b   :  { %v7249_v8 = vmax.f32 %v7153_v15, 0.0  ;;  %v6863_v43 = vadd.f32 %v15061_v54, %v5818_v45  ;;  %5726 = vst.msk [vmem:[#allocation2 + $0x270] sm:$0xff] %vm1925_vm8, %v5630_v18  ;;  %6960 = vst.msk [vmem:[#allocation2 + $0x258] sm:$0xff] %vm1925_vm8, %v6864_v49  ;;  %v5821_v39 = vld [vmem:[#allocation2 + $0x268] sm:$0xff]  ;;  %v5632_v47 = vadd.f32 %v5473_v42, %v4586_v55  ;;  %v5820_v33 = vld [vmem:[#allocation2 + $0x260] sm:$0xff]  ;;  %v9661_v23 = vpop.f32.mrb[18].mxu1 }
 0x42c   :  { %7642 = vst.msk [vmem:[%s14317_s5 + $0xf8] sm:$0xff] %vm1925_vm8, %v7594_v53  ;;  %v7248_v63 = vmax.f32 %v7152_v29, 0.0  ;;  %v7052_v2 = vld [vmem:[#allocation2 + $0x238] sm:$0xff]  ;;  %v15062_v26 = vld [vmem:[#allocation164_spill] sm:$0xff]  ;;  %5729 = vst.msk [vmem:[#allocation2 + $0x288] sm:$0xff] %vm1925_vm8, %v5633_v13  ;;  %v5483_v10 = vpop.f32.mrb[19].mxu1 }
 0x42d   :  { %v7436_v34 = vld [vmem:[#allocation2 + $0x200] ss:$2 sm:$0xff]  ;;  %v7532_v50 = vld [vmem:[#allocation2 + $0x201] ss:$2 sm:$0xff]  ;;  %7345 = vst.msk [vmem:[#allocation2 + $0x228] sm:$0xff] %vm1925_vm8, %v7249_v8  ;;  %v7155_v32 = vadd.f32 %v13923_v61, %v7052_v2  ;;  %v7051_v35 = vld [vmem:[#allocation2 + $0x230] sm:$0xff]  ;;  %v6866_v7 = vadd.f32 %v15062_v26, %v5821_v39 }
 0x42e   :  { %v7595_v24 = vmax.f32 %v7436_v34, %v7532_v50  ;;  %7344 = vst.msk [vmem:[#allocation2 + $0x220] sm:$0xff] %vm1925_vm8, %v7248_v63  ;;  %v7154_v51 = vadd.f32 %v13923_v61, %v7051_v35  ;;  %6959 = vst.msk [vmem:[#allocation2 + $0x250] sm:$0xff] %vm1925_vm8, %v6863_v43  ;;  %v15063_v48 = vld [vmem:[#allocation169_spill] sm:$0xff]  ;;  %v4589_v46 = vld [vmem:[#allocation2 + $0x298] sm:$0xff] }
 0x42f   :  { %v7251_v62 = vmax.f32 %v7155_v32, 0.0  ;;  %v6865_v59 = vadd.f32 %v15063_v48, %v5820_v33  ;;  %5728 = vst.msk [vmem:[#allocation2 + $0x280] sm:$0xff] %vm1925_vm8, %v5632_v47  ;;  %v4588_v36 = vld [vmem:[#allocation2 + $0x290] sm:$0xff]  ;;  %6962 = vst.msk [vmem:[#allocation2 + $0x268] sm:$0xff] %vm1925_vm8, %v6866_v7  ;;  %v5635_v22 = vadd.f32 %v9661_v23, %v4589_v46  ;;  %v5823_v28 = vld [vmem:[#allocation2 + $0x278] sm:$0xff]  ;;  %v9664_v14 = vpop.f32.mrb[20].mxu1 }
 0x430   :  { %7643 = vst.msk [vmem:[%s14317_s5 + $0x100] sm:$0xff] %vm1925_vm8, %v7595_v24  ;;  %v7250_v0 = vmax.f32 %v7154_v51, 0.0  ;;  %v7054_v6 = vld [vmem:[#allocation2 + $0x248] sm:$0xff]  ;;  %v5634_v57 = vadd.f32 %v5483_v10, %v4588_v36  ;;  %v15064_v37 = vld [vmem:[#allocation167_spill] sm:$0xff]  ;;  %v5493_v41 = vpop.f32.mrb[21].mxu1  ;;  %v4592_v55 = vld [vmem:[#allocation2 + $0x2b0] sm:$0xff] }
 0x431   :  { %v7438_v16 = vld [vmem:[#allocation2 + $0x210] ss:$2 sm:$0xff]  ;;  %v7534_v3 = vld [vmem:[#allocation2 + $0x211] ss:$2 sm:$0xff]  ;;  %7347 = vst.msk [vmem:[#allocation2 + $0x238] sm:$0xff] %vm1925_vm8, %v7251_v62  ;;  %v7157_v19 = vadd.f32 %v13923_v61, %v7054_v6  ;;  %v7053_v60 = vld [vmem:[#allocation2 + $0x240] sm:$0xff]  ;;  %v6868_v25 = vadd.f32 %v15064_v37, %v5823_v28 }
 0x432   :  { %v7596_v38 = vmax.f32 %v7438_v16, %v7534_v3  ;;  %7346 = vst.msk [vmem:[#allocation2 + $0x230] sm:$0xff] %vm1925_vm8, %v7250_v0  ;;  %v7156_v58 = vadd.f32 %v13923_v61, %v7053_v60  ;;  %6961 = vst.msk [vmem:[#allocation2 + $0x260] sm:$0xff] %vm1925_vm8, %v6865_v59  ;;  %v5822_v40 = vld [vmem:[#allocation2 + $0x270] sm:$0xff]  ;;  %v7056_v17 = vld [vmem:[#allocation2 + $0x258] sm:$0xff] }
 0x433   :  { %v7253_v4 = vmax.f32 %v7157_v19, 0.0  ;;  %5731 = vst.msk [vmem:[#allocation2 + $0x298] sm:$0xff] %vm1925_vm8, %v5635_v22  ;;  %v15065_v12 = vld [vmem:[#allocation171_spill] sm:$0xff]  ;;  %5730 = vst.msk [vmem:[#allocation2 + $0x290] sm:$0xff] %vm1925_vm8, %v5634_v57  ;;  %v4591_v31 = vld [vmem:[#allocation2 + $0x2a8] sm:$0xff]  ;;  %v7159_v15 = vadd.f32 %v13923_v61, %v7056_v17 }
 0x434   :  { %7644 = vst.msk [vmem:[%s14317_s5 + $0x108] sm:$0xff] %vm1925_vm8, %v7596_v38  ;;  %v7252_v11 = vmax.f32 %v7156_v58, 0.0  ;;  %v6867_v21 = vadd.f32 %v15065_v12, %v5822_v40  ;;  %v4590_v5 = vld [vmem:[#allocation2 + $0x2a0] sm:$0xff]  ;;  %6964 = vst.msk [vmem:[#allocation2 + $0x278] sm:$0xff] %vm1925_vm8, %v6868_v25  ;;  %v5637_v30 = vadd.f32 %v9664_v14, %v4591_v31  ;;  %v5825_v1 = vld [vmem:[#allocation2 + $0x288] sm:$0xff]  ;;  %v9667_v44 = vpop.f32.mrb[22].mxu1 }
 0x435   :  { %v7440_v20 = vld [vmem:[#allocation2 + $0x220] ss:$2 sm:$0xff]  ;;  %v7536_v27 = vld [vmem:[#allocation2 + $0x221] ss:$2 sm:$0xff]  ;;  %7349 = vst.msk [vmem:[#allocation2 + $0x248] sm:$0xff] %vm1925_vm8, %v7253_v4  ;;  %v7055_v52 = vld [vmem:[#allocation2 + $0x250] sm:$0xff]  ;;  %v5636_v18 = vadd.f32 %v5493_v41, %v4590_v5 }
 0x436   :  { %v7597_v53 = vmax.f32 %v7440_v20, %v7536_v27  ;;  %7348 = vst.msk [vmem:[#allocation2 + $0x240] sm:$0xff] %vm1925_vm8, %v7252_v11  ;;  %v7158_v29 = vadd.f32 %v13923_v61, %v7055_v52  ;;  %6963 = vst.msk [vmem:[#allocation2 + $0x270] sm:$0xff] %vm1925_vm8, %v6867_v21  ;;  %v7255_v8 = vmax.f32 %v7159_v15, 0.0  ;;  %v15066_v56 = vld [vmem:[#allocation168_spill] sm:$0xff]  ;;  %v4593_v9 = vld [vmem:[#allocation2 + $0x2b8] sm:$0xff]  ;;  %v5503_v42 = vpop.f32.mrb[23].mxu1 }
 0x437   :  { %v6870_v49 = vadd.f32 %v15066_v56, %v5825_v1  ;;  %v5824_v45 = vld [vmem:[#allocation2 + $0x280] sm:$0xff]  ;;  %5733 = vst.msk [vmem:[#allocation2 + $0x2a8] sm:$0xff] %vm1925_vm8, %v5637_v30  ;;  %v7058_v2 = vld [vmem:[#allocation2 + $0x268] sm:$0xff]  ;;  %5732 = vst.msk [vmem:[#allocation2 + $0x2a0] sm:$0xff] %vm1925_vm8, %v5636_v18  ;;  %v5639_v13 = vadd.f32 %v9667_v44, %v4593_v9  ;;  %v5638_v47 = vadd.f32 %v5503_v42, %v4592_v55 }
 0x438   :  { %7645 = vst.msk [vmem:[%s14317_s5 + $0x110] sm:$0xff] %vm1925_vm8, %v7597_v53  ;;  %v7254_v63 = vmax.f32 %v7158_v29, 0.0  ;;  %v15067_v54 = vld [vmem:[#allocation172_spill] sm:$0xff]  ;;  %7351 = vst.msk [vmem:[#allocation2 + $0x258] sm:$0xff] %vm1925_vm8, %v7255_v8  ;;  %v7161_v32 = vadd.f32 %v13923_v61, %v7058_v2  ;;  %v15068_v26 = vld [vmem:[#allocation170_spill] sm:$0xff]  ;;  %v9670_v23 = vpop.f32.mrb[24].mxu1 }
 0x439   :  { %v6869_v43 = vadd.f32 %v15067_v54, %v5824_v45  ;;  %v7442_v34 = vld [vmem:[#allocation2 + $0x230] ss:$2 sm:$0xff]  ;;  %v7538_v50 = vld [vmem:[#allocation2 + $0x231] ss:$2 sm:$0xff]  ;;  %v7057_v35 = vld [vmem:[#allocation2 + $0x260] sm:$0xff]  ;;  %6966 = vst.msk [vmem:[#allocation2 + $0x288] sm:$0xff] %vm1925_vm8, %v6870_v49 }
 0x43a   :  { %v7598_v24 = vmax.f32 %v7442_v34, %v7538_v50  ;;  %7350 = vst.msk [vmem:[#allocation2 + $0x250] sm:$0xff] %vm1925_vm8, %v7254_v63  ;;  %v7160_v51 = vadd.f32 %v13923_v61, %v7057_v35  ;;  %v5827_v39 = vld [vmem:[#allocation2 + $0x298] sm:$0xff]  ;;  %v7257_v62 = vmax.f32 %v7161_v32, 0.0  ;;  %v5826_v33 = vld [vmem:[#allocation2 + $0x290] sm:$0xff]  ;;  %5735 = vst.msk [vmem:[#allocation2 + $0x2b8] sm:$0xff] %vm1925_vm8, %v5639_v13  ;;  %v5513_v10 = vpop.f32.mrb[25].mxu1 }
 0x43b   :  { %6965 = vst.msk [vmem:[#allocation2 + $0x280] sm:$0xff] %vm1925_vm8, %v6869_v43  ;;  %v6872_v7 = vadd.f32 %v15068_v26, %v5827_v39  ;;  %v7060_v6 = vld [vmem:[#allocation2 + $0x278] sm:$0xff]  ;;  %5734 = vst.msk [vmem:[#allocation2 + $0x2b0] sm:$0xff] %vm1925_vm8, %v5638_v47  ;;  %v4595_v46 = vld [vmem:[#allocation2 + $0x2c8] sm:$0xff] }
 0x43c   :  { %7646 = vst.msk [vmem:[%s14317_s5 + $0x118] sm:$0xff] %vm1925_vm8, %v7598_v24  ;;  %v7256_v0 = vmax.f32 %v7160_v51, 0.0  ;;  %v15069_v48 = vld [vmem:[#allocation175_spill] sm:$0xff]  ;;  %7353 = vst.msk [vmem:[#allocation2 + $0x268] sm:$0xff] %vm1925_vm8, %v7257_v62  ;;  %v7163_v19 = vadd.f32 %v13923_v61, %v7060_v6  ;;  %v5641_v22 = vadd.f32 %v9670_v23, %v4595_v46  ;;  %v15070_v37 = vld [vmem:[#allocation173_spill] sm:$0xff]  ;;  %v9673_v31 = vpop.f32.mrb[26].mxu1 }
 0x43d   :  { %v6871_v59 = vadd.f32 %v15069_v48, %v5826_v33  ;;  %v4594_v36 = vld [vmem:[#allocation2 + $0x2c0] sm:$0xff]  ;;  %v7059_v60 = vld [vmem:[#allocation2 + $0x270] sm:$0xff]  ;;  %6968 = vst.msk [vmem:[#allocation2 + $0x298] sm:$0xff] %vm1925_vm8, %v6872_v7  ;;  %v14205_v27 = vld [vmem:[#allocation8] ss:$0 sm:$0xff]  ;;  %v5523_v41 = vpop.f32.mrb[27].mxu1 }
 0x43e   :  { %v7444_v16 = vld [vmem:[#allocation2 + $0x240] ss:$2 sm:$0xff]  ;;  %v7540_v3 = vld [vmem:[#allocation2 + $0x241] ss:$2 sm:$0xff]  ;;  %7352 = vst.msk [vmem:[#allocation2 + $0x260] sm:$0xff] %vm1925_vm8, %v7256_v0  ;;  %v7162_v58 = vadd.f32 %v13923_v61, %v7059_v60  ;;  %v5640_v57 = vadd.f32 %v5513_v10, %v4594_v36  ;;  %v7259_v4 = vmax.f32 %v7163_v19, 0.0 }
 0x43f   :  { %v7599_v38 = vmax.f32 %v7444_v16, %v7540_v3  ;;  %6967 = vst.msk [vmem:[#allocation2 + $0x290] sm:$0xff] %vm1925_vm8, %v6871_v59  ;;  %v5829_v28 = vld [vmem:[#allocation2 + $0x2a8] sm:$0xff]  ;;  %v5828_v40 = vld [vmem:[#allocation2 + $0x2a0] sm:$0xff]  ;;  %5737 = vst.msk [vmem:[#allocation2 + $0x2c8] sm:$0xff] %vm1925_vm8, %v5641_v22 }
 0x440   :  { %v6874_v25 = vadd.f32 %v15070_v37, %v5829_v28  ;;  %v7258_v11 = vmax.f32 %v7162_v58, 0.0  ;;  %v7062_v17 = vld [vmem:[#allocation2 + $0x288] sm:$0xff]  ;;  %5736 = vst.msk [vmem:[#allocation2 + $0x2c0] sm:$0xff] %vm1925_vm8, %v5640_v57  ;;  %v4597_v61 = vld [vmem:[#allocation2 + $0x2d8] sm:$0xff]  ;;  %v4596_v14 = vld [vmem:[#allocation2 + $0x2d0] sm:$0xff]  ;;  %v9676_v44 = vpop.f32.mrb[28].mxu1 }
 0x441   :  { %7647 = vst.msk [vmem:[%s14317_s5 + $0x120] sm:$0xff] %vm1925_vm8, %v7599_v38  ;;  %v15071_v12 = vld [vmem:[#allocation176_spill] sm:$0xff]  ;;  %v7446_v5 = vld [vmem:[#allocation2 + $0x250] ss:$2 sm:$0xff]  ;;  %v7542_v20 = vld [vmem:[#allocation2 + $0x251] ss:$2 sm:$0xff]  ;;  %v7165_v15 = vadd.f32 %v14205_v27, %v7062_v17  ;;  %v5643_v30 = vadd.f32 %v9673_v31, %v4597_v61  ;;  %v5642_v18 = vadd.f32 %v5523_v41, %v4596_v14 }
 0x442   :  { %v6873_v21 = vadd.f32 %v15071_v12, %v5828_v40  ;;  %7355 = vst.msk [vmem:[#allocation2 + $0x278] sm:$0xff] %vm1925_vm8, %v7259_v4  ;;  %v7061_v52 = vld [vmem:[#allocation2 + $0x280] sm:$0xff]  ;;  %6970 = vst.msk [vmem:[#allocation2 + $0x2a8] sm:$0xff] %vm1925_vm8, %v6874_v25  ;;  %v7600_v53 = vmax.f32 %v7446_v5, %v7542_v20  ;;  %v5831_v1 = vld [vmem:[#allocation2 + $0x2b8] sm:$0xff]  ;;  %v5533_v42 = vpop.f32.mrb[29].mxu1 }
 0x443   :  { %7354 = vst.msk [vmem:[#allocation2 + $0x270] sm:$0xff] %vm1925_vm8, %v7258_v11  ;;  %v7164_v29 = vadd.f32 %v14205_v27, %v7061_v52  ;;  %v7261_v8 = vmax.f32 %v7165_v15, 0.0  ;;  %v15072_v56 = vld [vmem:[#allocation174_spill] sm:$0xff]  ;;  %5739 = vst.msk [vmem:[#allocation2 + $0x2d8] sm:$0xff] %vm1925_vm8, %v5643_v30  ;;  %v15073_v54 = vld [vmem:[#allocation181_spill] sm:$0xff] }
 0x444   :  { %6969 = vst.msk [vmem:[#allocation2 + $0x2a0] sm:$0xff] %vm1925_vm8, %v6873_v21  ;;  %v6876_v49 = vadd.f32 %v15072_v56, %v5831_v1  ;;  %v5830_v45 = vld [vmem:[#allocation2 + $0x2b0] sm:$0xff]  ;;  %7648 = vst.msk [vmem:[%s14317_s5 + $0x128] sm:$0xff] %vm1925_vm8, %v7600_v53  ;;  %v7064_v2 = vld [vmem:[#allocation2 + $0x298] sm:$0xff]  ;;  %v9679_v23 = vpop.f32.mrb[30].mxu1 }
 0x445   :  { %v7260_v63 = vmax.f32 %v7164_v29, 0.0  ;;  %v6875_v43 = vadd.f32 %v15073_v54, %v5830_v45  ;;  %5738 = vst.msk [vmem:[#allocation2 + $0x2d0] sm:$0xff] %vm1925_vm8, %v5642_v18  ;;  %v4599_v9 = vld [vmem:[#allocation2 + $0x2e8] sm:$0xff]  ;;  %v4598_v55 = vld [vmem:[#allocation2 + $0x2e0] sm:$0xff]  ;;  %7357 = vst.msk [vmem:[#allocation2 + $0x288] sm:$0xff] %vm1925_vm8, %v7261_v8  ;;  %v7167_v32 = vadd.f32 %v14205_v27, %v7064_v2  ;;  %v5543_v10 = vpop.f32.mrb[31].mxu1 }
 0x446   :  { %v7448_v34 = vld [vmem:[#allocation2 + $0x260] ss:$2 sm:$0xff]  ;;  %v7544_v50 = vld [vmem:[#allocation2 + $0x261] ss:$2 sm:$0xff]  ;;  %v7063_v35 = vld [vmem:[#allocation2 + $0x290] sm:$0xff]  ;;  %6972 = vst.msk [vmem:[#allocation2 + $0x2b8] sm:$0xff] %vm1925_vm8, %v6876_v49  ;;  %v5645_v13 = vadd.f32 %v9676_v44, %v4599_v9  ;;  %v5644_v47 = vadd.f32 %v5533_v42, %v4598_v55 }
 0x447   :  { %v7601_v24 = vmax.f32 %v7448_v34, %v7544_v50  ;;  %7356 = vst.msk [vmem:[#allocation2 + $0x280] sm:$0xff] %vm1925_vm8, %v7260_v63  ;;  %v7166_v51 = vadd.f32 %v14205_v27, %v7063_v35  ;;  %6971 = vst.msk [vmem:[#allocation2 + $0x2b0] sm:$0xff] %vm1925_vm8, %v6875_v43  ;;  %v5833_v39 = vld [vmem:[#allocation2 + $0x2c8] sm:$0xff]  ;;  %v7263_v62 = vmax.f32 %v7167_v32, 0.0  ;;  %v5832_v33 = vld [vmem:[#allocation2 + $0x2c0] sm:$0xff] }
 0x448   :  { %v15074_v26 = vld [vmem:[#allocation177_spill] sm:$0xff]  ;;  %5741 = vst.msk [vmem:[#allocation2 + $0x2e8] sm:$0xff] %vm1925_vm8, %v5645_v13  ;;  %v15075_v48 = vld [vmem:[#allocation182_spill] sm:$0xff]  ;;  %5740 = vst.msk [vmem:[#allocation2 + $0x2e0] sm:$0xff] %vm1925_vm8, %v5644_v47 }
 0x449   :  { %v6878_v7 = vadd.f32 %v15074_v26, %v5833_v39  ;;  %7649 = vst.msk [vmem:[%s14317_s5 + $0x130] sm:$0xff] %vm1925_vm8, %v7601_v24  ;;  %v7262_v0 = vmax.f32 %v7166_v51, 0.0  ;;  %v7066_v6 = vld [vmem:[#allocation2 + $0x2a8] sm:$0xff]  ;;  %v6877_v59 = vadd.f32 %v15075_v48, %v5832_v33  ;;  %v4601_v46 = vld [vmem:[#allocation2 + $0x2f8] sm:$0xff]  ;;  %v4600_v36 = vld [vmem:[#allocation2 + $0x2f0] sm:$0xff] }
 0x44a   :  { %v7450_v16 = vld [vmem:[#allocation2 + $0x270] ss:$2 sm:$0xff]  ;;  %v7546_v3 = vld [vmem:[#allocation2 + $0x271] ss:$2 sm:$0xff]  ;;  %7359 = vst.msk [vmem:[#allocation2 + $0x298] sm:$0xff] %vm1925_vm8, %v7263_v62  ;;  %v7169_v19 = vadd.f32 %v14205_v27, %v7066_v6  ;;  %v5647_v22 = vadd.f32 %v9679_v23, %v4601_v46  ;;  %v5646_v57 = vadd.f32 %v5543_v10, %v4600_v36  ;;  %v15079_v8 = vld [vmem:[#allocation188_spill] sm:$0xff] }
 0x44b   :  { %v7065_v60 = vld [vmem:[#allocation2 + $0x2a0] sm:$0xff]  ;;  %6974 = vst.msk [vmem:[#allocation2 + $0x2c8] sm:$0xff] %vm1925_vm8, %v6878_v7  ;;  %v7602_v38 = vmax.f32 %v7450_v16, %v7546_v3  ;;  %7358 = vst.msk [vmem:[#allocation2 + $0x290] sm:$0xff] %vm1925_vm8, %v7262_v0  ;;  %v5835_v28 = vld [vmem:[#allocation2 + $0x2d8] sm:$0xff] }
 0x44c   :  { %v7168_v58 = vadd.f32 %v14205_v27, %v7065_v60  ;;  %6973 = vst.msk [vmem:[#allocation2 + $0x2c0] sm:$0xff] %vm1925_vm8, %v6877_v59  ;;  %v7265_v4 = vmax.f32 %v7169_v19, 0.0  ;;  %v15076_v37 = vld [vmem:[#allocation178_spill] sm:$0xff]  ;;  %5743 = vst.msk [vmem:[#allocation2 + $0x2f8] sm:$0xff] %vm1925_vm8, %v5647_v22  ;;  %v15077_v12 = vld [vmem:[#allocation187_spill] sm:$0xff] }
 0x44d   :  { %v6880_v25 = vadd.f32 %v15076_v37, %v5835_v28  ;;  %v5834_v40 = vld [vmem:[#allocation2 + $0x2d0] sm:$0xff]  ;;  %7650 = vst.msk [vmem:[%s14317_s5 + $0x138] sm:$0xff] %vm1925_vm8, %v7602_v38  ;;  %v7068_v17 = vld [vmem:[#allocation2 + $0x2b8] sm:$0xff]  ;;  %5742 = vst.msk [vmem:[#allocation2 + $0x2f0] sm:$0xff] %vm1925_vm8, %v5646_v57 }
 0x44e   :  { %v7264_v11 = vmax.f32 %v7168_v58, 0.0  ;;  %v6879_v21 = vadd.f32 %v15077_v12, %v5834_v40  ;;  %v7452_v61 = vld [vmem:[#allocation2 + $0x280] ss:$2 sm:$0xff]  ;;  %v7548_v31 = vld [vmem:[#allocation2 + $0x281] ss:$2 sm:$0xff]  ;;  %7361 = vst.msk [vmem:[#allocation2 + $0x2a8] sm:$0xff] %vm1925_vm8, %v7265_v4  ;;  %v7171_v14 = vadd.f32 %v14205_v27, %v7068_v17 }
 0x44f   :  { %v7067_v5 = vld [vmem:[#allocation2 + $0x2b0] sm:$0xff]  ;;  %6976 = vst.msk [vmem:[#allocation2 + $0x2d8] sm:$0xff] %vm1925_vm8, %v6880_v25  ;;  %v7603_v20 = vmax.f32 %v7452_v61, %v7548_v31  ;;  %v5837_v52 = vld [vmem:[#allocation2 + $0x2e8] sm:$0xff]  ;;  %v15078_v41 = vld [vmem:[#allocation183_spill] sm:$0xff] }
 0x450   :  { %7360 = vst.msk [vmem:[#allocation2 + $0x2a0] sm:$0xff] %vm1925_vm8, %v7264_v11  ;;  %v7170_v15 = vadd.f32 %v14205_v27, %v7067_v5  ;;  %6975 = vst.msk [vmem:[#allocation2 + $0x2d0] sm:$0xff] %vm1925_vm8, %v6879_v21  ;;  %v7267_v30 = vmax.f32 %v7171_v14, 0.0  ;;  %v6882_v53 = vadd.f32 %v15078_v41, %v5837_v52  ;;  %v5836_v29 = vld [vmem:[#allocation2 + $0x2e0] sm:$0xff] }
 0x451   :  { %7651 = vst.msk [vmem:[%s14317_s5 + $0x140] sm:$0xff] %vm1925_vm8, %v7603_v20  ;;  %v6881_v56 = vadd.f32 %v15079_v8, %v5836_v29  ;;  %v15080_v55 = vld [vmem:[#allocation184_spill] sm:$0xff]  ;;  %v15081_v13 = vld [vmem:[#allocation191_spill] sm:$0xff] }
 0x452   :  { %v7266_v1 = vmax.f32 %v7170_v15, 0.0  ;;  %v7070_v18 = vld [vmem:[#allocation2 + $0x2c8] sm:$0xff]  ;;  %v7454_v49 = vld [vmem:[#allocation2 + $0x290] ss:$2 sm:$0xff]  ;;  %v7550_v45 = vld [vmem:[#allocation2 + $0x291] ss:$2 sm:$0xff] }
 0x453   :  { %7363 = vst.msk [vmem:[#allocation2 + $0x2b8] sm:$0xff] %vm1925_vm8, %v7267_v30  ;;  %v7173_v63 = vadd.f32 %v14205_v27, %v7070_v18  ;;  %v7069_v2 = vld [vmem:[#allocation2 + $0x2c0] sm:$0xff]  ;;  %6978 = vst.msk [vmem:[#allocation2 + $0x2e8] sm:$0xff] %vm1925_vm8, %v6882_v53  ;;  %v7604_v54 = vmax.f32 %v7454_v49, %v7550_v45  ;;  %v5839_v9 = vld [vmem:[#allocation2 + $0x2f8] sm:$0xff] }
 0x454   :  { %7362 = vst.msk [vmem:[#allocation2 + $0x2b0] sm:$0xff] %vm1925_vm8, %v7266_v1  ;;  %v7172_v43 = vadd.f32 %v14205_v27, %v7069_v2  ;;  %6977 = vst.msk [vmem:[#allocation2 + $0x2e0] sm:$0xff] %vm1925_vm8, %v6881_v56  ;;  %v6884_v34 = vadd.f32 %v15080_v55, %v5839_v9  ;;  %v5838_v50 = vld [vmem:[#allocation2 + $0x2f0] sm:$0xff] }
 0x455   :  { %v7269_v44 = vmax.f32 %v7173_v63, 0.0  ;;  %7652 = vst.msk [vmem:[%s14317_s5 + $0x148] sm:$0xff] %vm1925_vm8, %v7604_v54  ;;  %v6883_v42 = vadd.f32 %v15081_v13, %v5838_v50 }
 0x456   :  { %v7268_v32 = vmax.f32 %v7172_v43, 0.0  ;;  %v7072_v35 = vld [vmem:[#allocation2 + $0x2d8] sm:$0xff]  ;;  %6980 = vst.msk [vmem:[#allocation2 + $0x2f8] sm:$0xff] %vm1925_vm8, %v6884_v34 }
 0x457   :  { %v7456_v24 = vld [vmem:[#allocation2 + $0x2a0] ss:$2 sm:$0xff]  ;;  %v7552_v51 = vld [vmem:[#allocation2 + $0x2a1] ss:$2 sm:$0xff]  ;;  %7365 = vst.msk [vmem:[#allocation2 + $0x2c8] sm:$0xff] %vm1925_vm8, %v7269_v44  ;;  %v7175_v39 = vadd.f32 %v14205_v27, %v7072_v35  ;;  %v7071_v47 = vld [vmem:[#allocation2 + $0x2d0] sm:$0xff] }
 0x458   :  { %v7605_v62 = vmax.f32 %v7456_v24, %v7552_v51  ;;  %7364 = vst.msk [vmem:[#allocation2 + $0x2c0] sm:$0xff] %vm1925_vm8, %v7268_v32  ;;  %v7174_v26 = vadd.f32 %v14205_v27, %v7071_v47  ;;  %6979 = vst.msk [vmem:[#allocation2 + $0x2f0] sm:$0xff] %vm1925_vm8, %v6883_v42 }
 0x459   :  { %v7271_v7 = vmax.f32 %v7175_v39, 0.0 }
 0x45a   :  { %7653 = vst.msk [vmem:[%s14317_s5 + $0x150] sm:$0xff] %vm1925_vm8, %v7605_v62  ;;  %v7270_v33 = vmax.f32 %v7174_v26, 0.0  ;;  %v7074_v0 = vld [vmem:[#allocation2 + $0x2e8] sm:$0xff] }
 0x45b   :  { %v7458_v6 = vld [vmem:[#allocation2 + $0x2b0] ss:$2 sm:$0xff]  ;;  %v7554_v48 = vld [vmem:[#allocation2 + $0x2b1] ss:$2 sm:$0xff]  ;;  %7367 = vst.msk [vmem:[#allocation2 + $0x2d8] sm:$0xff] %vm1925_vm8, %v7271_v7  ;;  %v7177_v59 = vadd.f32 %v14205_v27, %v7074_v0  ;;  %v7073_v46 = vld [vmem:[#allocation2 + $0x2e0] sm:$0xff] }
 0x45c   :  { %v7606_v23 = vmax.f32 %v7458_v6, %v7554_v48  ;;  %7366 = vst.msk [vmem:[#allocation2 + $0x2d0] sm:$0xff] %vm1925_vm8, %v7270_v33  ;;  %v7176_v36 = vadd.f32 %v14205_v27, %v7073_v46 }
 0x45d   :  { %v7273_v16 = vmax.f32 %v7177_v59, 0.0  ;;  %v7076_v19 = vld [vmem:[#allocation2 + $0x2f8] sm:$0xff] }
 0x45e   :  { %7654 = vst.msk [vmem:[%s14317_s5 + $0x158] sm:$0xff] %vm1925_vm8, %v7606_v23  ;;  %v7272_v3 = vmax.f32 %v7176_v36, 0.0  ;;  %v7179_v10 = vadd.f32 %v14205_v27, %v7076_v19 }
 0x45f   :  { %v7460_v60 = vld [vmem:[#allocation2 + $0x2c0] ss:$2 sm:$0xff]  ;;  %v7556_v22 = vld [vmem:[#allocation2 + $0x2c1] ss:$2 sm:$0xff]  ;;  %7369 = vst.msk [vmem:[#allocation2 + $0x2e8] sm:$0xff] %vm1925_vm8, %v7273_v16  ;;  %v7075_v38 = vld [vmem:[#allocation2 + $0x2f0] sm:$0xff] }
 0x460   :  { %v7607_v58 = vmax.f32 %v7460_v60, %v7556_v22  ;;  %7368 = vst.msk [vmem:[#allocation2 + $0x2e0] sm:$0xff] %vm1925_vm8, %v7272_v3  ;;  %v7178_v28 = vadd.f32 %v14205_v27, %v7075_v38  ;;  %v7275_v57 = vmax.f32 %v7179_v10, 0.0 }
 0x462   :  { %7655 = vst.msk [vmem:[%s14317_s5 + $0x160] sm:$0xff] %vm1925_vm8, %v7607_v58  ;;  %v7274_v4 = vmax.f32 %v7178_v28, 0.0  ;;  %7371 = vst.msk [vmem:[#allocation2 + $0x2f8] sm:$0xff] %vm1925_vm8, %v7275_v57 }
 0x463   :  { %v7462_v37 = vld [vmem:[#allocation2 + $0x2d0] ss:$2 sm:$0xff]  ;;  %v7558_v25 = vld [vmem:[#allocation2 + $0x2d1] ss:$2 sm:$0xff] }
 0x464   :  { %v7608_v40 = vmax.f32 %v7462_v37, %v7558_v25  ;;  %7370 = vst.msk [vmem:[#allocation2 + $0x2f0] sm:$0xff] %vm1925_vm8, %v7274_v4 }
 0x466   :  { %7656 = vst.msk [vmem:[%s14317_s5 + $0x168] sm:$0xff] %vm1925_vm8, %v7608_v40 }
 0x467   :  { %v7464_v27 = vld [vmem:[#allocation2 + $0x2e0] ss:$2 sm:$0xff]  ;;  %v7560_v11 = vld [vmem:[#allocation2 + $0x2e1] ss:$2 sm:$0xff] }
 0x468   :  { %v7609_v17 = vmax.f32 %v7464_v27, %v7560_v11 }
 0x46a   :  { %7657 = vst.msk [vmem:[%s14317_s5 + $0x170] sm:$0xff] %vm1925_vm8, %v7609_v17 }
 0x46b   :  { %v7466_v12 = vld [vmem:[#allocation2 + $0x2f0] ss:$2 sm:$0xff]  ;;  %v7562_v21 = vld [vmem:[#allocation2 + $0x2f1] ss:$2 sm:$0xff] }
 0x46c   :  { %v7610_v61 = vmax.f32 %v7466_v12, %v7562_v21 }
 0x46e   :  { %7658 = vst.msk [vmem:[%s14317_s5 + $0x178] sm:$0xff] %vm1925_vm8, %v7610_v61 }
 0x46f   :  { %7663 = vsyncpa [#allocation4], 1 }
 0x470   :  { %7664 = vsyncpa [#allocation6], 1 }
 0x471   :  { %7665 = vsyncpa [#allocation9], 1 }

</bundles_post_ra>
